<compile_context>
chip_gen: v7x
topology: tpu7x:2x2x1
jax: 0.10.0
libtpu: 0.0.40
codegen_flags: <defaults>
</compile_context>

<pallas_src>
import numpy as np
import jax
import jax.numpy as jnp
from jax.experimental import pallas as pl
from jax.experimental.pallas import tpu as pltpu

EPS = 1e-5


# --------------------------------------------------------------------------------------
# In-kernel compute helpers (operate on (C, M) values, M = H*W on the lane axis)
# --------------------------------------------------------------------------------------
def _perturb_layer(x, p):
    """PerturbLayer / PerturbLayerFirst, filter_size == 0 path, all masks vectorized.

    x: (in_c, M).  p["noise"]: (nmasks, M) level-scaled noise (shared over channels);
    p["pre_s"/"pre_b"]: (nmasks, in_c) folded BN over the perturbed maps;
    p["w"]: (cg, nmasks, in_c) grouped-conv weight, slice-major output order;
    p["place"]: (cg, out_c, in_c) 0/1 row-placement (None when cg == 1);
    p["post_s"/"post_b"]: (out_c, 1) folded conv-bias + output BN.
    """
    noise = p["noise"][...]
    pre_s = p["pre_s"][...][:, :, None]
    pre_b = p["pre_b"][...][:, :, None]
    # (nmasks, in_c, M): BN + sigmoid of every (channel, mask) map in one broadcast op (VPU+EUP).
    a = jax.nn.sigmoid((x[None, :, :] + noise[:, None, :]) * pre_s + pre_b)

    w_ref = p["w"]
    cg = w_ref.shape[0]
    if cg == 1:
        # out_c == in_c: pure-VPU weighted sum over masks.
        lin = jnp.sum(a * w_ref[0][:, :, None], axis=0)                  # (in_c, M)
    else:
        place_ref = p["place"]
        lin = None
        for j in range(cg):                                              # cg <= 4, static
            piece = jnp.sum(a * w_ref[j][:, :, None], axis=0)            # (in_c, M), VPU
            t = jnp.dot(place_ref[j], piece,
                        preferred_element_type=jnp.float32)              # place rows -> (out_c, M)
            lin = t if lin is None else lin + t
    return jax.nn.sigmoid(lin * p["post_s"][...] + p["post_b"][...])


def _conv_bn(x, p, relu):
    """1x1 conv (channel mixing) + folded BN (+ReLU): (out_c, in_c) @ (in_c, M)."""
    z = jnp.dot(p["w"][...], x, preferred_element_type=jnp.float32)
    z = z * p["scale"][...] + p["shift"][...]
    return jnp.maximum(z, 0.0) if relu else z


def _residual_block(x, blk):
    """PerturbLayer -> pool(stride) -> PerturbLayer, + shortcut, add, ReLU."""
    mid = _perturb_layer(x, blk["p1"])
    if blk["pool_sel"] is not None:
        sel = blk["pool_sel"]                                            # (4, HW, HW//4) ref
        # TODO(synk): MaxPool2d(2, 2) assumed; the 4 window corners are selected by matmul.
        mp = jnp.dot(mid, sel[0], preferred_element_type=jnp.float32)
        for k in range(1, 4):
            mp = jnp.maximum(mp, jnp.dot(mid, sel[k],
                                         preferred_element_type=jnp.float32))
        mid = mp
        # stride-2 shortcut subsample == picking the (0,0) corner of each 2x2 window.
        x_sc = jnp.dot(x, sel[0], preferred_element_type=jnp.float32)
    else:
        x_sc = x
    y = _perturb_layer(mid, blk["p2"])
    if blk["shortcut"] is not None:
        res = _conv_bn(x_sc, blk["shortcut"], relu=False)
    else:
        res = x_sc
    return jnp.maximum(y + res, 0.0)


def _make_kernel(treedef, n_leaves):
    def kernel(*refs):
        x_ref = refs[0]
        param_refs = refs[1:1 + n_leaves]
        o_ref = refs[1 + n_leaves]
        p = jax.tree_util.tree_unflatten(treedef, list(param_refs))

        x = x_ref[...]                                                   # (3, H*W)
        x = _perturb_layer(x, p["pre_perturb"])                          # (3*nf, H*W)
        x = _conv_bn(x, p["pre_conv"], relu=True)                        # (nf, H*W)
        for blocks in p["layers"]:
            for blk in blocks:
                x = _residual_block(x, blk)
        # AvgPool2d(2, stride=1) on the final 2x2 map == global mean, then Linear.
        pooled = jnp.mean(x, axis=1, keepdims=True)                      # (8*nf, 1)
        logits = jnp.dot(p["fc"]["w"][...], pooled,
                         preferred_element_type=jnp.float32) + p["fc"]["b"][...]
        o_ref[...] = logits                                              # (nclasses, 1)
    return kernel


# --------------------------------------------------------------------------------------
# Single fused pallas_call wrapper
# --------------------------------------------------------------------------------------
def _full_spec(shape):
    nd = len(shape)
    return pl.BlockSpec(tuple(shape), lambda b, _nd=nd: (0,) * _nd)


def perturb_resnet_forward(params, x_nchw):
    n, c0, h, w = x_nchw.shape
    x = x_nchw.reshape(n, c0, h * w).astype(jnp.float32)                 # (N, C, H*W), no transpose
    leaves, treedef = jax.tree_util.tree_flatten(params)
    nclasses = params["fc"]["w"].shape[0]
    kernel = _make_kernel(treedef, len(leaves))

    in_specs = [pl.BlockSpec((None, c0, h * w), lambda b: (b, 0, 0))]
    in_specs += [_full_spec(l.shape) for l in leaves]                    # weights: resident in VMEM

    out = pl.pallas_call(
        kernel,
        out_shape=jax.ShapeDtypeStruct((n, nclasses, 1), jnp.float32),
        grid=(n,),
        in_specs=in_specs,
        out_specs=pl.BlockSpec((None, nclasses, 1), lambda b: (b, 0, 0)),
        compiler_params=pltpu.CompilerParams(dimension_semantics=("parallel",)),
    )(x, *leaves)
    return out[:, :, 0]                                                  # (N, nclasses)


# --------------------------------------------------------------------------------------
# Parameter initialization (deterministic, PyTorch __init__ shapes / bounds / buffers)
# --------------------------------------------------------------------------------------
def _bn_fold(c):
    gamma = jnp.ones((c,), jnp.float32)
    beta = jnp.zeros((c,), jnp.float32)
    mean = jnp.zeros((c,), jnp.float32)
    var = jnp.ones((c,), jnp.float32)
    scale = gamma / jnp.sqrt(var + EPS)
    shift = beta - mean * scale
    return scale, shift


def _pool_selects(hh, ww):
    """(4, H*W, H*W//4) 0/1 matrices picking the 4 corners of every 2x2/stride-2 window."""
    h2, w2 = hh // 2, ww // 2
    sel = np.zeros((4, hh * ww, h2 * w2), np.float32)
    for k, (di, dj) in enumerate(((0, 0), (0, 1), (1, 0), (1, 1))):
        for i in range(h2):
            for j in range(w2):
                sel[k, (2 * i + di) * ww + (2 * j + dj), i * w2 + j] = 1.0
    return jnp.asarray(sel)


def init_perturb_layer(key, in_c, out_c, nmasks, level, size):
    # PerturbLayer(First), filter_size=0, unique_masks=False, noise_type='uniform', mix_maps=None:
    # noise ~ U(-1,1); BN(in_c*nmasks) -> sigmoid -> Conv1x1(groups=in_c, bias=True) -> BN -> sigmoid
    assert out_c % in_c == 0
    cg = out_c // in_c
    k_n, k_w, k_b = jax.random.split(key, 3)
    m = size * size
    noise = jax.random.uniform(k_n, (nmasks, m), jnp.float32, -1.0, 1.0) * level
    bound = 1.0 / float(nmasks) ** 0.5                  # Conv2d fan_in = in_c*nmasks/groups = nmasks
    w = jax.random.uniform(k_w, (cg, nmasks, in_c), jnp.float32, -bound, bound)
    bias = jax.random.uniform(k_b, (out_c, 1), jnp.float32, -bound, bound)
    bn1_s, bn1_b = _bn_fold(in_c * nmasks)              # BN1 channel index = g*nmasks + n
    bn2_s, bn2_b = _bn_fold(out_c)
    place = None
    if cg > 1:
        pm = np.zeros((cg, out_c, in_c), np.float32)    # slice-major output channel p = j*in_c + g
        for j in range(cg):
            for g in range(in_c):
                pm[j, j * in_c + g, g] = 1.0
        place = jnp.asarray(pm)
    return dict(
        noise=noise,
        pre_s=bn1_s.reshape(in_c, nmasks).T,            # (nmasks, in_c)
        pre_b=bn1_b.reshape(in_c, nmasks).T,
        w=w,
        place=place,
        post_s=bn2_s.reshape(out_c, 1),
        post_b=bn2_s.reshape(out_c, 1) * bias + bn2_b.reshape(out_c, 1),   # conv bias folded in
    )


def init_conv_bn(key, in_c, out_c):
    bound = 1.0 / float(in_c) ** 0.5
    w = jax.random.uniform(key, (out_c, in_c), jnp.float32, -bound, bound)
    s, sh = _bn_fold(out_c)
    return dict(w=w, scale=s.reshape(out_c, 1), shift=sh.reshape(out_c, 1))


def init_block(key, in_c, out_c, stride, nmasks, level, in_size):
    assert stride in (1, 2)
    k1, k2, k3 = jax.random.split(key, 3)
    p1 = init_perturb_layer(k1, in_c, out_c, nmasks, level, in_size)
    p2 = init_perturb_layer(k2, out_c, out_c, nmasks, level, in_size // stride)
    shortcut = None
    if stride != 1 or in_c != out_c:                    # _make_layer shortcut condition
        shortcut = init_conv_bn(k3, in_c, out_c)
    pool_sel = _pool_selects(in_size, in_size) if stride != 1 else None
    return dict(p1=p1, p2=p2, shortcut=shortcut, pool_sel=pool_sel)


def init_perturb_resnet(key, *, nfilters=4, nclasses=10, nmasks=2, input_size=16,
                        level=0.1, scale_noise=1, nblocks=(1, 1, 1, 1)):
    keys = jax.random.split(key, 32)
    params = {}
    params["pre_perturb"] = init_perturb_layer(
        keys[0], 3, 3 * nfilters, nfilters * 5, level * scale_noise * 20, input_size)
    params["pre_conv"] = init_conv_bn(keys[1], 3 * nfilters, nfilters)

    cfg = [(1 * nfilters, nblocks[0], 1, input_size),
           (2 * nfilters, nblocks[1], 2, input_size),
           (4 * nfilters, nblocks[2], 2, input_size // 2),
           (8 * nfilters, nblocks[3], 2, input_size // 4)]
    in_c = nfilters
    layers = []
    ki = 2
    for out_c, nb, stride, in_size in cfg:
        blocks = [init_block(keys[ki], in_c, out_c, stride, nmasks, level, in_size)]
        ki += 1
        in_c = out_c
        for _ in range(1, nb):
            blocks.append(init_block(keys[ki], in_c, out_c, 1, nmasks, level, in_size // stride))
            ki += 1
        layers.append(blocks)
    params["layers"] = layers

    kw, kb = jax.random.split(keys[31])
    bound = 1.0 / float(8 * nfilters) ** 0.5
    params["fc"] = dict(
        w=jax.random.uniform(kw, (nclasses, 8 * nfilters), jnp.float32, -bound, bound),
        b=jax.random.uniform(kb, (nclasses, 1), jnp.float32, -bound, bound))
    return params


if __name__ == "__main__":
    key = jax.random.PRNGKey(0)
    k_param, k_x = jax.random.split(key)
    params = init_perturb_resnet(k_param, nfilters=4, nclasses=10, nmasks=2,
                                 input_size=16, level=0.1, scale_noise=1,
                                 nblocks=(1, 1, 1, 1))
    x = jax.random.normal(k_x, (2, 3, 16, 16), jnp.float32)      # NCHW, like PyTorch
    fwd = jax.jit(lambda inp: perturb_resnet_forward(params, inp))
    out = fwd(x)
    jax.block_until_ready(out)
    assert out.shape == (2, 10) and out.dtype == jnp.float32
    assert bool(jnp.all(jnp.isfinite(out)))
    print("KERNEL_OK")
</pallas_src>

<mosaic_0001>
module attributes {stable_mosaic.version = 11 : i64} {
  func.func @kernel(%arg0: i32, %arg1: memref<1x3x256xf32, #tpu.memory_space<vmem>>, %arg2: memref<10x1xf32, #tpu.memory_space<vmem>>, %arg3: memref<10x32xf32, #tpu.memory_space<vmem>>, %arg4: memref<2x256xf32, #tpu.memory_space<vmem>>, %arg5: memref<4x1xf32, #tpu.memory_space<vmem>>, %arg6: memref<4x1xf32, #tpu.memory_space<vmem>>, %arg7: memref<2x4xf32, #tpu.memory_space<vmem>>, %arg8: memref<2x4xf32, #tpu.memory_space<vmem>>, %arg9: memref<1x2x4xf32, #tpu.memory_space<vmem>>, %arg10: memref<2x256xf32, #tpu.memory_space<vmem>>, %arg11: memref<4x1xf32, #tpu.memory_space<vmem>>, %arg12: memref<4x1xf32, #tpu.memory_space<vmem>>, %arg13: memref<2x4xf32, #tpu.memory_space<vmem>>, %arg14: memref<2x4xf32, #tpu.memory_space<vmem>>, %arg15: memref<1x2x4xf32, #tpu.memory_space<vmem>>, %arg16: memref<2x256xf32, #tpu.memory_space<vmem>>, %arg17: memref<2x8x4xf32, #tpu.memory_space<vmem>>, %arg18: memref<8x1xf32, #tpu.memory_space<vmem>>, %arg19: memref<8x1xf32, #tpu.memory_space<vmem>>, %arg20: memref<2x4xf32, #tpu.memory_space<vmem>>, %arg21: memref<2x4xf32, #tpu.memory_space<vmem>>, %arg22: memref<2x2x4xf32, #tpu.memory_space<vmem>>, %arg23: memref<2x64xf32, #tpu.memory_space<vmem>>, %arg24: memref<8x1xf32, #tpu.memory_space<vmem>>, %arg25: memref<8x1xf32, #tpu.memory_space<vmem>>, %arg26: memref<2x8xf32, #tpu.memory_space<vmem>>, %arg27: memref<2x8xf32, #tpu.memory_space<vmem>>, %arg28: memref<1x2x8xf32, #tpu.memory_space<vmem>>, %arg29: memref<4x256x64xf32, #tpu.memory_space<vmem>>, %arg30: memref<8x1xf32, #tpu.memory_space<vmem>>, %arg31: memref<8x1xf32, #tpu.memory_space<vmem>>, %arg32: memref<8x4xf32, #tpu.memory_space<vmem>>, %arg33: memref<2x64xf32, #tpu.memory_space<vmem>>, %arg34: memref<2x16x8xf32, #tpu.memory_space<vmem>>, %arg35: memref<16x1xf32, #tpu.memory_space<vmem>>, %arg36: memref<16x1xf32, #tpu.memory_space<vmem>>, %arg37: memref<2x8xf32, #tpu.memory_space<vmem>>, %arg38: memref<2x8xf32, #tpu.memory_space<vmem>>, %arg39: memref<2x2x8xf32, #tpu.memory_space<vmem>>, %arg40: memref<2x16xf32, #tpu.memory_space<vmem>>, %arg41: memref<16x1xf32, #tpu.memory_space<vmem>>, %arg42: memref<16x1xf32, #tpu.memory_space<vmem>>, %arg43: memref<2x16xf32, #tpu.memory_space<vmem>>, %arg44: memref<2x16xf32, #tpu.memory_space<vmem>>, %arg45: memref<1x2x16xf32, #tpu.memory_space<vmem>>, %arg46: memref<4x64x16xf32, #tpu.memory_space<vmem>>, %arg47: memref<16x1xf32, #tpu.memory_space<vmem>>, %arg48: memref<16x1xf32, #tpu.memory_space<vmem>>, %arg49: memref<16x8xf32, #tpu.memory_space<vmem>>, %arg50: memref<2x16xf32, #tpu.memory_space<vmem>>, %arg51: memref<2x32x16xf32, #tpu.memory_space<vmem>>, %arg52: memref<32x1xf32, #tpu.memory_space<vmem>>, %arg53: memref<32x1xf32, #tpu.memory_space<vmem>>, %arg54: memref<2x16xf32, #tpu.memory_space<vmem>>, %arg55: memref<2x16xf32, #tpu.memory_space<vmem>>, %arg56: memref<2x2x16xf32, #tpu.memory_space<vmem>>, %arg57: memref<2x4xf32, #tpu.memory_space<vmem>>, %arg58: memref<32x1xf32, #tpu.memory_space<vmem>>, %arg59: memref<32x1xf32, #tpu.memory_space<vmem>>, %arg60: memref<2x32xf32, #tpu.memory_space<vmem>>, %arg61: memref<2x32xf32, #tpu.memory_space<vmem>>, %arg62: memref<1x2x32xf32, #tpu.memory_space<vmem>>, %arg63: memref<4x16x4xf32, #tpu.memory_space<vmem>>, %arg64: memref<32x1xf32, #tpu.memory_space<vmem>>, %arg65: memref<32x1xf32, #tpu.memory_space<vmem>>, %arg66: memref<32x16xf32, #tpu.memory_space<vmem>>, %arg67: memref<4x1xf32, #tpu.memory_space<vmem>>, %arg68: memref<4x1xf32, #tpu.memory_space<vmem>>, %arg69: memref<4x12xf32, #tpu.memory_space<vmem>>, %arg70: memref<20x256xf32, #tpu.memory_space<vmem>>, %arg71: memref<4x12x3xf32, #tpu.memory_space<vmem>>, %arg72: memref<12x1xf32, #tpu.memory_space<vmem>>, %arg73: memref<12x1xf32, #tpu.memory_space<vmem>>, %arg74: memref<20x3xf32, #tpu.memory_space<vmem>>, %arg75: memref<20x3xf32, #tpu.memory_space<vmem>>, %arg76: memref<4x20x3xf32, #tpu.memory_space<vmem>>, %arg77: memref<1x10x1xf32, #tpu.memory_space<vmem>>) attributes {dimension_semantics = [#tpu.dimension_semantics<parallel>], iteration_bounds = array<i64: 2>, scalar_prefetch = 0 : i64, scratch_operands = 0 : i64, tpu.core_type = #tpu.core_type<tc>, window_params = [{transform_indices = @transform_0, window_bounds = array<i64: 1, 3, 256>}, {pipeline_mode = #tpu.pipeline_mode<synchronous>, transform_indices = @transform_1, window_bounds = array<i64: 10, 1>}, {pipeline_mode = #tpu.pipeline_mode<synchronous>, transform_indices = @transform_2, window_bounds = array<i64: 10, 32>}, {pipeline_mode = #tpu.pipeline_mode<synchronous>, transform_indices = @transform_3, window_bounds = array<i64: 2, 256>}, {pipeline_mode = #tpu.pipeline_mode<synchronous>, transform_indices = @transform_4, window_bounds = array<i64: 4, 1>}, {pipeline_mode = #tpu.pipeline_mode<synchronous>, transform_indices = @transform_5, window_bounds = array<i64: 4, 1>}, {pipeline_mode = #tpu.pipeline_mode<synchronous>, transform_indices = @transform_6, window_bounds = array<i64: 2, 4>}, {pipeline_mode = #tpu.pipeline_mode<synchronous>, transform_indices = @transform_7, window_bounds = array<i64: 2, 4>}, {pipeline_mode = #tpu.pipeline_mode<synchronous>, transform_indices = @transform_8, window_bounds = array<i64: 1, 2, 4>}, {pipeline_mode = #tpu.pipeline_mode<synchronous>, transform_indices = @transform_9, window_bounds = array<i64: 2, 256>}, {pipeline_mode = #tpu.pipeline_mode<synchronous>, transform_indices = @transform_10, window_bounds = array<i64: 4, 1>}, {pipeline_mode = #tpu.pipeline_mode<synchronous>, transform_indices = @transform_11, window_bounds = array<i64: 4, 1>}, {pipeline_mode = #tpu.pipeline_mode<synchronous>, transform_indices = @transform_12, window_bounds = array<i64: 2, 4>}, {pipeline_mode = #tpu.pipeline_mode<synchronous>, transform_indices = @transform_13, window_bounds = array<i64: 2, 4>}, {pipeline_mode = #tpu.pipeline_mode<synchronous>, transform_indices = @transform_14, window_bounds = array<i64: 1, 2, 4>}, {pipeline_mode = #tpu.pipeline_mode<synchronous>, transform_indices = @transform_15, window_bounds = array<i64: 2, 256>}, {pipeline_mode = #tpu.pipeline_mode<synchronous>, transform_indices = @transform_16, window_bounds = array<i64: 2, 8, 4>}, {pipeline_mode = #tpu.pipeline_mode<synchronous>, transform_indices = @transform_17, window_bounds = array<i64: 8, 1>}, {pipeline_mode = #tpu.pipeline_mode<synchronous>, transform_indices = @transform_18, window_bounds = array<i64: 8, 1>}, {pipeline_mode = #tpu.pipeline_mode<synchronous>, transform_indices = @transform_19, window_bounds = array<i64: 2, 4>}, {pipeline_mode = #tpu.pipeline_mode<synchronous>, transform_indices = @transform_20, window_bounds = array<i64: 2, 4>}, {pipeline_mode = #tpu.pipeline_mode<synchronous>, transform_indices = @transform_21, window_bounds = array<i64: 2, 2, 4>}, {pipeline_mode = #tpu.pipeline_mode<synchronous>, transform_indices = @transform_22, window_bounds = array<i64: 2, 64>}, {pipeline_mode = #tpu.pipeline_mode<synchronous>, transform_indices = @transform_23, window_bounds = array<i64: 8, 1>}, {pipeline_mode = #tpu.pipeline_mode<synchronous>, transform_indices = @transform_24, window_bounds = array<i64: 8, 1>}, {pipeline_mode = #tpu.pipeline_mode<synchronous>, transform_indices = @transform_25, window_bounds = array<i64: 2, 8>}, {pipeline_mode = #tpu.pipeline_mode<synchronous>, transform_indices = @transform_26, window_bounds = array<i64: 2, 8>}, {pipeline_mode = #tpu.pipeline_mode<synchronous>, transform_indices = @transform_27, window_bounds = array<i64: 1, 2, 8>}, {pipeline_mode = #tpu.pipeline_mode<synchronous>, transform_indices = @transform_28, window_bounds = array<i64: 4, 256, 64>}, {pipeline_mode = #tpu.pipeline_mode<synchronous>, transform_indices = @transform_29, window_bounds = array<i64: 8, 1>}, {pipeline_mode = #tpu.pipeline_mode<synchronous>, transform_indices = @transform_30, window_bounds = array<i64: 8, 1>}, {pipeline_mode = #tpu.pipeline_mode<synchronous>, transform_indices = @transform_31, window_bounds = array<i64: 8, 4>}, {pipeline_mode = #tpu.pipeline_mode<synchronous>, transform_indices = @transform_32, window_bounds = array<i64: 2, 64>}, {pipeline_mode = #tpu.pipeline_mode<synchronous>, transform_indices = @transform_33, window_bounds = array<i64: 2, 16, 8>}, {pipeline_mode = #tpu.pipeline_mode<synchronous>, transform_indices = @transform_34, window_bounds = array<i64: 16, 1>}, {pipeline_mode = #tpu.pipeline_mode<synchronous>, transform_indices = @transform_35, window_bounds = array<i64: 16, 1>}, {pipeline_mode = #tpu.pipeline_mode<synchronous>, transform_indices = @transform_36, window_bounds = array<i64: 2, 8>}, {pipeline_mode = #tpu.pipeline_mode<synchronous>, transform_indices = @transform_37, window_bounds = array<i64: 2, 8>}, {pipeline_mode = #tpu.pipeline_mode<synchronous>, transform_indices = @transform_38, window_bounds = array<i64: 2, 2, 8>}, {pipeline_mode = #tpu.pipeline_mode<synchronous>, transform_indices = @transform_39, window_bounds = array<i64: 2, 16>}, {pipeline_mode = #tpu.pipeline_mode<synchronous>, transform_indices = @transform_40, window_bounds = array<i64: 16, 1>}, {pipeline_mode = #tpu.pipeline_mode<synchronous>, transform_indices = @transform_41, window_bounds = array<i64: 16, 1>}, {pipeline_mode = #tpu.pipeline_mode<synchronous>, transform_indices = @transform_42, window_bounds = array<i64: 2, 16>}, {pipeline_mode = #tpu.pipeline_mode<synchronous>, transform_indices = @transform_43, window_bounds = array<i64: 2, 16>}, {pipeline_mode = #tpu.pipeline_mode<synchronous>, transform_indices = @transform_44, window_bounds = array<i64: 1, 2, 16>}, {pipeline_mode = #tpu.pipeline_mode<synchronous>, transform_indices = @transform_45, window_bounds = array<i64: 4, 64, 16>}, {pipeline_mode = #tpu.pipeline_mode<synchronous>, transform_indices = @transform_46, window_bounds = array<i64: 16, 1>}, {pipeline_mode = #tpu.pipeline_mode<synchronous>, transform_indices = @transform_47, window_bounds = array<i64: 16, 1>}, {pipeline_mode = #tpu.pipeline_mode<synchronous>, transform_indices = @transform_48, window_bounds = array<i64: 16, 8>}, {pipeline_mode = #tpu.pipeline_mode<synchronous>, transform_indices = @transform_49, window_bounds = array<i64: 2, 16>}, {pipeline_mode = #tpu.pipeline_mode<synchronous>, transform_indices = @transform_50, window_bounds = array<i64: 2, 32, 16>}, {pipeline_mode = #tpu.pipeline_mode<synchronous>, transform_indices = @transform_51, window_bounds = array<i64: 32, 1>}, {pipeline_mode = #tpu.pipeline_mode<synchronous>, transform_indices = @transform_52, window_bounds = array<i64: 32, 1>}, {pipeline_mode = #tpu.pipeline_mode<synchronous>, transform_indices = @transform_53, window_bounds = array<i64: 2, 16>}, {pipeline_mode = #tpu.pipeline_mode<synchronous>, transform_indices = @transform_54, window_bounds = array<i64: 2, 16>}, {pipeline_mode = #tpu.pipeline_mode<synchronous>, transform_indices = @transform_55, window_bounds = array<i64: 2, 2, 16>}, {pipeline_mode = #tpu.pipeline_mode<synchronous>, transform_indices = @transform_56, window_bounds = array<i64: 2, 4>}, {pipeline_mode = #tpu.pipeline_mode<synchronous>, transform_indices = @transform_57, window_bounds = array<i64: 32, 1>}, {pipeline_mode = #tpu.pipeline_mode<synchronous>, transform_indices = @transform_58, window_bounds = array<i64: 32, 1>}, {pipeline_mode = #tpu.pipeline_mode<synchronous>, transform_indices = @transform_59, window_bounds = array<i64: 2, 32>}, {pipeline_mode = #tpu.pipeline_mode<synchronous>, transform_indices = @transform_60, window_bounds = array<i64: 2, 32>}, {pipeline_mode = #tpu.pipeline_mode<synchronous>, transform_indices = @transform_61, window_bounds = array<i64: 1, 2, 32>}, {pipeline_mode = #tpu.pipeline_mode<synchronous>, transform_indices = @transform_62, window_bounds = array<i64: 4, 16, 4>}, {pipeline_mode = #tpu.pipeline_mode<synchronous>, transform_indices = @transform_63, window_bounds = array<i64: 32, 1>}, {pipeline_mode = #tpu.pipeline_mode<synchronous>, transform_indices = @transform_64, window_bounds = array<i64: 32, 1>}, {pipeline_mode = #tpu.pipeline_mode<synchronous>, transform_indices = @transform_65, window_bounds = array<i64: 32, 16>}, {pipeline_mode = #tpu.pipeline_mode<synchronous>, transform_indices = @transform_66, window_bounds = array<i64: 4, 1>}, {pipeline_mode = #tpu.pipeline_mode<synchronous>, transform_indices = @transform_67, window_bounds = array<i64: 4, 1>}, {pipeline_mode = #tpu.pipeline_mode<synchronous>, transform_indices = @transform_68, window_bounds = array<i64: 4, 12>}, {pipeline_mode = #tpu.pipeline_mode<synchronous>, transform_indices = @transform_69, window_bounds = array<i64: 20, 256>}, {pipeline_mode = #tpu.pipeline_mode<synchronous>, transform_indices = @transform_70, window_bounds = array<i64: 4, 12, 3>}, {pipeline_mode = #tpu.pipeline_mode<synchronous>, transform_indices = @transform_71, window_bounds = array<i64: 12, 1>}, {pipeline_mode = #tpu.pipeline_mode<synchronous>, transform_indices = @transform_72, window_bounds = array<i64: 12, 1>}, {pipeline_mode = #tpu.pipeline_mode<synchronous>, transform_indices = @transform_73, window_bounds = array<i64: 20, 3>}, {pipeline_mode = #tpu.pipeline_mode<synchronous>, transform_indices = @transform_74, window_bounds = array<i64: 20, 3>}, {pipeline_mode = #tpu.pipeline_mode<synchronous>, transform_indices = @transform_75, window_bounds = array<i64: 4, 20, 3>}, {transform_indices = @transform_76, window_bounds = array<i64: 1, 10, 1>}]} {
    %c0 = arith.constant 0 : index
    %c0_0 = arith.constant 0 : index
    %c0_1 = arith.constant 0 : index
    %0 = vector.load %arg1[%c0, %c0_0, %c0_1] : memref<1x3x256xf32, #tpu.memory_space<vmem>>, vector<1x3x256xf32>
    %1 = vector.shape_cast %0 : vector<1x3x256xf32> to vector<3x256xf32>
    %c0_2 = arith.constant 0 : index
    %c0_3 = arith.constant 0 : index
    %2 = vector.load %arg70[%c0_2, %c0_3] : memref<20x256xf32, #tpu.memory_space<vmem>>, vector<20x256xf32>
    %c0_4 = arith.constant 0 : index
    %c0_5 = arith.constant 0 : index
    %3 = vector.load %arg75[%c0_4, %c0_5] : memref<20x3xf32, #tpu.memory_space<vmem>>, vector<20x3xf32>
    %4 = vector.shape_cast %3 : vector<20x3xf32> to vector<20x3x1xf32>
    %c0_6 = arith.constant 0 : index
    %c0_7 = arith.constant 0 : index
    %5 = vector.load %arg74[%c0_6, %c0_7] : memref<20x3xf32, #tpu.memory_space<vmem>>, vector<20x3xf32>
    %6 = vector.shape_cast %5 : vector<20x3xf32> to vector<20x3x1xf32>
    %7 = vector.shape_cast %1 : vector<3x256xf32> to vector<1x3x256xf32>
    %8 = vector.shape_cast %2 : vector<20x256xf32> to vector<20x1x256xf32>
    %9 = vector.broadcast %7 : vector<1x3x256xf32> to vector<20x3x256xf32>
    %10 = vector.broadcast %8 : vector<20x1x256xf32> to vector<20x3x256xf32>
    %11 = arith.addf %9, %10 : vector<20x3x256xf32>
    %12 = vector.broadcast %4 : vector<20x3x1xf32> to vector<20x3x256xf32>
    %13 = arith.mulf %11, %12 : vector<20x3x256xf32>
    %14 = vector.broadcast %6 : vector<20x3x1xf32> to vector<20x3x256xf32>
    %15 = arith.addf %13, %14 : vector<20x3x256xf32>
    %16 = arith.negf %15 : vector<20x3x256xf32>
    %17 = math.exp %16 : vector<20x3x256xf32>
    %cst = arith.constant 1.000000e+00 : f32
    %18 = vector.broadcast %cst : f32 to vector<20x3x256xf32>
    %19 = arith.addf %18, %17 : vector<20x3x256xf32>
    %20 = arith.divf %18, %19 : vector<20x3x256xf32>
    %c0_8 = arith.constant 0 : index
    %c0_9 = arith.constant 0 : index
    %c0_10 = arith.constant 0 : index
    %21 = vector.load %arg76[%c0_8, %c0_9, %c0_10] : memref<4x20x3xf32, #tpu.memory_space<vmem>>, vector<1x20x3xf32>
    %22 = vector.shape_cast %21 : vector<1x20x3xf32> to vector<20x3xf32>
    %23 = vector.shape_cast %22 : vector<20x3xf32> to vector<20x3x1xf32>
    %24 = vector.broadcast %23 : vector<20x3x1xf32> to vector<20x3x256xf32>
    %25 = arith.mulf %20, %24 : vector<20x3x256xf32>
    %cst_11 = arith.constant dense<0.000000e+00> : vector<3x256xf32>
    %26 = vector.multi_reduction <add>, %25, %cst_11 [0] : vector<20x3x256xf32> to vector<3x256xf32>
    %c0_12 = arith.constant 0 : index
    %c0_13 = arith.constant 0 : index
    %c0_14 = arith.constant 0 : index
    %27 = vector.load %arg71[%c0_12, %c0_13, %c0_14] : memref<4x12x3xf32, #tpu.memory_space<vmem>>, vector<1x12x3xf32>
    %28 = vector.shape_cast %27 : vector<1x12x3xf32> to vector<12x3xf32>
    %cst_15 = arith.constant dense<0.000000e+00> : vector<12x256xf32>
    %29 = tpu.matmul %28, %26, %cst_15 {dimension_numbers = #tpu.dot_dimension_numbers<[1], [0], [0], [1], [0, 0, 1, 1], [], []>} : vector<12x3xf32>, vector<3x256xf32>, vector<12x256xf32> -> vector<12x256xf32>
    %c1 = arith.constant 1 : index
    %c0_16 = arith.constant 0 : index
    %c0_17 = arith.constant 0 : index
    %30 = vector.load %arg76[%c1, %c0_16, %c0_17] : memref<4x20x3xf32, #tpu.memory_space<vmem>>, vector<1x20x3xf32>
    %31 = vector.shape_cast %30 : vector<1x20x3xf32> to vector<20x3xf32>
    %32 = vector.shape_cast %31 : vector<20x3xf32> to vector<20x3x1xf32>
    %33 = vector.broadcast %32 : vector<20x3x1xf32> to vector<20x3x256xf32>
    %34 = arith.mulf %20, %33 : vector<20x3x256xf32>
    %cst_18 = arith.constant dense<0.000000e+00> : vector<3x256xf32>
    %35 = vector.multi_reduction <add>, %34, %cst_18 [0] : vector<20x3x256xf32> to vector<3x256xf32>
    %c1_19 = arith.constant 1 : index
    %c0_20 = arith.constant 0 : index
    %c0_21 = arith.constant 0 : index
    %36 = vector.load %arg71[%c1_19, %c0_20, %c0_21] : memref<4x12x3xf32, #tpu.memory_space<vmem>>, vector<1x12x3xf32>
    %37 = vector.shape_cast %36 : vector<1x12x3xf32> to vector<12x3xf32>
    %cst_22 = arith.constant dense<0.000000e+00> : vector<12x256xf32>
    %38 = tpu.matmul %37, %35, %cst_22 {dimension_numbers = #tpu.dot_dimension_numbers<[1], [0], [0], [1], [0, 0, 1, 1], [], []>} : vector<12x3xf32>, vector<3x256xf32>, vector<12x256xf32> -> vector<12x256xf32>
    %39 = arith.addf %29, %38 : vector<12x256xf32>
    %c2 = arith.constant 2 : index
    %c0_23 = arith.constant 0 : index
    %c0_24 = arith.constant 0 : index
    %40 = vector.load %arg76[%c2, %c0_23, %c0_24] : memref<4x20x3xf32, #tpu.memory_space<vmem>>, vector<1x20x3xf32>
    %41 = vector.shape_cast %40 : vector<1x20x3xf32> to vector<20x3xf32>
    %42 = vector.shape_cast %41 : vector<20x3xf32> to vector<20x3x1xf32>
    %43 = vector.broadcast %42 : vector<20x3x1xf32> to vector<20x3x256xf32>
    %44 = arith.mulf %20, %43 : vector<20x3x256xf32>
    %cst_25 = arith.constant dense<0.000000e+00> : vector<3x256xf32>
    %45 = vector.multi_reduction <add>, %44, %cst_25 [0] : vector<20x3x256xf32> to vector<3x256xf32>
    %c2_26 = arith.constant 2 : index
    %c0_27 = arith.constant 0 : index
    %c0_28 = arith.constant 0 : index
    %46 = vector.load %arg71[%c2_26, %c0_27, %c0_28] : memref<4x12x3xf32, #tpu.memory_space<vmem>>, vector<1x12x3xf32>
    %47 = vector.shape_cast %46 : vector<1x12x3xf32> to vector<12x3xf32>
    %cst_29 = arith.constant dense<0.000000e+00> : vector<12x256xf32>
    %48 = tpu.matmul %47, %45, %cst_29 {dimension_numbers = #tpu.dot_dimension_numbers<[1], [0], [0], [1], [0, 0, 1, 1], [], []>} : vector<12x3xf32>, vector<3x256xf32>, vector<12x256xf32> -> vector<12x256xf32>
    %49 = arith.addf %39, %48 : vector<12x256xf32>
    %c3 = arith.constant 3 : index
    %c0_30 = arith.constant 0 : index
    %c0_31 = arith.constant 0 : index
    %50 = vector.load %arg76[%c3, %c0_30, %c0_31] : memref<4x20x3xf32, #tpu.memory_space<vmem>>, vector<1x20x3xf32>
    %51 = vector.shape_cast %50 : vector<1x20x3xf32> to vector<20x3xf32>
    %52 = vector.shape_cast %51 : vector<20x3xf32> to vector<20x3x1xf32>
    %53 = vector.broadcast %52 : vector<20x3x1xf32> to vector<20x3x256xf32>
    %54 = arith.mulf %20, %53 : vector<20x3x256xf32>
    %cst_32 = arith.constant dense<0.000000e+00> : vector<3x256xf32>
    %55 = vector.multi_reduction <add>, %54, %cst_32 [0] : vector<20x3x256xf32> to vector<3x256xf32>
    %c3_33 = arith.constant 3 : index
    %c0_34 = arith.constant 0 : index
    %c0_35 = arith.constant 0 : index
    %56 = vector.load %arg71[%c3_33, %c0_34, %c0_35] : memref<4x12x3xf32, #tpu.memory_space<vmem>>, vector<1x12x3xf32>
    %57 = vector.shape_cast %56 : vector<1x12x3xf32> to vector<12x3xf32>
    %cst_36 = arith.constant dense<0.000000e+00> : vector<12x256xf32>
    %58 = tpu.matmul %57, %55, %cst_36 {dimension_numbers = #tpu.dot_dimension_numbers<[1], [0], [0], [1], [0, 0, 1, 1], [], []>} : vector<12x3xf32>, vector<3x256xf32>, vector<12x256xf32> -> vector<12x256xf32>
    %59 = arith.addf %49, %58 : vector<12x256xf32>
    %c0_37 = arith.constant 0 : index
    %c0_38 = arith.constant 0 : index
    %60 = vector.load %arg73[%c0_37, %c0_38] : memref<12x1xf32, #tpu.memory_space<vmem>>, vector<12x1xf32>
    %61 = vector.broadcast %60 : vector<12x1xf32> to vector<12x256xf32>
    %62 = arith.mulf %59, %61 : vector<12x256xf32>
    %c0_39 = arith.constant 0 : index
    %c0_40 = arith.constant 0 : index
    %63 = vector.load %arg72[%c0_39, %c0_40] : memref<12x1xf32, #tpu.memory_space<vmem>>, vector<12x1xf32>
    %64 = vector.broadcast %63 : vector<12x1xf32> to vector<12x256xf32>
    %65 = arith.addf %62, %64 : vector<12x256xf32>
    %66 = arith.negf %65 : vector<12x256xf32>
    %67 = math.exp %66 : vector<12x256xf32>
    %cst_41 = arith.constant 1.000000e+00 : f32
    %68 = vector.broadcast %cst_41 : f32 to vector<12x256xf32>
    %69 = arith.addf %68, %67 : vector<12x256xf32>
    %70 = arith.divf %68, %69 : vector<12x256xf32>
    %c0_42 = arith.constant 0 : index
    %c0_43 = arith.constant 0 : index
    %71 = vector.load %arg69[%c0_42, %c0_43] : memref<4x12xf32, #tpu.memory_space<vmem>>, vector<4x12xf32>
    %cst_44 = arith.constant dense<0.000000e+00> : vector<4x256xf32>
    %72 = tpu.matmul %71, %70, %cst_44 {dimension_numbers = #tpu.dot_dimension_numbers<[1], [0], [0], [1], [0, 0, 1, 1], [], []>} : vector<4x12xf32>, vector<12x256xf32>, vector<4x256xf32> -> vector<4x256xf32>
    %c0_45 = arith.constant 0 : index
    %c0_46 = arith.constant 0 : index
    %73 = vector.load %arg67[%c0_45, %c0_46] : memref<4x1xf32, #tpu.memory_space<vmem>>, vector<4x1xf32>
    %74 = vector.broadcast %73 : vector<4x1xf32> to vector<4x256xf32>
    %75 = arith.mulf %72, %74 : vector<4x256xf32>
    %c0_47 = arith.constant 0 : index
    %c0_48 = arith.constant 0 : index
    %76 = vector.load %arg68[%c0_47, %c0_48] : memref<4x1xf32, #tpu.memory_space<vmem>>, vector<4x1xf32>
    %77 = vector.broadcast %76 : vector<4x1xf32> to vector<4x256xf32>
    %78 = arith.addf %75, %77 : vector<4x256xf32>
    %cst_49 = arith.constant 0.000000e+00 : f32
    %79 = vector.broadcast %cst_49 : f32 to vector<4x256xf32>
    %80 = arith.maximumf %78, %79 : vector<4x256xf32>
    %c0_50 = arith.constant 0 : index
    %c0_51 = arith.constant 0 : index
    %81 = vector.load %arg4[%c0_50, %c0_51] : memref<2x256xf32, #tpu.memory_space<vmem>>, vector<2x256xf32>
    %c0_52 = arith.constant 0 : index
    %c0_53 = arith.constant 0 : index
    %82 = vector.load %arg8[%c0_52, %c0_53] : memref<2x4xf32, #tpu.memory_space<vmem>>, vector<2x4xf32>
    %83 = vector.shape_cast %82 : vector<2x4xf32> to vector<2x4x1xf32>
    %c0_54 = arith.constant 0 : index
    %c0_55 = arith.constant 0 : index
    %84 = vector.load %arg7[%c0_54, %c0_55] : memref<2x4xf32, #tpu.memory_space<vmem>>, vector<2x4xf32>
    %85 = vector.shape_cast %84 : vector<2x4xf32> to vector<2x4x1xf32>
    %86 = vector.shape_cast %80 : vector<4x256xf32> to vector<1x4x256xf32>
    %87 = vector.shape_cast %81 : vector<2x256xf32> to vector<2x1x256xf32>
    %88 = vector.broadcast %86 : vector<1x4x256xf32> to vector<2x4x256xf32>
    %89 = vector.broadcast %87 : vector<2x1x256xf32> to vector<2x4x256xf32>
    %90 = arith.addf %88, %89 : vector<2x4x256xf32>
    %91 = vector.broadcast %83 : vector<2x4x1xf32> to vector<2x4x256xf32>
    %92 = arith.mulf %90, %91 : vector<2x4x256xf32>
    %93 = vector.broadcast %85 : vector<2x4x1xf32> to vector<2x4x256xf32>
    %94 = arith.addf %92, %93 : vector<2x4x256xf32>
    %95 = arith.negf %94 : vector<2x4x256xf32>
    %96 = math.exp %95 : vector<2x4x256xf32>
    %cst_56 = arith.constant 1.000000e+00 : f32
    %97 = vector.broadcast %cst_56 : f32 to vector<2x4x256xf32>
    %98 = arith.addf %97, %96 : vector<2x4x256xf32>
    %99 = arith.divf %97, %98 : vector<2x4x256xf32>
    %c0_57 = arith.constant 0 : index
    %c0_58 = arith.constant 0 : index
    %c0_59 = arith.constant 0 : index
    %100 = vector.load %arg9[%c0_57, %c0_58, %c0_59] : memref<1x2x4xf32, #tpu.memory_space<vmem>>, vector<1x2x4xf32>
    %101 = vector.shape_cast %100 : vector<1x2x4xf32> to vector<2x4xf32>
    %102 = vector.shape_cast %101 : vector<2x4xf32> to vector<2x4x1xf32>
    %103 = vector.broadcast %102 : vector<2x4x1xf32> to vector<2x4x256xf32>
    %104 = arith.mulf %99, %103 : vector<2x4x256xf32>
    %cst_60 = arith.constant dense<0.000000e+00> : vector<4x256xf32>
    %105 = vector.multi_reduction <add>, %104, %cst_60 [0] : vector<2x4x256xf32> to vector<4x256xf32>
    %c0_61 = arith.constant 0 : index
    %c0_62 = arith.constant 0 : index
    %106 = vector.load %arg6[%c0_61, %c0_62] : memref<4x1xf32, #tpu.memory_space<vmem>>, vector<4x1xf32>
    %107 = vector.broadcast %106 : vector<4x1xf32> to vector<4x256xf32>
    %108 = arith.mulf %105, %107 : vector<4x256xf32>
    %c0_63 = arith.constant 0 : index
    %c0_64 = arith.constant 0 : index
    %109 = vector.load %arg5[%c0_63, %c0_64] : memref<4x1xf32, #tpu.memory_space<vmem>>, vector<4x1xf32>
    %110 = vector.broadcast %109 : vector<4x1xf32> to vector<4x256xf32>
    %111 = arith.addf %108, %110 : vector<4x256xf32>
    %112 = arith.negf %111 : vector<4x256xf32>
    %113 = math.exp %112 : vector<4x256xf32>
    %cst_65 = arith.constant 1.000000e+00 : f32
    %114 = vector.broadcast %cst_65 : f32 to vector<4x256xf32>
    %115 = arith.addf %114, %113 : vector<4x256xf32>
    %116 = arith.divf %114, %115 : vector<4x256xf32>
    %c0_66 = arith.constant 0 : index
    %c0_67 = arith.constant 0 : index
    %117 = vector.load %arg10[%c0_66, %c0_67] : memref<2x256xf32, #tpu.memory_space<vmem>>, vector<2x256xf32>
    %c0_68 = arith.constant 0 : index
    %c0_69 = arith.constant 0 : index
    %118 = vector.load %arg14[%c0_68, %c0_69] : memref<2x4xf32, #tpu.memory_space<vmem>>, vector<2x4xf32>
    %119 = vector.shape_cast %118 : vector<2x4xf32> to vector<2x4x1xf32>
    %c0_70 = arith.constant 0 : index
    %c0_71 = arith.constant 0 : index
    %120 = vector.load %arg13[%c0_70, %c0_71] : memref<2x4xf32, #tpu.memory_space<vmem>>, vector<2x4xf32>
    %121 = vector.shape_cast %120 : vector<2x4xf32> to vector<2x4x1xf32>
    %122 = vector.shape_cast %116 : vector<4x256xf32> to vector<1x4x256xf32>
    %123 = vector.shape_cast %117 : vector<2x256xf32> to vector<2x1x256xf32>
    %124 = vector.broadcast %122 : vector<1x4x256xf32> to vector<2x4x256xf32>
    %125 = vector.broadcast %123 : vector<2x1x256xf32> to vector<2x4x256xf32>
    %126 = arith.addf %124, %125 : vector<2x4x256xf32>
    %127 = vector.broadcast %119 : vector<2x4x1xf32> to vector<2x4x256xf32>
    %128 = arith.mulf %126, %127 : vector<2x4x256xf32>
    %129 = vector.broadcast %121 : vector<2x4x1xf32> to vector<2x4x256xf32>
    %130 = arith.addf %128, %129 : vector<2x4x256xf32>
    %131 = arith.negf %130 : vector<2x4x256xf32>
    %132 = math.exp %131 : vector<2x4x256xf32>
    %cst_72 = arith.constant 1.000000e+00 : f32
    %133 = vector.broadcast %cst_72 : f32 to vector<2x4x256xf32>
    %134 = arith.addf %133, %132 : vector<2x4x256xf32>
    %135 = arith.divf %133, %134 : vector<2x4x256xf32>
    %c0_73 = arith.constant 0 : index
    %c0_74 = arith.constant 0 : index
    %c0_75 = arith.constant 0 : index
    %136 = vector.load %arg15[%c0_73, %c0_74, %c0_75] : memref<1x2x4xf32, #tpu.memory_space<vmem>>, vector<1x2x4xf32>
    %137 = vector.shape_cast %136 : vector<1x2x4xf32> to vector<2x4xf32>
    %138 = vector.shape_cast %137 : vector<2x4xf32> to vector<2x4x1xf32>
    %139 = vector.broadcast %138 : vector<2x4x1xf32> to vector<2x4x256xf32>
    %140 = arith.mulf %135, %139 : vector<2x4x256xf32>
    %cst_76 = arith.constant dense<0.000000e+00> : vector<4x256xf32>
    %141 = vector.multi_reduction <add>, %140, %cst_76 [0] : vector<2x4x256xf32> to vector<4x256xf32>
    %c0_77 = arith.constant 0 : index
    %c0_78 = arith.constant 0 : index
    %142 = vector.load %arg12[%c0_77, %c0_78] : memref<4x1xf32, #tpu.memory_space<vmem>>, vector<4x1xf32>
    %143 = vector.broadcast %142 : vector<4x1xf32> to vector<4x256xf32>
    %144 = arith.mulf %141, %143 : vector<4x256xf32>
    %c0_79 = arith.constant 0 : index
    %c0_80 = arith.constant 0 : index
    %145 = vector.load %arg11[%c0_79, %c0_80] : memref<4x1xf32, #tpu.memory_space<vmem>>, vector<4x1xf32>
    %146 = vector.broadcast %145 : vector<4x1xf32> to vector<4x256xf32>
    %147 = arith.addf %144, %146 : vector<4x256xf32>
    %148 = arith.negf %147 : vector<4x256xf32>
    %149 = math.exp %148 : vector<4x256xf32>
    %cst_81 = arith.constant 1.000000e+00 : f32
    %150 = vector.broadcast %cst_81 : f32 to vector<4x256xf32>
    %151 = arith.addf %150, %149 : vector<4x256xf32>
    %152 = arith.divf %150, %151 : vector<4x256xf32>
    %153 = arith.addf %152, %80 : vector<4x256xf32>
    %cst_82 = arith.constant 0.000000e+00 : f32
    %154 = vector.broadcast %cst_82 : f32 to vector<4x256xf32>
    %155 = arith.maximumf %153, %154 : vector<4x256xf32>
    %c0_83 = arith.constant 0 : index
    %c0_84 = arith.constant 0 : index
    %156 = vector.load %arg16[%c0_83, %c0_84] : memref<2x256xf32, #tpu.memory_space<vmem>>, vector<2x256xf32>
    %c0_85 = arith.constant 0 : index
    %c0_86 = arith.constant 0 : index
    %157 = vector.load %arg21[%c0_85, %c0_86] : memref<2x4xf32, #tpu.memory_space<vmem>>, vector<2x4xf32>
    %158 = vector.shape_cast %157 : vector<2x4xf32> to vector<2x4x1xf32>
    %c0_87 = arith.constant 0 : index
    %c0_88 = arith.constant 0 : index
    %159 = vector.load %arg20[%c0_87, %c0_88] : memref<2x4xf32, #tpu.memory_space<vmem>>, vector<2x4xf32>
    %160 = vector.shape_cast %159 : vector<2x4xf32> to vector<2x4x1xf32>
    %161 = vector.shape_cast %155 : vector<4x256xf32> to vector<1x4x256xf32>
    %162 = vector.shape_cast %156 : vector<2x256xf32> to vector<2x1x256xf32>
    %163 = vector.broadcast %161 : vector<1x4x256xf32> to vector<2x4x256xf32>
    %164 = vector.broadcast %162 : vector<2x1x256xf32> to vector<2x4x256xf32>
    %165 = arith.addf %163, %164 : vector<2x4x256xf32>
    %166 = vector.broadcast %158 : vector<2x4x1xf32> to vector<2x4x256xf32>
    %167 = arith.mulf %165, %166 : vector<2x4x256xf32>
    %168 = vector.broadcast %160 : vector<2x4x1xf32> to vector<2x4x256xf32>
    %169 = arith.addf %167, %168 : vector<2x4x256xf32>
    %170 = arith.negf %169 : vector<2x4x256xf32>
    %171 = math.exp %170 : vector<2x4x256xf32>
    %cst_89 = arith.constant 1.000000e+00 : f32
    %172 = vector.broadcast %cst_89 : f32 to vector<2x4x256xf32>
    %173 = arith.addf %172, %171 : vector<2x4x256xf32>
    %174 = arith.divf %172, %173 : vector<2x4x256xf32>
    %c0_90 = arith.constant 0 : index
    %c0_91 = arith.constant 0 : index
    %c0_92 = arith.constant 0 : index
    %175 = vector.load %arg22[%c0_90, %c0_91, %c0_92] : memref<2x2x4xf32, #tpu.memory_space<vmem>>, vector<1x2x4xf32>
    %176 = vector.shape_cast %175 : vector<1x2x4xf32> to vector<2x4xf32>
    %177 = vector.shape_cast %176 : vector<2x4xf32> to vector<2x4x1xf32>
    %178 = vector.broadcast %177 : vector<2x4x1xf32> to vector<2x4x256xf32>
    %179 = arith.mulf %174, %178 : vector<2x4x256xf32>
    %cst_93 = arith.constant dense<0.000000e+00> : vector<4x256xf32>
    %180 = vector.multi_reduction <add>, %179, %cst_93 [0] : vector<2x4x256xf32> to vector<4x256xf32>
    %c0_94 = arith.constant 0 : index
    %c0_95 = arith.constant 0 : index
    %c0_96 = arith.constant 0 : index
    %181 = vector.load %arg17[%c0_94, %c0_95, %c0_96] : memref<2x8x4xf32, #tpu.memory_space<vmem>>, vector<1x8x4xf32>
    %182 = vector.shape_cast %181 : vector<1x8x4xf32> to vector<8x4xf32>
    %cst_97 = arith.constant dense<0.000000e+00> : vector<8x256xf32>
    %183 = tpu.matmul %182, %180, %cst_97 {dimension_numbers = #tpu.dot_dimension_numbers<[1], [0], [0], [1], [0, 0, 1, 1], [], []>} : vector<8x4xf32>, vector<4x256xf32>, vector<8x256xf32> -> vector<8x256xf32>
    %c1_98 = arith.constant 1 : index
    %c0_99 = arith.constant 0 : index
    %c0_100 = arith.constant 0 : index
    %184 = vector.load %arg22[%c1_98, %c0_99, %c0_100] : memref<2x2x4xf32, #tpu.memory_space<vmem>>, vector<1x2x4xf32>
    %185 = vector.shape_cast %184 : vector<1x2x4xf32> to vector<2x4xf32>
    %186 = vector.shape_cast %185 : vector<2x4xf32> to vector<2x4x1xf32>
    %187 = vector.broadcast %186 : vector<2x4x1xf32> to vector<2x4x256xf32>
    %188 = arith.mulf %174, %187 : vector<2x4x256xf32>
    %cst_101 = arith.constant dense<0.000000e+00> : vector<4x256xf32>
    %189 = vector.multi_reduction <add>, %188, %cst_101 [0] : vector<2x4x256xf32> to vector<4x256xf32>
    %c1_102 = arith.constant 1 : index
    %c0_103 = arith.constant 0 : index
    %c0_104 = arith.constant 0 : index
    %190 = vector.load %arg17[%c1_102, %c0_103, %c0_104] : memref<2x8x4xf32, #tpu.memory_space<vmem>>, vector<1x8x4xf32>
    %191 = vector.shape_cast %190 : vector<1x8x4xf32> to vector<8x4xf32>
    %cst_105 = arith.constant dense<0.000000e+00> : vector<8x256xf32>
    %192 = tpu.matmul %191, %189, %cst_105 {dimension_numbers = #tpu.dot_dimension_numbers<[1], [0], [0], [1], [0, 0, 1, 1], [], []>} : vector<8x4xf32>, vector<4x256xf32>, vector<8x256xf32> -> vector<8x256xf32>
    %193 = arith.addf %183, %192 : vector<8x256xf32>
    %c0_106 = arith.constant 0 : index
    %c0_107 = arith.constant 0 : index
    %194 = vector.load %arg19[%c0_106, %c0_107] : memref<8x1xf32, #tpu.memory_space<vmem>>, vector<8x1xf32>
    %195 = vector.broadcast %194 : vector<8x1xf32> to vector<8x256xf32>
    %196 = arith.mulf %193, %195 : vector<8x256xf32>
    %c0_108 = arith.constant 0 : index
    %c0_109 = arith.constant 0 : index
    %197 = vector.load %arg18[%c0_108, %c0_109] : memref<8x1xf32, #tpu.memory_space<vmem>>, vector<8x1xf32>
    %198 = vector.broadcast %197 : vector<8x1xf32> to vector<8x256xf32>
    %199 = arith.addf %196, %198 : vector<8x256xf32>
    %200 = arith.negf %199 : vector<8x256xf32>
    %201 = math.exp %200 : vector<8x256xf32>
    %cst_110 = arith.constant 1.000000e+00 : f32
    %202 = vector.broadcast %cst_110 : f32 to vector<8x256xf32>
    %203 = arith.addf %202, %201 : vector<8x256xf32>
    %204 = arith.divf %202, %203 : vector<8x256xf32>
    %c0_111 = arith.constant 0 : index
    %c0_112 = arith.constant 0 : index
    %c0_113 = arith.constant 0 : index
    %205 = vector.load %arg29[%c0_111, %c0_112, %c0_113] : memref<4x256x64xf32, #tpu.memory_space<vmem>>, vector<1x256x64xf32>
    %206 = vector.shape_cast %205 : vector<1x256x64xf32> to vector<256x64xf32>
    %cst_114 = arith.constant dense<0.000000e+00> : vector<8x64xf32>
    %207 = tpu.matmul %204, %206, %cst_114 {dimension_numbers = #tpu.dot_dimension_numbers<[1], [0], [0], [1], [0, 0, 1, 1], [], []>} : vector<8x256xf32>, vector<256x64xf32>, vector<8x64xf32> -> vector<8x64xf32>
    %c1_115 = arith.constant 1 : index
    %c0_116 = arith.constant 0 : index
    %c0_117 = arith.constant 0 : index
    %208 = vector.load %arg29[%c1_115, %c0_116, %c0_117] : memref<4x256x64xf32, #tpu.memory_space<vmem>>, vector<1x256x64xf32>
    %209 = vector.shape_cast %208 : vector<1x256x64xf32> to vector<256x64xf32>
    %cst_118 = arith.constant dense<0.000000e+00> : vector<8x64xf32>
    %210 = tpu.matmul %204, %209, %cst_118 {dimension_numbers = #tpu.dot_dimension_numbers<[1], [0], [0], [1], [0, 0, 1, 1], [], []>} : vector<8x256xf32>, vector<256x64xf32>, vector<8x64xf32> -> vector<8x64xf32>
    %211 = arith.maximumf %207, %210 : vector<8x64xf32>
    %c2_119 = arith.constant 2 : index
    %c0_120 = arith.constant 0 : index
    %c0_121 = arith.constant 0 : index
    %212 = vector.load %arg29[%c2_119, %c0_120, %c0_121] : memref<4x256x64xf32, #tpu.memory_space<vmem>>, vector<1x256x64xf32>
    %213 = vector.shape_cast %212 : vector<1x256x64xf32> to vector<256x64xf32>
    %cst_122 = arith.constant dense<0.000000e+00> : vector<8x64xf32>
    %214 = tpu.matmul %204, %213, %cst_122 {dimension_numbers = #tpu.dot_dimension_numbers<[1], [0], [0], [1], [0, 0, 1, 1], [], []>} : vector<8x256xf32>, vector<256x64xf32>, vector<8x64xf32> -> vector<8x64xf32>
    %215 = arith.maximumf %211, %214 : vector<8x64xf32>
    %c3_123 = arith.constant 3 : index
    %c0_124 = arith.constant 0 : index
    %c0_125 = arith.constant 0 : index
    %216 = vector.load %arg29[%c3_123, %c0_124, %c0_125] : memref<4x256x64xf32, #tpu.memory_space<vmem>>, vector<1x256x64xf32>
    %217 = vector.shape_cast %216 : vector<1x256x64xf32> to vector<256x64xf32>
    %cst_126 = arith.constant dense<0.000000e+00> : vector<8x64xf32>
    %218 = tpu.matmul %204, %217, %cst_126 {dimension_numbers = #tpu.dot_dimension_numbers<[1], [0], [0], [1], [0, 0, 1, 1], [], []>} : vector<8x256xf32>, vector<256x64xf32>, vector<8x64xf32> -> vector<8x64xf32>
    %219 = arith.maximumf %215, %218 : vector<8x64xf32>
    %c0_127 = arith.constant 0 : index
    %c0_128 = arith.constant 0 : index
    %c0_129 = arith.constant 0 : index
    %220 = vector.load %arg29[%c0_127, %c0_128, %c0_129] : memref<4x256x64xf32, #tpu.memory_space<vmem>>, vector<1x256x64xf32>
    %221 = vector.shape_cast %220 : vector<1x256x64xf32> to vector<256x64xf32>
    %cst_130 = arith.constant dense<0.000000e+00> : vector<4x64xf32>
    %222 = tpu.matmul %155, %221, %cst_130 {dimension_numbers = #tpu.dot_dimension_numbers<[1], [0], [0], [1], [0, 0, 1, 1], [], []>} : vector<4x256xf32>, vector<256x64xf32>, vector<4x64xf32> -> vector<4x64xf32>
    %c0_131 = arith.constant 0 : index
    %c0_132 = arith.constant 0 : index
    %223 = vector.load %arg23[%c0_131, %c0_132] : memref<2x64xf32, #tpu.memory_space<vmem>>, vector<2x64xf32>
    %c0_133 = arith.constant 0 : index
    %c0_134 = arith.constant 0 : index
    %224 = vector.load %arg27[%c0_133, %c0_134] : memref<2x8xf32, #tpu.memory_space<vmem>>, vector<2x8xf32>
    %225 = vector.shape_cast %224 : vector<2x8xf32> to vector<2x8x1xf32>
    %c0_135 = arith.constant 0 : index
    %c0_136 = arith.constant 0 : index
    %226 = vector.load %arg26[%c0_135, %c0_136] : memref<2x8xf32, #tpu.memory_space<vmem>>, vector<2x8xf32>
    %227 = vector.shape_cast %226 : vector<2x8xf32> to vector<2x8x1xf32>
    %228 = vector.shape_cast %219 : vector<8x64xf32> to vector<1x8x64xf32>
    %229 = vector.shape_cast %223 : vector<2x64xf32> to vector<2x1x64xf32>
    %230 = vector.broadcast %228 : vector<1x8x64xf32> to vector<2x8x64xf32>
    %231 = vector.broadcast %229 : vector<2x1x64xf32> to vector<2x8x64xf32>
    %232 = arith.addf %230, %231 : vector<2x8x64xf32>
    %233 = vector.broadcast %225 : vector<2x8x1xf32> to vector<2x8x64xf32>
    %234 = arith.mulf %232, %233 : vector<2x8x64xf32>
    %235 = vector.broadcast %227 : vector<2x8x1xf32> to vector<2x8x64xf32>
    %236 = arith.addf %234, %235 : vector<2x8x64xf32>
    %237 = arith.negf %236 : vector<2x8x64xf32>
    %238 = math.exp %237 : vector<2x8x64xf32>
    %cst_137 = arith.constant 1.000000e+00 : f32
    %239 = vector.broadcast %cst_137 : f32 to vector<2x8x64xf32>
    %240 = arith.addf %239, %238 : vector<2x8x64xf32>
    %241 = arith.divf %239, %240 : vector<2x8x64xf32>
    %c0_138 = arith.constant 0 : index
    %c0_139 = arith.constant 0 : index
    %c0_140 = arith.constant 0 : index
    %242 = vector.load %arg28[%c0_138, %c0_139, %c0_140] : memref<1x2x8xf32, #tpu.memory_space<vmem>>, vector<1x2x8xf32>
    %243 = vector.shape_cast %242 : vector<1x2x8xf32> to vector<2x8xf32>
    %244 = vector.shape_cast %243 : vector<2x8xf32> to vector<2x8x1xf32>
    %245 = vector.broadcast %244 : vector<2x8x1xf32> to vector<2x8x64xf32>
    %246 = arith.mulf %241, %245 : vector<2x8x64xf32>
    %cst_141 = arith.constant dense<0.000000e+00> : vector<8x64xf32>
    %247 = vector.multi_reduction <add>, %246, %cst_141 [0] : vector<2x8x64xf32> to vector<8x64xf32>
    %c0_142 = arith.constant 0 : index
    %c0_143 = arith.constant 0 : index
    %248 = vector.load %arg25[%c0_142, %c0_143] : memref<8x1xf32, #tpu.memory_space<vmem>>, vector<8x1xf32>
    %249 = vector.broadcast %248 : vector<8x1xf32> to vector<8x64xf32>
    %250 = arith.mulf %247, %249 : vector<8x64xf32>
    %c0_144 = arith.constant 0 : index
    %c0_145 = arith.constant 0 : index
    %251 = vector.load %arg24[%c0_144, %c0_145] : memref<8x1xf32, #tpu.memory_space<vmem>>, vector<8x1xf32>
    %252 = vector.broadcast %251 : vector<8x1xf32> to vector<8x64xf32>
    %253 = arith.addf %250, %252 : vector<8x64xf32>
    %254 = arith.negf %253 : vector<8x64xf32>
    %255 = math.exp %254 : vector<8x64xf32>
    %cst_146 = arith.constant 1.000000e+00 : f32
    %256 = vector.broadcast %cst_146 : f32 to vector<8x64xf32>
    %257 = arith.addf %256, %255 : vector<8x64xf32>
    %258 = arith.divf %256, %257 : vector<8x64xf32>
    %c0_147 = arith.constant 0 : index
    %c0_148 = arith.constant 0 : index
    %259 = vector.load %arg32[%c0_147, %c0_148] : memref<8x4xf32, #tpu.memory_space<vmem>>, vector<8x4xf32>
    %cst_149 = arith.constant dense<0.000000e+00> : vector<8x64xf32>
    %260 = tpu.matmul %259, %222, %cst_149 {dimension_numbers = #tpu.dot_dimension_numbers<[1], [0], [0], [1], [0, 0, 1, 1], [], []>} : vector<8x4xf32>, vector<4x64xf32>, vector<8x64xf32> -> vector<8x64xf32>
    %c0_150 = arith.constant 0 : index
    %c0_151 = arith.constant 0 : index
    %261 = vector.load %arg30[%c0_150, %c0_151] : memref<8x1xf32, #tpu.memory_space<vmem>>, vector<8x1xf32>
    %262 = vector.broadcast %261 : vector<8x1xf32> to vector<8x64xf32>
    %263 = arith.mulf %260, %262 : vector<8x64xf32>
    %c0_152 = arith.constant 0 : index
    %c0_153 = arith.constant 0 : index
    %264 = vector.load %arg31[%c0_152, %c0_153] : memref<8x1xf32, #tpu.memory_space<vmem>>, vector<8x1xf32>
    %265 = vector.broadcast %264 : vector<8x1xf32> to vector<8x64xf32>
    %266 = arith.addf %263, %265 : vector<8x64xf32>
    %267 = arith.addf %258, %266 : vector<8x64xf32>
    %cst_154 = arith.constant 0.000000e+00 : f32
    %268 = vector.broadcast %cst_154 : f32 to vector<8x64xf32>
    %269 = arith.maximumf %267, %268 : vector<8x64xf32>
    %c0_155 = arith.constant 0 : index
    %c0_156 = arith.constant 0 : index
    %270 = vector.load %arg33[%c0_155, %c0_156] : memref<2x64xf32, #tpu.memory_space<vmem>>, vector<2x64xf32>
    %c0_157 = arith.constant 0 : index
    %c0_158 = arith.constant 0 : index
    %271 = vector.load %arg38[%c0_157, %c0_158] : memref<2x8xf32, #tpu.memory_space<vmem>>, vector<2x8xf32>
    %272 = vector.shape_cast %271 : vector<2x8xf32> to vector<2x8x1xf32>
    %c0_159 = arith.constant 0 : index
    %c0_160 = arith.constant 0 : index
    %273 = vector.load %arg37[%c0_159, %c0_160] : memref<2x8xf32, #tpu.memory_space<vmem>>, vector<2x8xf32>
    %274 = vector.shape_cast %273 : vector<2x8xf32> to vector<2x8x1xf32>
    %275 = vector.shape_cast %269 : vector<8x64xf32> to vector<1x8x64xf32>
    %276 = vector.shape_cast %270 : vector<2x64xf32> to vector<2x1x64xf32>
    %277 = vector.broadcast %275 : vector<1x8x64xf32> to vector<2x8x64xf32>
    %278 = vector.broadcast %276 : vector<2x1x64xf32> to vector<2x8x64xf32>
    %279 = arith.addf %277, %278 : vector<2x8x64xf32>
    %280 = vector.broadcast %272 : vector<2x8x1xf32> to vector<2x8x64xf32>
    %281 = arith.mulf %279, %280 : vector<2x8x64xf32>
    %282 = vector.broadcast %274 : vector<2x8x1xf32> to vector<2x8x64xf32>
    %283 = arith.addf %281, %282 : vector<2x8x64xf32>
    %284 = arith.negf %283 : vector<2x8x64xf32>
    %285 = math.exp %284 : vector<2x8x64xf32>
    %cst_161 = arith.constant 1.000000e+00 : f32
    %286 = vector.broadcast %cst_161 : f32 to vector<2x8x64xf32>
    %287 = arith.addf %286, %285 : vector<2x8x64xf32>
    %288 = arith.divf %286, %287 : vector<2x8x64xf32>
    %c0_162 = arith.constant 0 : index
    %c0_163 = arith.constant 0 : index
    %c0_164 = arith.constant 0 : index
    %289 = vector.load %arg39[%c0_162, %c0_163, %c0_164] : memref<2x2x8xf32, #tpu.memory_space<vmem>>, vector<1x2x8xf32>
    %290 = vector.shape_cast %289 : vector<1x2x8xf32> to vector<2x8xf32>
    %291 = vector.shape_cast %290 : vector<2x8xf32> to vector<2x8x1xf32>
    %292 = vector.broadcast %291 : vector<2x8x1xf32> to vector<2x8x64xf32>
    %293 = arith.mulf %288, %292 : vector<2x8x64xf32>
    %cst_165 = arith.constant dense<0.000000e+00> : vector<8x64xf32>
    %294 = vector.multi_reduction <add>, %293, %cst_165 [0] : vector<2x8x64xf32> to vector<8x64xf32>
    %c0_166 = arith.constant 0 : index
    %c0_167 = arith.constant 0 : index
    %c0_168 = arith.constant 0 : index
    %295 = vector.load %arg34[%c0_166, %c0_167, %c0_168] : memref<2x16x8xf32, #tpu.memory_space<vmem>>, vector<1x16x8xf32>
    %296 = vector.shape_cast %295 : vector<1x16x8xf32> to vector<16x8xf32>
    %cst_169 = arith.constant dense<0.000000e+00> : vector<16x64xf32>
    %297 = tpu.matmul %296, %294, %cst_169 {dimension_numbers = #tpu.dot_dimension_numbers<[1], [0], [0], [1], [0, 0, 1, 1], [], []>} : vector<16x8xf32>, vector<8x64xf32>, vector<16x64xf32> -> vector<16x64xf32>
    %c1_170 = arith.constant 1 : index
    %c0_171 = arith.constant 0 : index
    %c0_172 = arith.constant 0 : index
    %298 = vector.load %arg39[%c1_170, %c0_171, %c0_172] : memref<2x2x8xf32, #tpu.memory_space<vmem>>, vector<1x2x8xf32>
    %299 = vector.shape_cast %298 : vector<1x2x8xf32> to vector<2x8xf32>
    %300 = vector.shape_cast %299 : vector<2x8xf32> to vector<2x8x1xf32>
    %301 = vector.broadcast %300 : vector<2x8x1xf32> to vector<2x8x64xf32>
    %302 = arith.mulf %288, %301 : vector<2x8x64xf32>
    %cst_173 = arith.constant dense<0.000000e+00> : vector<8x64xf32>
    %303 = vector.multi_reduction <add>, %302, %cst_173 [0] : vector<2x8x64xf32> to vector<8x64xf32>
    %c1_174 = arith.constant 1 : index
    %c0_175 = arith.constant 0 : index
    %c0_176 = arith.constant 0 : index
    %304 = vector.load %arg34[%c1_174, %c0_175, %c0_176] : memref<2x16x8xf32, #tpu.memory_space<vmem>>, vector<1x16x8xf32>
    %305 = vector.shape_cast %304 : vector<1x16x8xf32> to vector<16x8xf32>
    %cst_177 = arith.constant dense<0.000000e+00> : vector<16x64xf32>
    %306 = tpu.matmul %305, %303, %cst_177 {dimension_numbers = #tpu.dot_dimension_numbers<[1], [0], [0], [1], [0, 0, 1, 1], [], []>} : vector<16x8xf32>, vector<8x64xf32>, vector<16x64xf32> -> vector<16x64xf32>
    %307 = arith.addf %297, %306 : vector<16x64xf32>
    %c0_178 = arith.constant 0 : index
    %c0_179 = arith.constant 0 : index
    %308 = vector.load %arg36[%c0_178, %c0_179] : memref<16x1xf32, #tpu.memory_space<vmem>>, vector<16x1xf32>
    %309 = vector.broadcast %308 : vector<16x1xf32> to vector<16x64xf32>
    %310 = arith.mulf %307, %309 : vector<16x64xf32>
    %c0_180 = arith.constant 0 : index
    %c0_181 = arith.constant 0 : index
    %311 = vector.load %arg35[%c0_180, %c0_181] : memref<16x1xf32, #tpu.memory_space<vmem>>, vector<16x1xf32>
    %312 = vector.broadcast %311 : vector<16x1xf32> to vector<16x64xf32>
    %313 = arith.addf %310, %312 : vector<16x64xf32>
    %314 = arith.negf %313 : vector<16x64xf32>
    %315 = math.exp %314 : vector<16x64xf32>
    %cst_182 = arith.constant 1.000000e+00 : f32
    %316 = vector.broadcast %cst_182 : f32 to vector<16x64xf32>
    %317 = arith.addf %316, %315 : vector<16x64xf32>
    %318 = arith.divf %316, %317 : vector<16x64xf32>
    %c0_183 = arith.constant 0 : index
    %c0_184 = arith.constant 0 : index
    %c0_185 = arith.constant 0 : index
    %319 = vector.load %arg46[%c0_183, %c0_184, %c0_185] : memref<4x64x16xf32, #tpu.memory_space<vmem>>, vector<1x64x16xf32>
    %320 = vector.shape_cast %319 : vector<1x64x16xf32> to vector<64x16xf32>
    %cst_186 = arith.constant dense<0.000000e+00> : vector<16x16xf32>
    %321 = tpu.matmul %318, %320, %cst_186 {dimension_numbers = #tpu.dot_dimension_numbers<[1], [0], [0], [1], [0, 0, 1, 1], [], []>} : vector<16x64xf32>, vector<64x16xf32>, vector<16x16xf32> -> vector<16x16xf32>
    %c1_187 = arith.constant 1 : index
    %c0_188 = arith.constant 0 : index
    %c0_189 = arith.constant 0 : index
    %322 = vector.load %arg46[%c1_187, %c0_188, %c0_189] : memref<4x64x16xf32, #tpu.memory_space<vmem>>, vector<1x64x16xf32>
    %323 = vector.shape_cast %322 : vector<1x64x16xf32> to vector<64x16xf32>
    %cst_190 = arith.constant dense<0.000000e+00> : vector<16x16xf32>
    %324 = tpu.matmul %318, %323, %cst_190 {dimension_numbers = #tpu.dot_dimension_numbers<[1], [0], [0], [1], [0, 0, 1, 1], [], []>} : vector<16x64xf32>, vector<64x16xf32>, vector<16x16xf32> -> vector<16x16xf32>
    %325 = arith.maximumf %321, %324 : vector<16x16xf32>
    %c2_191 = arith.constant 2 : index
    %c0_192 = arith.constant 0 : index
    %c0_193 = arith.constant 0 : index
    %326 = vector.load %arg46[%c2_191, %c0_192, %c0_193] : memref<4x64x16xf32, #tpu.memory_space<vmem>>, vector<1x64x16xf32>
    %327 = vector.shape_cast %326 : vector<1x64x16xf32> to vector<64x16xf32>
    %cst_194 = arith.constant dense<0.000000e+00> : vector<16x16xf32>
    %328 = tpu.matmul %318, %327, %cst_194 {dimension_numbers = #tpu.dot_dimension_numbers<[1], [0], [0], [1], [0, 0, 1, 1], [], []>} : vector<16x64xf32>, vector<64x16xf32>, vector<16x16xf32> -> vector<16x16xf32>
    %329 = arith.maximumf %325, %328 : vector<16x16xf32>
    %c3_195 = arith.constant 3 : index
    %c0_196 = arith.constant 0 : index
    %c0_197 = arith.constant 0 : index
    %330 = vector.load %arg46[%c3_195, %c0_196, %c0_197] : memref<4x64x16xf32, #tpu.memory_space<vmem>>, vector<1x64x16xf32>
    %331 = vector.shape_cast %330 : vector<1x64x16xf32> to vector<64x16xf32>
    %cst_198 = arith.constant dense<0.000000e+00> : vector<16x16xf32>
    %332 = tpu.matmul %318, %331, %cst_198 {dimension_numbers = #tpu.dot_dimension_numbers<[1], [0], [0], [1], [0, 0, 1, 1], [], []>} : vector<16x64xf32>, vector<64x16xf32>, vector<16x16xf32> -> vector<16x16xf32>
    %333 = arith.maximumf %329, %332 : vector<16x16xf32>
    %c0_199 = arith.constant 0 : index
    %c0_200 = arith.constant 0 : index
    %c0_201 = arith.constant 0 : index
    %334 = vector.load %arg46[%c0_199, %c0_200, %c0_201] : memref<4x64x16xf32, #tpu.memory_space<vmem>>, vector<1x64x16xf32>
    %335 = vector.shape_cast %334 : vector<1x64x16xf32> to vector<64x16xf32>
    %cst_202 = arith.constant dense<0.000000e+00> : vector<8x16xf32>
    %336 = tpu.matmul %269, %335, %cst_202 {dimension_numbers = #tpu.dot_dimension_numbers<[1], [0], [0], [1], [0, 0, 1, 1], [], []>} : vector<8x64xf32>, vector<64x16xf32>, vector<8x16xf32> -> vector<8x16xf32>
    %c0_203 = arith.constant 0 : index
    %c0_204 = arith.constant 0 : index
    %337 = vector.load %arg40[%c0_203, %c0_204] : memref<2x16xf32, #tpu.memory_space<vmem>>, vector<2x16xf32>
    %c0_205 = arith.constant 0 : index
    %c0_206 = arith.constant 0 : index
    %338 = vector.load %arg44[%c0_205, %c0_206] : memref<2x16xf32, #tpu.memory_space<vmem>>, vector<2x16xf32>
    %339 = vector.shape_cast %338 : vector<2x16xf32> to vector<2x16x1xf32>
    %c0_207 = arith.constant 0 : index
    %c0_208 = arith.constant 0 : index
    %340 = vector.load %arg43[%c0_207, %c0_208] : memref<2x16xf32, #tpu.memory_space<vmem>>, vector<2x16xf32>
    %341 = vector.shape_cast %340 : vector<2x16xf32> to vector<2x16x1xf32>
    %342 = vector.shape_cast %333 : vector<16x16xf32> to vector<1x16x16xf32>
    %343 = vector.shape_cast %337 : vector<2x16xf32> to vector<2x1x16xf32>
    %344 = vector.broadcast %342 : vector<1x16x16xf32> to vector<2x16x16xf32>
    %345 = vector.broadcast %343 : vector<2x1x16xf32> to vector<2x16x16xf32>
    %346 = arith.addf %344, %345 : vector<2x16x16xf32>
    %347 = vector.broadcast %339 : vector<2x16x1xf32> to vector<2x16x16xf32>
    %348 = arith.mulf %346, %347 : vector<2x16x16xf32>
    %349 = vector.broadcast %341 : vector<2x16x1xf32> to vector<2x16x16xf32>
    %350 = arith.addf %348, %349 : vector<2x16x16xf32>
    %351 = arith.negf %350 : vector<2x16x16xf32>
    %352 = math.exp %351 : vector<2x16x16xf32>
    %cst_209 = arith.constant 1.000000e+00 : f32
    %353 = vector.broadcast %cst_209 : f32 to vector<2x16x16xf32>
    %354 = arith.addf %353, %352 : vector<2x16x16xf32>
    %355 = arith.divf %353, %354 : vector<2x16x16xf32>
    %c0_210 = arith.constant 0 : index
    %c0_211 = arith.constant 0 : index
    %c0_212 = arith.constant 0 : index
    %356 = vector.load %arg45[%c0_210, %c0_211, %c0_212] : memref<1x2x16xf32, #tpu.memory_space<vmem>>, vector<1x2x16xf32>
    %357 = vector.shape_cast %356 : vector<1x2x16xf32> to vector<2x16xf32>
    %358 = vector.shape_cast %357 : vector<2x16xf32> to vector<2x16x1xf32>
    %359 = vector.broadcast %358 : vector<2x16x1xf32> to vector<2x16x16xf32>
    %360 = arith.mulf %355, %359 : vector<2x16x16xf32>
    %cst_213 = arith.constant dense<0.000000e+00> : vector<16x16xf32>
    %361 = vector.multi_reduction <add>, %360, %cst_213 [0] : vector<2x16x16xf32> to vector<16x16xf32>
    %c0_214 = arith.constant 0 : index
    %c0_215 = arith.constant 0 : index
    %362 = vector.load %arg42[%c0_214, %c0_215] : memref<16x1xf32, #tpu.memory_space<vmem>>, vector<16x1xf32>
    %363 = vector.broadcast %362 : vector<16x1xf32> to vector<16x16xf32>
    %364 = arith.mulf %361, %363 : vector<16x16xf32>
    %c0_216 = arith.constant 0 : index
    %c0_217 = arith.constant 0 : index
    %365 = vector.load %arg41[%c0_216, %c0_217] : memref<16x1xf32, #tpu.memory_space<vmem>>, vector<16x1xf32>
    %366 = vector.broadcast %365 : vector<16x1xf32> to vector<16x16xf32>
    %367 = arith.addf %364, %366 : vector<16x16xf32>
    %368 = arith.negf %367 : vector<16x16xf32>
    %369 = math.exp %368 : vector<16x16xf32>
    %cst_218 = arith.constant 1.000000e+00 : f32
    %370 = vector.broadcast %cst_218 : f32 to vector<16x16xf32>
    %371 = arith.addf %370, %369 : vector<16x16xf32>
    %372 = arith.divf %370, %371 : vector<16x16xf32>
    %c0_219 = arith.constant 0 : index
    %c0_220 = arith.constant 0 : index
    %373 = vector.load %arg49[%c0_219, %c0_220] : memref<16x8xf32, #tpu.memory_space<vmem>>, vector<16x8xf32>
    %cst_221 = arith.constant dense<0.000000e+00> : vector<16x16xf32>
    %374 = tpu.matmul %373, %336, %cst_221 {dimension_numbers = #tpu.dot_dimension_numbers<[1], [0], [0], [1], [0, 0, 1, 1], [], []>} : vector<16x8xf32>, vector<8x16xf32>, vector<16x16xf32> -> vector<16x16xf32>
    %c0_222 = arith.constant 0 : index
    %c0_223 = arith.constant 0 : index
    %375 = vector.load %arg47[%c0_222, %c0_223] : memref<16x1xf32, #tpu.memory_space<vmem>>, vector<16x1xf32>
    %376 = vector.broadcast %375 : vector<16x1xf32> to vector<16x16xf32>
    %377 = arith.mulf %374, %376 : vector<16x16xf32>
    %c0_224 = arith.constant 0 : index
    %c0_225 = arith.constant 0 : index
    %378 = vector.load %arg48[%c0_224, %c0_225] : memref<16x1xf32, #tpu.memory_space<vmem>>, vector<16x1xf32>
    %379 = vector.broadcast %378 : vector<16x1xf32> to vector<16x16xf32>
    %380 = arith.addf %377, %379 : vector<16x16xf32>
    %381 = arith.addf %372, %380 : vector<16x16xf32>
    %cst_226 = arith.constant 0.000000e+00 : f32
    %382 = vector.broadcast %cst_226 : f32 to vector<16x16xf32>
    %383 = arith.maximumf %381, %382 : vector<16x16xf32>
    %c0_227 = arith.constant 0 : index
    %c0_228 = arith.constant 0 : index
    %384 = vector.load %arg50[%c0_227, %c0_228] : memref<2x16xf32, #tpu.memory_space<vmem>>, vector<2x16xf32>
    %c0_229 = arith.constant 0 : index
    %c0_230 = arith.constant 0 : index
    %385 = vector.load %arg55[%c0_229, %c0_230] : memref<2x16xf32, #tpu.memory_space<vmem>>, vector<2x16xf32>
    %386 = vector.shape_cast %385 : vector<2x16xf32> to vector<2x16x1xf32>
    %c0_231 = arith.constant 0 : index
    %c0_232 = arith.constant 0 : index
    %387 = vector.load %arg54[%c0_231, %c0_232] : memref<2x16xf32, #tpu.memory_space<vmem>>, vector<2x16xf32>
    %388 = vector.shape_cast %387 : vector<2x16xf32> to vector<2x16x1xf32>
    %389 = vector.shape_cast %383 : vector<16x16xf32> to vector<1x16x16xf32>
    %390 = vector.shape_cast %384 : vector<2x16xf32> to vector<2x1x16xf32>
    %391 = vector.broadcast %389 : vector<1x16x16xf32> to vector<2x16x16xf32>
    %392 = vector.broadcast %390 : vector<2x1x16xf32> to vector<2x16x16xf32>
    %393 = arith.addf %391, %392 : vector<2x16x16xf32>
    %394 = vector.broadcast %386 : vector<2x16x1xf32> to vector<2x16x16xf32>
    %395 = arith.mulf %393, %394 : vector<2x16x16xf32>
    %396 = vector.broadcast %388 : vector<2x16x1xf32> to vector<2x16x16xf32>
    %397 = arith.addf %395, %396 : vector<2x16x16xf32>
    %398 = arith.negf %397 : vector<2x16x16xf32>
    %399 = math.exp %398 : vector<2x16x16xf32>
    %cst_233 = arith.constant 1.000000e+00 : f32
    %400 = vector.broadcast %cst_233 : f32 to vector<2x16x16xf32>
    %401 = arith.addf %400, %399 : vector<2x16x16xf32>
    %402 = arith.divf %400, %401 : vector<2x16x16xf32>
    %c0_234 = arith.constant 0 : index
    %c0_235 = arith.constant 0 : index
    %c0_236 = arith.constant 0 : index
    %403 = vector.load %arg56[%c0_234, %c0_235, %c0_236] : memref<2x2x16xf32, #tpu.memory_space<vmem>>, vector<1x2x16xf32>
    %404 = vector.shape_cast %403 : vector<1x2x16xf32> to vector<2x16xf32>
    %405 = vector.shape_cast %404 : vector<2x16xf32> to vector<2x16x1xf32>
    %406 = vector.broadcast %405 : vector<2x16x1xf32> to vector<2x16x16xf32>
    %407 = arith.mulf %402, %406 : vector<2x16x16xf32>
    %cst_237 = arith.constant dense<0.000000e+00> : vector<16x16xf32>
    %408 = vector.multi_reduction <add>, %407, %cst_237 [0] : vector<2x16x16xf32> to vector<16x16xf32>
    %c0_238 = arith.constant 0 : index
    %c0_239 = arith.constant 0 : index
    %c0_240 = arith.constant 0 : index
    %409 = vector.load %arg51[%c0_238, %c0_239, %c0_240] : memref<2x32x16xf32, #tpu.memory_space<vmem>>, vector<1x32x16xf32>
    %410 = vector.shape_cast %409 : vector<1x32x16xf32> to vector<32x16xf32>
    %cst_241 = arith.constant dense<0.000000e+00> : vector<32x16xf32>
    %411 = tpu.matmul %410, %408, %cst_241 {dimension_numbers = #tpu.dot_dimension_numbers<[1], [0], [0], [1], [0, 0, 1, 1], [], []>} : vector<32x16xf32>, vector<16x16xf32>, vector<32x16xf32> -> vector<32x16xf32>
    %c1_242 = arith.constant 1 : index
    %c0_243 = arith.constant 0 : index
    %c0_244 = arith.constant 0 : index
    %412 = vector.load %arg56[%c1_242, %c0_243, %c0_244] : memref<2x2x16xf32, #tpu.memory_space<vmem>>, vector<1x2x16xf32>
    %413 = vector.shape_cast %412 : vector<1x2x16xf32> to vector<2x16xf32>
    %414 = vector.shape_cast %413 : vector<2x16xf32> to vector<2x16x1xf32>
    %415 = vector.broadcast %414 : vector<2x16x1xf32> to vector<2x16x16xf32>
    %416 = arith.mulf %402, %415 : vector<2x16x16xf32>
    %cst_245 = arith.constant dense<0.000000e+00> : vector<16x16xf32>
    %417 = vector.multi_reduction <add>, %416, %cst_245 [0] : vector<2x16x16xf32> to vector<16x16xf32>
    %c1_246 = arith.constant 1 : index
    %c0_247 = arith.constant 0 : index
    %c0_248 = arith.constant 0 : index
    %418 = vector.load %arg51[%c1_246, %c0_247, %c0_248] : memref<2x32x16xf32, #tpu.memory_space<vmem>>, vector<1x32x16xf32>
    %419 = vector.shape_cast %418 : vector<1x32x16xf32> to vector<32x16xf32>
    %cst_249 = arith.constant dense<0.000000e+00> : vector<32x16xf32>
    %420 = tpu.matmul %419, %417, %cst_249 {dimension_numbers = #tpu.dot_dimension_numbers<[1], [0], [0], [1], [0, 0, 1, 1], [], []>} : vector<32x16xf32>, vector<16x16xf32>, vector<32x16xf32> -> vector<32x16xf32>
    %421 = arith.addf %411, %420 : vector<32x16xf32>
    %c0_250 = arith.constant 0 : index
    %c0_251 = arith.constant 0 : index
    %422 = vector.load %arg53[%c0_250, %c0_251] : memref<32x1xf32, #tpu.memory_space<vmem>>, vector<32x1xf32>
    %423 = vector.broadcast %422 : vector<32x1xf32> to vector<32x16xf32>
    %424 = arith.mulf %421, %423 : vector<32x16xf32>
    %c0_252 = arith.constant 0 : index
    %c0_253 = arith.constant 0 : index
    %425 = vector.load %arg52[%c0_252, %c0_253] : memref<32x1xf32, #tpu.memory_space<vmem>>, vector<32x1xf32>
    %426 = vector.broadcast %425 : vector<32x1xf32> to vector<32x16xf32>
    %427 = arith.addf %424, %426 : vector<32x16xf32>
    %428 = arith.negf %427 : vector<32x16xf32>
    %429 = math.exp %428 : vector<32x16xf32>
    %cst_254 = arith.constant 1.000000e+00 : f32
    %430 = vector.broadcast %cst_254 : f32 to vector<32x16xf32>
    %431 = arith.addf %430, %429 : vector<32x16xf32>
    %432 = arith.divf %430, %431 : vector<32x16xf32>
    %c0_255 = arith.constant 0 : index
    %c0_256 = arith.constant 0 : index
    %c0_257 = arith.constant 0 : index
    %433 = vector.load %arg63[%c0_255, %c0_256, %c0_257] : memref<4x16x4xf32, #tpu.memory_space<vmem>>, vector<1x16x4xf32>
    %434 = vector.shape_cast %433 : vector<1x16x4xf32> to vector<16x4xf32>
    %cst_258 = arith.constant dense<0.000000e+00> : vector<32x4xf32>
    %435 = tpu.matmul %432, %434, %cst_258 {dimension_numbers = #tpu.dot_dimension_numbers<[1], [0], [0], [1], [0, 0, 1, 1], [], []>} : vector<32x16xf32>, vector<16x4xf32>, vector<32x4xf32> -> vector<32x4xf32>
    %c1_259 = arith.constant 1 : index
    %c0_260 = arith.constant 0 : index
    %c0_261 = arith.constant 0 : index
    %436 = vector.load %arg63[%c1_259, %c0_260, %c0_261] : memref<4x16x4xf32, #tpu.memory_space<vmem>>, vector<1x16x4xf32>
    %437 = vector.shape_cast %436 : vector<1x16x4xf32> to vector<16x4xf32>
    %cst_262 = arith.constant dense<0.000000e+00> : vector<32x4xf32>
    %438 = tpu.matmul %432, %437, %cst_262 {dimension_numbers = #tpu.dot_dimension_numbers<[1], [0], [0], [1], [0, 0, 1, 1], [], []>} : vector<32x16xf32>, vector<16x4xf32>, vector<32x4xf32> -> vector<32x4xf32>
    %439 = arith.maximumf %435, %438 : vector<32x4xf32>
    %c2_263 = arith.constant 2 : index
    %c0_264 = arith.constant 0 : index
    %c0_265 = arith.constant 0 : index
    %440 = vector.load %arg63[%c2_263, %c0_264, %c0_265] : memref<4x16x4xf32, #tpu.memory_space<vmem>>, vector<1x16x4xf32>
    %441 = vector.shape_cast %440 : vector<1x16x4xf32> to vector<16x4xf32>
    %cst_266 = arith.constant dense<0.000000e+00> : vector<32x4xf32>
    %442 = tpu.matmul %432, %441, %cst_266 {dimension_numbers = #tpu.dot_dimension_numbers<[1], [0], [0], [1], [0, 0, 1, 1], [], []>} : vector<32x16xf32>, vector<16x4xf32>, vector<32x4xf32> -> vector<32x4xf32>
    %443 = arith.maximumf %439, %442 : vector<32x4xf32>
    %c3_267 = arith.constant 3 : index
    %c0_268 = arith.constant 0 : index
    %c0_269 = arith.constant 0 : index
    %444 = vector.load %arg63[%c3_267, %c0_268, %c0_269] : memref<4x16x4xf32, #tpu.memory_space<vmem>>, vector<1x16x4xf32>
    %445 = vector.shape_cast %444 : vector<1x16x4xf32> to vector<16x4xf32>
    %cst_270 = arith.constant dense<0.000000e+00> : vector<32x4xf32>
    %446 = tpu.matmul %432, %445, %cst_270 {dimension_numbers = #tpu.dot_dimension_numbers<[1], [0], [0], [1], [0, 0, 1, 1], [], []>} : vector<32x16xf32>, vector<16x4xf32>, vector<32x4xf32> -> vector<32x4xf32>
    %447 = arith.maximumf %443, %446 : vector<32x4xf32>
    %c0_271 = arith.constant 0 : index
    %c0_272 = arith.constant 0 : index
    %c0_273 = arith.constant 0 : index
    %448 = vector.load %arg63[%c0_271, %c0_272, %c0_273] : memref<4x16x4xf32, #tpu.memory_space<vmem>>, vector<1x16x4xf32>
    %449 = vector.shape_cast %448 : vector<1x16x4xf32> to vector<16x4xf32>
    %cst_274 = arith.constant dense<0.000000e+00> : vector<16x4xf32>
    %450 = tpu.matmul %383, %449, %cst_274 {dimension_numbers = #tpu.dot_dimension_numbers<[1], [0], [0], [1], [0, 0, 1, 1], [], []>} : vector<16x16xf32>, vector<16x4xf32>, vector<16x4xf32> -> vector<16x4xf32>
    %c0_275 = arith.constant 0 : index
    %c0_276 = arith.constant 0 : index
    %451 = vector.load %arg57[%c0_275, %c0_276] : memref<2x4xf32, #tpu.memory_space<vmem>>, vector<2x4xf32>
    %c0_277 = arith.constant 0 : index
    %c0_278 = arith.constant 0 : index
    %452 = vector.load %arg61[%c0_277, %c0_278] : memref<2x32xf32, #tpu.memory_space<vmem>>, vector<2x32xf32>
    %453 = vector.shape_cast %452 : vector<2x32xf32> to vector<2x32x1xf32>
    %c0_279 = arith.constant 0 : index
    %c0_280 = arith.constant 0 : index
    %454 = vector.load %arg60[%c0_279, %c0_280] : memref<2x32xf32, #tpu.memory_space<vmem>>, vector<2x32xf32>
    %455 = vector.shape_cast %454 : vector<2x32xf32> to vector<2x32x1xf32>
    %456 = vector.shape_cast %447 : vector<32x4xf32> to vector<1x32x4xf32>
    %457 = vector.shape_cast %451 : vector<2x4xf32> to vector<2x1x4xf32>
    %458 = vector.broadcast %456 : vector<1x32x4xf32> to vector<2x32x4xf32>
    %459 = vector.broadcast %457 : vector<2x1x4xf32> to vector<2x32x4xf32>
    %460 = arith.addf %458, %459 : vector<2x32x4xf32>
    %461 = vector.broadcast %453 : vector<2x32x1xf32> to vector<2x32x4xf32>
    %462 = arith.mulf %460, %461 : vector<2x32x4xf32>
    %463 = vector.broadcast %455 : vector<2x32x1xf32> to vector<2x32x4xf32>
    %464 = arith.addf %462, %463 : vector<2x32x4xf32>
    %465 = arith.negf %464 : vector<2x32x4xf32>
    %466 = math.exp %465 : vector<2x32x4xf32>
    %cst_281 = arith.constant 1.000000e+00 : f32
    %467 = vector.broadcast %cst_281 : f32 to vector<2x32x4xf32>
    %468 = arith.addf %467, %466 : vector<2x32x4xf32>
    %469 = arith.divf %467, %468 : vector<2x32x4xf32>
    %c0_282 = arith.constant 0 : index
    %c0_283 = arith.constant 0 : index
    %c0_284 = arith.constant 0 : index
    %470 = vector.load %arg62[%c0_282, %c0_283, %c0_284] : memref<1x2x32xf32, #tpu.memory_space<vmem>>, vector<1x2x32xf32>
    %471 = vector.shape_cast %470 : vector<1x2x32xf32> to vector<2x32xf32>
    %472 = vector.shape_cast %471 : vector<2x32xf32> to vector<2x32x1xf32>
    %473 = vector.broadcast %472 : vector<2x32x1xf32> to vector<2x32x4xf32>
    %474 = arith.mulf %469, %473 : vector<2x32x4xf32>
    %cst_285 = arith.constant dense<0.000000e+00> : vector<32x4xf32>
    %475 = vector.multi_reduction <add>, %474, %cst_285 [0] : vector<2x32x4xf32> to vector<32x4xf32>
    %c0_286 = arith.constant 0 : index
    %c0_287 = arith.constant 0 : index
    %476 = vector.load %arg59[%c0_286, %c0_287] : memref<32x1xf32, #tpu.memory_space<vmem>>, vector<32x1xf32>
    %477 = vector.broadcast %476 : vector<32x1xf32> to vector<32x4xf32>
    %478 = arith.mulf %475, %477 : vector<32x4xf32>
    %c0_288 = arith.constant 0 : index
    %c0_289 = arith.constant 0 : index
    %479 = vector.load %arg58[%c0_288, %c0_289] : memref<32x1xf32, #tpu.memory_space<vmem>>, vector<32x1xf32>
    %480 = vector.broadcast %479 : vector<32x1xf32> to vector<32x4xf32>
    %481 = arith.addf %478, %480 : vector<32x4xf32>
    %482 = arith.negf %481 : vector<32x4xf32>
    %483 = math.exp %482 : vector<32x4xf32>
    %cst_290 = arith.constant 1.000000e+00 : f32
    %484 = vector.broadcast %cst_290 : f32 to vector<32x4xf32>
    %485 = arith.addf %484, %483 : vector<32x4xf32>
    %486 = arith.divf %484, %485 : vector<32x4xf32>
    %c0_291 = arith.constant 0 : index
    %c0_292 = arith.constant 0 : index
    %487 = vector.load %arg66[%c0_291, %c0_292] : memref<32x16xf32, #tpu.memory_space<vmem>>, vector<32x16xf32>
    %cst_293 = arith.constant dense<0.000000e+00> : vector<32x4xf32>
    %488 = tpu.matmul %487, %450, %cst_293 {dimension_numbers = #tpu.dot_dimension_numbers<[1], [0], [0], [1], [0, 0, 1, 1], [], []>} : vector<32x16xf32>, vector<16x4xf32>, vector<32x4xf32> -> vector<32x4xf32>
    %c0_294 = arith.constant 0 : index
    %c0_295 = arith.constant 0 : index
    %489 = vector.load %arg64[%c0_294, %c0_295] : memref<32x1xf32, #tpu.memory_space<vmem>>, vector<32x1xf32>
    %490 = vector.broadcast %489 : vector<32x1xf32> to vector<32x4xf32>
    %491 = arith.mulf %488, %490 : vector<32x4xf32>
    %c0_296 = arith.constant 0 : index
    %c0_297 = arith.constant 0 : index
    %492 = vector.load %arg65[%c0_296, %c0_297] : memref<32x1xf32, #tpu.memory_space<vmem>>, vector<32x1xf32>
    %493 = vector.broadcast %492 : vector<32x1xf32> to vector<32x4xf32>
    %494 = arith.addf %491, %493 : vector<32x4xf32>
    %495 = arith.addf %486, %494 : vector<32x4xf32>
    %cst_298 = arith.constant 0.000000e+00 : f32
    %496 = vector.broadcast %cst_298 : f32 to vector<32x4xf32>
    %497 = arith.maximumf %495, %496 : vector<32x4xf32>
    %cst_299 = arith.constant dense<0.000000e+00> : vector<32xf32>
    %498 = vector.multi_reduction <add>, %497, %cst_299 [1] : vector<32x4xf32> to vector<32xf32>
    %499 = vector.shape_cast %498 : vector<32xf32> to vector<32x1xf32>
    %cst_300 = arith.constant 4.000000e+00 : f32
    %500 = vector.broadcast %cst_300 : f32 to vector<32x1xf32>
    %501 = arith.divf %499, %500 : vector<32x1xf32>
    %c0_301 = arith.constant 0 : index
    %c0_302 = arith.constant 0 : index
    %502 = vector.load %arg3[%c0_301, %c0_302] : memref<10x32xf32, #tpu.memory_space<vmem>>, vector<10x32xf32>
    %cst_303 = arith.constant dense<0.000000e+00> : vector<10x1xf32>
    %503 = tpu.matmul %502, %501, %cst_303 {dimension_numbers = #tpu.dot_dimension_numbers<[1], [0], [0], [1], [0, 0, 1, 1], [], []>} : vector<10x32xf32>, vector<32x1xf32>, vector<10x1xf32> -> vector<10x1xf32>
    %c0_304 = arith.constant 0 : index
    %c0_305 = arith.constant 0 : index
    %504 = vector.load %arg2[%c0_304, %c0_305] : memref<10x1xf32, #tpu.memory_space<vmem>>, vector<10x1xf32>
    %505 = arith.addf %503, %504 : vector<10x1xf32>
    %c0_306 = arith.constant 0 : index
    %c0_307 = arith.constant 0 : index
    %c0_308 = arith.constant 0 : index
    %506 = vector.load %arg77[%c0_306, %c0_307, %c0_308] : memref<1x10x1xf32, #tpu.memory_space<vmem>>, vector<1x10x1xf32>
    %507 = vector.shape_cast %506 : vector<1x10x1xf32> to vector<10x1xf32>
    %508 = vector.shape_cast %505 : vector<10x1xf32> to vector<1x10x1xf32>
    tpu.vector_store %arg77[%c0_306, %c0_307, %c0_308], %508 {strides = array<i32>} : memref<1x10x1xf32, #tpu.memory_space<vmem>>, vector<1x10x1xf32>,
    return
  }
  func.func @transform_0(%arg0: i32) -> (i32, i32, i32) {
    %c0_i32 = arith.constant 0 : i32
    %c0_i32_0 = arith.constant 0 : i32
    %c0_i32_1 = arith.constant 0 : i32
    return %arg0, %c0_i32, %c0_i32_0 : i32, i32, i32
  }
  func.func @transform_1(%arg0: i32) -> (i32, i32) {
    %c0_i32 = arith.constant 0 : i32
    %c0_i32_0 = arith.constant 0 : i32
    %c0_i32_1 = arith.constant 0 : i32
    return %c0_i32, %c0_i32_0 : i32, i32
  }
  func.func @transform_2(%arg0: i32) -> (i32, i32) {
    %c0_i32 = arith.constant 0 : i32
    %c0_i32_0 = arith.constant 0 : i32
    %c0_i32_1 = arith.constant 0 : i32
    return %c0_i32, %c0_i32_0 : i32, i32
  }
  func.func @transform_3(%arg0: i32) -> (i32, i32) {
    %c0_i32 = arith.constant 0 : i32
    %c0_i32_0 = arith.constant 0 : i32
    %c0_i32_1 = arith.constant 0 : i32
    return %c0_i32, %c0_i32_0 : i32, i32
  }
  func.func @transform_4(%arg0: i32) -> (i32, i32) {
    %c0_i32 = arith.constant 0 : i32
    %c0_i32_0 = arith.constant 0 : i32
    %c0_i32_1 = arith.constant 0 : i32
    return %c0_i32, %c0_i32_0 : i32, i32
  }
  func.func @transform_5(%arg0: i32) -> (i32, i32) {
    %c0_i32 = arith.constant 0 : i32
    %c0_i32_0 = arith.constant 0 : i32
    %c0_i32_1 = arith.constant 0 : i32
    return %c0_i32, %c0_i32_0 : i32, i32
  }
  func.func @transform_6(%arg0: i32) -> (i32, i32) {
    %c0_i32 = arith.constant 0 : i32
    %c0_i32_0 = arith.constant 0 : i32
    %c0_i32_1 = arith.constant 0 : i32
    return %c0_i32, %c0_i32_0 : i32, i32
  }
  func.func @transform_7(%arg0: i32) -> (i32, i32) {
    %c0_i32 = arith.constant 0 : i32
    %c0_i32_0 = arith.constant 0 : i32
    %c0_i32_1 = arith.constant 0 : i32
    return %c0_i32, %c0_i32_0 : i32, i32
  }
  func.func @transform_8(%arg0: i32) -> (i32, i32, i32) {
    %c0_i32 = arith.constant 0 : i32
    %c0_i32_0 = arith.constant 0 : i32
    %c0_i32_1 = arith.constant 0 : i32
    %c0_i32_2 = arith.constant 0 : i32
    return %c0_i32, %c0_i32_0, %c0_i32_1 : i32, i32, i32
  }
  func.func @transform_9(%arg0: i32) -> (i32, i32) {
    %c0_i32 = arith.constant 0 : i32
    %c0_i32_0 = arith.constant 0 : i32
    %c0_i32_1 = arith.constant 0 : i32
    return %c0_i32, %c0_i32_0 : i32, i32
  }
  func.func @transform_10(%arg0: i32) -> (i32, i32) {
    %c0_i32 = arith.constant 0 : i32
    %c0_i32_0 = arith.constant 0 : i32
    %c0_i32_1 = arith.constant 0 : i32
    return %c0_i32, %c0_i32_0 : i32, i32
  }
  func.func @transform_11(%arg0: i32) -> (i32, i32) {
    %c0_i32 = arith.constant 0 : i32
    %c0_i32_0 = arith.constant 0 : i32
    %c0_i32_1 = arith.constant 0 : i32
    return %c0_i32, %c0_i32_0 : i32, i32
  }
  func.func @transform_12(%arg0: i32) -> (i32, i32) {
    %c0_i32 = arith.constant 0 : i32
    %c0_i32_0 = arith.constant 0 : i32
    %c0_i32_1 = arith.constant 0 : i32
    return %c0_i32, %c0_i32_0 : i32, i32
  }
  func.func @transform_13(%arg0: i32) -> (i32, i32) {
    %c0_i32 = arith.constant 0 : i32
    %c0_i32_0 = arith.constant 0 : i32
    %c0_i32_1 = arith.constant 0 : i32
    return %c0_i32, %c0_i32_0 : i32, i32
  }
  func.func @transform_14(%arg0: i32) -> (i32, i32, i32) {
    %c0_i32 = arith.constant 0 : i32
    %c0_i32_0 = arith.constant 0 : i32
    %c0_i32_1 = arith.constant 0 : i32
    %c0_i32_2 = arith.constant 0 : i32
    return %c0_i32, %c0_i32_0, %c0_i32_1 : i32, i32, i32
  }
  func.func @transform_15(%arg0: i32) -> (i32, i32) {
    %c0_i32 = arith.constant 0 : i32
    %c0_i32_0 = arith.constant 0 : i32
    %c0_i32_1 = arith.constant 0 : i32
    return %c0_i32, %c0_i32_0 : i32, i32
  }
  func.func @transform_16(%arg0: i32) -> (i32, i32, i32) {
    %c0_i32 = arith.constant 0 : i32
    %c0_i32_0 = arith.constant 0 : i32
    %c0_i32_1 = arith.constant 0 : i32
    %c0_i32_2 = arith.constant 0 : i32
    return %c0_i32, %c0_i32_0, %c0_i32_1 : i32, i32, i32
  }
  func.func @transform_17(%arg0: i32) -> (i32, i32) {
    %c0_i32 = arith.constant 0 : i32
    %c0_i32_0 = arith.constant 0 : i32
    %c0_i32_1 = arith.constant 0 : i32
    return %c0_i32, %c0_i32_0 : i32, i32
  }
  func.func @transform_18(%arg0: i32) -> (i32, i32) {
    %c0_i32 = arith.constant 0 : i32
    %c0_i32_0 = arith.constant 0 : i32
    %c0_i32_1 = arith.constant 0 : i32
    return %c0_i32, %c0_i32_0 : i32, i32
  }
  func.func @transform_19(%arg0: i32) -> (i32, i32) {
    %c0_i32 = arith.constant 0 : i32
    %c0_i32_0 = arith.constant 0 : i32
    %c0_i32_1 = arith.constant 0 : i32
    return %c0_i32, %c0_i32_0 : i32, i32
  }
  func.func @transform_20(%arg0: i32) -> (i32, i32) {
    %c0_i32 = arith.constant 0 : i32
    %c0_i32_0 = arith.constant 0 : i32
    %c0_i32_1 = arith.constant 0 : i32
    return %c0_i32, %c0_i32_0 : i32, i32
  }
  func.func @transform_21(%arg0: i32) -> (i32, i32, i32) {
    %c0_i32 = arith.constant 0 : i32
    %c0_i32_0 = arith.constant 0 : i32
    %c0_i32_1 = arith.constant 0 : i32
    %c0_i32_2 = arith.constant 0 : i32
    return %c0_i32, %c0_i32_0, %c0_i32_1 : i32, i32, i32
  }
  func.func @transform_22(%arg0: i32) -> (i32, i32) {
    %c0_i32 = arith.constant 0 : i32
    %c0_i32_0 = arith.constant 0 : i32
    %c0_i32_1 = arith.constant 0 : i32
    return %c0_i32, %c0_i32_0 : i32, i32
  }
  func.func @transform_23(%arg0: i32) -> (i32, i32) {
    %c0_i32 = arith.constant 0 : i32
    %c0_i32_0 = arith.constant 0 : i32
    %c0_i32_1 = arith.constant 0 : i32
    return %c0_i32, %c0_i32_0 : i32, i32
  }
  func.func @transform_24(%arg0: i32) -> (i32, i32) {
    %c0_i32 = arith.constant 0 : i32
    %c0_i32_0 = arith.constant 0 : i32
    %c0_i32_1 = arith.constant 0 : i32
    return %c0_i32, %c0_i32_0 : i32, i32
  }
  func.func @transform_25(%arg0: i32) -> (i32, i32) {
    %c0_i32 = arith.constant 0 : i32
    %c0_i32_0 = arith.constant 0 : i32
    %c0_i32_1 = arith.constant 0 : i32
    return %c0_i32, %c0_i32_0 : i32, i32
  }
  func.func @transform_26(%arg0: i32) -> (i32, i32) {
    %c0_i32 = arith.constant 0 : i32
    %c0_i32_0 = arith.constant 0 : i32
    %c0_i32_1 = arith.constant 0 : i32
    return %c0_i32, %c0_i32_0 : i32, i32
  }
  func.func @transform_27(%arg0: i32) -> (i32, i32, i32) {
    %c0_i32 = arith.constant 0 : i32
    %c0_i32_0 = arith.constant 0 : i32
    %c0_i32_1 = arith.constant 0 : i32
    %c0_i32_2 = arith.constant 0 : i32
    return %c0_i32, %c0_i32_0, %c0_i32_1 : i32, i32, i32
  }
  func.func @transform_28(%arg0: i32) -> (i32, i32, i32) {
    %c0_i32 = arith.constant 0 : i32
    %c0_i32_0 = arith.constant 0 : i32
    %c0_i32_1 = arith.constant 0 : i32
    %c0_i32_2 = arith.constant 0 : i32
    return %c0_i32, %c0_i32_0, %c0_i32_1 : i32, i32, i32
  }
  func.func @transform_29(%arg0: i32) -> (i32, i32) {
    %c0_i32 = arith.constant 0 : i32
    %c0_i32_0 = arith.constant 0 : i32
    %c0_i32_1 = arith.constant 0 : i32
    return %c0_i32, %c0_i32_0 : i32, i32
  }
  func.func @transform_30(%arg0: i32) -> (i32, i32) {
    %c0_i32 = arith.constant 0 : i32
    %c0_i32_0 = arith.constant 0 : i32
    %c0_i32_1 = arith.constant 0 : i32
    return %c0_i32, %c0_i32_0 : i32, i32
  }
  func.func @transform_31(%arg0: i32) -> (i32, i32) {
    %c0_i32 = arith.constant 0 : i32
    %c0_i32_0 = arith.constant 0 : i32
    %c0_i32_1 = arith.constant 0 : i32
    return %c0_i32, %c0_i32_0 : i32, i32
  }
  func.func @transform_32(%arg0: i32) -> (i32, i32) {
    %c0_i32 = arith.constant 0 : i32
    %c0_i32_0 = arith.constant 0 : i32
    %c0_i32_1 = arith.constant 0 : i32
    return %c0_i32, %c0_i32_0 : i32, i32
  }
  func.func @transform_33(%arg0: i32) -> (i32, i32, i32) {
    %c0_i32 = arith.constant 0 : i32
    %c0_i32_0 = arith.constant 0 : i32
    %c0_i32_1 = arith.constant 0 : i32
    %c0_i32_2 = arith.constant 0 : i32
    return %c0_i32, %c0_i32_0, %c0_i32_1 : i32, i32, i32
  }
  func.func @transform_34(%arg0: i32) -> (i32, i32) {
    %c0_i32 = arith.constant 0 : i32
    %c0_i32_0 = arith.constant 0 : i32
    %c0_i32_1 = arith.constant 0 : i32
    return %c0_i32, %c0_i32_0 : i32, i32
  }
  func.func @transform_35(%arg0: i32) -> (i32, i32) {
    %c0_i32 = arith.constant 0 : i32
    %c0_i32_0 = arith.constant 0 : i32
    %c0_i32_1 = arith.constant 0 : i32
    return %c0_i32, %c0_i32_0 : i32, i32
  }
  func.func @transform_36(%arg0: i32) -> (i32, i32) {
    %c0_i32 = arith.constant 0 : i32
    %c0_i32_0 = arith.constant 0 : i32
    %c0_i32_1 = arith.constant 0 : i32
    return %c0_i32, %c0_i32_0 : i32, i32
  }
  func.func @transform_37(%arg0: i32) -> (i32, i32) {
    %c0_i32 = arith.constant 0 : i32
    %c0_i32_0 = arith.constant 0 : i32
    %c0_i32_1 = arith.constant 0 : i32
    return %c0_i32, %c0_i32_0 : i32, i32
  }
  func.func @transform_38(%arg0: i32) -> (i32, i32, i32) {
    %c0_i32 = arith.constant 0 : i32
    %c0_i32_0 = arith.constant 0 : i32
    %c0_i32_1 = arith.constant 0 : i32
    %c0_i32_2 = arith.constant 0 : i32
    return %c0_i32, %c0_i32_0, %c0_i32_1 : i32, i32, i32
  }
  func.func @transform_39(%arg0: i32) -> (i32, i32) {
    %c0_i32 = arith.constant 0 : i32
    %c0_i32_0 = arith.constant 0 : i32
    %c0_i32_1 = arith.constant 0 : i32
    return %c0_i32, %c0_i32_0 : i32, i32
  }
  func.func @transform_40(%arg0: i32) -> (i32, i32) {
    %c0_i32 = arith.constant 0 : i32
    %c0_i32_0 = arith.constant 0 : i32
    %c0_i32_1 = arith.constant 0 : i32
    return %c0_i32, %c0_i32_0 : i32, i32
  }
  func.func @transform_41(%arg0: i32) -> (i32, i32) {
    %c0_i32 = arith.constant 0 : i32
    %c0_i32_0 = arith.constant 0 : i32
    %c0_i32_1 = arith.constant 0 : i32
    return %c0_i32, %c0_i32_0 : i32, i32
  }
  func.func @transform_42(%arg0: i32) -> (i32, i32) {
    %c0_i32 = arith.constant 0 : i32
    %c0_i32_0 = arith.constant 0 : i32
    %c0_i32_1 = arith.constant 0 : i32
    return %c0_i32, %c0_i32_0 : i32, i32
  }
  func.func @transform_43(%arg0: i32) -> (i32, i32) {
    %c0_i32 = arith.constant 0 : i32
    %c0_i32_0 = arith.constant 0 : i32
    %c0_i32_1 = arith.constant 0 : i32
    return %c0_i32, %c0_i32_0 : i32, i32
  }
  func.func @transform_44(%arg0: i32) -> (i32, i32, i32) {
    %c0_i32 = arith.constant 0 : i32
    %c0_i32_0 = arith.constant 0 : i32
    %c0_i32_1 = arith.constant 0 : i32
    %c0_i32_2 = arith.constant 0 : i32
    return %c0_i32, %c0_i32_0, %c0_i32_1 : i32, i32, i32
  }
  func.func @transform_45(%arg0: i32) -> (i32, i32, i32) {
    %c0_i32 = arith.constant 0 : i32
    %c0_i32_0 = arith.constant 0 : i32
    %c0_i32_1 = arith.constant 0 : i32
    %c0_i32_2 = arith.constant 0 : i32
    return %c0_i32, %c0_i32_0, %c0_i32_1 : i32, i32, i32
  }
  func.func @transform_46(%arg0: i32) -> (i32, i32) {
    %c0_i32 = arith.constant 0 : i32
    %c0_i32_0 = arith.constant 0 : i32
    %c0_i32_1 = arith.constant 0 : i32
    return %c0_i32, %c0_i32_0 : i32, i32
  }
  func.func @transform_47(%arg0: i32) -> (i32, i32) {
    %c0_i32 = arith.constant 0 : i32
    %c0_i32_0 = arith.constant 0 : i32
    %c0_i32_1 = arith.constant 0 : i32
    return %c0_i32, %c0_i32_0 : i32, i32
  }
  func.func @transform_48(%arg0: i32) -> (i32, i32) {
    %c0_i32 = arith.constant 0 : i32
    %c0_i32_0 = arith.constant 0 : i32
    %c0_i32_1 = arith.constant 0 : i32
    return %c0_i32, %c0_i32_0 : i32, i32
  }
  func.func @transform_49(%arg0: i32) -> (i32, i32) {
    %c0_i32 = arith.constant 0 : i32
    %c0_i32_0 = arith.constant 0 : i32
    %c0_i32_1 = arith.constant 0 : i32
    return %c0_i32, %c0_i32_0 : i32, i32
  }
  func.func @transform_50(%arg0: i32) -> (i32, i32, i32) {
    %c0_i32 = arith.constant 0 : i32
    %c0_i32_0 = arith.constant 0 : i32
    %c0_i32_1 = arith.constant 0 : i32
    %c0_i32_2 = arith.constant 0 : i32
    return %c0_i32, %c0_i32_0, %c0_i32_1 : i32, i32, i32
  }
  func.func @transform_51(%arg0: i32) -> (i32, i32) {
    %c0_i32 = arith.constant 0 : i32
    %c0_i32_0 = arith.constant 0 : i32
    %c0_i32_1 = arith.constant 0 : i32
    return %c0_i32, %c0_i32_0 : i32, i32
  }
  func.func @transform_52(%arg0: i32) -> (i32, i32) {
    %c0_i32 = arith.constant 0 : i32
    %c0_i32_0 = arith.constant 0 : i32
    %c0_i32_1 = arith.constant 0 : i32
    return %c0_i32, %c0_i32_0 : i32, i32
  }
  func.func @transform_53(%arg0: i32) -> (i32, i32) {
    %c0_i32 = arith.constant 0 : i32
    %c0_i32_0 = arith.constant 0 : i32
    %c0_i32_1 = arith.constant 0 : i32
    return %c0_i32, %c0_i32_0 : i32, i32
  }
  func.func @transform_54(%arg0: i32) -> (i32, i32) {
    %c0_i32 = arith.constant 0 : i32
    %c0_i32_0 = arith.constant 0 : i32
    %c0_i32_1 = arith.constant 0 : i32
    return %c0_i32, %c0_i32_0 : i32, i32
  }
  func.func @transform_55(%arg0: i32) -> (i32, i32, i32) {
    %c0_i32 = arith.constant 0 : i32
    %c0_i32_0 = arith.constant 0 : i32
    %c0_i32_1 = arith.constant 0 : i32
    %c0_i32_2 = arith.constant 0 : i32
    return %c0_i32, %c0_i32_0, %c0_i32_1 : i32, i32, i32
  }
  func.func @transform_56(%arg0: i32) -> (i32, i32) {
    %c0_i32 = arith.constant 0 : i32
    %c0_i32_0 = arith.constant 0 : i32
    %c0_i32_1 = arith.constant 0 : i32
    return %c0_i32, %c0_i32_0 : i32, i32
  }
  func.func @transform_57(%arg0: i32) -> (i32, i32) {
    %c0_i32 = arith.constant 0 : i32
    %c0_i32_0 = arith.constant 0 : i32
    %c0_i32_1 = arith.constant 0 : i32
    return %c0_i32, %c0_i32_0 : i32, i32
  }
  func.func @transform_58(%arg0: i32) -> (i32, i32) {
    %c0_i32 = arith.constant 0 : i32
    %c0_i32_0 = arith.constant 0 : i32
    %c0_i32_1 = arith.constant 0 : i32
    return %c0_i32, %c0_i32_0 : i32, i32
  }
  func.func @transform_59(%arg0: i32) -> (i32, i32) {
    %c0_i32 = arith.constant 0 : i32
    %c0_i32_0 = arith.constant 0 : i32
    %c0_i32_1 = arith.constant 0 : i32
    return %c0_i32, %c0_i32_0 : i32, i32
  }
  func.func @transform_60(%arg0: i32) -> (i32, i32) {
    %c0_i32 = arith.constant 0 : i32
    %c0_i32_0 = arith.constant 0 : i32
    %c0_i32_1 = arith.constant 0 : i32
    return %c0_i32, %c0_i32_0 : i32, i32
  }
  func.func @transform_61(%arg0: i32) -> (i32, i32, i32) {
    %c0_i32 = arith.constant 0 : i32
    %c0_i32_0 = arith.constant 0 : i32
    %c0_i32_1 = arith.constant 0 : i32
    %c0_i32_2 = arith.constant 0 : i32
    return %c0_i32, %c0_i32_0, %c0_i32_1 : i32, i32, i32
  }
  func.func @transform_62(%arg0: i32) -> (i32, i32, i32) {
    %c0_i32 = arith.constant 0 : i32
    %c0_i32_0 = arith.constant 0 : i32
    %c0_i32_1 = arith.constant 0 : i32
    %c0_i32_2 = arith.constant 0 : i32
    return %c0_i32, %c0_i32_0, %c0_i32_1 : i32, i32, i32
  }
  func.func @transform_63(%arg0: i32) -> (i32, i32) {
    %c0_i32 = arith.constant 0 : i32
    %c0_i32_0 = arith.constant 0 : i32
    %c0_i32_1 = arith.constant 0 : i32
    return %c0_i32, %c0_i32_0 : i32, i32
  }
  func.func @transform_64(%arg0: i32) -> (i32, i32) {
    %c0_i32 = arith.constant 0 : i32
    %c0_i32_0 = arith.constant 0 : i32
    %c0_i32_1 = arith.constant 0 : i32
    return %c0_i32, %c0_i32_0 : i32, i32
  }
  func.func @transform_65(%arg0: i32) -> (i32, i32) {
    %c0_i32 = arith.constant 0 : i32
    %c0_i32_0 = arith.constant 0 : i32
    %c0_i32_1 = arith.constant 0 : i32
    return %c0_i32, %c0_i32_0 : i32, i32
  }
  func.func @transform_66(%arg0: i32) -> (i32, i32) {
    %c0_i32 = arith.constant 0 : i32
    %c0_i32_0 = arith.constant 0 : i32
    %c0_i32_1 = arith.constant 0 : i32
    return %c0_i32, %c0_i32_0 : i32, i32
  }
  func.func @transform_67(%arg0: i32) -> (i32, i32) {
    %c0_i32 = arith.constant 0 : i32
    %c0_i32_0 = arith.constant 0 : i32
    %c0_i32_1 = arith.constant 0 : i32
    return %c0_i32, %c0_i32_0 : i32, i32
  }
  func.func @transform_68(%arg0: i32) -> (i32, i32) {
    %c0_i32 = arith.constant 0 : i32
    %c0_i32_0 = arith.constant 0 : i32
    %c0_i32_1 = arith.constant 0 : i32
    return %c0_i32, %c0_i32_0 : i32, i32
  }
  func.func @transform_69(%arg0: i32) -> (i32, i32) {
    %c0_i32 = arith.constant 0 : i32
    %c0_i32_0 = arith.constant 0 : i32
    %c0_i32_1 = arith.constant 0 : i32
    return %c0_i32, %c0_i32_0 : i32, i32
  }
  func.func @transform_70(%arg0: i32) -> (i32, i32, i32) {
    %c0_i32 = arith.constant 0 : i32
    %c0_i32_0 = arith.constant 0 : i32
    %c0_i32_1 = arith.constant 0 : i32
    %c0_i32_2 = arith.constant 0 : i32
    return %c0_i32, %c0_i32_0, %c0_i32_1 : i32, i32, i32
  }
  func.func @transform_71(%arg0: i32) -> (i32, i32) {
    %c0_i32 = arith.constant 0 : i32
    %c0_i32_0 = arith.constant 0 : i32
    %c0_i32_1 = arith.constant 0 : i32
    return %c0_i32, %c0_i32_0 : i32, i32
  }
  func.func @transform_72(%arg0: i32) -> (i32, i32) {
    %c0_i32 = arith.constant 0 : i32
    %c0_i32_0 = arith.constant 0 : i32
    %c0_i32_1 = arith.constant 0 : i32
    return %c0_i32, %c0_i32_0 : i32, i32
  }
  func.func @transform_73(%arg0: i32) -> (i32, i32) {
    %c0_i32 = arith.constant 0 : i32
    %c0_i32_0 = arith.constant 0 : i32
    %c0_i32_1 = arith.constant 0 : i32
    return %c0_i32, %c0_i32_0 : i32, i32
  }
  func.func @transform_74(%arg0: i32) -> (i32, i32) {
    %c0_i32 = arith.constant 0 : i32
    %c0_i32_0 = arith.constant 0 : i32
    %c0_i32_1 = arith.constant 0 : i32
    return %c0_i32, %c0_i32_0 : i32, i32
  }
  func.func @transform_75(%arg0: i32) -> (i32, i32, i32) {
    %c0_i32 = arith.constant 0 : i32
    %c0_i32_0 = arith.constant 0 : i32
    %c0_i32_1 = arith.constant 0 : i32
    %c0_i32_2 = arith.constant 0 : i32
    return %c0_i32, %c0_i32_0, %c0_i32_1 : i32, i32, i32
  }
  func.func @transform_76(%arg0: i32) -> (i32, i32, i32) {
    %c0_i32 = arith.constant 0 : i32
    %c0_i32_0 = arith.constant 0 : i32
    %c0_i32_1 = arith.constant 0 : i32
    return %arg0, %c0_i32, %c0_i32_0 : i32, i32, i32
  }
}

</mosaic_0001>

<bundles_post_ra>
// kernel: _lambda_.1
= control target key start
LH: loop header
LB: loop body
LE: loop exit
PB: predicated region body
PF: predicated region fallthrough
CT: control target
= control target key end

     0   :  { %s13405_s6 = smov 1   ;;  %s13406_s10 = smov 2   ;;  %s16325_s0 = inlined_call_operand.smem [shape: u32[77], index: -1, kind: input, shape index: {}] }
   0x1   :  { %s13535_s5 = sld [smem:[%s16325_s0]]   ;;  %s13407_s14 = smov 3  }
   0x2   :  { %s13540_s9 = sld [smem:[%s16325_s0 + %s13405_s6]]   ;;  %s13408_s18 = smov 4  }
   0x3   :  { %s13545_s13 = sld [smem:[%s16325_s0 + %s13406_s10]]   ;;  %s13409_s22 = smov 5  }
   0x4   :  { %s13550_s17 = sld [smem:[%s16325_s0 + %s13407_s14]]   ;;  %s13410_s26 = smov 6  }
   0x5   :  { %s13555_s21 = sld [smem:[%s16325_s0 + %s13408_s18]]   ;;  %s13411_s30 = smov 7  }
   0x6   :  { %s13560_s25 = sld [smem:[%s16325_s0 + %s13409_s22]]   ;;  %s13412_s4 = smov 8  }
   0x7   :  { %16425 = sst [smem:[#allocation73_spill]] %s13535_s5  ;;  %s13413_s10 = smov 9  }
   0x8   :  { %16426 = sst [smem:[#allocation74_spill]] %s13540_s9  ;;  %s13414_s15 = smov 10  }
   0x9   :  { %16427 = sst [smem:[#allocation75_spill]] %s13545_s13  ;;  %s13415_s20 = smov 11  }
   0xa   :  { %16428 = sst [smem:[#allocation76_spill]] %s13550_s17  ;;  %s13417_s1 = smov 13  }
   0xb   :  { %s13565_s29 = sld [smem:[%s16325_s0 + %s13410_s26]]   ;;  %s13416_s26 = smov 12  }
   0xc   :  { %16429 = sst [smem:[#allocation77_spill]] %s13560_s25  ;;  %s13418_s7 = smov 14  }
   0xd   :  { %s13570_s3 = sld [smem:[%s16325_s0 + %s13411_s30]]   ;;  %s13420_s22 = smov 16  }
   0xe   :  { %s13575_s8 = sld [smem:[%s16325_s0 + %s13412_s4]]   ;;  %s13421_s28 = smov 17  }
   0xf   :  { %s13580_s14 = sld [smem:[%s16325_s0 + %s13413_s10]]  }
  0x10   :  { %s13585_s19 = sld [smem:[%s16325_s0 + %s13414_s15]]   ;;  %s13419_s15 = smov 15  }
  0x11   :  { %16430 = sst [smem:[#allocation78_spill]] %s13565_s29 }
  0x12   :  { %s13590_s24 = sld [smem:[%s16325_s0 + %s13415_s20]]  }
  0x13   :  { %16431 = sst [smem:[#allocation79_spill]] %s13570_s3 }
  0x14   :  { %16432 = sst [smem:[#allocation80_spill]] %s13575_s8 }
  0x15   :  { %16433 = sst [smem:[#allocation81_spill]] %s13580_s14 }
  0x16   :  { %16434 = sst [smem:[#allocation82_spill]] %s13585_s19 }
  0x17   :  { %s13595_s30 = sld [smem:[%s16325_s0 + %s13416_s26]]  }
  0x18   :  { %16435 = sst [smem:[#allocation83_spill]] %s13590_s24 }
  0x19   :  { %s13600_s6 = sld [smem:[%s16325_s0 + %s13417_s1]]  }
  0x1a   :  { %s13605_s12 = sld [smem:[%s16325_s0 + %s13418_s7]]   ;;  %s13422_s7 = smov 18  }
  0x1b   :  { %s13610_s20 = sld [smem:[%s16325_s0 + %s13419_s15]]   ;;  %s13423_s15 = smov 19  }
  0x1c   :  { %s13615_s27 = sld [smem:[%s16325_s0 + %s13420_s22]]   ;;  %s13424_s22 = smov 20  }
  0x1d   :  { %16436 = sst [smem:[#allocation84_spill]] %s13595_s30 }
  0x1e   :  { %s13620_s4 = sld [smem:[%s16325_s0 + %s13421_s28]]   ;;  %s13425_s28 = smov 21  }
  0x1f   :  { %16437 = sst [smem:[#allocation85_spill]] %s13600_s6 }
  0x20   :  { %16438 = sst [smem:[#allocation86_spill]] %s13605_s12 }
  0x21   :  { %16439 = sst [smem:[#allocation87_spill]] %s13610_s20 }
  0x22   :  { %s13625_s24 = sld [smem:[%s16325_s0 + %s13422_s7]]   ;;  %s13426_s7 = smov 22  }
  0x23   :  { %s13630_s25 = sld [smem:[%s16325_s0 + %s13423_s15]]   ;;  %s13427_s15 = smov 23  }
  0x24   :  { %16440 = sst [smem:[#allocation88_spill]] %s13620_s4 }
  0x25   :  { %s13635_s30 = sld [smem:[%s16325_s0 + %s13424_s22]]   ;;  %s13428_s22 = smov 24  }
  0x26   :  { %s13640_s6 = sld [smem:[%s16325_s0 + %s13425_s28]]   ;;  %s13429_s28 = smov 25  }
  0x27   :  { %s13660_s29 = sld [smem:[%s16325_s0 + %s13429_s28]]   ;;  %s13433_s28 = smov 29  }
  0x28   :  { %16441 = sst [smem:[#allocation89_spill]] %s13625_s24 }
  0x29   :  { %16442 = sst [smem:[#allocation90_spill]] %s13630_s25 }
  0x2a   :  { %s13645_s24 = sld [smem:[%s16325_s0 + %s13426_s7]]   ;;  %s13430_s7 = smov 26  }
  0x2b   :  { %16443 = sst [smem:[#allocation91_spill]] %s13635_s30 }
  0x2c   :  { %16444 = sst [smem:[#allocation92_spill]] %s13640_s6 }
  0x2d   :  { %s13650_s25 = sld [smem:[%s16325_s0 + %s13427_s15]]   ;;  %s13431_s15 = smov 27  }
  0x2e   :  { %s13655_s30 = sld [smem:[%s16325_s0 + %s13428_s22]]   ;;  %s13432_s22 = smov 28  }
  0x2f   :  { %16447 = sst [smem:[#allocation95_spill]] %s13660_s29 }
  0x30   :  { %16445 = sst [smem:[#allocation93_spill]] %s13645_s24 }
  0x31   :  { %s13665_s3 = sld [smem:[%s16325_s0 + %s13430_s7]]   ;;  %s13434_s7 = smov 30  }
  0x32   :  { %s13670_s5 = sld [smem:[%s16325_s0 + %s13431_s15]]   ;;  %s13435_s15 = smov 31  }
  0x33   :  { %s13680_s29 = sld [smem:[%s16325_s0 + %s13433_s28]]   ;;  %s13437_s28 = smov 33  }
  0x34   :  { %16446 = sst [smem:[#allocation94_spill]] %s13655_s30 }
  0x35   :  { %s13675_s30 = sld [smem:[%s16325_s0 + %s13432_s22]]   ;;  %s13436_s22 = smov 32  }
  0x36   :  { %s13695_s24 = sld [smem:[%s16325_s0 + %s13436_s22]]   ;;  %s13440_s22 = smov 36  }
  0x37   :  { %16448 = sst [smem:[#allocation96_spill]] %s13665_s3 }
  0x38   :  { %16449 = sst [smem:[#allocation97_spill]] %s13670_s5 }
  0x39   :  { %16450 = sst [smem:[#allocation98_spill]] %s13680_s29 }
  0x3a   :  { %s13685_s3 = sld [smem:[%s16325_s0 + %s13434_s7]]   ;;  %s13438_s7 = smov 34  }
  0x3b   :  { %s13690_s5 = sld [smem:[%s16325_s0 + %s13435_s15]]   ;;  %s13439_s15 = smov 35  }
  0x3c   :  { %s13700_s29 = sld [smem:[%s16325_s0 + %s13437_s28]]   ;;  %s13441_s28 = smov 37  }
  0x3d   :  { %s13715_s4 = sld [smem:[%s16325_s0 + %s13440_s22]]   ;;  %s13444_s22 = smov 40  }
  0x40   :  { %16451 = sst [smem:[#allocation99_spill]] %s13685_s3 }
  0x41   :  { %16452 = sst [smem:[#allocation100_spill]] %s13690_s5 }
  0x42   :  { %16453 = sst [smem:[#allocation101_spill]] %s13700_s29 }
  0x43   :  { %s13705_s3 = sld [smem:[%s16325_s0 + %s13438_s7]]   ;;  %s13442_s7 = smov 38  }
  0x44   :  { %s13710_s5 = sld [smem:[%s16325_s0 + %s13439_s15]]   ;;  %s13443_s15 = smov 39  }
  0x45   :  { %16456 = sst [smem:[#allocation104_spill]] %s13715_s4 }
  0x46   :  { %s13720_s29 = sld [smem:[%s16325_s0 + %s13441_s28]]   ;;  %s13445_s28 = smov 41  }
  0x47   :  { %s13725_s20 = sld [smem:[%s16325_s0 + %s13442_s7]]   ;;  %s13446_s7 = smov 42  }
  0x48   :  { %s13735_s4 = sld [smem:[%s16325_s0 + %s13444_s22]]   ;;  %s13448_s22 = smov 44  }
  0x49   :  { %16454 = sst [smem:[#allocation102_spill]] %s13705_s3 }
  0x4a   :  { %16455 = sst [smem:[#allocation103_spill]] %s13710_s5 }
  0x4b   :  { %s13730_s5 = sld [smem:[%s16325_s0 + %s13443_s15]]   ;;  %s13447_s15 = smov 43  }
  0x4c   :  { %16457 = sst [smem:[#allocation105_spill]] %s13720_s29 }
  0x4d   :  { %16458 = sst [smem:[#allocation106_spill]] %s13725_s20 }
  0x4e   :  { %16460 = sst [smem:[#allocation108_spill]] %s13735_s4 }
  0x4f   :  { %s13740_s29 = sld [smem:[%s16325_s0 + %s13445_s28]]   ;;  %s13449_s28 = smov 45  }
  0x50   :  { %s13745_s20 = sld [smem:[%s16325_s0 + %s13446_s7]]   ;;  %s13450_s7 = smov 46  }
  0x51   :  { %16459 = sst [smem:[#allocation107_spill]] %s13730_s5 }
  0x52   :  { %s13750_s19 = sld [smem:[%s16325_s0 + %s13447_s15]]   ;;  %s13451_s15 = smov 47  }
  0x53   :  { %s13755_s4 = sld [smem:[%s16325_s0 + %s13448_s22]]   ;;  %s13452_s22 = smov 48  }
  0x54   :  { %s13775_s8 = sld [smem:[%s16325_s0 + %s13452_s22]]   ;;  %s13456_s22 = smov 52  }
  0x55   :  { %16461 = sst [smem:[#allocation109_spill]] %s13740_s29 }
  0x56   :  { %16462 = sst [smem:[#allocation110_spill]] %s13745_s20 }
  0x57   :  { %s13760_s29 = sld [smem:[%s16325_s0 + %s13449_s28]]   ;;  %s13453_s28 = smov 49  }
  0x58   :  { %16463 = sst [smem:[#allocation111_spill]] %s13750_s19 }
  0x59   :  { %16464 = sst [smem:[#allocation112_spill]] %s13755_s4 }
  0x5a   :  { %s13765_s20 = sld [smem:[%s16325_s0 + %s13450_s7]]   ;;  %s13454_s7 = smov 50  }
  0x5b   :  { %s13770_s19 = sld [smem:[%s16325_s0 + %s13451_s15]]   ;;  %s13455_s15 = smov 51  }
  0x5c   :  { %16468 = sst [smem:[#allocation116_spill]] %s13775_s8 }
  0x5d   :  { %16465 = sst [smem:[#allocation113_spill]] %s13760_s29 }
  0x5e   :  { %s13780_s29 = sld [smem:[%s16325_s0 + %s13453_s28]]   ;;  %s13457_s28 = smov 53  }
  0x5f   :  { %s13795_s8 = sld [smem:[%s16325_s0 + %s13456_s22]]   ;;  %s13460_s22 = smov 56  }
  0x60   :  { %16466 = sst [smem:[#allocation114_spill]] %s13765_s20 }
  0x61   :  { %16467 = sst [smem:[#allocation115_spill]] %s13770_s19 }
  0x62   :  { %s13785_s20 = sld [smem:[%s16325_s0 + %s13454_s7]]   ;;  %s13458_s7 = smov 54  }
  0x63   :  { %s13790_s19 = sld [smem:[%s16325_s0 + %s13455_s15]]   ;;  %s13459_s15 = smov 55  }
  0x64   :  { %s13800_s17 = sld [smem:[%s16325_s0 + %s13457_s28]]   ;;  %s13461_s28 = smov 57  }
  0x65   :  { %16470 = sst [smem:[#allocation118_spill]] %s13795_s8 }
  0x66   :  { %s13810_s9 = sld [smem:[%s16325_s0 + %s13459_s15]]   ;;  %s13463_s15 = smov 59  }
  0x67   :  { %s13815_s8 = sld [smem:[%s16325_s0 + %s13460_s22]]   ;;  %s13464_s22 = smov 60  }
  0x68   :  { %16469 = sst [smem:[#allocation117_spill]] %s13785_s20 }
  0x69   :  { %s13805_s20 = sld [smem:[%s16325_s0 + %s13458_s7]]   ;;  %s13462_s7 = smov 58  }
  0x6a   :  { %16471 = sst [smem:[#allocation119_spill]] %s13800_s17 }
  0x6b   :  { %s13820_s17 = sld [smem:[%s16325_s0 + %s13461_s28]]   ;;  %s13465_s28 = smov 61  }
  0x6c   :  { %16473 = sst [smem:[#allocation121_spill]] %s13810_s9 }
  0x6d   :  { %16474 = sst [smem:[#allocation122_spill]] %s13815_s8 }
  0x6e   :  { %s13830_s9 = sld [smem:[%s16325_s0 + %s13463_s15]]   ;;  %s13467_s15 = smov 63  }
  0x6f   :  { %16472 = sst [smem:[#allocation120_spill]] %s13805_s20 }
  0x70   :  { %s13825_s20 = sld [smem:[%s16325_s0 + %s13462_s7]]   ;;  %s13466_s7 = smov 62  }
  0x71   :  { %16475 = sst [smem:[#allocation123_spill]] %s13820_s17 }
  0x72   :  { %s13835_s8 = sld [smem:[%s16325_s0 + %s13464_s22]]   ;;  %s13468_s22 = smov 64  }
  0x73   :  { %s13840_s17 = sld [smem:[%s16325_s0 + %s13465_s28]]   ;;  %s13469_s28 = smov 65  }
  0x74   :  { %16477 = sst [smem:[#allocation125_spill]] %s13830_s9 }
  0x75   :  { %s13850_s9 = sld [smem:[%s16325_s0 + %s13467_s15]]   ;;  %s13471_s15 = smov 67  }
  0x76   :  { %16476 = sst [smem:[#allocation124_spill]] %s13825_s20 }
  0x77   :  { %s13845_s20 = sld [smem:[%s16325_s0 + %s13466_s7]]   ;;  %s13470_s7 = smov 66  }
  0x78   :  { %16478 = sst [smem:[#allocation126_spill]] %s13835_s8 }
  0x79   :  { %16479 = sst [smem:[#allocation127_spill]] %s13840_s17 }
  0x7a   :  { %s13855_s8 = sld [smem:[%s16325_s0 + %s13468_s22]]   ;;  %s13472_s22 = smov 68  }
  0x7b   :  { %16481 = sst [smem:[#allocation129_spill]] %s13850_s9 }
  0x7c   :  { %s13860_s17 = sld [smem:[%s16325_s0 + %s13469_s28]]   ;;  %s13473_s28 = smov 69  }
  0x7d   :  { %16480 = sst [smem:[#allocation128_spill]] %s13845_s20 }
  0x7e   :  { %s13865_s20 = sld [smem:[%s16325_s0 + %s13470_s7]]   ;;  %s13474_s7 = smov 70  }
  0x7f   :  { %s13870_s9 = sld [smem:[%s16325_s0 + %s13471_s15]]   ;;  %s13475_s15 = smov 71  }
  0x80   :  { %16482 = sst [smem:[#allocation130_spill]] %s13855_s8 }
  0x81   :  { %s13875_s8 = sld [smem:[%s16325_s0 + %s13472_s22]]   ;;  %s13476_s22 = smov 72  }
  0x82   :  { %16483 = sst [smem:[#allocation131_spill]] %s13860_s17 }
  0x83   :  { %s13880_s17 = sld [smem:[%s16325_s0 + %s13473_s28]]   ;;  %s13477_s28 = smov 73  }
  0x84   :  { %16484 = sst [smem:[#allocation132_spill]] %s13865_s20 }
  0x85   :  { %16485 = sst [smem:[#allocation133_spill]] %s13870_s9 }
  0x86   :  { %s13885_s20 = sld [smem:[%s16325_s0 + %s13474_s7]]   ;;  %s13478_s7 = smov 74  }
  0x87   :  { %16486 = sst [smem:[#allocation134_spill]] %s13875_s8 }
  0x88   :  { %s13890_s9 = sld [smem:[%s16325_s0 + %s13475_s15]]   ;;  %s13479_s15 = smov 75  }
  0x89   :  { %16487 = sst [smem:[#allocation135_spill]] %s13880_s17 }
  0x8a   :  { %s13895_s8 = sld [smem:[%s16325_s0 + %s13476_s22]]   ;;  %s13480_s22 = smov 76  }
  0x8b   :  { %s13900_s17 = sld [smem:[%s16325_s0 + %s13477_s28]]  }
  0x8c   :  { %16488 = sst [smem:[#allocation136_spill]] %s13885_s20 }
  0x8d   :  { %s13905_s20 = sld [smem:[%s16325_s0 + %s13478_s7]]  }
  0x8e   :  { %16489 = sst [smem:[#allocation137_spill]] %s13890_s9 }
  0x8f   :  { %s13910_s9 = sld [smem:[%s16325_s0 + %s13479_s15]]  }
  0x90   :  { %16490 = sst [smem:[#allocation138_spill]] %s13895_s8 }
  0x91   :  { %s13915_s8 = sld [smem:[%s16325_s0 + %s13480_s22]]  }
  0x92   :  { %158 = vsyncpa [#allocation3], 0 }
  0x93   :  { %159 = vsyncpa [#allocation5], 0 }
  0x94   :  { %160 = vsyncpa [#allocation8], 0 }
  0x95   :  { %161 = vsyncpa [#allocation11], 0 }
  0x96   :  { %162 = vsyncpa [#allocation14], 0 }
  0x97   :  { %163 = vsyncpa [#allocation17], 0 }
  0x98   :  { %164 = vsyncpa [#allocation20], 0 }
  0x99   :  { %165 = vsyncpa [#allocation23], 0 }
  0x9a   :  { %166 = vsyncpa [#allocation26], 0 }
  0x9b   :  { %167 = vsyncpa [#allocation29], 0 }
  0x9c   :  { %168 = vsyncpa [#allocation32], 0 }
  0x9d   :  { %169 = vsyncpa [#allocation35], 0 }
  0x9e   :  { %170 = vsyncpa [#allocation38], 0 }
  0x9f   :  { %171 = vsyncpa [#allocation41], 0 }
  0xa0   :  { %172 = vsyncpa [#allocation44], 0 }
  0xa1   :  { %173 = vsyncpa [#allocation47], 0 }
  0xa2   :  { %174 = vsyncpa [#allocation50], 0 }
  0xa3   :  { %175 = vsyncpa [#allocation53], 0  ;;  %s13917_s0 = smov 0  }
  0xa4 LB: > { %s16491_s14 = sld [smem:[#allocation81_spill]]  ;;  %s16492_s13 = sld [smem:[#allocation75_spill]]  ;;  %s13403_s0 = sphi %s13917_s0, %s181_s0  }
  0xa5   : > { %s16493_s12 = sld [smem:[#allocation86_spill]]  ;;  %s16494_s6 = sld [smem:[#allocation92_spill]] }
  0xa6   : > { %s16495_s5 = sld [smem:[#allocation107_spill]]  ;;  %s16496_s4 = sld [smem:[#allocation112_spill]] }
  0xa7   : > { %s16497_s3 = sld [smem:[#allocation102_spill]]  ;;  %s13923_s28 = sadd.s32 4294967295, %s13403_s0  }
  0xa8   : > { %p10696_p0 = scmp.ge.s32.totalorder %s13403_s0, 1  ;;  %p1813_p1 = scmp.lt.s32.totalorder %s13403_s0, 3 }
  0xaa   : > { %p13927_p2 = pnand %p10696_p0, %p1813_p1 }
  0xab   : > { %p11905_p3 = scmp.eq.s32.totalorder (!%p13927_p2), %s13923_s28, 0  ;;  %s13481_s2 = smov (!%p13927_p2), [#allocation4]  }
  0xac   : > { %1817 = sbr.rel (%p13927_p2) target bundleno = 1028 (0x404), region = 12  ;;  %s1838_s7 = sshll.u32 (!%p13927_p2), %s13481_s2, 4  ;;  %s1839_s7 = int_to_ptr.vmem [resolvable:$true] %s1838_s7 }
  0xad   : > { %s13482_s10 = smov (!%p13927_p2), [#allocation7]   ;;  %s12415_s15 = scalar_lea.hbm (!%p13927_p2), %s16492_s13, 256 }
  0xae   : > { %s1863_s11 = sshll.u32 (!%p13927_p2), %s13482_s10, 4  ;;  %p12416_p4 = scmp.ne.s32.totalorder (!%p13927_p2), %s16492_s13, %s12415_s15  ;;  %s1864_s11 = int_to_ptr.vmem [resolvable:$true] %s1863_s11 }
  0xaf   : > { %p12421_p7 = scmp.lt.u32.totalorder (!%p13927_p2), %s12415_s15, %s16492_s13 }
  0xb0   : > { %p12417_p5 = pnand (!%p13927_p2), %p12416_p4, %p11905_p3 }
  0xb2   : > { %p12418_p6 = pneg (!%p13927_p2), %p12417_p5 }
  0xb4   : > { %p12423_p8 = pnand %p12421_p7, %p12418_p6 }
  0xb6   : > { %12426 = shalt.err (!%p12423_p8)
}
  0xb7   : > { %s12427_s16 = scalar_lea.vmem %s1839_s7, 256  ;;  %p12434_p12 = scmp.lt.s32.totalorder %s1839_s7, %s1839_s7 }
  0xb8   : > { %p12428_p9 = scmp.ne.s32.totalorder %s1839_s7, %s12427_s16  ;;  %p12435_p13 = scmp.lt.s32.totalorder %s12427_s16, %s12427_s16 }
  0xba   : > { %p12429_p10 = pnand %p12428_p9, %p11905_p3  ;;  %p12436_p0 = por %p12435_p13, %p12434_p12 }
  0xbc   : > { %p12430_p11 = pneg %p12429_p10 }
  0xbe   : > { %p12437_p1 = pnand %p12436_p0, %p12430_p11 }
  0xc0   : > { %12440 = shalt.err (!%p12437_p1)
}
  0xc1   : > { %s16361_s18 = smov 128   ;;  %s16370_s22 = smov 8  }
  0xc2   : > { %11768 = dma.hbm_to_vmem [thread:$0]  (%p11905_p3), %s16492_s13, 256, %s1839_s7, [#allocation5], %s16361_s18, %s16361_s18, %s16370_s22  }
  0xc3   : > { %s12441_s23 = scalar_lea.hbm %s13555_s21, 64 }
  0xc4   : > { %p12442_p4 = scmp.ne.s32.totalorder %s13555_s21, %s12441_s23  ;;  %p12447_p7 = scmp.lt.u32.totalorder %s12441_s23, %s13555_s21 }
  0xc6   : > { %p12443_p5 = pnand %p12442_p4, %p11905_p3 }
  0xc8   : > { %p12444_p6 = pneg %p12443_p5 }
  0xca   : > { %p12449_p8 = pnand %p12447_p7, %p12444_p6 }
  0xcc   : > { %12452 = shalt.err (!%p12449_p8)
}
  0xcd   : > { %s12453_s26 = scalar_lea.vmem %s1864_s11, 64  ;;  %p12460_p12 = scmp.lt.s32.totalorder %s1864_s11, %s1864_s11 }
  0xce   : > { %p12454_p9 = scmp.ne.s32.totalorder %s1864_s11, %s12453_s26  ;;  %p12461_p13 = scmp.lt.s32.totalorder %s12453_s26, %s12453_s26 }
  0xd0   : > { %p12455_p10 = pnand %p12454_p9, %p11905_p3  ;;  %p12462_p0 = por %p12461_p13, %p12460_p12 }
  0xd2   : > { %p12456_p11 = pneg %p12455_p10 }
  0xd4   : > { %p12463_p1 = pnand %p12462_p0, %p12456_p11 }
  0xd6   : > { %12466 = shalt.err (!%p12463_p1)
}
  0xd7   : > { %11772 = dma.hbm_to_vmem [thread:$0]  (%p11905_p3), %s13555_s21, 64, %s1864_s11, [#allocation8]  }
  0xd8   : > { %s13485_s2 = smov [#allocation10]   ;;  %s13486_s10 = smov [#allocation13]  }
  0xd9   : > { %s1894_s7 = sshll.u32 %s13485_s2, 4  ;;  %s1925_s15 = sshll.u32 %s13486_s10, 4  ;;  %s1895_s7 = int_to_ptr.vmem [resolvable:$true] %s1894_s7  ;;  %s1926_s15 = int_to_ptr.vmem [resolvable:$true] %s1925_s15 }
  0xda   : > { %s12467_s16 = scalar_lea.hbm %s16491_s14, 64 }
  0xdb   : > { %p12468_p4 = scmp.ne.s32.totalorder %s16491_s14, %s12467_s16  ;;  %p12473_p7 = scmp.lt.u32.totalorder %s12467_s16, %s16491_s14 }
  0xdd   : > { %p12469_p5 = pnand %p12468_p4, %p11905_p3 }
  0xdf   : > { %p12470_p6 = pneg %p12469_p5 }
  0xe1   : > { %p12475_p8 = pnand %p12473_p7, %p12470_p6 }
  0xe3   : > { %12478 = shalt.err (!%p12475_p8)
}
  0xe4   : > { %s12479_s23 = scalar_lea.vmem %s1895_s7, 64  ;;  %p12486_p12 = scmp.lt.s32.totalorder %s1895_s7, %s1895_s7 }
  0xe5   : > { %p12480_p9 = scmp.ne.s32.totalorder %s1895_s7, %s12479_s23  ;;  %p12487_p13 = scmp.lt.s32.totalorder %s12479_s23, %s12479_s23 }
  0xe7   : > { %p12481_p10 = pnand %p12480_p9, %p11905_p3  ;;  %p12488_p0 = por %p12487_p13, %p12486_p12 }
  0xe9   : > { %p12482_p11 = pneg %p12481_p10 }
  0xeb   : > { %p12489_p1 = pnand %p12488_p0, %p12482_p11 }
  0xed   : > { %12492 = shalt.err (!%p12489_p1)
}
  0xee   : > { %11776 = dma.hbm_to_vmem [thread:$0]  (%p11905_p3), %s16491_s14, 64, %s1895_s7, [#allocation11]  }
  0xef   : > { %s12493_s11 = scalar_lea.hbm %s16493_s12, 32 }
  0xf0   : > { %p12494_p4 = scmp.ne.s32.totalorder %s16493_s12, %s12493_s11  ;;  %p12499_p7 = scmp.lt.u32.totalorder %s12493_s11, %s16493_s12 }
  0xf2   : > { %p12495_p5 = pnand %p12494_p4, %p11905_p3 }
  0xf4   : > { %p12496_p6 = pneg %p12495_p5 }
  0xf6   : > { %p12501_p8 = pnand %p12499_p7, %p12496_p6 }
  0xf8   : > { %12504 = shalt.err (!%p12501_p8)
}
  0xf9   : > { %s12505_s26 = scalar_lea.vmem %s1926_s15, 32  ;;  %p12512_p12 = scmp.lt.s32.totalorder %s1926_s15, %s1926_s15 }
  0xfa   : > { %p12506_p9 = scmp.ne.s32.totalorder %s1926_s15, %s12505_s26  ;;  %p12513_p13 = scmp.lt.s32.totalorder %s12505_s26, %s12505_s26 }
  0xfc   : > { %p12507_p10 = pnand %p12506_p9, %p11905_p3  ;;  %p12514_p0 = por %p12513_p13, %p12512_p12 }
  0xfe   : > { %p12508_p11 = pneg %p12507_p10 }
 0x100   : > { %p12515_p1 = pnand %p12514_p0, %p12508_p11 }
 0x102   : > { %12518 = shalt.err (!%p12515_p1)
}
 0x103   : > { %11780 = dma.hbm_to_vmem [thread:$0]  (%p11905_p3), %s16493_s12, 32, %s1926_s15, [#allocation14]  }
 0x104   : > { %s13487_s2 = smov [#allocation16]   ;;  %s13488_s10 = smov [#allocation19]  }
 0x105   : > { %s1946_s7 = sshll.u32 %s13487_s2, 4  ;;  %s1979_s16 = sshll.u32 %s13488_s10, 4  ;;  %s1947_s7 = int_to_ptr.vmem [resolvable:$true] %s1946_s7  ;;  %s1980_s16 = int_to_ptr.vmem [resolvable:$true] %s1979_s16 }
 0x106   : > { %s12519_s23 = scalar_lea.hbm %s13615_s27, 256 }
 0x107   : > { %p12520_p4 = scmp.ne.s32.totalorder %s13615_s27, %s12519_s23  ;;  %p12525_p7 = scmp.lt.u32.totalorder %s12519_s23, %s13615_s27 }
 0x109   : > { %p12521_p5 = pnand %p12520_p4, %p11905_p3 }
 0x10b   : > { %p12522_p6 = pneg %p12521_p5 }
 0x10d   : > { %p12527_p8 = pnand %p12525_p7, %p12522_p6 }
 0x10f   : > { %12530 = shalt.err (!%p12527_p8)
}
 0x110   : > { %s12531_s11 = scalar_lea.vmem %s1947_s7, 256  ;;  %p12538_p12 = scmp.lt.s32.totalorder %s1947_s7, %s1947_s7 }
 0x111   : > { %p12532_p9 = scmp.ne.s32.totalorder %s1947_s7, %s12531_s11  ;;  %p12539_p13 = scmp.lt.s32.totalorder %s12531_s11, %s12531_s11 }
 0x113   : > { %p12533_p10 = pnand %p12532_p9, %p11905_p3  ;;  %p12540_p0 = por %p12539_p13, %p12538_p12 }
 0x115   : > { %p12534_p11 = pneg %p12533_p10 }
 0x117   : > { %p12541_p1 = pnand %p12540_p0, %p12534_p11 }
 0x119   : > { %12544 = shalt.err (!%p12541_p1)
}
 0x11a   : > { %11784 = dma.hbm_to_vmem [thread:$0]  (%p11905_p3), %s13615_s27, 256, %s1947_s7, [#allocation17], %s16361_s18, %s16361_s18, %s16370_s22  }
 0x11b   : > { %s12545_s15 = scalar_lea.hbm %s16494_s6, 64 }
 0x11c   : > { %p12546_p4 = scmp.ne.s32.totalorder %s16494_s6, %s12545_s15  ;;  %p12551_p7 = scmp.lt.u32.totalorder %s12545_s15, %s16494_s6 }
 0x11e   : > { %p12547_p5 = pnand %p12546_p4, %p11905_p3 }
 0x120   : > { %p12548_p6 = pneg %p12547_p5 }
 0x122   : > { %p12553_p8 = pnand %p12551_p7, %p12548_p6 }
 0x124   : > { %12556 = shalt.err (!%p12553_p8)
}
 0x125   : > { %s12557_s26 = scalar_lea.vmem %s1980_s16, 64  ;;  %p12564_p12 = scmp.lt.s32.totalorder %s1980_s16, %s1980_s16 }
 0x126   : > { %p12558_p9 = scmp.ne.s32.totalorder %s1980_s16, %s12557_s26  ;;  %p12565_p13 = scmp.lt.s32.totalorder %s12557_s26, %s12557_s26 }
 0x128   : > { %p12559_p10 = pnand %p12558_p9, %p11905_p3  ;;  %p12566_p0 = por %p12565_p13, %p12564_p12 }
 0x12a   : > { %p12560_p11 = pneg %p12559_p10 }
 0x12c   : > { %p12567_p1 = pnand %p12566_p0, %p12560_p11 }
 0x12e   : > { %12570 = shalt.err (!%p12567_p1)
}
 0x12f   : > { %s16363_s2 = smov 32   ;;  %s16365_s7 = smov 2  }
 0x130   : > { %11788 = dma.hbm_to_vmem [thread:$0]  (%p11905_p3), %s16494_s6, 64, %s1980_s16, [#allocation20], %s16363_s2, %s16363_s2, %s16365_s7  }
 0x131   : > { %s13491_s10 = smov [#allocation22]   ;;  %s13492_s11 = smov [#allocation25]  }
 0x132   : > { %s2004_s23 = sshll.u32 %s13491_s10, 4  ;;  %s2034_s15 = sshll.u32 %s13492_s11, 4  ;;  %s2005_s23 = int_to_ptr.vmem [resolvable:$true] %s2004_s23  ;;  %s2035_s15 = int_to_ptr.vmem [resolvable:$true] %s2034_s15 }
 0x133   : > { %s12571_s26 = scalar_lea.hbm %s13650_s25, 128 }
 0x134   : > { %p12572_p4 = scmp.ne.s32.totalorder %s13650_s25, %s12571_s26  ;;  %p12577_p7 = scmp.lt.u32.totalorder %s12571_s26, %s13650_s25 }
 0x136   : > { %p12573_p5 = pnand %p12572_p4, %p11905_p3 }
 0x138   : > { %p12574_p6 = pneg %p12573_p5 }
 0x13a   : > { %p12579_p8 = pnand %p12577_p7, %p12574_p6 }
 0x13c   : > { %12582 = shalt.err (!%p12579_p8)
}
 0x13d   : > { %s12583_s18 = scalar_lea.vmem %s2005_s23, 128  ;;  %p12590_p12 = scmp.lt.s32.totalorder %s2005_s23, %s2005_s23 }
 0x13e   : > { %p12584_p9 = scmp.ne.s32.totalorder %s2005_s23, %s12583_s18  ;;  %p12591_p13 = scmp.lt.s32.totalorder %s12583_s18, %s12583_s18 }
 0x140   : > { %p12585_p10 = pnand %p12584_p9, %p11905_p3  ;;  %p12592_p0 = por %p12591_p13, %p12590_p12 }
 0x142   : > { %p12586_p11 = pneg %p12585_p10 }
 0x144   : > { %p12593_p1 = pnand %p12592_p0, %p12586_p11 }
 0x146   : > { %12596 = shalt.err (!%p12593_p1)
}
 0x147   : > { %11792 = dma.hbm_to_vmem [thread:$0]  (%p11905_p3), %s13650_s25, 128, %s2005_s23, [#allocation23]  }
 0x148   : > { %s12597_s16 = scalar_lea.hbm %s13675_s30, 16384 }
 0x149   : > { %p12598_p4 = scmp.ne.s32.totalorder %s13675_s30, %s12597_s16  ;;  %p12603_p7 = scmp.lt.u32.totalorder %s12597_s16, %s13675_s30 }
 0x14b   : > { %p12599_p5 = pnand %p12598_p4, %p11905_p3 }
 0x14d   : > { %p12600_p6 = pneg %p12599_p5 }
 0x14f   : > { %p12605_p8 = pnand %p12603_p7, %p12600_p6 }
 0x151   : > { %12608 = shalt.err (!%p12605_p8)
}
 0x152   : > { %s12609_s18 = scalar_lea.vmem %s2035_s15, 16384  ;;  %p12616_p12 = scmp.lt.s32.totalorder %s2035_s15, %s2035_s15 }
 0x153   : > { %p12610_p9 = scmp.ne.s32.totalorder %s2035_s15, %s12609_s18  ;;  %p12617_p13 = scmp.lt.s32.totalorder %s12609_s18, %s12609_s18 }
 0x155   : > { %p12611_p10 = pnand %p12610_p9, %p11905_p3  ;;  %p12618_p0 = por %p12617_p13, %p12616_p12 }
 0x157   : > { %p12612_p11 = pneg %p12611_p10 }
 0x159   : > { %p12619_p1 = pnand %p12618_p0, %p12612_p11 }
 0x15b   : > { %12622 = shalt.err (!%p12619_p1)
}
 0x15c   : > { %s16499_s10 = smov 128   ;;  %s13493_s23 = smov [#allocation28]  }
 0x15d   : > { %11796 = dma.hbm_to_vmem [thread:$0]  (%p11905_p3), %s13675_s30, 16384, %s2035_s15, [#allocation26], %s16499_s10, %s16499_s10, %s16370_s22  }
 0x15e   : > { %s2065_s11 = sshll.u32 %s13493_s23, 4  ;;  %s13494_s26 = smov [#allocation31]   ;;  %s2066_s11 = int_to_ptr.vmem [resolvable:$true] %s2065_s11 }
 0x15f   : > { %s2088_s16 = sshll.u32 %s13494_s26, 4  ;;  %s12623_s18 = scalar_lea.hbm %s13695_s24, 32  ;;  %s2089_s16 = int_to_ptr.vmem [resolvable:$true] %s2088_s16 }
 0x160   : > { %p12624_p4 = scmp.ne.s32.totalorder %s13695_s24, %s12623_s18  ;;  %p12629_p7 = scmp.lt.u32.totalorder %s12623_s18, %s13695_s24 }
 0x162   : > { %p12625_p5 = pnand %p12624_p4, %p11905_p3 }
 0x164   : > { %p12626_p6 = pneg %p12625_p5 }
 0x166   : > { %p12631_p8 = pnand %p12629_p7, %p12626_p6 }
 0x168   : > { %12634 = shalt.err (!%p12631_p8)
}
 0x169   : > { %s12635_s2 = scalar_lea.vmem %s2066_s11, 32  ;;  %p12642_p12 = scmp.lt.s32.totalorder %s2066_s11, %s2066_s11 }
 0x16a   : > { %p12636_p9 = scmp.ne.s32.totalorder %s2066_s11, %s12635_s2  ;;  %p12643_p13 = scmp.lt.s32.totalorder %s12635_s2, %s12635_s2 }
 0x16c   : > { %p12637_p10 = pnand %p12636_p9, %p11905_p3  ;;  %p12644_p0 = por %p12643_p13, %p12642_p12 }
 0x16e   : > { %p12638_p11 = pneg %p12637_p10 }
 0x170   : > { %p12645_p1 = pnand %p12644_p0, %p12638_p11 }
 0x172   : > { %12648 = shalt.err (!%p12645_p1)
}
 0x173   : > { %11800 = dma.hbm_to_vmem [thread:$0]  (%p11905_p3), %s13695_s24, 32, %s2066_s11, [#allocation29]  }
 0x174   : > { %s12649_s15 = scalar_lea.hbm %s16497_s3, 256 }
 0x175   : > { %p12650_p4 = scmp.ne.s32.totalorder %s16497_s3, %s12649_s15  ;;  %p12655_p7 = scmp.lt.u32.totalorder %s12649_s15, %s16497_s3 }
 0x177   : > { %p12651_p5 = pnand %p12650_p4, %p11905_p3 }
 0x179   : > { %p12652_p6 = pneg %p12651_p5 }
 0x17b   : > { %p12657_p8 = pnand %p12655_p7, %p12652_p6 }
 0x17d   : > { %12660 = shalt.err (!%p12657_p8)
}
 0x17e   : > { %s12661_s2 = scalar_lea.vmem %s2089_s16, 256  ;;  %p12668_p12 = scmp.lt.s32.totalorder %s2089_s16, %s2089_s16 }
 0x17f   : > { %p12662_p9 = scmp.ne.s32.totalorder %s2089_s16, %s12661_s2  ;;  %p12669_p13 = scmp.lt.s32.totalorder %s12661_s2, %s12661_s2 }
 0x181   : > { %p12663_p10 = pnand %p12662_p9, %p11905_p3  ;;  %p12670_p0 = por %p12669_p13, %p12668_p12 }
 0x183   : > { %p12664_p11 = pneg %p12663_p10 }
 0x185   : > { %p12671_p1 = pnand %p12670_p0, %p12664_p11 }
 0x187   : > { %12674 = shalt.err (!%p12671_p1)
}
 0x188   : > { %11804 = dma.hbm_to_vmem [thread:$0]  (%p11905_p3), %s16497_s3, 256, %s2089_s16, [#allocation32], %s16499_s10, %s16499_s10, %s16370_s22  }
 0x189   : > { %s13495_s23 = smov [#allocation34]   ;;  %s13496_s26 = smov [#allocation37]  }
 0x18a   : > { %s2124_s11 = sshll.u32 %s13495_s23, 4  ;;  %s2157_s18 = sshll.u32 %s13496_s26, 4  ;;  %s2125_s11 = int_to_ptr.vmem [resolvable:$true] %s2124_s11  ;;  %s2158_s18 = int_to_ptr.vmem [resolvable:$true] %s2157_s18 }
 0x18b   : > { %s12675_s15 = scalar_lea.hbm %s16495_s5, 32 }
 0x18c   : > { %p12676_p4 = scmp.ne.s32.totalorder %s16495_s5, %s12675_s15  ;;  %p12681_p7 = scmp.lt.u32.totalorder %s12675_s15, %s16495_s5 }
 0x18e   : > { %p12677_p5 = pnand %p12676_p4, %p11905_p3 }
 0x190   : > { %p12678_p6 = pneg %p12677_p5 }
 0x192   : > { %p12683_p8 = pnand %p12681_p7, %p12678_p6 }
 0x194   : > { %12686 = shalt.err (!%p12683_p8)
}
 0x195   : > { %s12687_s2 = scalar_lea.vmem %s2125_s11, 32  ;;  %p12694_p12 = scmp.lt.s32.totalorder %s2125_s11, %s2125_s11 }
 0x196   : > { %p12688_p9 = scmp.ne.s32.totalorder %s2125_s11, %s12687_s2  ;;  %p12695_p13 = scmp.lt.s32.totalorder %s12687_s2, %s12687_s2 }
 0x198   : > { %p12689_p10 = pnand %p12688_p9, %p11905_p3  ;;  %p12696_p0 = por %p12695_p13, %p12694_p12 }
 0x19a   : > { %p12690_p11 = pneg %p12689_p10 }
 0x19c   : > { %p12697_p1 = pnand %p12696_p0, %p12690_p11 }
 0x19e   : > { %12700 = shalt.err (!%p12697_p1)
}
 0x19f   : > { %11808 = dma.hbm_to_vmem [thread:$0]  (%p11905_p3), %s16495_s5, 32, %s2125_s11, [#allocation35]  }
 0x1a0   : > { %s12701_s16 = scalar_lea.hbm %s16496_s4, 32 }
 0x1a1   : > { %p12702_p4 = scmp.ne.s32.totalorder %s16496_s4, %s12701_s16  ;;  %p12707_p7 = scmp.lt.u32.totalorder %s12701_s16, %s16496_s4 }
 0x1a3   : > { %p12703_p5 = pnand %p12702_p4, %p11905_p3 }
 0x1a5   : > { %p12704_p6 = pneg %p12703_p5 }
 0x1a7   : > { %p12709_p8 = pnand %p12707_p7, %p12704_p6 }
 0x1a9   : > { %12712 = shalt.err (!%p12709_p8)
}
 0x1aa   : > { %s12713_s23 = scalar_lea.vmem %s2158_s18, 32  ;;  %p12720_p12 = scmp.lt.s32.totalorder %s2158_s18, %s2158_s18 }
 0x1ab   : > { %p12714_p9 = scmp.ne.s32.totalorder %s2158_s18, %s12713_s23  ;;  %p12721_p13 = scmp.lt.s32.totalorder %s12713_s23, %s12713_s23 }
 0x1ad   : > { %p12715_p10 = pnand %p12714_p9, %p11905_p3  ;;  %p12722_p0 = por %p12721_p13, %p12720_p12 }
 0x1af   : > { %p12716_p11 = pneg %p12715_p10 }
 0x1b1   : > { %p12723_p1 = pnand %p12722_p0, %p12716_p11 }
 0x1b3   : > { %12726 = shalt.err (!%p12723_p1)
}
 0x1b4   : > { %11812 = dma.hbm_to_vmem [thread:$0]  (%p11905_p3), %s16496_s4, 32, %s2158_s18, [#allocation38]  }
 0x1b5   : > { %s13497_s11 = smov [#allocation40]   ;;  %s13498_s15 = smov [#allocation43]  }
 0x1b6   : > { %s2190_s26 = sshll.u32 %s13497_s11, 4  ;;  %s2213_s2 = sshll.u32 %s13498_s15, 4  ;;  %s2191_s26 = int_to_ptr.vmem [resolvable:$true] %s2190_s26  ;;  %s2214_s2 = int_to_ptr.vmem [resolvable:$true] %s2213_s2 }
 0x1b7   : > { %s12727_s16 = scalar_lea.hbm %s13780_s29, 32 }
 0x1b8   : > { %p12728_p4 = scmp.ne.s32.totalorder %s13780_s29, %s12727_s16  ;;  %p12733_p7 = scmp.lt.u32.totalorder %s12727_s16, %s13780_s29 }
 0x1ba   : > { %p12729_p5 = pnand %p12728_p4, %p11905_p3 }
 0x1bc   : > { %p12730_p6 = pneg %p12729_p5 }
 0x1be   : > { %p12735_p8 = pnand %p12733_p7, %p12730_p6 }
 0x1c0   : > { %12738 = shalt.err (!%p12735_p8)
}
 0x1c1   : > { %s12739_s23 = scalar_lea.vmem %s2191_s26, 32  ;;  %p12746_p12 = scmp.lt.s32.totalorder %s2191_s26, %s2191_s26 }
 0x1c2   : > { %p12740_p9 = scmp.ne.s32.totalorder %s2191_s26, %s12739_s23  ;;  %p12747_p13 = scmp.lt.s32.totalorder %s12739_s23, %s12739_s23 }
 0x1c4   : > { %p12741_p10 = pnand %p12740_p9, %p11905_p3  ;;  %p12748_p0 = por %p12747_p13, %p12746_p12 }
 0x1c6   : > { %p12742_p11 = pneg %p12741_p10 }
 0x1c8   : > { %p12749_p1 = pnand %p12748_p0, %p12742_p11 }
 0x1ca   : > { %12752 = shalt.err (!%p12749_p1)
}
 0x1cb   : > { %11816 = dma.hbm_to_vmem [thread:$0]  (%p11905_p3), %s13780_s29, 32, %s2191_s26, [#allocation41]  }
 0x1cc   : > { %s12753_s18 = scalar_lea.hbm %s13790_s19, 512 }
 0x1cd   : > { %p12754_p4 = scmp.ne.s32.totalorder %s13790_s19, %s12753_s18  ;;  %p12759_p7 = scmp.lt.u32.totalorder %s12753_s18, %s13790_s19 }
 0x1cf   : > { %p12755_p5 = pnand %p12754_p4, %p11905_p3 }
 0x1d1   : > { %p12756_p6 = pneg %p12755_p5 }
 0x1d3   : > { %p12761_p8 = pnand %p12759_p7, %p12756_p6 }
 0x1d5   : > { %12764 = shalt.err (!%p12761_p8)
}
 0x1d6   : > { %s12765_s11 = scalar_lea.vmem %s2214_s2, 512  ;;  %p12772_p12 = scmp.lt.s32.totalorder %s2214_s2, %s2214_s2 }
 0x1d7   : > { %p12766_p9 = scmp.ne.s32.totalorder %s2214_s2, %s12765_s11  ;;  %p12773_p13 = scmp.lt.s32.totalorder %s12765_s11, %s12765_s11 }
 0x1d9   : > { %p12767_p10 = pnand %p12766_p9, %p11905_p3  ;;  %p12774_p0 = por %p12773_p13, %p12772_p12 }
 0x1db   : > { %p12768_p11 = pneg %p12767_p10 }
 0x1dd   : > { %p12775_p1 = pnand %p12774_p0, %p12768_p11 }
 0x1df   : > { %12778 = shalt.err (!%p12775_p1)
}
 0x1e0   : > { %s16500_s26 = sld [smem:[#allocation122_spill]]  ;;  %s13499_s15 = smov [#allocation46]  }
 0x1e1   : > { %11820 = dma.hbm_to_vmem [thread:$0]  (%p11905_p3), %s13790_s19, 512, %s2214_s2, [#allocation44], %s16499_s10, %s16499_s10, %s16370_s22  }
 0x1e2   : > { %s2249_s16 = sshll.u32 %s13499_s15, 4  ;;  %s13500_s23 = smov [#allocation49]   ;;  %s2250_s16 = int_to_ptr.vmem [resolvable:$true] %s2249_s16 }
 0x1e3   : > { %s2282_s18 = sshll.u32 %s13500_s23, 4  ;;  %s2283_s18 = int_to_ptr.vmem [resolvable:$true] %s2282_s18 }
 0x1e6   : > { %s12779_s11 = scalar_lea.hbm %s16500_s26, 32 }
 0x1e7   : > { %p12780_p4 = scmp.ne.s32.totalorder %s16500_s26, %s12779_s11  ;;  %p12785_p7 = scmp.lt.u32.totalorder %s12779_s11, %s16500_s26 }
 0x1e9   : > { %p12781_p5 = pnand %p12780_p4, %p11905_p3 }
 0x1eb   : > { %p12782_p6 = pneg %p12781_p5 }
 0x1ed   : > { %p12787_p8 = pnand %p12785_p7, %p12782_p6 }
 0x1ef   : > { %12790 = shalt.err (!%p12787_p8)
}
 0x1f0   : > { %s12791_s7 = scalar_lea.vmem %s2250_s16, 32  ;;  %p12798_p12 = scmp.lt.s32.totalorder %s2250_s16, %s2250_s16 }
 0x1f1   : > { %p12792_p9 = scmp.ne.s32.totalorder %s2250_s16, %s12791_s7  ;;  %p12799_p13 = scmp.lt.s32.totalorder %s12791_s7, %s12791_s7 }
 0x1f3   : > { %p12793_p10 = pnand %p12792_p9, %p11905_p3  ;;  %p12800_p0 = por %p12799_p13, %p12798_p12 }
 0x1f5   : > { %p12794_p11 = pneg %p12793_p10 }
 0x1f7   : > { %p12801_p1 = pnand %p12800_p0, %p12794_p11 }
 0x1f9   : > { %12804 = shalt.err (!%p12801_p1)
}
 0x1fa   : > { %s16501_s2 = sld [smem:[#allocation127_spill]] }
 0x1fb   : > { %11824 = dma.hbm_to_vmem [thread:$0]  (%p11905_p3), %s16500_s26, 32, %s2250_s16, [#allocation47]  }
 0x200   : > { %s12805_s15 = scalar_lea.hbm %s16501_s2, 32 }
 0x201   : > { %p12806_p4 = scmp.ne.s32.totalorder %s16501_s2, %s12805_s15  ;;  %p12811_p7 = scmp.lt.u32.totalorder %s12805_s15, %s16501_s2 }
 0x203   : > { %p12807_p5 = pnand %p12806_p4, %p11905_p3 }
 0x205   : > { %p12808_p6 = pneg %p12807_p5 }
 0x207   : > { %p12813_p8 = pnand %p12811_p7, %p12808_p6 }
 0x209   : > { %12816 = shalt.err (!%p12813_p8)
}
 0x20a   : > { %s12817_s7 = scalar_lea.vmem %s2283_s18, 32  ;;  %p12824_p12 = scmp.lt.s32.totalorder %s2283_s18, %s2283_s18 }
 0x20b   : > { %p12818_p9 = scmp.ne.s32.totalorder %s2283_s18, %s12817_s7  ;;  %p12825_p13 = scmp.lt.s32.totalorder %s12817_s7, %s12817_s7 }
 0x20d   : > { %p12819_p10 = pnand %p12818_p9, %p11905_p3  ;;  %p12826_p0 = por %p12825_p13, %p12824_p12 }
 0x20f   : > { %p12820_p11 = pneg %p12819_p10 }
 0x211   : > { %p12827_p1 = pnand %p12826_p0, %p12820_p11 }
 0x213   : > { %12830 = shalt.err (!%p12827_p1)
}
 0x214   : > { %s16502_s16 = sld [smem:[#allocation131_spill]]  ;;  %s13501_s23 = smov [#allocation52]  }
 0x215   : > { %11828 = dma.hbm_to_vmem [thread:$0]  (%p11905_p3), %s16501_s2, 32, %s2283_s18, [#allocation50]  }
 0x216   : > { %s2311_s11 = sshll.u32 %s13501_s23, 4  ;;  %s2312_s11 = int_to_ptr.vmem [resolvable:$true] %s2311_s11 }
 0x21a   : > { %s12831_s15 = scalar_lea.hbm %s16502_s16, 512 }
 0x21b   : > { %p12832_p4 = scmp.ne.s32.totalorder %s16502_s16, %s12831_s15  ;;  %p12837_p7 = scmp.lt.u32.totalorder %s12831_s15, %s16502_s16 }
 0x21d   : > { %p12833_p5 = pnand %p12832_p4, %p11905_p3 }
 0x21f   : > { %p12834_p6 = pneg %p12833_p5 }
 0x221   : > { %p12839_p8 = pnand %p12837_p7, %p12834_p6 }
 0x223   : > { %12842 = shalt.err (!%p12839_p8)
}
 0x224   : > { %s12843_s7 = scalar_lea.vmem %s2312_s11, 512  ;;  %p12850_p12 = scmp.lt.s32.totalorder %s2312_s11, %s2312_s11 }
 0x225   : > { %p12844_p9 = scmp.ne.s32.totalorder %s2312_s11, %s12843_s7  ;;  %p12851_p13 = scmp.lt.s32.totalorder %s12843_s7, %s12843_s7 }
 0x227   : > { %p12845_p10 = pnand %p12844_p9, %p11905_p3  ;;  %p12852_p0 = por %p12851_p13, %p12850_p12 }
 0x229   : > { %p12846_p11 = pneg %p12845_p10 }
 0x22b   : > { %p12853_p1 = pnand %p12852_p0, %p12846_p11 }
 0x22d   : > { %12856 = shalt.err (!%p12853_p1)
}
 0x22e   : > { %s16503_s18 = sld [smem:[#allocation74_spill]]  ;;  %s13502_s23 = smov [#allocation2]  }
 0x22f   : > { %11832 = dma.hbm_to_vmem [thread:$0]  (%p11905_p3), %s16502_s16, 512, %s2312_s11, [#allocation53], %s16499_s10, %s16499_s10, %s16370_s22  }
 0x230   : > { %s1825_s15 = sshll.u32 %s13502_s23, 4  ;;  %s13503_s2 = smov [#allocation6]   ;;  %s1826_s15 = int_to_ptr.vmem [resolvable:$true] %s1825_s15 }
 0x231   : > { %s1852_s3 = sshll.u32 %s13503_s2, 4  ;;  %s1853_s3 = int_to_ptr.vmem [resolvable:$true] %s1852_s3 }
 0x234   : > { %s12857_s7 = scalar_lea.hbm %s16503_s18, 256 }
 0x235   : > { %p12858_p4 = scmp.ne.s32.totalorder %s16503_s18, %s12857_s7  ;;  %p12863_p7 = scmp.lt.u32.totalorder %s12857_s7, %s16503_s18 }
 0x237   : > { %p12859_p5 = pnand %p12858_p4, %p11905_p3 }
 0x239   : > { %p12860_p6 = pneg %p12859_p5 }
 0x23b   : > { %p12865_p8 = pnand %p12863_p7, %p12860_p6 }
 0x23d   : > { %12868 = shalt.err (!%p12865_p8)
}
 0x23e   : > { %s12869_s4 = scalar_lea.vmem %s1826_s15, 256  ;;  %p12876_p12 = scmp.lt.s32.totalorder %s1826_s15, %s1826_s15 }
 0x23f   : > { %p12870_p9 = scmp.ne.s32.totalorder %s1826_s15, %s12869_s4  ;;  %p12877_p13 = scmp.lt.s32.totalorder %s12869_s4, %s12869_s4 }
 0x241   : > { %p12871_p10 = pnand %p12870_p9, %p11905_p3  ;;  %p12878_p0 = por %p12877_p13, %p12876_p12 }
 0x243   : > { %p12872_p11 = pneg %p12871_p10 }
 0x245   : > { %p12879_p1 = pnand %p12878_p0, %p12872_p11 }
 0x247   : > { %12882 = shalt.err (!%p12879_p1)
}
 0x248   : > { %s16504_s2 = sld [smem:[#allocation76_spill]] }
 0x249   : > { %11766 = dma.hbm_to_vmem [thread:$0]  (%p11905_p3), %s16503_s18, 256, %s1826_s15, [#allocation3], %s16499_s10, %s16499_s10, %s16370_s22  }
 0x24e   : > { %s12883_s11 = scalar_lea.hbm %s16504_s2, 64 }
 0x24f   : > { %p12884_p4 = scmp.ne.s32.totalorder %s16504_s2, %s12883_s11  ;;  %p12889_p7 = scmp.lt.u32.totalorder %s12883_s11, %s16504_s2 }
 0x251   : > { %p12885_p5 = pnand %p12884_p4, %p11905_p3 }
 0x253   : > { %p12886_p6 = pneg %p12885_p5 }
 0x255   : > { %p12891_p8 = pnand %p12889_p7, %p12886_p6 }
 0x257   : > { %12894 = shalt.err (!%p12891_p8)
}
 0x258   : > { %s12895_s4 = scalar_lea.vmem %s1853_s3, 64  ;;  %p12902_p12 = scmp.lt.s32.totalorder %s1853_s3, %s1853_s3 }
 0x259   : > { %p12896_p9 = scmp.ne.s32.totalorder %s1853_s3, %s12895_s4  ;;  %p12903_p13 = scmp.lt.s32.totalorder %s12895_s4, %s12895_s4 }
 0x25b   : > { %p12897_p10 = pnand %p12896_p9, %p11905_p3  ;;  %p12904_p0 = por %p12903_p13, %p12902_p12 }
 0x25d   : > { %p12898_p11 = pneg %p12897_p10 }
 0x25f   : > { %p12905_p1 = pnand %p12904_p0, %p12898_p11 }
 0x261   : > { %12908 = shalt.err (!%p12905_p1)
}
 0x262   : > { %s16505_s23 = sld [smem:[#allocation80_spill]]  ;;  %s13504_s15 = smov [#allocation9]  }
 0x263   : > { %11770 = dma.hbm_to_vmem [thread:$0]  (%p11905_p3), %s16504_s2, 64, %s1853_s3, [#allocation5]  }
 0x264   : > { %s1883_s7 = sshll.u32 %s13504_s15, 4  ;;  %s13505_s11 = smov [#allocation12]   ;;  %s1884_s7 = int_to_ptr.vmem [resolvable:$true] %s1883_s7 }
 0x265   : > { %s1905_s22 = sshll.u32 %s13505_s11, 4  ;;  %s1906_s22 = int_to_ptr.vmem [resolvable:$true] %s1905_s22 }
 0x268   : > { %s12909_s5 = scalar_lea.hbm %s16505_s23, 32 }
 0x269   : > { %p12910_p4 = scmp.ne.s32.totalorder %s16505_s23, %s12909_s5  ;;  %p12915_p7 = scmp.lt.u32.totalorder %s12909_s5, %s16505_s23 }
 0x26b   : > { %p12911_p5 = pnand %p12910_p4, %p11905_p3 }
 0x26d   : > { %p12912_p6 = pneg %p12911_p5 }
 0x26f   : > { %p12917_p8 = pnand %p12915_p7, %p12912_p6 }
 0x271   : > { %12920 = shalt.err (!%p12917_p8)
}
 0x272   : > { %s12921_s4 = scalar_lea.vmem %s1884_s7, 32  ;;  %p12928_p12 = scmp.lt.s32.totalorder %s1884_s7, %s1884_s7 }
 0x273   : > { %p12922_p9 = scmp.ne.s32.totalorder %s1884_s7, %s12921_s4  ;;  %p12929_p13 = scmp.lt.s32.totalorder %s12921_s4, %s12921_s4 }
 0x275   : > { %p12923_p10 = pnand %p12922_p9, %p11905_p3  ;;  %p12930_p0 = por %p12929_p13, %p12928_p12 }
 0x277   : > { %p12924_p11 = pneg %p12923_p10 }
 0x279   : > { %p12931_p1 = pnand %p12930_p0, %p12924_p11 }
 0x27b   : > { %12934 = shalt.err (!%p12931_p1)
}
 0x27c   : > { %s16506_s3 = sld [smem:[#allocation82_spill]] }
 0x27d   : > { %11774 = dma.hbm_to_vmem [thread:$0]  (%p11905_p3), %s16505_s23, 32, %s1884_s7, [#allocation8]  }
 0x282   : > { %s12935_s5 = scalar_lea.hbm %s16506_s3, 64 }
 0x283   : > { %p12936_p4 = scmp.ne.s32.totalorder %s16506_s3, %s12935_s5  ;;  %p12941_p7 = scmp.lt.u32.totalorder %s12935_s5, %s16506_s3 }
 0x285   : > { %p12937_p5 = pnand %p12936_p4, %p11905_p3 }
 0x287   : > { %p12938_p6 = pneg %p12937_p5 }
 0x289   : > { %p12943_p8 = pnand %p12941_p7, %p12938_p6 }
 0x28b   : > { %12946 = shalt.err (!%p12943_p8)
}
 0x28c   : > { %s12947_s15 = scalar_lea.vmem %s1906_s22, 64  ;;  %p12954_p12 = scmp.lt.s32.totalorder %s1906_s22, %s1906_s22 }
 0x28d   : > { %p12948_p9 = scmp.ne.s32.totalorder %s1906_s22, %s12947_s15  ;;  %p12955_p13 = scmp.lt.s32.totalorder %s12947_s15, %s12947_s15 }
 0x28f   : > { %p12949_p10 = pnand %p12948_p9, %p11905_p3  ;;  %p12956_p0 = por %p12955_p13, %p12954_p12 }
 0x291   : > { %p12950_p11 = pneg %p12949_p10 }
 0x293   : > { %p12957_p1 = pnand %p12956_p0, %p12950_p11 }
 0x295   : > { %12960 = shalt.err (!%p12957_p1)
}
 0x296   : > { %s16507_s7 = sld [smem:[#allocation87_spill]]  ;;  %s13506_s11 = smov [#allocation15]  }
 0x297   : > { %11778 = dma.hbm_to_vmem [thread:$0]  (%p11905_p3), %s16506_s3, 64, %s1906_s22, [#allocation11]  }
 0x298   : > { %s1936_s4 = sshll.u32 %s13506_s11, 4  ;;  %s13507_s5 = smov [#allocation18]   ;;  %s1937_s4 = int_to_ptr.vmem [resolvable:$true] %s1936_s4 }
 0x299   : > { %s1960_s2 = sshll.u32 %s13507_s5, 4  ;;  %s1961_s2 = int_to_ptr.vmem [resolvable:$true] %s1960_s2 }
 0x29c   : > { %s12961_s6 = scalar_lea.hbm %s16507_s7, 64 }
 0x29d   : > { %p12962_p4 = scmp.ne.s32.totalorder %s16507_s7, %s12961_s6  ;;  %p12967_p7 = scmp.lt.u32.totalorder %s12961_s6, %s16507_s7 }
 0x29f   : > { %p12963_p5 = pnand %p12962_p4, %p11905_p3 }
 0x2a1   : > { %p12964_p6 = pneg %p12963_p5 }
 0x2a3   : > { %p12969_p8 = pnand %p12967_p7, %p12964_p6 }
 0x2a5   : > { %12972 = shalt.err (!%p12969_p8)
}
 0x2a6   : > { %s12973_s15 = scalar_lea.vmem %s1937_s4, 64  ;;  %p12980_p12 = scmp.lt.s32.totalorder %s1937_s4, %s1937_s4 }
 0x2a7   : > { %p12974_p9 = scmp.ne.s32.totalorder %s1937_s4, %s12973_s15  ;;  %p12981_p13 = scmp.lt.s32.totalorder %s12973_s15, %s12973_s15 }
 0x2a9   : > { %p12975_p10 = pnand %p12974_p9, %p11905_p3  ;;  %p12982_p0 = por %p12981_p13, %p12980_p12 }
 0x2ab   : > { %p12976_p11 = pneg %p12975_p10 }
 0x2ad   : > { %p12983_p1 = pnand %p12982_p0, %p12976_p11 }
 0x2af   : > { %12986 = shalt.err (!%p12983_p1)
}
 0x2b0   : > { %s16508_s22 = sld [smem:[#allocation88_spill]] }
 0x2b1   : > { %11782 = dma.hbm_to_vmem [thread:$0]  (%p11905_p3), %s16507_s7, 64, %s1937_s4, [#allocation14]  }
 0x2b6   : > { %s12987_s6 = scalar_lea.hbm %s16508_s22, 128 }
 0x2b7   : > { %p12988_p4 = scmp.ne.s32.totalorder %s16508_s22, %s12987_s6  ;;  %p12993_p7 = scmp.lt.u32.totalorder %s12987_s6, %s16508_s22 }
 0x2b9   : > { %p12989_p5 = pnand %p12988_p4, %p11905_p3 }
 0x2bb   : > { %p12990_p6 = pneg %p12989_p5 }
 0x2bd   : > { %p12995_p8 = pnand %p12993_p7, %p12990_p6 }
 0x2bf   : > { %12998 = shalt.err (!%p12995_p8)
}
 0x2c0   : > { %s12999_s11 = scalar_lea.vmem %s1961_s2, 128  ;;  %p13006_p12 = scmp.lt.s32.totalorder %s1961_s2, %s1961_s2 }
 0x2c1   : > { %p13000_p9 = scmp.ne.s32.totalorder %s1961_s2, %s12999_s11  ;;  %p13007_p13 = scmp.lt.s32.totalorder %s12999_s11, %s12999_s11 }
 0x2c3   : > { %p13001_p10 = pnand %p13000_p9, %p11905_p3  ;;  %p13008_p0 = por %p13007_p13, %p13006_p12 }
 0x2c5   : > { %p13002_p11 = pneg %p13001_p10 }
 0x2c7   : > { %p13009_p1 = pnand %p13008_p0, %p13002_p11 }
 0x2c9   : > { %13012 = shalt.err (!%p13009_p1)
}
 0x2ca   : > { %s16509_s4 = sld [smem:[#allocation93_spill]]  ;;  %s13508_s5 = smov [#allocation21]  }
 0x2cb   : > { %11786 = dma.hbm_to_vmem [thread:$0]  (%p11905_p3), %s16508_s22, 128, %s1961_s2, [#allocation17]  }
 0x2cc   : > { %s1993_s15 = sshll.u32 %s13508_s5, 4  ;;  %s13509_s6 = smov [#allocation24]   ;;  %s1994_s15 = int_to_ptr.vmem [resolvable:$true] %s1993_s15 }
 0x2cd   : > { %s2024_s3 = sshll.u32 %s13509_s6, 4  ;;  %s2025_s3 = int_to_ptr.vmem [resolvable:$true] %s2024_s3 }
 0x2d0   : > { %s13013_s7 = scalar_lea.hbm %s16509_s4, 32 }
 0x2d1   : > { %p13014_p4 = scmp.ne.s32.totalorder %s16509_s4, %s13013_s7  ;;  %p13019_p7 = scmp.lt.u32.totalorder %s13013_s7, %s16509_s4 }
 0x2d3   : > { %p13015_p5 = pnand %p13014_p4, %p11905_p3 }
 0x2d5   : > { %p13016_p6 = pneg %p13015_p5 }
 0x2d7   : > { %p13021_p8 = pnand %p13019_p7, %p13016_p6 }
 0x2d9   : > { %13024 = shalt.err (!%p13021_p8)
}
 0x2da   : > { %s13025_s11 = scalar_lea.vmem %s1994_s15, 32  ;;  %p13032_p12 = scmp.lt.s32.totalorder %s1994_s15, %s1994_s15 }
 0x2db   : > { %p13026_p9 = scmp.ne.s32.totalorder %s1994_s15, %s13025_s11  ;;  %p13033_p13 = scmp.lt.s32.totalorder %s13025_s11, %s13025_s11 }
 0x2dd   : > { %p13027_p10 = pnand %p13026_p9, %p11905_p3  ;;  %p13034_p0 = por %p13033_p13, %p13032_p12 }
 0x2df   : > { %p13028_p11 = pneg %p13027_p10 }
 0x2e1   : > { %p13035_p1 = pnand %p13034_p0, %p13028_p11 }
 0x2e3   : > { %13038 = shalt.err (!%p13035_p1)
}
 0x2e4   : > { %s16510_s2 = sld [smem:[#allocation97_spill]] }
 0x2e5   : > { %11790 = dma.hbm_to_vmem [thread:$0]  (%p11905_p3), %s16509_s4, 32, %s1994_s15, [#allocation20]  }
 0x2ea   : > { %s13039_s7 = scalar_lea.hbm %s16510_s2, 32 }
 0x2eb   : > { %p13040_p4 = scmp.ne.s32.totalorder %s16510_s2, %s13039_s7  ;;  %p13045_p7 = scmp.lt.u32.totalorder %s13039_s7, %s16510_s2 }
 0x2ed   : > { %p13041_p5 = pnand %p13040_p4, %p11905_p3 }
 0x2ef   : > { %p13042_p6 = pneg %p13041_p5 }
 0x2f1   : > { %p13047_p8 = pnand %p13045_p7, %p13042_p6 }
 0x2f3   : > { %13050 = shalt.err (!%p13047_p8)
}
 0x2f4   : > { %s13051_s5 = scalar_lea.vmem %s2025_s3, 32  ;;  %p13058_p12 = scmp.lt.s32.totalorder %s2025_s3, %s2025_s3 }
 0x2f5   : > { %p13052_p9 = scmp.ne.s32.totalorder %s2025_s3, %s13051_s5  ;;  %p13059_p13 = scmp.lt.s32.totalorder %s13051_s5, %s13051_s5 }
 0x2f7   : > { %p13053_p10 = pnand %p13052_p9, %p11905_p3  ;;  %p13060_p0 = por %p13059_p13, %p13058_p12 }
 0x2f9   : > { %p13054_p11 = pneg %p13053_p10 }
 0x2fb   : > { %p13061_p1 = pnand %p13060_p0, %p13054_p11 }
 0x2fd   : > { %13064 = shalt.err (!%p13061_p1)
}
 0x2fe   : > { %s16511_s15 = sld [smem:[#allocation100_spill]]  ;;  %s13510_s6 = smov [#allocation27]  }
 0x2ff   : > { %11794 = dma.hbm_to_vmem [thread:$0]  (%p11905_p3), %s16510_s2, 32, %s2025_s3, [#allocation23]  }
 0x300   : > { %s2054_s11 = sshll.u32 %s13510_s6, 4  ;;  %s13511_s7 = smov [#allocation30]   ;;  %s2055_s11 = int_to_ptr.vmem [resolvable:$true] %s2054_s11 }
 0x301   : > { %s2075_s4 = sshll.u32 %s13511_s7, 4  ;;  %s2076_s4 = int_to_ptr.vmem [resolvable:$true] %s2075_s4 }
 0x304   : > { %s13065_s12 = scalar_lea.hbm %s16511_s15, 128 }
 0x305   : > { %p13066_p4 = scmp.ne.s32.totalorder %s16511_s15, %s13065_s12  ;;  %p13071_p7 = scmp.lt.u32.totalorder %s13065_s12, %s16511_s15 }
 0x307   : > { %p13067_p5 = pnand %p13066_p4, %p11905_p3 }
 0x309   : > { %p13068_p6 = pneg %p13067_p5 }
 0x30b   : > { %p13073_p8 = pnand %p13071_p7, %p13068_p6 }
 0x30d   : > { %13076 = shalt.err (!%p13073_p8)
}
 0x30e   : > { %s13077_s5 = scalar_lea.vmem %s2055_s11, 128  ;;  %p13084_p12 = scmp.lt.s32.totalorder %s2055_s11, %s2055_s11 }
 0x30f   : > { %p13078_p9 = scmp.ne.s32.totalorder %s2055_s11, %s13077_s5  ;;  %p13085_p13 = scmp.lt.s32.totalorder %s13077_s5, %s13077_s5 }
 0x311   : > { %p13079_p10 = pnand %p13078_p9, %p11905_p3  ;;  %p13086_p0 = por %p13085_p13, %p13084_p12 }
 0x313   : > { %p13080_p11 = pneg %p13079_p10 }
 0x315   : > { %p13087_p1 = pnand %p13086_p0, %p13080_p11 }
 0x317   : > { %13090 = shalt.err (!%p13087_p1)
}
 0x318   : > { %s16512_s3 = sld [smem:[#allocation101_spill]] }
 0x319   : > { %11798 = dma.hbm_to_vmem [thread:$0]  (%p11905_p3), %s16511_s15, 128, %s2055_s11, [#allocation26]  }
 0x31e   : > { %s13091_s12 = scalar_lea.hbm %s16512_s3, 512 }
 0x31f   : > { %p13092_p4 = scmp.ne.s32.totalorder %s16512_s3, %s13091_s12  ;;  %p13097_p7 = scmp.lt.u32.totalorder %s13091_s12, %s16512_s3 }
 0x321   : > { %p13093_p5 = pnand %p13092_p4, %p11905_p3 }
 0x323   : > { %p13094_p6 = pneg %p13093_p5 }
 0x325   : > { %p13099_p8 = pnand %p13097_p7, %p13094_p6 }
 0x327   : > { %13102 = shalt.err (!%p13099_p8)
}
 0x328   : > { %s13103_s6 = scalar_lea.vmem %s2076_s4, 512  ;;  %p13110_p12 = scmp.lt.s32.totalorder %s2076_s4, %s2076_s4 }
 0x329   : > { %p13104_p9 = scmp.ne.s32.totalorder %s2076_s4, %s13103_s6  ;;  %p13111_p13 = scmp.lt.s32.totalorder %s13103_s6, %s13103_s6 }
 0x32b   : > { %p13105_p10 = pnand %p13104_p9, %p11905_p3  ;;  %p13112_p0 = por %p13111_p13, %p13110_p12 }
 0x32d   : > { %p13106_p11 = pneg %p13105_p10 }
 0x32f   : > { %p13113_p1 = pnand %p13112_p0, %p13106_p11 }
 0x331   : > { %13116 = shalt.err (!%p13113_p1)
}
 0x332   : > { %s16513_s11 = smov 8   ;;  %s16514_s7 = sld [smem:[#allocation106_spill]] }
 0x333   : > { %11802 = dma.hbm_to_vmem [thread:$0]  (%p11905_p3), %s16512_s3, 512, %s2076_s4, [#allocation29], %s16499_s10, %s16499_s10, %s16513_s11  }
 0x334   : > { %s13512_s5 = smov [#allocation33]   ;;  %s13513_s2 = smov [#allocation36]  }
 0x335   : > { %s2110_s12 = sshll.u32 %s13512_s5, 4  ;;  %s2134_s13 = sshll.u32 %s13513_s2, 4  ;;  %s2111_s12 = int_to_ptr.vmem [resolvable:$true] %s2110_s12  ;;  %s2135_s13 = int_to_ptr.vmem [resolvable:$true] %s2134_s13 }
 0x338   : > { %s13117_s6 = scalar_lea.hbm %s16514_s7, 64 }
 0x339   : > { %p13118_p4 = scmp.ne.s32.totalorder %s16514_s7, %s13117_s6  ;;  %p13123_p7 = scmp.lt.u32.totalorder %s13117_s6, %s16514_s7 }
 0x33b   : > { %p13119_p5 = pnand %p13118_p4, %p11905_p3 }
 0x33d   : > { %p13120_p6 = pneg %p13119_p5 }
 0x33f   : > { %p13125_p8 = pnand %p13123_p7, %p13120_p6 }
 0x341   : > { %13128 = shalt.err (!%p13125_p8)
}
 0x342   : > { %s13129_s14 = scalar_lea.vmem %s2111_s12, 64  ;;  %p13136_p12 = scmp.lt.s32.totalorder %s2111_s12, %s2111_s12 }
 0x343   : > { %p13130_p9 = scmp.ne.s32.totalorder %s2111_s12, %s13129_s14  ;;  %p13137_p13 = scmp.lt.s32.totalorder %s13129_s14, %s13129_s14 }
 0x345   : > { %p13131_p10 = pnand %p13130_p9, %p11905_p3  ;;  %p13138_p0 = por %p13137_p13, %p13136_p12 }
 0x347   : > { %p13132_p11 = pneg %p13131_p10 }
 0x349   : > { %p13139_p1 = pnand %p13138_p0, %p13132_p11 }
 0x34b   : > { %13142 = shalt.err (!%p13139_p1)
}
 0x34c   : > { %s16515_s4 = smov 2   ;;  %s16516_s2 = smov 32  }
 0x34d   : > { %s16517_s5 = sld [smem:[#allocation108_spill]] }
 0x34e   : > { %11806 = dma.hbm_to_vmem [thread:$0]  (%p11905_p3), %s16514_s7, 64, %s2111_s12, [#allocation32], %s16516_s2, %s16516_s2, %s16515_s4  }
 0x353   : > { %s13143_s6 = scalar_lea.hbm %s16517_s5, 256 }
 0x354   : > { %p13144_p4 = scmp.ne.s32.totalorder %s16517_s5, %s13143_s6  ;;  %p13149_p7 = scmp.lt.u32.totalorder %s13143_s6, %s16517_s5 }
 0x356   : > { %p13145_p5 = pnand %p13144_p4, %p11905_p3 }
 0x358   : > { %p13146_p6 = pneg %p13145_p5 }
 0x35a   : > { %p13151_p8 = pnand %p13149_p7, %p13146_p6 }
 0x35c   : > { %13154 = shalt.err (!%p13151_p8)
}
 0x35d   : > { %s13155_s14 = scalar_lea.vmem %s2135_s13, 256  ;;  %p13162_p12 = scmp.lt.s32.totalorder %s2135_s13, %s2135_s13 }
 0x35e   : > { %p13156_p9 = scmp.ne.s32.totalorder %s2135_s13, %s13155_s14  ;;  %p13163_p13 = scmp.lt.s32.totalorder %s13155_s14, %s13155_s14 }
 0x360   : > { %p13157_p10 = pnand %p13156_p9, %p11905_p3  ;;  %p13164_p0 = por %p13163_p13, %p13162_p12 }
 0x362   : > { %p13158_p11 = pneg %p13157_p10 }
 0x364   : > { %p13165_p1 = pnand %p13164_p0, %p13158_p11 }
 0x366   : > { %13168 = shalt.err (!%p13165_p1)
}
 0x367   : > { %s16518_s12 = sld [smem:[#allocation116_spill]]  ;;  %s13514_s6 = smov [#allocation39]  }
 0x368   : > { %11810 = dma.hbm_to_vmem [thread:$0]  (%p11905_p3), %s16517_s5, 256, %s2135_s13, [#allocation35], %s16499_s10, %s16499_s10, %s16513_s11  }
 0x369   : > { %s2176_s3 = sshll.u32 %s13514_s6, 4  ;;  %s13515_s7 = smov [#allocation42]   ;;  %s2177_s3 = int_to_ptr.vmem [resolvable:$true] %s2176_s3 }
 0x36a   : > { %s2200_s15 = sshll.u32 %s13515_s7, 4  ;;  %s2201_s15 = int_to_ptr.vmem [resolvable:$true] %s2200_s15 }
 0x36d   : > { %s13169_s14 = scalar_lea.hbm %s16518_s12, 256 }
 0x36e   : > { %p13170_p4 = scmp.ne.s32.totalorder %s16518_s12, %s13169_s14  ;;  %p13175_p7 = scmp.lt.u32.totalorder %s13169_s14, %s16518_s12 }
 0x370   : > { %p13171_p5 = pnand %p13170_p4, %p11905_p3 }
 0x372   : > { %p13172_p6 = pneg %p13171_p5 }
 0x374   : > { %p13177_p8 = pnand %p13175_p7, %p13172_p6 }
 0x376   : > { %13180 = shalt.err (!%p13177_p8)
}
 0x377   : > { %s13181_s16 = scalar_lea.vmem %s2177_s3, 256  ;;  %p13188_p12 = scmp.lt.s32.totalorder %s2177_s3, %s2177_s3 }
 0x378   : > { %p13182_p9 = scmp.ne.s32.totalorder %s2177_s3, %s13181_s16  ;;  %p13189_p13 = scmp.lt.s32.totalorder %s13181_s16, %s13181_s16 }
 0x37a   : > { %p13183_p10 = pnand %p13182_p9, %p11905_p3  ;;  %p13190_p0 = por %p13189_p13, %p13188_p12 }
 0x37c   : > { %p13184_p11 = pneg %p13183_p10 }
 0x37e   : > { %p13191_p1 = pnand %p13190_p0, %p13184_p11 }
 0x380   : > { %13194 = shalt.err (!%p13191_p1)
}
 0x381   : > { %s16519_s13 = sld [smem:[#allocation117_spill]] }
 0x382   : > { %11814 = dma.hbm_to_vmem [thread:$0]  (%p11905_p3), %s16518_s12, 256, %s2177_s3, [#allocation38], %s16499_s10, %s16499_s10, %s16513_s11  }
 0x387   : > { %s13195_s7 = scalar_lea.hbm %s16519_s13, 1024 }
 0x388   : > { %p13196_p4 = scmp.ne.s32.totalorder %s16519_s13, %s13195_s7  ;;  %p13201_p7 = scmp.lt.u32.totalorder %s13195_s7, %s16519_s13 }
 0x38a   : > { %p13197_p5 = pnand %p13196_p4, %p11905_p3 }
 0x38c   : > { %p13198_p6 = pneg %p13197_p5 }
 0x38e   : > { %p13203_p8 = pnand %p13201_p7, %p13198_p6 }
 0x390   : > { %13206 = shalt.err (!%p13203_p8)
}
 0x391   : > { %s13207_s16 = scalar_lea.vmem %s2201_s15, 1024  ;;  %p13214_p12 = scmp.lt.s32.totalorder %s2201_s15, %s2201_s15 }
 0x392   : > { %p13208_p9 = scmp.ne.s32.totalorder %s2201_s15, %s13207_s16  ;;  %p13215_p13 = scmp.lt.s32.totalorder %s13207_s16, %s13207_s16 }
 0x394   : > { %p13209_p10 = pnand %p13208_p9, %p11905_p3  ;;  %p13216_p0 = por %p13215_p13, %p13214_p12 }
 0x396   : > { %p13210_p11 = pneg %p13209_p10 }
 0x398   : > { %p13217_p1 = pnand %p13216_p0, %p13210_p11 }
 0x39a   : > { %13220 = shalt.err (!%p13217_p1)
}
 0x39b   : > { %s16520_s3 = sld [smem:[#allocation121_spill]]  ;;  %s13516_s6 = smov [#allocation45]  }
 0x39c   : > { %11818 = dma.hbm_to_vmem [thread:$0]  (%p11905_p3), %s16519_s13, 1024, %s2201_s15, [#allocation41], %s16499_s10, %s16499_s10, %s16513_s11  }
 0x39d   : > { %s2235_s14 = sshll.u32 %s13516_s6, 4  ;;  %s13517_s7 = smov [#allocation48]   ;;  %s2236_s14 = int_to_ptr.vmem [resolvable:$true] %s2235_s14 }
 0x39e   : > { %s2259_s5 = sshll.u32 %s13517_s7, 4  ;;  %s2260_s5 = int_to_ptr.vmem [resolvable:$true] %s2259_s5 }
 0x3a1   : > { %s13221_s16 = scalar_lea.hbm %s16520_s3, 64 }
 0x3a2   : > { %p13222_p4 = scmp.ne.s32.totalorder %s16520_s3, %s13221_s16  ;;  %p13227_p7 = scmp.lt.u32.totalorder %s13221_s16, %s16520_s3 }
 0x3a4   : > { %p13223_p5 = pnand %p13222_p4, %p11905_p3 }
 0x3a6   : > { %p13224_p6 = pneg %p13223_p5 }
 0x3a8   : > { %p13229_p8 = pnand %p13227_p7, %p13224_p6 }
 0x3aa   : > { %13232 = shalt.err (!%p13229_p8)
}
 0x3ab   : > { %s13233_s12 = scalar_lea.vmem %s2236_s14, 64  ;;  %p13240_p12 = scmp.lt.s32.totalorder %s2236_s14, %s2236_s14 }
 0x3ac   : > { %p13234_p9 = scmp.ne.s32.totalorder %s2236_s14, %s13233_s12  ;;  %p13241_p13 = scmp.lt.s32.totalorder %s13233_s12, %s13233_s12 }
 0x3ae   : > { %p13235_p10 = pnand %p13234_p9, %p11905_p3  ;;  %p13242_p0 = por %p13241_p13, %p13240_p12 }
 0x3b0   : > { %p13236_p11 = pneg %p13235_p10 }
 0x3b2   : > { %p13243_p1 = pnand %p13242_p0, %p13236_p11 }
 0x3b4   : > { %13246 = shalt.err (!%p13243_p1)
}
 0x3b5   : > { %s16521_s15 = sld [smem:[#allocation123_spill]] }
 0x3b6   : > { %11822 = dma.hbm_to_vmem [thread:$0]  (%p11905_p3), %s16520_s3, 64, %s2236_s14, [#allocation44], %s16516_s2, %s16516_s2, %s16515_s4  }
 0x3bb   : > { %s13247_s6 = scalar_lea.hbm %s16521_s15, 512 }
 0x3bc   : > { %p13248_p4 = scmp.ne.s32.totalorder %s16521_s15, %s13247_s6  ;;  %p13253_p7 = scmp.lt.u32.totalorder %s13247_s6, %s16521_s15 }
 0x3be   : > { %p13249_p5 = pnand %p13248_p4, %p11905_p3 }
 0x3c0   : > { %p13250_p6 = pneg %p13249_p5 }
 0x3c2   : > { %p13255_p8 = pnand %p13253_p7, %p13250_p6 }
 0x3c4   : > { %13258 = shalt.err (!%p13255_p8)
}
 0x3c5   : > { %s13259_s12 = scalar_lea.vmem %s2260_s5, 512  ;;  %p13266_p12 = scmp.lt.s32.totalorder %s2260_s5, %s2260_s5 }
 0x3c6   : > { %p13260_p9 = scmp.ne.s32.totalorder %s2260_s5, %s13259_s12  ;;  %p13267_p13 = scmp.lt.s32.totalorder %s13259_s12, %s13259_s12 }
 0x3c8   : > { %p13261_p10 = pnand %p13260_p9, %p11905_p3  ;;  %p13268_p0 = por %p13267_p13, %p13266_p12 }
 0x3ca   : > { %p13262_p11 = pneg %p13261_p10 }
 0x3cc   : > { %p13269_p1 = pnand %p13268_p0, %p13262_p11 }
 0x3ce   : > { %13272 = shalt.err (!%p13269_p1)
}
 0x3cf   : > { %s16522_s4 = sld [smem:[#allocation128_spill]]  ;;  %s13518_s2 = smov [#allocation51]  }
 0x3d0   : > { %11826 = dma.hbm_to_vmem [thread:$0]  (%p11905_p3), %s16521_s15, 512, %s2260_s5, [#allocation47], %s16499_s10, %s16499_s10, %s16513_s11  }
 0x3d1   : > { %s2292_s14 = sshll.u32 %s13518_s2, 4  ;;  %s13519_s7 = smov [#allocation54]   ;;  %s2293_s14 = int_to_ptr.vmem [resolvable:$true] %s2292_s14 }
 0x3d2   : > { %s2331_s16 = sshll.u32 %s13519_s7, 4  ;;  %s2332_s16 = int_to_ptr.vmem [resolvable:$true] %s2331_s16 }
 0x3d5   : > { %s13273_s6 = scalar_lea.hbm %s16522_s4, 1024 }
 0x3d6   : > { %p13274_p4 = scmp.ne.s32.totalorder %s16522_s4, %s13273_s6  ;;  %p13279_p7 = scmp.lt.u32.totalorder %s13273_s6, %s16522_s4 }
 0x3d8   : > { %p13275_p5 = pnand %p13274_p4, %p11905_p3 }
 0x3da   : > { %p13276_p6 = pneg %p13275_p5 }
 0x3dc   : > { %p13281_p8 = pnand %p13279_p7, %p13276_p6 }
 0x3de   : > { %13284 = shalt.err (!%p13281_p8)
}
 0x3df   : > { %s13285_s12 = scalar_lea.vmem %s2293_s14, 1024  ;;  %p13292_p12 = scmp.lt.s32.totalorder %s2293_s14, %s2293_s14 }
 0x3e0   : > { %p13286_p9 = scmp.ne.s32.totalorder %s2293_s14, %s13285_s12  ;;  %p13293_p13 = scmp.lt.s32.totalorder %s13285_s12, %s13285_s12 }
 0x3e2   : > { %p13287_p10 = pnand %p13286_p9, %p11905_p3  ;;  %p13294_p0 = por %p13293_p13, %p13292_p12 }
 0x3e4   : > { %p13288_p11 = pneg %p13287_p10 }
 0x3e6   : > { %p13295_p1 = pnand %p13294_p0, %p13288_p11 }
 0x3e8   : > { %13298 = shalt.err (!%p13295_p1)
}
 0x3e9   : > { %s16523_s5 = sld [smem:[#allocation134_spill]] }
 0x3ea   : > { %11830 = dma.hbm_to_vmem [thread:$0]  (%p11905_p3), %s16522_s4, 1024, %s2293_s14, [#allocation50], %s16499_s10, %s16499_s10, %s16513_s11  }
 0x3ef   : > { %s13299_s2 = scalar_lea.hbm %s16523_s5, 64 }
 0x3f0   : > { %p13300_p4 = scmp.ne.s32.totalorder %s16523_s5, %s13299_s2  ;;  %p13305_p7 = scmp.lt.u32.totalorder %s13299_s2, %s16523_s5 }
 0x3f2   : > { %p13301_p5 = pnand %p13300_p4, %p11905_p3 }
 0x3f4   : > { %p13302_p6 = pneg %p13301_p5 }
 0x3f6   : > { %p13307_p8 = pnand %p13305_p7, %p13302_p6 }
 0x3f8   : > { %13310 = shalt.err (!%p13307_p8)
}
 0x3f9   : > { %s13311_s7 = scalar_lea.vmem %s2332_s16, 64  ;;  %p13318_p12 = scmp.lt.s32.totalorder %s2332_s16, %s2332_s16 }
 0x3fa   : > { %p13312_p9 = scmp.ne.s32.totalorder %s2332_s16, %s13311_s7  ;;  %p13319_p13 = scmp.lt.s32.totalorder %s13311_s7, %s13311_s7 }
 0x3fc   : > { %p13313_p10 = pnand %p13312_p9, %p11905_p3  ;;  %p13320_p0 = por %p13319_p13, %p13318_p12 }
 0x3fe   : > { %p13314_p11 = pneg %p13313_p10 }
 0x400   : > { %p13321_p1 = pnand %p13320_p0, %p13314_p11 }
 0x402   : > { %13324 = shalt.err (!%p13321_p1)
}
 0x403   : > { %11834 = dma.hbm_to_vmem [thread:$0]  (%p11905_p3), %s16523_s5, 64, %s2332_s16, [#allocation53]  }
 0x404 PF: > { %2373 = sbr.rel (%p13927_p2) target bundleno = 4728 (0x1278), region = 324 }
 0x40b   : > { %p11940_p4 = scmp.eq.s32.totalorder %s13923_s28, 0 }
 0x40d   : > { %13330 = dma.done.wait (%p11940_p4), [#allocation3], 256  }
 0x40e   : > { %13332 = vsyncadd (%p11940_p4), [#allocation3], 4294967040 }
 0x40f   : > { %13334 = dma.done.wait (%p11940_p4), [#allocation5], 320  }
 0x410   : > { %13336 = vsyncadd (%p11940_p4), [#allocation5], 4294966976 }
 0x411   : > { %13338 = dma.done.wait (%p11940_p4), [#allocation8], 96  }
 0x412   : > { %13340 = vsyncadd (%p11940_p4), [#allocation8], 4294967200 }
 0x413   : > { %13342 = dma.done.wait (%p11940_p4), [#allocation11], 128  }
 0x414   : > { %13344 = vsyncadd (%p11940_p4), [#allocation11], 4294967168 }
 0x415   : > { %13346 = dma.done.wait (%p11940_p4), [#allocation14], 96  }
 0x416   : > { %13348 = vsyncadd (%p11940_p4), [#allocation14], 4294967200 }
 0x417   : > { %13350 = dma.done.wait (%p11940_p4), [#allocation17], 384  }
 0x418   : > { %13352 = vsyncadd (%p11940_p4), [#allocation17], 4294966912 }
 0x419   : > { %13354 = dma.done.wait (%p11940_p4), [#allocation20], 96  }
 0x41a   : > { %13356 = vsyncadd (%p11940_p4), [#allocation20], 4294967200 }
 0x41b   : > { %13358 = dma.done.wait (%p11940_p4), [#allocation23], 160  }
 0x41c   : > { %13360 = vsyncadd (%p11940_p4), [#allocation23], 4294967136 }
 0x41d   : > { %13362 = dma.done.wait (%p11940_p4), [#allocation26], 16512  }
 0x41e   : > { %13364 = vsyncadd (%p11940_p4), [#allocation26], 4294950784 }
 0x41f   : > { %13366 = dma.done.wait (%p11940_p4), [#allocation29], 544  }
 0x420   : > { %13368 = vsyncadd (%p11940_p4), [#allocation29], 4294966752 }
 0x421   : > { %13370 = dma.done.wait (%p11940_p4), [#allocation32], 320  }
 0x422   : > { %13372 = vsyncadd (%p11940_p4), [#allocation32], 4294966976 }
 0x423   : > { %13374 = dma.done.wait (%p11940_p4), [#allocation35], 288  }
 0x424   : > { %13376 = vsyncadd (%p11940_p4), [#allocation35], 4294967008 }
 0x425   : > { %13378 = dma.done.wait (%p11940_p4), [#allocation38], 288  }
 0x426   : > { %13380 = vsyncadd (%p11940_p4), [#allocation38], 4294967008 }
 0x427   : > { %13382 = dma.done.wait (%p11940_p4), [#allocation41], 1056  }
 0x428   : > { %13384 = vsyncadd (%p11940_p4), [#allocation41], 4294966240 }
 0x429   : > { %13386 = dma.done.wait (%p11940_p4), [#allocation44], 576  }
 0x42a   : > { %13388 = vsyncadd (%p11940_p4), [#allocation44], 4294966720 }
 0x42b   : > { %13390 = dma.done.wait (%p11940_p4), [#allocation47], 544  }
 0x42c   : > { %13392 = vsyncadd (%p11940_p4), [#allocation47], 4294966752 }
 0x42d   : > { %13394 = dma.done.wait (%p11940_p4), [#allocation50], 1056  }
 0x42e   : > { %13396 = vsyncadd (%p11940_p4), [#allocation50], 4294966240 }
 0x42f   : > { %13398 = dma.done.wait (%p11940_p4), [#allocation53], 576  }
 0x430   : > { %13400 = vsyncadd (%p11940_p4), [#allocation53], 4294966720  ;;  %v2699_v0 = vlaneseq  ;;  %v2696_v5 = vld [vmem:[%s13905_s20] sm:$0xff]  ;;  %v2697_v26 = vld [vmem:[%s13905_s20 + $0x8] sm:$0xff]  ;;  %s16524_s1 = sld [smem:[#allocation135_spill]]  ;;  %p2679_p2 = scmp.lt.s32.totalorder %s13923_s28, 1 }
 0x431   : > { %v2839_v6 = vld [vmem:[%s13900_s17] sm:$0xff]  ;;  %v2840_v31 = vld [vmem:[%s13900_s17 + $0x8] sm:$0xff]  ;;  %v2698_v44 = vld [vmem:[%s13905_s20 + $0x10] sm:$0xf]  ;;  %s16526_s10 = sld [smem:[#allocation73_spill]]  ;;  %s16551_s16 = sld [smem:[#allocation79_spill]] }
 0x432   : > { %v14407_v1 = vshrl.u32 %v2699_v0, 7  ;;  %v10793_v47 = vld [vmem:[%s13910_s9 + $0x18] sm:$0xff]  ;;  %v2841_v52 = vld [vmem:[%s13900_s17 + $0x10] sm:$0xf]  ;;  %v3853_v61 = vld [vmem:[%s13910_s9] sm:$0xff]  ;;  %s16679_s28 = smov (!%p2679_p2, %s13923_s28), 1 }
 0x433   : > { %s10971_s11 = sshll.u32 %s16679_s28, 3  ;;  %s16554_s6 = sld [smem:[#allocation78_spill]]  ;;  %vm4256_vm0 = vcmask 1042432   ;;  %vm4822_vm1 = vcmask 23552   ;;  %vm6218_vm2 = vcmask 1043456   ;;  %vm13524_vm3 = vmmov 1  }
 0x434   : > { %v14410_v2 = vsub.s32 0, %v14407_v1  ;;  %v14413_v3 = vsub.s32 2, %v14407_v1  ;;  %v14416_v4 = vsub.s32 1, %v14407_v1  ;;  %v14425_v11 = vsub.s32 3, %v14407_v1  ;;  %s16557_s12 = sld [smem:[#allocation85_spill]]  ;;  %s16558_s2 = sld [smem:[#allocation84_spill]]  ;;  %vm11464_vm4 = vmpackc.low %vm6218_vm2, %vm13524_vm3 }
 0x435   : > { %v14430_v14 = vsub.s32 4, %v14407_v1  ;;  %v14435_v17 = vsub.s32 5, %v14407_v1  ;;  %v14440_v20 = vsub.s32 6, %v14407_v1  ;;  %v14445_v23 = vsub.s32 7, %v14407_v1  ;;  %s16561_s7 = sld [smem:[#allocation91_spill]]  ;;  %s16672_s3 = sld [smem:[#allocation125_spill]] }
 0x436   : > { %v2716_v7 = vrot.slane %v2696_v5, %v14413_v3  ;;  %v2702_v8 = vrot.slane %v2696_v5, %v14410_v2  ;;  %v2845_v9 = vrot.slane %v2839_v6, %v14410_v2  ;;  %v2709_v10 = vrot.slane %v2696_v5, %v14416_v4 }
 0x437   : > { %v2723_v12 = vrot.slane %v2696_v5, %v14425_v11  ;;  %v2852_v13 = vrot.slane %v2839_v6, %v14416_v4  ;;  %v2730_v15 = vrot.slane %v2696_v5, %v14430_v14  ;;  %v2859_v16 = vrot.slane %v2839_v6, %v14413_v3  ;;  %s2683_s14 = scalar_lea.vmem %s16526_s10, %s10971_s11  ;;  %s16563_s10 = sld [smem:[#allocation90_spill]] }
 0x438   : > { %2718 = vbcast.lane.b32.xlu1 %v2716_v7, 256  ;;  %2704 = vbcast.lane.b32.xlu0 %v2702_v8, 256  ;;  %v2737_v18 = vrot.slane %v2696_v5, %v14435_v17  ;;  %v2866_v19 = vrot.slane %v2839_v6, %v14425_v11  ;;  %v2744_v21 = vrot.slane %v2696_v5, %v14440_v20  ;;  %s16569_s11 = sld [smem:[#allocation96_spill]]  ;;  %vm6214_vm5 = vcmask 97280  }
 0x439   : > { %v2873_v22 = vrot.slane %v2839_v6, %v14430_v14  ;;  %v2751_v24 = vrot.slane %v2696_v5, %v14445_v23  ;;  %v2880_v25 = vrot.slane %v2839_v6, %v14435_v17  ;;  %v2758_v27 = vrot.slane %v2697_v26, %v14410_v2 }
 0x43a   : > { %v2887_v28 = vrot.slane %v2839_v6, %v14440_v20  ;;  %v2765_v29 = vrot.slane %v2697_v26, %v14416_v4  ;;  %v2894_v30 = vrot.slane %v2839_v6, %v14445_v23  ;;  %v2772_v32 = vrot.slane %v2697_v26, %v14413_v3 }
 0x43b   : > { %v2901_v33 = vrot.slane %v2840_v31, %v14410_v2  ;;  %v2779_v34 = vrot.slane %v2697_v26, %v14425_v11  ;;  %v2908_v35 = vrot.slane %v2840_v31, %v14416_v4  ;;  %v2786_v36 = vrot.slane %v2697_v26, %v14430_v14 }
 0x43c   : > { %2847 = vbcast.lane.b32.xlu1 %v2845_v9, 256  ;;  %2711 = vbcast.lane.b32.xlu0 %v2709_v10, 256  ;;  %v2915_v37 = vrot.slane %v2840_v31, %v14413_v3  ;;  %v2793_v38 = vrot.slane %v2697_v26, %v14435_v17  ;;  %v2922_v39 = vrot.slane %v2840_v31, %v14425_v11  ;;  %v14494_v10 = vld [vmem:[%s13910_s9 + $0x20] sm:$0xff]  ;;  %vm6766_vm6 = vcmask 31744  }
 0x43d   : > { %v2800_v40 = vrot.slane %v2697_v26, %v14440_v20  ;;  %v2929_v41 = vrot.slane %v2840_v31, %v14430_v14  ;;  %v2807_v42 = vrot.slane %v2697_v26, %v14445_v23  ;;  %v2936_v43 = vrot.slane %v2840_v31, %v14435_v17 }
 0x43e   : > { %v2814_v45 = vrot.slane %v2698_v44, %v14410_v2  ;;  %v2943_v46 = vrot.slane %v2840_v31, %v14440_v20  ;;  %v4344_v48 = vrot.slane %v10793_v47, %v14410_v2  ;;  %v2950_v49 = vrot.slane %v2840_v31, %v14445_v23 }
 0x43f   : > { %v2821_v50 = vrot.slane %v2698_v44, %v14416_v4  ;;  %v4351_v51 = vrot.slane %v10793_v47, %v14416_v4  ;;  %v4358_v53 = vrot.slane %v10793_v47, %v14413_v3  ;;  %v2957_v54 = vrot.slane %v2841_v52, %v14410_v2 }
 0x440   : > { %2725 = vbcast.lane.b32.xlu1 %v2723_v12, 256  ;;  %2854 = vbcast.lane.b32.xlu0 %v2852_v13, 256  ;;  %v2964_v55 = vrot.slane %v2841_v52, %v14416_v4  ;;  %v2828_v56 = vrot.slane %v2698_v44, %v14413_v3  ;;  %v2835_v57 = vrot.slane %v2698_v44, %v14425_v11  ;;  %vm13525_vm7 = vmmov 0  }
 0x441   : > { %v4365_v58 = vrot.slane %v10793_v47, %v14425_v11  ;;  %v4372_v59 = vrot.slane %v10793_v47, %v14430_v14  ;;  %v2971_v60 = vrot.slane %v2841_v52, %v14413_v3  ;;  %v3859_v62 = vrot.slane %v3853_v61, %v14410_v2 }
 0x442   : > { %v2978_v63 = vrot.slane %v2841_v52, %v14425_v11  ;;  %v4379_v0 = vrot.slane %v10793_v47, %v14435_v17  ;;  %v3866_v5 = vrot.slane %v3853_v61, %v14416_v4  ;;  %v4386_v6 = vrot.slane %v10793_v47, %v14440_v20 }
 0x443   : > { %v3873_v7 = vrot.slane %v3853_v61, %v14413_v3  ;;  %v4393_v8 = vrot.slane %v10793_v47, %v14445_v23  ;;  %v3880_v9 = vrot.slane %v3853_v61, %v14425_v11  ;;  %v4400_v12 = vrot.slane %v14494_v10, %v14410_v2 }
 0x444   : > { %2732 = vbcast.lane.b32.xlu1 %v2730_v15, 256  ;;  %2861 = vbcast.lane.b32.xlu0 %v2859_v16, 256  ;;  %v3887_v13 = vrot.slane %v3853_v61, %v14430_v14  ;;  %v13520_v15 = vmov 1966171168   ;;  %vm7783_vm8 = vcmask 64512   ;;  %vm7538_vm9 = vcmask 523264  }
 0x445   : > { %v2991_v16 = vunpack.c.l.s4 %v13520_v15  ;;  %vm8549_vm10 = vcmask 130048   ;;  %vm10142_vm11 = vcmask 261120   ;;  %vm10226_vm12 = vcmask 1024  }
 0x446   : > { %vm10224_vm13 = vcmask 7168  }
 0x448   : > { %2739 = vbcast.lane.b32.xlu1 %v2737_v18, 256  ;;  %2868 = vbcast.lane.b32.xlu0 %v2866_v19, 256  ;;  %v4407_v18 = vrot.slane %v14494_v10, %v14416_v4  ;;  %v3894_v19 = vrot.slane %v3853_v61, %v14435_v17 }
 0x44c   : > { %2746 = vbcast.lane.b32.xlu1 %v2744_v21, 256  ;;  %2875 = vbcast.lane.b32.xlu0 %v2873_v22, 256  ;;  %v14503_v21 = vld [vmem:[%s13910_s9 + $0x30] sm:$0xff]  ;;  %v2992_v22 = vunpack.c.0.s8 %v2991_v16 }
 0x44e   : > { %v14510_v26 = vsub.s32 %v2992_v22, %v14407_v1 }
 0x450   : > { %2753 = vbcast.lane.b32.xlu1 %v2751_v24, 256  ;;  %2882 = vbcast.lane.b32.xlu0 %v2880_v25, 256  ;;  %v5015_v24 = vrot.slane %v14503_v21, %v14416_v4  ;;  %v5008_v25 = vrot.slane %v14503_v21, %v14410_v2  ;;  %16525 = vst [vmem:[#allocation139_spill] sm:$0xff] %v14510_v26 }
 0x454   : > { %2760 = vbcast.lane.b32.xlu1 %v2758_v27, 256  ;;  %2889 = vbcast.lane.b32.xlu0 %v2887_v28, 256  ;;  %v12107_v27 = vld [vmem:[%s16524_s1] ss:$8 sps:$4 sm:$0xff]   ;;  %v4414_v28 = vrot.slane %v14494_v10, %v14413_v3 }
 0x458   : > { %2767 = vbcast.lane.b32.xlu1 %v2765_v29, 256  ;;  %2896 = vbcast.lane.b32.xlu0 %v2894_v30, 256  ;;  %v3901_v29 = vrot.slane %v3853_v61, %v14440_v20  ;;  %v13521_v30 = vmov 0  }
 0x459   : > { %12106 = vset.pattern.permute.xlu1 %v13521_v30  ;;  %12105 = vset.pattern.permute.xlu0 %v13521_v30  ;;  %v14584_v30 = vld [vmem:[%s13910_s9 + $0x48] sm:$0xff] }
 0x45c   : > { %2774 = vbcast.lane.b32.xlu1 %v2772_v32, 256  ;;  %2903 = vbcast.lane.b32.xlu0 %v2901_v33, 256  ;;  %v2996_v33 = vrot.slane %v12107_v27, %v14510_v26 }
 0x460   : > { %2781 = vbcast.lane.b32.xlu1 %v2779_v34, 256  ;;  %2910 = vbcast.lane.b32.xlu0 %v2908_v35, 256  ;;  %v3908_v34 = vrot.slane %v3853_v61, %v14445_v23  ;;  %v5022_v35 = vrot.slane %v14503_v21, %v14413_v3 }
 0x464   : > { %2788 = vbcast.lane.b32.xlu1 %v2786_v36, 256  ;;  %2917 = vbcast.lane.b32.xlu0 %v2915_v37, 256 }
 0x468   : > { %2795 = vbcast.lane.b32.xlu1 %v2793_v38, 256  ;;  %2924 = vbcast.lane.b32.xlu0 %v2922_v39, 256  ;;  %v12109_v38 = vld [vmem:[%s16524_s1 + $0x4] ss:$8 sps:$4 sm:$0xff]   ;;  %v3012_v39 = vrot.slane %v2996_v33, %v14510_v26 }
 0x46a   : > { %v3034_v47 = vcombine.high %v3012_v39, %v3012_v39 }
 0x46c   : > { %2802 = vbcast.lane.b32.xlu1 %v2800_v40, 256  ;;  %2931 = vbcast.lane.b32.xlu0 %v2929_v41, 256  ;;  %v5029_v40 = vrot.slane %v14503_v21, %v14425_v11  ;;  %v4421_v41 = vrot.slane %v14494_v10, %v14425_v11  ;;  %v3132_v61 = vrot.slane %v3034_v47, %v14410_v2 }
 0x470   : > { %2809 = vbcast.lane.b32.xlu1 %v2807_v42, 256  ;;  %2938 = vbcast.lane.b32.xlu0 %v2936_v43, 256  ;;  %v14536_v42 = vld [vmem:[%s13910_s9 + $0x8] sm:$0xff]  ;;  %v3004_v43 = vcombine.high %v2996_v33, %v2996_v33 }
 0x472   : > { %v3026_v52 = vrot.slane %v3004_v43, %v14510_v26 }
 0x474   : > { %2816 = vbcast.lane.b32.xlu1 %v2814_v45, 256  ;;  %2945 = vbcast.lane.b32.xlu0 %v2943_v46, 256  ;;  %v3003_v46 = vrot.slane %v12109_v38, %v14510_v26  ;;  %v3128_v15 = vrot.slane %v3026_v52, %v14416_v4 }
 0x478   : > { %4346 = vbcast.lane.b32.xlu1 %v4344_v48, 256  ;;  %2952 = vbcast.lane.b32.xlu0 %v2950_v49, 256  ;;  %v4428_v48 = vrot.slane %v14494_v10, %v14430_v14  ;;  %v3915_v49 = vrot.slane %v14536_v42, %v14410_v2 }
 0x47c   : > { %2823 = vbcast.lane.b32.xlu1 %v2821_v50, 256  ;;  %4353 = vbcast.lane.b32.xlu0 %v4351_v51, 256  ;;  %v13522_v50 = vmov 839922192  }
 0x47d   : > { %v3354_v51 = vunpack.c.l.s4 %v13522_v50  ;;  %v5586_v50 = vrot.slane %v14584_v30, %v14410_v2 }
 0x480   : > { %4360 = vbcast.lane.b32.xlu1 %v4358_v53, 256  ;;  %2959 = vbcast.lane.b32.xlu0 %v2957_v54, 256 }
 0x484   : > { %2966 = vbcast.lane.b32.xlu1 %v2964_v55, 256  ;;  %2830 = vbcast.lane.b32.xlu0 %v2828_v56, 256  ;;  %v3005_v55 = vcombine.high %v3003_v46, %v3003_v46  ;;  %v3116_v56 = vrot.slane %v3012_v39, %v14410_v2 }
 0x488   : > { %2837 = vbcast.lane.b32.xlu1 %v2835_v57, 256  ;;  %4367 = vbcast.lane.b32.xlu0 %v4365_v58, 256  ;;  %v3120_v57 = vrot.slane %v3012_v39, %v14416_v4  ;;  %v3019_v58 = vrot.slane %v3003_v46, %v14510_v26 }
 0x48a   : > { %v3148_v16 = vrot.slane %v3019_v58, %v14410_v2 }
 0x48c   : > { %4374 = vbcast.lane.b32.xlu1 %v4372_v59, 256  ;;  %2973 = vbcast.lane.b32.xlu0 %v2971_v60, 256  ;;  %v3922_v59 = vrot.slane %v14536_v42, %v14416_v4  ;;  %v12110_v60 = vld [vmem:[%s16524_s1 + $0x10] ss:$8 sps:$4 sm:$0xff]  }
 0x490   : > { %3861 = vbcast.lane.b32.xlu1 %v3859_v62, 256  ;;  %2980 = vbcast.lane.b32.xlu0 %v2978_v63, 256  ;;  %v3136_v62 = vrot.slane %v3034_v47, %v14416_v4  ;;  %v5036_v63 = vrot.slane %v14503_v21, %v14430_v14 }
 0x492   : > { %v3275_v22 = vcombine.low %v3132_v61, %v3136_v62 }
 0x494   : > { %4381 = vbcast.lane.b32.xlu1 %v4379_v0, 256  ;;  %3868 = vbcast.lane.b32.xlu0 %v3866_v5, 256  ;;  %v3355_v0 = vunpack.c.0.s8 %v3354_v51  ;;  %v3036_v5 = vcombine.high %v3026_v52, %v3026_v52 }
 0x496   : > { %v3140_v27 = vrot.slane %v3036_v5, %v14410_v2  ;;  %v14597_v46 = vsub.s32 %v3355_v0, %v14407_v1 }
 0x498   : > { %4388 = vbcast.lane.b32.xlu1 %v4386_v6, 256  ;;  %3875 = vbcast.lane.b32.xlu0 %v3873_v7, 256  ;;  %v3124_v6 = vrot.slane %v3026_v52, %v14410_v2 }
 0x49a   : > { %v3274_v47 = vcombine.low %v3124_v6, %v3128_v15  ;;  %v4442_v6 = vrot.slane %v14494_v10, %v14440_v20 }
 0x49c   : > { %4395 = vbcast.lane.b32.xlu1 %v4393_v8, 256  ;;  %3882 = vbcast.lane.b32.xlu0 %v3880_v9, 256  ;;  %v3033_v8 = vrot.slane %v3005_v55, %v14510_v26 }
 0x49e   : > { %v3160_v38 = vrot.slane %v3033_v8, %v14416_v4 }
 0x4a0   : > { %4402 = vbcast.lane.b32.xlu1 %v4400_v12, 256  ;;  %3889 = vbcast.lane.b32.xlu0 %v3887_v13, 256  ;;  %v3035_v12 = vcombine.high %v3019_v58, %v3019_v58  ;;  %v5043_v13 = vrot.slane %v14503_v21, %v14435_v17 }
 0x4a4   : > { %4409 = vbcast.lane.b32.xlu1 %v4407_v18, 256  ;;  %3896 = vbcast.lane.b32.xlu0 %v3894_v19, 256  ;;  %v3152_v18 = vrot.slane %v3019_v58, %v14416_v4  ;;  %v3046_v19 = vrot.slane %v12110_v60, %v14510_v26 }
 0x4a6   : > { %v3054_v33 = vcombine.high %v3046_v19, %v3046_v19  ;;  %v3062_v51 = vrot.slane %v3046_v19, %v14510_v26 }
 0x4a8   : > { %5017 = vbcast.lane.b32.xlu1 %v5015_v24, 256  ;;  %5010 = vbcast.lane.b32.xlu0 %v5008_v25, 256  ;;  %v3273_v24 = vcombine.low %v3116_v56, %v3120_v57  ;;  %v4435_v25 = vrot.slane %v14494_v10, %v14435_v17  ;;  %v3076_v56 = vrot.slane %v3054_v33, %v14510_v26  ;;  %v12112_v57 = vld [vmem:[%s16524_s1 + $0x14] ss:$8 sps:$4 sm:$0xff]  }
 0x4a9   : > { %v3084_v15 = vcombine.high %v3062_v51, %v3062_v51 }
 0x4aa   : > { %v14516_v31 = vpop.permute.xlu1 %2718  ;;  %v14518_v32 = vpop.permute.xlu0 %2704  ;;  %v3192_v19 = vrot.slane %v3076_v56, %v14416_v4  ;;  %v3086_v33 = vcombine.high %v3076_v56, %v3076_v56 }
 0x4ac   : > { %4416 = vbcast.lane.b32.xlu1 %v4414_v28, 256  ;;  %3903 = vbcast.lane.b32.xlu0 %v3901_v29, 256  ;;  %v3144_v28 = vrot.slane %v3036_v5, %v14416_v4  ;;  %v3037_v29 = vcombine.high %v3033_v8, %v3033_v8 }
 0x4ae   : > { %v14524_v36 = vpop.permute.xlu1 %2847  ;;  %v14526_v37 = vpop.permute.xlu0 %2711  ;;  %v3172_v55 = vrot.slane %v3037_v29, %v14410_v2  ;;  %v3176_v1 = vrot.slane %v3037_v29, %v14416_v4 }
 0x4b0   : > { %3910 = vbcast.lane.b32.xlu1 %v3908_v34, 256  ;;  %5024 = vbcast.lane.b32.xlu0 %v5022_v35, 256  ;;  %v14586_v34 = vld [vmem:[%s2683_s14] sm:$0x77]  ;;  %v3156_v35 = vrot.slane %v3033_v8, %v14410_v2  ;;  %v3929_v8 = vrot.slane %v14536_v42, %v14413_v3  ;;  %s16574_s14 = sld [smem:[#allocation95_spill]] }
 0x4b1   : > { %v14605_v52 = vadd.f32 %v3273_v24, %v14586_v34  ;;  %v14612_v58 = vadd.f32 %v3275_v22, %v14586_v34  ;;  %v14619_v0 = vadd.f32 %v3274_v47, %v14586_v34  ;;  %v3053_v22 = vrot.slane %v12112_v57, %v14510_v26 }
 0x4b2   : > { %v14538_v44 = vpop.permute.xlu1 %2725  ;;  %v14540_v45 = vpop.permute.xlu0 %2854  ;;  %v3278_v60 = vcombine.low %v3156_v35, %v3160_v38  ;;  %v12113_v35 = vld [vmem:[%s16524_s1 + $0x20] ss:$8 sps:$4 sm:$0xff]   ;;  %v5600_v38 = vrot.slane %v14584_v30, %v14413_v3  ;;  %s16668_s1 = sld [smem:[#allocation120_spill]] }
 0x4b3   : > { %v3055_v47 = vcombine.high %v3053_v22, %v3053_v22  ;;  %v3069_v57 = vrot.slane %v3053_v22, %v14510_v26 }
 0x4b4   : > { %5031 = vbcast.lane.b32.xlu1 %v5029_v40, 256  ;;  %4423 = vbcast.lane.b32.xlu0 %v4421_v41, 256  ;;  %v3164_v40 = vrot.slane %v3035_v12, %v14410_v2  ;;  %v3168_v41 = vrot.slane %v3035_v12, %v14416_v4  ;;  %v3180_v12 = vrot.slane %v3062_v51, %v14410_v2 }
 0x4b6   : > { %v14551_v53 = vpop.permute.xlu1 %2732  ;;  %v14553_v54 = vpop.permute.xlu0 %2861  ;;  %v3279_v61 = vcombine.low %v3164_v40, %v3168_v41  ;;  %v5050_v40 = vrot.slane %v14503_v21, %v14440_v20  ;;  %v4449_v41 = vrot.slane %v14494_v10, %v14445_v23 }
 0x4b8   : > { %4430 = vbcast.lane.b32.xlu1 %v4428_v48, 256  ;;  %3917 = vbcast.lane.b32.xlu0 %v3915_v49, 256  ;;  %v3277_v48 = vcombine.low %v3148_v16, %v3152_v18  ;;  %v5593_v49 = vrot.slane %v14584_v30, %v14416_v4  ;;  %v3280_v16 = vcombine.low %v3172_v55, %v3176_v1 }
 0x4b9   : > { %v3188_v18 = vrot.slane %v3076_v56, %v14410_v2  ;;  %v3936_v56 = vrot.slane %v14536_v42, %v14425_v11 }
 0x4ba   : > { %v14567_v7 = vpop.permute.xlu1 %2739  ;;  %v14570_v9 = vpop.permute.xlu0 %2868  ;;  %v14622_v5 = vadd.f32 %v3277_v48, %v14586_v34  ;;  %v14659_v55 = vadd.f32 %v3280_v16, %v14586_v34  ;;  %v3085_v16 = vcombine.high %v3069_v57, %v3069_v57 }
 0x4bb   : > { %v3282_v1 = vcombine.low %v3188_v18, %v3192_v19 }
 0x4bc   : > { %3924 = vbcast.lane.b32.xlu1 %v3922_v59, 256  ;;  %5038 = vbcast.lane.b32.xlu0 %v5036_v63, 256  ;;  %v3276_v59 = vcombine.low %v3140_v27, %v3144_v28  ;;  %v14640_v27 = vadd.f32 %v3279_v61, %v14586_v34  ;;  %16528 = vst [vmem:[#allocation141_spill] sm:$0xff] %v14659_v55  ;;  %v14689_v55 = vld [vmem:[%s13910_s9 + $0x38] sm:$0xff] }
 0x4bd   : > { %v3208_v61 = vrot.slane %v3086_v33, %v14416_v4 }
 0x4be   : > { %v14590_v39 = vpop.permute.xlu1 %2746  ;;  %v14594_v43 = vpop.permute.xlu0 %2875  ;;  %v14634_v24 = vadd.f32 %v3276_v59, %v14586_v34  ;;  %16527 = vst [vmem:[#allocation140_spill] sm:$0xff] %v14640_v27 }
 0x4c0   : > { %5045 = vbcast.lane.b32.xlu1 %v5043_v13, 256  ;;  %4437 = vbcast.lane.b32.xlu0 %v4435_v25, 256  ;;  %v3184_v13 = vrot.slane %v3062_v51, %v14416_v4  ;;  %v14637_v25 = vadd.f32 %v3278_v60, %v14586_v34  ;;  %v14656_v51 = vld [vmem:[%s13910_s9 + $0x28] sm:$0xf]  ;;  %v3204_v60 = vrot.slane %v3086_v33, %v14410_v2 }
 0x4c1   : > { %v14682_v33 = vadd.f32 %v3282_v1, %v14586_v34 }
 0x4c2   : > { %v14614_v62 = vpop.permute.xlu1 %2753  ;;  %v14616_v63 = vpop.permute.xlu0 %2882  ;;  %v3281_v48 = vcombine.low %v3180_v12, %v3184_v13  ;;  %v5057_v12 = vrot.slane %v14503_v21, %v14445_v23  ;;  %v4456_v13 = vrot.slane %v14656_v51, %v14410_v2  ;;  %v3228_v21 = vrot.slane %v3085_v16, %v14410_v2 }
 0x4c3   : > { %16532 = vst [vmem:[#allocation145_spill] sm:$0xff] %v14682_v33 }
 0x4c4   : > { %5595 = vbcast.lane.b32.xlu1 %v5593_v49, 256  ;;  %5588 = vbcast.lane.b32.xlu0 %v5586_v50, 256  ;;  %v3196_v49 = vrot.slane %v3084_v15, %v14410_v2  ;;  %v3200_v50 = vrot.slane %v3084_v15, %v14416_v4  ;;  %v3083_v15 = vrot.slane %v3055_v47, %v14510_v26 }
 0x4c5   : > { %v14679_v18 = vadd.f32 %v3281_v48, %v14586_v34 }
 0x4c6   : > { %v14642_v28 = vpop.permute.xlu1 %2760  ;;  %v14644_v29 = vpop.permute.xlu0 %2889  ;;  %v3283_v19 = vcombine.low %v3196_v49, %v3200_v50  ;;  %v3087_v47 = vcombine.high %v3083_v15, %v3083_v15  ;;  %v3216_v49 = vrot.slane %v3069_v57, %v14416_v4  ;;  %v3220_v1 = vrot.slane %v3083_v15, %v14410_v2 }
 0x4c7   : > { %16531 = vst [vmem:[#allocation144_spill] sm:$0xff] %v14679_v18  ;;  %v3224_v33 = vrot.slane %v3083_v15, %v14416_v4  ;;  %v3232_v18 = vrot.slane %v3085_v16, %v14416_v4 }
 0x4c8   : > { %4444 = vbcast.lane.b32.xlu1 %v4442_v6, 256  ;;  %3931 = vbcast.lane.b32.xlu0 %v3929_v8, 256  ;;  %v5607_v6 = vrot.slane %v14584_v30, %v14425_v11  ;;  %v3095_v8 = vrot.slane %v12113_v35, %v14510_v26  ;;  %v3943_v35 = vrot.slane %v14536_v42, %v14430_v14 }
 0x4c9   : > { %v3240_v15 = vrot.slane %v3087_v47, %v14416_v4 }
 0x4ca   : > { %v14664_v10 = vpop.permute.xlu1 %2767  ;;  %v14666_v59 = vpop.permute.xlu0 %2896  ;;  %v3096_v22 = vcombine.high %v3095_v8, %v3095_v8  ;;  %v3103_v50 = vrot.slane %v3095_v8, %v14510_v26  ;;  %v3236_v8 = vrot.slane %v3087_v47, %v14410_v2  ;;  %v3359_v47 = vrot.slane %v14518_v32, %v14597_v46 }
 0x4cb   : > { %16529 = vst [vmem:[#allocation142_spill] sm:$0xff] %v14664_v10  ;;  %16530 = vst [vmem:[#allocation143_spill] sm:$0xff] %v14666_v59  ;;  %v14703_v59 = vadd.f32 %v3283_v19, %v14586_v34 }
 0x4cc   : > { %5602 = vbcast.lane.b32.xlu1 %v5600_v38, 256  ;;  %5052 = vbcast.lane.b32.xlu0 %v5050_v40, 256  ;;  %v3284_v38 = vcombine.low %v3204_v60, %v3208_v61  ;;  %v3212_v40 = vrot.slane %v3069_v57, %v14410_v2  ;;  %v5064_v60 = vrot.slane %v14689_v55, %v14410_v2 }
 0x4cd   : > { %16535 = vst [vmem:[#allocation148_spill] sm:$0xff] %v14703_v59  ;;  %v3110_v57 = vrot.slane %v3096_v22, %v14510_v26  ;;  %v3248_v22 = vrot.slane %v3103_v50, %v14416_v4  ;;  %v3286_v61 = vcombine.low %v3220_v1, %v3224_v33  ;;  %v3287_v59 = vcombine.low %v3228_v21, %v3232_v18 }
 0x4ce   : > { %v14691_v10 = vpop.permute.xlu1 %2774  ;;  %v14693_v48 = vpop.permute.xlu0 %2903  ;;  %v3285_v19 = vcombine.low %v3212_v40, %v3216_v49  ;;  %v14721_v26 = vadd.f32 %v3284_v38, %v14586_v34  ;;  %v3559_v18 = vrot.slane %v14524_v36, %v14597_v46 }
 0x4cf   : > { %16533 = vst [vmem:[#allocation146_spill] sm:$0xff] %v14691_v10  ;;  %16534 = vst [vmem:[#allocation147_spill] sm:$0xff] %v14693_v48  ;;  %v3111_v10 = vcombine.high %v3103_v50, %v3103_v50  ;;  %v3112_v27 = vcombine.high %v3110_v57, %v3110_v57  ;;  %v3252_v40 = vrot.slane %v3110_v57, %v14410_v2 }
 0x4d0   : > { %4451 = vbcast.lane.b32.xlu1 %v4449_v41, 256  ;;  %3938 = vbcast.lane.b32.xlu0 %v3936_v56, 256  ;;  %v3244_v56 = vrot.slane %v3103_v50, %v14410_v2  ;;  %v3256_v49 = vrot.slane %v3110_v57, %v14416_v4  ;;  %v3288_v41 = vcombine.low %v3236_v8, %v3240_v15 }
 0x4d1   : > { %v3260_v50 = vrot.slane %v3111_v10, %v14410_v2  ;;  %v3264_v38 = vrot.slane %v3111_v10, %v14416_v4  ;;  %v14736_v32 = vadd.f32 %v3285_v19, %v14586_v34  ;;  %v14743_v1 = vadd.f32 %v3286_v61, %v14586_v34 }
 0x4d2   : > { %v14712_v48 = vpop.permute.xlu1 %2781  ;;  %v14714_v16 = vpop.permute.xlu0 %2910  ;;  %v3289_v21 = vcombine.low %v3244_v56, %v3248_v22  ;;  %v14746_v57 = vadd.f32 %v3287_v59, %v14586_v34  ;;  %v3268_v10 = vrot.slane %v3112_v27, %v14410_v2  ;;  %v3272_v36 = vrot.slane %v3112_v27, %v14416_v4 }
 0x4d3   : > { %16536 = vst [vmem:[#allocation149_spill] sm:$0xff] %v14712_v48  ;;  %v5621_v48 = vrot.slane %v14584_v30, %v14435_v17  ;;  %v3513_v8 = vmul.f32 %v3359_v47, %v14605_v52  ;;  %v4470_v15 = vrot.slane %v14656_v51, %v14413_v3  ;;  %v3290_v19 = vcombine.low %v3252_v40, %v3256_v49 }
 0x4d4   : > { %5609 = vbcast.lane.b32.xlu1 %v5607_v6, 256  ;;  %5059 = vbcast.lane.b32.xlu0 %v5057_v12, 256  ;;  %v3366_v61 = vrot.slane %v14526_v37, %v14597_v46  ;;  %v14756_v59 = vadd.f32 %v3288_v41, %v14586_v34  ;;  %v3957_v56 = vrot.slane %v14536_v42, %v14440_v20  ;;  %v14772_v41 = vld [vmem:[%s13910_s9 + $0x10] sm:$0xf] }
 0x4d5   : > { %v3291_v27 = vcombine.low %v3260_v50, %v3264_v38  ;;  %v3713_v22 = vadd.f32 %v3559_v18, %v3513_v8  ;;  %v5078_v37 = vrot.slane %v14689_v55, %v14413_v3  ;;  %v3566_v47 = vrot.slane %v14540_v45, %v14597_v46  ;;  %v14781_v38 = vld [vmem:[%s13910_s9 + $0x50] sm:$0xff] }
 0x4d6   : > { %v14733_v33 = vpop.permute.xlu1 %2788  ;;  %v14738_v6 = vpop.permute.xlu0 %2917  ;;  %v3292_v50 = vcombine.low %v3268_v10, %v3272_v36  ;;  %v16537_v18 = vrot.slane %v14584_v30, %v14430_v14  ;;  %v3514_v40 = vmul.f32 %v3366_v61, %v14619_v0  ;;  %v3978_v0 = vrot.slane %v14772_v41, %v14416_v4 }
 0x4d7   : > { %v14795_v10 = vadd.f32 %v3291_v27, %v14586_v34  ;;  %v3380_v27 = vrot.slane %v14538_v44, %v14597_v46  ;;  %v16538_v8 = vrot.slane %v14656_v51, %v14416_v4  ;;  %v16539_v61 = vrot.slane %v14536_v42, %v14435_v17 }
 0x4d8   : > { %4458 = vbcast.lane.b32.xlu1 %v4456_v13, 256  ;;  %3945 = vbcast.lane.b32.xlu0 %v3943_v35, 256  ;;  %v14765_v13 = vadd.f32 %v3289_v21, %v14586_v34  ;;  %v5628_v35 = vrot.slane %v14584_v30, %v14440_v20  ;;  %v14787_v21 = vadd.f32 %v3290_v19, %v14586_v34 }
 0x4d9   : > { %v3373_v19 = vrot.slane %v14516_v31, %v14597_v46  ;;  %v3714_v36 = vadd.f32 %v3566_v47, %v3514_v40  ;;  %v14816_v31 = vadd.f32 %v3292_v50, %v14586_v34  ;;  %v3580_v34 = vrot.slane %v14570_v9, %v14597_v46 }
 0x4da   : > { %v14760_v12 = vpop.permute.xlu1 %2795  ;;  %v14762_v52 = vpop.permute.xlu0 %2924  ;;  %v5656_v40 = vrot.slane %v14781_v38, %v14413_v3 }
 0x4db   : > { %v3515_v50 = vmul.f32 %v3373_v19, %v14612_v58  ;;  %v10774_v47 = vmul.f32 -1.442695, %v3714_v36  ;;  %v3401_v19 = vrot.slane %v14590_v39, %v14597_v46  ;;  %v5663_v36 = vrot.slane %v14781_v38, %v14425_v11 }
 0x4dc   : > { %5616 = vbcast.lane.b32.xlu1 %v16537_v18, 256  ;;  %5066 = vbcast.lane.b32.xlu0 %v5064_v60, 256  ;;  %v10773_v18 = vmul.f32 -1.442695, %v3713_v22  ;;  %v3387_v60 = vrot.slane %v14551_v53, %v14597_v46  ;;  %v3573_v22 = vrot.slane %v14553_v54, %v14597_v46  ;;  %v3516_v54 = vmul.f32 %v3380_v27, %v14634_v24  ;;  %v14862_v24 = vld [vmem:[%s13910_s9 + $0x40] sm:$0xf] }
 0x4dd   : > { %v3601_v27 = vrot.slane %v14644_v29, %v14597_v46  ;;  %v16542_v29 = vld [vmem:[#allocation143_spill] sm:$0xff] }
 0x4de   : > { %v14803_v49 = vpop.permute.xlu1 %2802  ;;  %v14805_v45 = vpop.permute.xlu0 %2931  ;;  %12114 = vpow2.f32 %v10773_v18  ;;  %v3517_v44 = vmul.f32 %v3387_v60, %v14622_v5  ;;  %v3715_v58 = vadd.f32 %v3573_v22, %v3515_v50  ;;  %v3716_v5 = vadd.f32 %v3580_v34, %v3516_v54 }
 0x4df   : > { %12116 = vpow2.f32 %v10774_v47  ;;  %v3415_v54 = vrot.slane %v14642_v28, %v14597_v46  ;;  %v16543_v47 = vld [vmem:[#allocation142_spill] sm:$0xff] }
 0x4e0   : > { %4465 = vbcast.lane.b32.xlu1 %v16538_v8, 256  ;;  %3952 = vbcast.lane.b32.xlu0 %v16539_v61, 256  ;;  %v3394_v8 = vrot.slane %v14567_v7, %v14597_v46  ;;  %v3587_v61 = vrot.slane %v14594_v43, %v14597_v46  ;;  %v3594_v7 = vrot.slane %v14616_v63, %v14597_v46  ;;  %v10776_v28 = vmul.f32 -1.442695, %v3716_v5  ;;  %v16546_v5 = vld [vmem:[#allocation144_spill] sm:$0xff] }
 0x4e1   : > { %v16540_v43 = vrot.slane %v14689_v55, %v14416_v4  ;;  %v3422_v50 = vrot.slane %v16543_v47, %v14597_v46  ;;  %v3521_v39 = vmul.f32 %v3415_v54, %v16546_v5  ;;  %v3622_v47 = vrot.slane %v14714_v16, %v14597_v46  ;;  %v16548_v16 = vld [vmem:[#allocation145_spill] sm:$0xff] }
 0x4e2   : > { %v14843_v9 = vpop.permute.xlu1 %2809  ;;  %v14845_v53 = vpop.permute.xlu0 %2938  ;;  %v3518_v60 = vmul.f32 %v3394_v8, %v14637_v25  ;;  %v3717_v18 = vadd.f32 %v3587_v61, %v3517_v44  ;;  %v10775_v44 = vmul.f32 -1.442695, %v3715_v58  ;;  %v16541_v8 = vld [vmem:[#allocation140_spill] sm:$0xff]  ;;  %v16544_v58 = vld [vmem:[#allocation147_spill] sm:$0xff] }
 0x4e3   : > { %v3615_v25 = vrot.slane %v16544_v58, %v14597_v46  ;;  %v3522_v54 = vmul.f32 %v3422_v50, %v16548_v16  ;;  %v16552_v16 = vrot.slane %v14656_v51, %v14425_v11 }
 0x4e4   : > { %5623 = vbcast.lane.b32.xlu1 %v5621_v48, 256  ;;  %5073 = vbcast.lane.b32.xlu0 %v16540_v43, 256  ;;  %v3408_v48 = vrot.slane %v14614_v62, %v14597_v46  ;;  %v3519_v62 = vmul.f32 %v3401_v19, %v16541_v8  ;;  %v3718_v61 = vadd.f32 %v3594_v7, %v3518_v60  ;;  %v10777_v7 = vmul.f32 -1.442695, %v3717_v18  ;;  %v16545_v60 = vld [vmem:[#allocation141_spill] sm:$0xff] }
 0x4e5   : > { %v3608_v43 = vrot.slane %v16542_v29, %v14597_v46  ;;  %12118 = vpow2.f32 %v10775_v44  ;;  %v3721_v5 = vadd.f32 %v3615_v25, %v3521_v39  ;;  %v16549_v44 = vld [vmem:[#allocation149_spill] sm:$0xff]  ;;  %v3722_v50 = vadd.f32 %v3622_v47, %v3522_v54 }
 0x4e6   : > { %v14875_v22 = vpop.permute.xlu1 %2816  ;;  %v14877_v34 = vpop.permute.xlu0 %2945  ;;  %v3520_v8 = vmul.f32 %v3408_v48, %v16545_v60  ;;  %v3719_v29 = vadd.f32 %v3601_v27, %v3519_v62  ;;  %v10778_v27 = vmul.f32 -1.442695, %v3718_v61  ;;  %v16547_v60 = vld [vmem:[#allocation146_spill] sm:$0xff]  ;;  %12120 = vpow2.f32 %v10776_v28 }
 0x4e7   : > { %v3429_v19 = vrot.slane %v16547_v60, %v14597_v46  ;;  %v3436_v18 = vrot.slane %v16549_v44, %v14597_v46  ;;  %12122 = vpow2.f32 %v10777_v7  ;;  %v3636_v39 = vrot.slane %v14762_v52, %v14597_v46 }
 0x4e8   : > { %4472 = vbcast.lane.b32.xlu1 %v4470_v15, 256  ;;  %3959 = vbcast.lane.b32.xlu0 %v3957_v56, 256  ;;  %v12115_v48 = vpop.eup %12114  ;;  %v3720_v62 = vadd.f32 %v3608_v43, %v3520_v8  ;;  %v10779_v61 = vmul.f32 -1.442695, %v3719_v29  ;;  %v3443_v43 = vrot.slane %v14733_v33, %v14597_v46  ;;  %v3629_v8 = vrot.slane %v14738_v6, %v14597_v46  ;;  %v16550_v33 = vld [vmem:[#allocation148_spill] sm:$0xff] }
 0x4e9   : > { %v3793_v28 = vadd.f32 1.0, %v12115_v48  ;;  %12124 = vpow2.f32 %v10778_v27  ;;  %v3523_v29 = vmul.f32 %v3429_v19, %v16550_v33  ;;  %v3643_v6 = vrot.slane %v14805_v45, %v14597_v46  ;;  %v12117_v52 = vpop.eup %12116 }
 0x4ea   : > { %v14901_v63 = vpop.permute.xlu1 %4346  ;;  %v14903_v15 = vpop.permute.xlu0 %2952  ;;  %v10780_v7 = vmul.f32 -1.442695, %v3720_v62  ;;  %v16553_v47 = vrot.slane %v14536_v42, %v14445_v23  ;;  %v10781_v48 = vmul.f32 -1.442695, %v3721_v5  ;;  %v3524_v54 = vmul.f32 %v3436_v18, %v14721_v26  ;;  %v14962_v5 = vld [vmem:[%s16551_s16] sm:$0x3] }
 0x4eb   : > { %12126 = vpow2.f32 %v10779_v61  ;;  %v3525_v45 = vmul.f32 %v3443_v43, %v14736_v32  ;;  %v3723_v51 = vadd.f32 %v3629_v8, %v3523_v29  ;;  %v3450_v62 = vrot.slane %v14760_v12, %v14597_v46  ;;  %s16581_s16 = sld [smem:[#allocation105_spill]] }
 0x4ec   : > { %5630 = vbcast.lane.b32.xlu1 %v5628_v35, 256  ;;  %5080 = vbcast.lane.b32.xlu0 %v5078_v37, 256  ;;  %v14934_v37 = vld [vmem:[%s13910_s9 + $0x58] sm:$0xf]  ;;  %12128 = vrcp.f32 %v3793_v28  ;;  %v10782_v26 = vmul.f32 -1.442695, %v3722_v50  ;;  %v3724_v18 = vadd.f32 %v3636_v39, %v3524_v54  ;;  %v3457_v32 = vrot.slane %v14803_v49, %v14597_v46 }
 0x4ed   : > { %12130 = vpow2.f32 %v10780_v7  ;;  %v3725_v61 = vadd.f32 %v3643_v6, %v3525_v45  ;;  %v3650_v12 = vrot.slane %v14845_v53, %v14597_v46  ;;  %v16555_v43 = vrot.slane %v14584_v30, %v14445_v23  ;;  %v14977_v28 = vld [vmem:[%s16554_s6] sm:$0x3]  ;;  %s16583_s6 = sld [smem:[#allocation104_spill]] }
 0x4ee   : > { %v14929_v35 = vpop.permute.xlu1 %2823  ;;  %v14931_v60 = vpop.permute.xlu0 %4353  ;;  %v16556_v8 = vrot.slane %v14689_v55, %v14425_v11  ;;  %v3794_v50 = vadd.f32 1.0, %v12117_v52  ;;  %12132 = vpow2.f32 %v10781_v48  ;;  %v10783_v53 = vmul.f32 -1.442695, %v3723_v51  ;;  %v14992_v52 = vld [vmem:[#allocation9] sm:$0x3] }
 0x4ef   : > { %v12119_v7 = vpop.eup %12118  ;;  %v3526_v29 = vmul.f32 %v3450_v62, %v14743_v1  ;;  %v3464_v30 = vrot.slane %v14843_v9, %v14597_v46  ;;  %v3657_v6 = vrot.slane %v14877_v34, %v14597_v46  ;;  %12134 = vpow2.f32 %v10782_v26 }
 0x4f0   : > { %4479 = vbcast.lane.b32.xlu1 %v16552_v16, 256  ;;  %3966 = vbcast.lane.b32.xlu0 %v16553_v47, 256  ;;  %v12121_v48 = vpop.eup %12120  ;;  %v10784_v54 = vmul.f32 -1.442695, %v3724_v18  ;;  %v3527_v51 = vmul.f32 %v3457_v32, %v14746_v57  ;;  %v10785_v34 = vmul.f32 -1.442695, %v3725_v61  ;;  %v16560_v26 = vrot.slane %v14772_v41, %v14410_v2 }
 0x4f1   : > { %v12123_v9 = vpop.eup %12122  ;;  %v3726_v62 = vadd.f32 %v3650_v12, %v3526_v29  ;;  %v15008_v18 = vld [vmem:[%s16557_s12] sm:$0x3]  ;;  %12136 = vrcp.f32 %v3794_v50  ;;  %v3795_v1 = vadd.f32 1.0, %v12119_v7  ;;  %v3528_v12 = vmul.f32 %v3464_v30, %v14756_v59  ;;  %s16595_s12 = sld [smem:[#allocation138_spill]] }
 0x4f2   : > { %v14957_v42 = vpop.permute.xlu1 %4360  ;;  %v14959_v44 = vpop.permute.xlu0 %2959  ;;  %12138 = vpow2.f32 %v10783_v53  ;;  %v3727_v29 = vadd.f32 %v3657_v6, %v3527_v51  ;;  %v3797_v50 = vadd.f32 1.0, %v12123_v9  ;;  %v3471_v59 = vrot.slane %v14875_v22, %v14597_v46 }
 0x4f3   : > { %v12125_v61 = vpop.eup %12124  ;;  %12140 = vpow2.f32 %v10784_v54  ;;  %v10786_v53 = vmul.f32 -1.442695, %v3726_v62  ;;  %v16562_v6 = vrot.slane %v14781_v38, %v14410_v2  ;;  %v3478_v32 = vrot.slane %v14929_v35, %v14597_v46 }
 0x4f4   : > { %5637 = vbcast.lane.b32.xlu1 %v16555_v43, 256  ;;  %5087 = vbcast.lane.b32.xlu0 %v16556_v8, 256  ;;  %v3664_v43 = vrot.slane %v14903_v15, %v14597_v46  ;;  %v16559_v8 = vrot.slane %v14689_v55, %v14430_v14  ;;  %v3796_v15 = vadd.f32 1.0, %v12121_v48  ;;  %12142 = vpow2.f32 %v10785_v34  ;;  %v15034_v48 = vld [vmem:[#allocation13] sm:$0x3] }
 0x4f5   : > { %v12127_v57 = vpop.eup %12126  ;;  %12144 = vrcp.f32 %v3795_v1  ;;  %v3798_v9 = vadd.f32 1.0, %v12125_v61  ;;  %v10787_v62 = vmul.f32 -1.442695, %v3727_v29  ;;  %v15051_v61 = vld [vmem:[%s16561_s7] sm:$0x3]  ;;  %v16565_v1 = vrot.slane %v14781_v38, %v14416_v4  ;;  %s16599_s7 = sld [smem:[#allocation111_spill]] }
 0x4f6   : > { %v14988_v16 = vpop.permute.xlu1 %2966  ;;  %v14990_v47 = vpop.permute.xlu0 %2830  ;;  %v3728_v30 = vadd.f32 %v3664_v43, %v3528_v12  ;;  %12146 = vrcp.f32 %v3796_v15  ;;  %16564 = vst [vmem:[#allocation140_spill] sm:$0xff] %v15051_v61  ;;  %v3799_v51 = vadd.f32 1.0, %v12127_v57  ;;  %v16566_v57 = vrot.slane %v14689_v55, %v14435_v17 }
 0x4f7   : > { %v15036_v54 = vpop.eup %12128  ;;  %12148 = vrcp.f32 %v3797_v50  ;;  %v15067_v50 = vld [vmem:[%s16563_s10] sm:$0x3]  ;;  %v16571_v7 = vrot.slane %v14689_v55, %v14440_v20  ;;  %s16600_s10 = sld [smem:[#allocation132_spill]] }
 0x4f8   : > { %5094 = vbcast.lane.b32.xlu1 %v16559_v8, 256  ;;  %3973 = vbcast.lane.b32.xlu0 %v16560_v26, 256  ;;  %v15020_v26 = vld [vmem:[%s16558_s2] sm:$0x3]  ;;  %v12131_v34 = vpop.eup %12130  ;;  %12150 = vpow2.f32 %v10786_v53  ;;  %v10788_v22 = vmul.f32 -1.442695, %v3728_v30 }
 0x4f9   : > { %16567 = vst [vmem:[#allocation143_spill] sm:$0xff] %v15067_v50  ;;  %12152 = vrcp.f32 %v3798_v9  ;;  %v3800_v29 = vadd.f32 1.0, %v12131_v34  ;;  %v15081_v34 = vld [vmem:[#allocation19 + $0x2] sm:$0x3]  ;;  %v3530_v9 = vmul.f32 %v3478_v32, %v14787_v21  ;;  %v15106_v32 = vld [vmem:[%s16569_s11] sm:$0x3]  ;;  %v16597_v50 = vrot.slane %v14934_v37, %v14413_v3 }
 0x4fa   : > { %v15015_v8 = vpop.permute.xlu1 %2837  ;;  %v15017_v45 = vpop.permute.xlu0 %4367  ;;  %12154 = vpow2.f32 %v10787_v62  ;;  %16568 = vst [vmem:[#allocation142_spill] sm:$0xff] %v15081_v34  ;;  %v4514_v62 = vrot.slane %v14931_v60, %v14597_v46  ;;  %16573 = vst [vmem:[#allocation141_spill] sm:$0xff] %v15106_v32  ;;  %s16598_s2 = sld [smem:[#allocation137_spill]]  ;;  %s16601_s11 = sld [smem:[#allocation133_spill]] }
 0x4fb   : > { %12156 = vrcp.f32 %v3799_v51  ;;  %v16572_v51 = vrot.slane %v14772_v41, %v14413_v3 }
 0x4fc   : > { %3980 = vbcast.lane.b32.xlu1 %v3978_v0, 256  ;;  %5644 = vbcast.lane.b32.xlu0 %v16562_v6, 256  ;;  %v3671_v0 = vrot.slane %v14959_v44, %v14597_v46  ;;  %v12133_v6 = vpop.eup %12132  ;;  %v3529_v44 = vmul.f32 %v3471_v59, %v14765_v13  ;;  %v4507_v13 = vrot.slane %v14901_v63, %v14597_v46  ;;  %12158 = vpow2.f32 %v10788_v22 }
 0x4fd   : > { %v12135_v15 = vpop.eup %12134  ;;  %v3678_v59 = vrot.slane %v14988_v16, %v14597_v46  ;;  %v3801_v63 = vadd.f32 1.0, %v12133_v6  ;;  %12160 = vrcp.f32 %v3800_v29 }
 0x4fe   : > { %v15044_v43 = vpop.permute.xlu1 %4374  ;;  %v15046_v12 = vpop.permute.xlu0 %2973  ;;  %v3729_v53 = vadd.f32 %v3671_v0, %v3529_v44  ;;  %v15089_v0 = vld [vmem:[#allocation19] sm:$0x3]  ;;  %v3802_v35 = vadd.f32 1.0, %v12135_v15  ;;  %v4661_v16 = vmul.f32 %v15036_v54, %v4507_v13  ;;  %v4521_v15 = vrot.slane %v14957_v42, %v14597_v46 }
 0x4ff   : > { %16570 = vst [vmem:[#allocation147_spill] sm:$0xff] %v15089_v0  ;;  %v3730_v49 = vadd.f32 %v3678_v59, %v3530_v9  ;;  %12162 = vrcp.f32 %v3801_v63  ;;  %v16575_v59 = vrot.slane %v14772_v41, %v14425_v11  ;;  %v15132_v63 = vld [vmem:[%s16574_s14] sm:$0x3]  ;;  %v3685_v27 = vrot.slane %v15046_v12, %v14597_v46  ;;  %s16604_s14 = sld [smem:[#allocation110_spill]] }
 0x500   : > { %5651 = vbcast.lane.b32.xlu1 %v16565_v1, 256  ;;  %5101 = vbcast.lane.b32.xlu0 %v16566_v57, 256  ;;  %v15083_v57 = vpop.eup %12136  ;;  %12164 = vrcp.f32 %v3802_v35  ;;  %16576 = vst [vmem:[#allocation144_spill] sm:$0xff] %v15132_v63  ;;  %v4701_v33 = vcombine.high %v4661_v16, %v4661_v16  ;;  %v3485_v35 = vrot.slane %v14990_v47, %v14597_v46 }
 0x501   : > { %v12139_v44 = vpop.eup %12138  ;;  %v4662_v39 = vmul.f32 %v15083_v57, %v4514_v62  ;;  %v10790_v9 = vmul.f32 -1.442695, %v3730_v49  ;;  %v4741_v49 = vsel %vm4256_vm0, %v4661_v16, 0.0  ;;  %v16580_v63 = vrot.slane %v14862_v24, %v14410_v2 }
 0x502   : > { %v15075_v30 = vpop.permute.xlu1 %3861  ;;  %v15077_v1 = vpop.permute.xlu0 %2980  ;;  %v3803_v21 = vadd.f32 1.0, %v12139_v44 }
 0x503   : > { %v12141_v6 = vpop.eup %12140  ;;  %v4702_v41 = vcombine.high %v4662_v39, %v4662_v39  ;;  %v4742_v16 = vsel %vm4256_vm0, %v4662_v39, 0.0 }
 0x504   : > { %5108 = vbcast.lane.b32.xlu1 %v16571_v7, 256  ;;  %3987 = vbcast.lane.b32.xlu0 %v16572_v51, 256  ;;  %v12143_v7 = vpop.eup %12142  ;;  %v10789_v51 = vmul.f32 -1.442695, %v3729_v53  ;;  %v3804_v53 = vadd.f32 1.0, %v12141_v6  ;;  %v16390_v6 = vmov 0.0  }
 0x505   : > { %v15116_v22 = vpop.eup %12144  ;;  %v3805_v44 = vadd.f32 1.0, %v12143_v7  ;;  %4899 = vmatprep.mubr.f32.mxu0 %v16390_v6  ;;  %6289 = vmatprep.mubr.f32.mxu1 %v16390_v6  ;;  %v4528_v7 = vrot.slane %v15017_v45, %v14597_v46  ;;  %v4535_v45 = vrot.slane %v15044_v43, %v14597_v46  ;;  %v3531_v6 = vmul.f32 %v3485_v35, %v14795_v10  ;;  %v15170_v43 = vld [vmem:[#allocation24] sm:$0x3] }
 0x506   : > { %v15110_v60 = vpop.permute.xlu1 %4381  ;;  %v15112_v29 = vpop.permute.xlu0 %3868  ;;  %12166 = vpow2.f32 %v10789_v51  ;;  %16578 = vst [vmem:[#allocation146_spill] sm:$0xff] %v15170_v43  ;;  %v4781_v39 = vsel %vm4256_vm0, %v4702_v41, 0.0  ;;  %v3492_v10 = vrot.slane %v15015_v8, %v14597_v46  ;;  %v4022_v8 = vrot.slane %v15075_v30, %v14597_v46  ;;  %v15210_v41 = vld [vmem:[%s16581_s16] sm:$0x3]  ;;  %s16609_s16 = sld [smem:[#allocation77_spill]] }
 0x507   : > { %v15121_v42 = vpop.eup %12146  ;;  %12168 = vrcp.f32 %v3803_v21  ;;  %v16577_v21 = vrot.slane %v14689_v55, %v14445_v23  ;;  %v3731_v35 = vadd.f32 %v3685_v27, %v3531_v6  ;;  %v3692_v6 = vrot.slane %v15077_v1, %v14597_v46  ;;  %16582 = vst [vmem:[#allocation145_spill] sm:$0xff] %v15210_v41 }
 0x508   : > { %3994 = vbcast.lane.b32.xlu1 %v16575_v59, 256  ;;  %5658 = vbcast.lane.b32.xlu0 %v5656_v40, 256  ;;  %v15134_v62 = vpop.eup %12148  ;;  %v4663_v59 = vmul.f32 %v15116_v22, %v4521_v15  ;;  %12170 = vrcp.f32 %v3804_v53  ;;  %v4664_v55 = vmul.f32 %v15121_v42, %v4528_v7  ;;  %v16579_v7 = vrot.slane %v14781_v38, %v14430_v14 }
 0x509   : > { %v12151_v40 = vpop.eup %12150  ;;  %12172 = vrcp.f32 %v3805_v44  ;;  %v3532_v30 = vmul.f32 %v3492_v10, %v14816_v31  ;;  %v4029_v32 = vrot.slane %v15112_v29, %v14597_v46  ;;  %v16585_v31 = vrot.slane %v14862_v24, %v14416_v4 }
 0x50a   : > { %v15145_v13 = vpop.permute.xlu1 %4388  ;;  %v15147_v19 = vpop.permute.xlu0 %3875  ;;  %v3806_v53 = vadd.f32 1.0, %v12151_v40  ;;  %v4703_v58 = vcombine.high %v4663_v59, %v4663_v59  ;;  %12174 = vpow2.f32 %v10790_v9  ;;  %v4743_v40 = vadd.f32 %v4742_v16, %v4741_v49 }
 0x50b   : > { %v15149_v47 = vpop.eup %12152  ;;  %v4665_v9 = vmul.f32 %v15134_v62, %v4535_v45  ;;  %v4549_v29 = vrot.slane %v15145_v13, %v14597_v46  ;;  %v4177_v43 = vmul.f32 %v15083_v57, %v4029_v32 }
 0x50c   : > { %v12155_v15 = vpop.eup %12154  ;;  %5665 = vbcast.lane.b32.xlu1 %v5663_v36, 256  ;;  %5115 = vbcast.lane.b32.xlu0 %v16577_v21, 256  ;;  %v4780_v36 = vsel %vm4256_vm0, %v4701_v33, 0.0  ;;  %v4744_v33 = vsel %vm4256_vm0, %v4663_v59, 0.0  ;;  %12176 = vrcp.f32 %v3806_v53  ;;  %v4783_v49 = vsel %vm4256_vm0, %v4703_v58, 0.0 }
 0x50d   : > { %v15166_v51 = vpop.eup %12156  ;;  %v3807_v44 = vadd.f32 1.0, %v12155_v15  ;;  %v4782_v59 = vadd.f32 %v4781_v39, %v4780_v36  ;;  %v4746_v36 = vsel %vm4256_vm0, %v4664_v55, 0.0  ;;  %v4705_v39 = vcombine.high %v4665_v9, %v4665_v9 }
 0x50e   : > { %v12159_v25 = vpop.eup %12158  ;;  %v15174_v21 = vpop.permute.xlu1 %4395  ;;  %v4542_v58 = vrot.slane %v15110_v60, %v14597_v46 }
 0x50f   : > { %v15176_v12 = vpop.permute.xlu0 %3882  ;;  %v15178_v56 = vpop.eup %12160  ;;  %v3808_v27 = vadd.f32 1.0, %v12159_v25  ;;  %12178 = vrcp.f32 %v3807_v44  ;;  %v4745_v25 = vadd.f32 %v4744_v33, %v4743_v40  ;;  %v16584_v44 = vrot.slane %v14781_v38, %v14435_v17 }
 0x510   : > { %5672 = vbcast.lane.b32.xlu1 %v16579_v7, 256  ;;  %5122 = vbcast.lane.b32.xlu0 %v16580_v63, 256  ;;  %v15193_v15 = vpop.eup %12162  ;;  %v4704_v63 = vcombine.high %v4664_v55, %v4664_v55  ;;  %v10791_v7 = vmul.f32 -1.442695, %v3731_v35  ;;  %v4784_v55 = vadd.f32 %v4783_v49, %v4782_v59  ;;  %v4176_v35 = vmul.f32 %v15036_v54, %v4022_v8  ;;  %v15240_v59 = vld [vmem:[%s16583_s6] sm:$0x3] }
 0x511   : > { %v15199_v14 = vpop.eup %12164  ;;  %12180 = vrcp.f32 %v3808_v27  ;;  %v3732_v40 = vadd.f32 %v3692_v6, %v3532_v30  ;;  %16586 = vst [vmem:[#allocation149_spill] sm:$0xff] %v15240_v59  ;;  %v4747_v49 = vadd.f32 %v4746_v36, %v4745_v25  ;;  %v4787_v30 = vsel %vm4256_vm0, %v4705_v39, 0.0  ;;  %s16616_s6 = sld [smem:[#allocation83_spill]] }
 0x512   : > { %v15202_v45 = vpop.permute.xlu1 %4402  ;;  %v12167_v1 = vpop.eup %12166  ;;  %v4785_v33 = vsel %vm4256_vm0, %v4704_v63, 0.0  ;;  %v4748_v63 = vsel %vm4256_vm0, %v4665_v9, 0.0  ;;  %12182 = vpow2.f32 %v10791_v7  ;;  %v4666_v53 = vmul.f32 %v15149_v47, %v4542_v58  ;;  %v15256_v9 = vld [vmem:[#allocation33 + $0x2] sm:$0x3] }
 0x513   : > { %v15204_v16 = vpop.permute.xlu0 %3889  ;;  %v15223_v10 = vpop.eup %12168  ;;  %v3809_v6 = vadd.f32 1.0, %v12167_v1  ;;  %v16587_v27 = vrot.slane %v14781_v38, %v14440_v20  ;;  %v16588_v25 = vrot.slane %v14862_v24, %v14413_v3  ;;  %16589 = vst [vmem:[#allocation148_spill] sm:$0xff] %v15256_v9  ;;  %v4786_v7 = vadd.f32 %v4785_v33, %v4784_v55 }
 0x514   : > { %5679 = vbcast.lane.b32.xlu1 %v16584_v44, 256  ;;  %5129 = vbcast.lane.b32.xlu0 %v16585_v31, 256  ;;  %v15226_v60 = vpop.eup %12170  ;;  %v4036_v31 = vrot.slane %v15147_v19, %v14597_v46  ;;  %v4216_v1 = vcombine.high %v4176_v35, %v4176_v35  ;;  %v10792_v36 = vmul.f32 -1.442695, %v3732_v40  ;;  %v4749_v32 = vadd.f32 %v4748_v63, %v4747_v49 }
 0x515   : > { %v15242_v8 = vpop.eup %12172  ;;  %v4667_v58 = vmul.f32 %v15166_v51, %v4549_v29  ;;  %v4556_v19 = vrot.slane %v15174_v21, %v14597_v46  ;;  %v4788_v40 = vadd.f32 %v4787_v30, %v4786_v7  ;;  %v4043_v33 = vrot.slane %v15176_v12, %v14597_v46 }
 0x516   : > { %v15231_v17 = vpop.permute.xlu1 %4409  ;;  %v12175_v13 = vpop.eup %12174  ;;  %12184 = vrcp.f32 %v3809_v6  ;;  %v4706_v49 = vcombine.high %v4666_v53, %v4666_v53  ;;  %v4217_v21 = vcombine.high %v4177_v43, %v4177_v43  ;;  %v4178_v63 = vmul.f32 %v15116_v22, %v4036_v31 }
 0x517   : > { %v15233_v44 = vpop.permute.xlu0 %3896  ;;  %v15269_v41 = vpop.eup %12176  ;;  %v3810_v55 = vadd.f32 1.0, %v12175_v13  ;;  %v16590_v39 = vrot.slane %v14781_v38, %v14445_v23  ;;  %v15282_v13 = vld [vmem:[#allocation33] sm:$0x3]  ;;  %v4257_v12 = vsel %vm4256_vm0, %v4176_v35, 0.0  ;;  %v4296_v6 = vsel %vm4256_vm0, %v4216_v1, 0.0 }
 0x518   : > { %5686 = vbcast.lane.b32.xlu1 %v16587_v27, 256  ;;  %5136 = vbcast.lane.b32.xlu0 %v16588_v25, 256  ;;  %v16591_v25 = vrot.slane %v14862_v24, %v14425_v11  ;;  %16592 = vst [vmem:[#allocation150_spill] sm:$0xff] %v15282_v13  ;;  %12186 = vpow2.f32 %v10792_v36  ;;  %v4750_v7 = vsel %vm4256_vm0, %v4666_v53, 0.0  ;;  %v4707_v23 = vcombine.high %v4667_v58, %v4667_v58 }
 0x519   : > { %v15284_v30 = vpop.eup %12178  ;;  %v4668_v38 = vmul.f32 %v15178_v56, %v4556_v19  ;;  %v4563_v24 = vrot.slane %v15202_v45, %v14597_v46  ;;  %12188 = vrcp.f32 %v3810_v55  ;;  %v4179_v35 = vmul.f32 %v15121_v42, %v4043_v33 }
 0x51a   : > { %v15263_v20 = vpop.permute.xlu1 %5017  ;;  %v4789_v36 = vsel %vm4256_vm0, %v4706_v49, 0.0  ;;  %v4258_v19 = vsel %vm4256_vm0, %v4177_v43, 0.0  ;;  %v4297_v45 = vsel %vm4256_vm0, %v4217_v21, 0.0  ;;  %v4218_v31 = vcombine.high %v4178_v63, %v4178_v63 }
 0x51b   : > { %v15265_v27 = vpop.permute.xlu0 %5010  ;;  %v15298_v29 = vpop.eup %12180  ;;  %v16593_v9 = vrot.slane %v14934_v37, %v14416_v4  ;;  %v16594_v55 = vrot.slane %v14934_v37, %v14410_v2  ;;  %v4751_v1 = vadd.f32 %v4750_v7, %v4749_v32  ;;  %v4752_v59 = vsel %vm4256_vm0, %v4667_v58, 0.0 }
 0x51c   : > { %5693 = vbcast.lane.b32.xlu1 %v16590_v39, 256  ;;  %5143 = vbcast.lane.b32.xlu0 %v16591_v25, 256  ;;  %v12183_v33 = vpop.eup %12182  ;;  %v4260_v53 = vsel %vm4256_vm0, %v4178_v63, 0.0  ;;  %v4050_v43 = vrot.slane %v15204_v16, %v14597_v46  ;;  %v4791_v49 = vsel %vm4256_vm0, %v4707_v23, 0.0  ;;  %v4708_v21 = vcombine.high %v4668_v38, %v4668_v38 }
 0x51d   : > { %v4669_v13 = vmul.f32 %v15193_v15, %v4563_v24  ;;  %v4790_v32 = vadd.f32 %v4789_v36, %v4788_v40  ;;  %v4259_v58 = vadd.f32 %v4258_v19, %v4257_v12  ;;  %v4298_v63 = vadd.f32 %v4297_v45, %v4296_v6 }
 0x51e   : > { %v15294_v39 = vpop.permute.xlu1 %4416  ;;  %v4219_v7 = vcombine.high %v4179_v35, %v4179_v35  ;;  %v3811_v34 = vadd.f32 1.0, %v12183_v33  ;;  %v4753_v16 = vadd.f32 %v4752_v59, %v4751_v1  ;;  %v4299_v23 = vsel %vm4256_vm0, %v4218_v31, 0.0  ;;  %v6158_v59 = vld [vmem:[%s16595_s12 + $0x8] sm:$0xf]  ;;  %v6157_v1 = vld [vmem:[%s16595_s12] sm:$0xff] }
 0x51f   : > { %v15296_v25 = vpop.permute.xlu0 %3903  ;;  %v4057_v24 = vrot.slane %v15233_v44, %v14597_v46  ;;  %v4792_v61 = vadd.f32 %v4791_v49, %v4790_v32  ;;  %v4261_v40 = vadd.f32 %v4260_v53, %v4259_v58  ;;  %v4754_v12 = vsel %vm4256_vm0, %v4668_v38, 0.0 }
 0x520   : > { %5707 = vbcast.lane.b32.xlu1 %v16593_v9, 256  ;;  %5700 = vbcast.lane.b32.xlu0 %v16594_v55, 256  ;;  %v4570_v9 = vrot.slane %v15231_v17, %v14597_v46  ;;  %v16596_v17 = vrot.slane %v14934_v37, %v14425_v11  ;;  %v4180_v6 = vmul.f32 %v15134_v62, %v4050_v43  ;;  %v15339_v31 = vpop.eup %12184  ;;  %v4793_v44 = vsel %vm4256_vm0, %v4708_v21, 0.0 }
 0x521   : > { %v4262_v36 = vsel %vm4256_vm0, %v4179_v35, 0.0  ;;  %v4709_v11 = vcombine.high %v4669_v13, %v4669_v13  ;;  %v4301_v38 = vsel %vm4256_vm0, %v4219_v7, 0.0  ;;  %v5178_v53 = vrot.slane %v15263_v20, %v14597_v46  ;;  %v6173_v20 = vld [vmem:[%s16598_s2] sm:$0xff]  ;;  %v6174_v7 = vld [vmem:[%s16598_s2 + $0x8] sm:$0xf]  ;;  %s16669_s2 = sld [smem:[#allocation119_spill]] }
 0x522   : > { %v15322_v0 = vpop.permute.xlu1 %3910  ;;  %v4670_v19 = vmul.f32 %v15199_v14, %v4570_v9  ;;  %v12187_v37 = vpop.eup %12186  ;;  %v5171_v33 = vrot.slane %v15265_v27, %v14597_v46  ;;  %12190 = vrcp.f32 %v3811_v34  ;;  %v4755_v35 = vadd.f32 %v4754_v12, %v4753_v16 }
 0x523   : > { %v15324_v55 = vpop.permute.xlu0 %5024  ;;  %v4756_v43 = vsel %vm4256_vm0, %v4669_v13, 0.0  ;;  %v4181_v49 = vmul.f32 %v15149_v47, %v4057_v24  ;;  %v15355_v21 = vpop.eup %12188  ;;  %v4794_v9 = vadd.f32 %v4793_v44, %v4792_v61  ;;  %v4263_v32 = vadd.f32 %v4262_v36, %v4261_v40  ;;  %v8407_v61 = vld [vmem:[%s16599_s7] sm:$0x3]  ;;  %s16630_s7 = sld [smem:[#allocation89_spill]] }
 0x524   : > { %5721 = vbcast.lane.b32.xlu1 %v16596_v17, 256  ;;  %5714 = vbcast.lane.b32.xlu0 %v16597_v50, 256  ;;  %v4300_v50 = vadd.f32 %v4299_v23, %v4298_v63  ;;  %v4220_v58 = vcombine.high %v4180_v6, %v4180_v6  ;;  %v4264_v63 = vsel %vm4256_vm0, %v4180_v6, 0.0  ;;  %v4795_v34 = vsel %vm4256_vm0, %v4709_v11, 0.0 }
 0x525   : > { %v4710_v27 = vcombine.high %v4670_v19, %v4670_v19  ;;  %v4577_v13 = vrot.slane %v15294_v39, %v14597_v46  ;;  %v4757_v17 = vadd.f32 %v4756_v43, %v4755_v35  ;;  %v5326_v40 = vmul.f32 %v15083_v57, %v5178_v53  ;;  %v6304_v53 = vld [vmem:[%s16601_s11] sm:$0xf]  ;;  %s16642_s11 = sld [smem:[#allocation136_spill]] }
 0x526   : > { %v15344_v45 = vpop.permute.xlu1 %5031  ;;  %v4302_v23 = vadd.f32 %v4301_v38, %v4300_v50  ;;  %v5325_v12 = vmul.f32 %v15036_v54, %v5171_v33  ;;  %v4064_v6 = vrot.slane %v15296_v25, %v14597_v46  ;;  %v4221_v44 = vcombine.high %v4181_v49, %v4181_v49  ;;  %v6296_v38 = vld [vmem:[%s16600_s10] sm:$0xf]  ;;  %s16638_s10 = sld [smem:[#allocation94_spill]] }
 0x527   : > { %v15346_v3 = vpop.permute.xlu0 %4423  ;;  %v5185_v39 = vrot.slane %v15324_v55, %v14597_v46  ;;  %v4796_v36 = vadd.f32 %v4795_v34, %v4794_v9  ;;  %v4303_v11 = vsel %vm4256_vm0, %v4220_v58, 0.0  ;;  %v4758_v50 = vsel %vm4256_vm0, %v4670_v19, 0.0 }
 0x528   : > { %6166 = vperm.xlu1 %12106, %v6158_v59   ;;  %6161 = vperm.xlu0 %12105, %v6157_v1   ;;  %v15372_v59 = vadd.f32 1.0, %v12187_v37  ;;  %v4265_v1 = vadd.f32 %v4264_v63, %v4263_v32  ;;  %v15381_v33 = vrot.slane %v8407_v61, %v14410_v2  ;;  %v4797_v25 = vsel %vm4256_vm0, %v4710_v27, 0.0 }
 0x529   : > { %v4266_v37 = vsel %vm4256_vm0, %v4181_v49, 0.0  ;;  %v4671_v35 = vmul.f32 %v15223_v10, %v4577_v13  ;;  %v4071_v55 = vrot.slane %v15322_v0, %v14597_v46  ;;  %v5366_v32 = vcombine.high %v5326_v40, %v5326_v40 }
 0x52a   : > { %v15363_v16 = vpop.permute.xlu1 %4430  ;;  %16602 = vst [vmem:[#allocation151_spill] sm:$0xff] %v15381_v33  ;;  %v5365_v19 = vcombine.high %v5325_v12, %v5325_v12  ;;  %v4182_v58 = vmul.f32 %v15166_v51, %v4064_v6  ;;  %v15394_v63 = vrot.slane %v8407_v61, %v14416_v4  ;;  %v5327_v49 = vmul.f32 %v15116_v22, %v5185_v39 }
 0x52b   : > { %v15365_v24 = vpop.permute.xlu0 %3917  ;;  %v5192_v0 = vrot.slane %v15344_v45, %v14597_v46  ;;  %v4759_v34 = vadd.f32 %v4758_v50, %v4757_v17  ;;  %v4798_v27 = vadd.f32 %v4797_v25, %v4796_v36  ;;  %v4267_v13 = vadd.f32 %v4266_v37, %v4265_v1 }
 0x52c   : > { %6177 = vperm.xlu1 %12106, %v6173_v20   ;;  %6182 = vperm.xlu0 %12105, %v6174_v7   ;;  %16603 = vst [vmem:[#allocation152_spill] sm:$0xff] %v15394_v63  ;;  %v4304_v20 = vadd.f32 %v4303_v11, %v4302_v23  ;;  %v4305_v7 = vsel %vm4256_vm0, %v4221_v44, 0.0  ;;  %v4584_v6 = vrot.slane %v15346_v3, %v14597_v46  ;;  %v15402_v33 = vpop.eup %12190  ;;  %v5406_v23 = vsel %vm4256_vm0, %v5326_v40, 0.0 }
 0x52d   : > { %16605 = vst [vmem:[#allocation153_spill] sm:$0xff] %v15402_v33  ;;  %v5405_v61 = vsel %vm4256_vm0, %v5325_v12, 0.0  ;;  %v4711_v44 = vcombine.high %v4671_v35, %v4671_v35  ;;  %v4183_v39 = vmul.f32 %v15178_v56, %v4071_v55  ;;  %v5445_v1 = vsel %vm4256_vm0, %v5366_v32, 0.0 }
 0x52e   : > { %v15388_v43 = vpop.permute.xlu1 %3924  ;;  %v4306_v17 = vadd.f32 %v4305_v7, %v4304_v20  ;;  %v5444_v36 = vsel %vm4256_vm0, %v5365_v19, 0.0  ;;  %v4222_v3 = vcombine.high %v4182_v58, %v4182_v58  ;;  %v4268_v50 = vsel %vm4256_vm0, %v4182_v58, 0.0 }
 0x52f   : > { %v15390_v9 = vpop.permute.xlu0 %5038  ;;  %v5328_v40 = vmul.f32 %v15121_v42, %v5192_v0  ;;  %v4591_v12 = vrot.slane %v15363_v16, %v14597_v46  ;;  %v16606_v25 = vrot.slane %v14962_v5, %v14410_v2  ;;  %v16607_v37 = vrot.slane %v14962_v5, %v14416_v4 }
 0x530   : > { %6299 = vperm.xlu1 %12106, %v6296_v38   ;;  %6307 = vperm.xlu0 %12105, %v6304_v53   ;;  %v8430_v38 = vld [vmem:[%s16604_s14] sm:$0x3]  ;;  %v5367_v53 = vcombine.high %v5327_v49, %v5327_v49  ;;  %v5407_v55 = vadd.f32 %v5406_v23, %v5405_v61  ;;  %v4672_v32 = vmul.f32 %v15226_v60, %v4584_v6  ;;  %v4760_v16 = vsel %vm4256_vm0, %v4671_v35, 0.0 }
 0x531   : > { %v4078_v19 = vrot.slane %v15365_v24, %v14597_v46  ;;  %v15428_v58 = vrot.slane %v8430_v38, %v14410_v2  ;;  %v5446_v20 = vadd.f32 %v5445_v1, %v5444_v36  ;;  %v4799_v7 = vsel %vm4256_vm0, %v4711_v44, 0.0 }
 0x532   : > { %v15407_v11 = vpop.permute.xlu1 %5045  ;;  %v4223_v0 = vcombine.high %v4183_v39, %v4183_v39  ;;  %v4269_v5 = vadd.f32 %v4268_v50, %v4267_v13  ;;  %v4307_v23 = vsel %vm4256_vm0, %v4222_v3, 0.0  ;;  %v4270_v6 = vsel %vm4256_vm0, %v4183_v39, 0.0  ;;  %v6435_v50 = vld [vmem:[%s16609_s16] sm:$0xf]  ;;  %s16645_s16 = sld [smem:[#allocation98_spill]] }
 0x533   : > { %v15409_v45 = vpop.permute.xlu0 %4437  ;;  %16608 = vst [vmem:[#allocation154_spill] sm:$0xff] %v15428_v58  ;;  %v5408_v61 = vsel %vm4256_vm0, %v5327_v49, 0.0  ;;  %v5447_v24 = vsel %vm4256_vm0, %v5367_v53, 0.0  ;;  %v5368_v38 = vcombine.high %v5328_v40, %v5328_v40  ;;  %v4673_v1 = vmul.f32 %v15242_v8, %v4591_v12 }
 0x534   : > { %6321 = vbcast.lane.b32.xlu1 %v16606_v25, 256  ;;  %6328 = vbcast.lane.b32.xlu0 %v16607_v37, 256  ;;  %v4085_v35 = vrot.slane %v15388_v43, %v14597_v46  ;;  %v16610_v44 = vrot.slane %v14977_v28, %v14410_v2  ;;  %v16611_v13 = vrot.slane %v14977_v28, %v14416_v4  ;;  %v4309_v43 = vsel %vm4256_vm0, %v4223_v0, 0.0 }
 0x535   : > { %v4761_v36 = vadd.f32 %v4760_v16, %v4759_v34  ;;  %v4712_v39 = vcombine.high %v4672_v32, %v4672_v32  ;;  %v4184_v49 = vmul.f32 %v15193_v15, %v4078_v19  ;;  %v5199_v3 = vrot.slane %v15390_v9, %v14597_v46 }
 0x536   : > { %v5596_v25 = vpop.permute.xlu1 %5595  ;;  %v4800_v53 = vadd.f32 %v4799_v7, %v4798_v27  ;;  %v4308_v12 = vadd.f32 %v4307_v23, %v4306_v17  ;;  %v4271_v37 = vadd.f32 %v4270_v6, %v4269_v5  ;;  %v5409_v33 = vadd.f32 %v5408_v61, %v5407_v55  ;;  %v6443_v7 = vld [vmem:[#allocation7] sm:$0xf] }
 0x537   : > { %v5589_v63 = vpop.permute.xlu0 %5588  ;;  %v5448_v28 = vadd.f32 %v5447_v24, %v5446_v20  ;;  %v5410_v34 = vsel %vm4256_vm0, %v5328_v40, 0.0  ;;  %v4762_v16 = vsel %vm4256_vm0, %v4672_v32, 0.0  ;;  %v5449_v19 = vsel %vm4256_vm0, %v5368_v38, 0.0 }
 0x538   : > { %6336 = vbcast.lane.b32.xlu1 %v16610_v44, 256  ;;  %6343 = vbcast.lane.b32.xlu0 %v16611_v13, 256  ;;  %v4713_v13 = vcombine.high %v4673_v1, %v4673_v1  ;;  %v4185_v9 = vmul.f32 %v15199_v14, %v4085_v35  ;;  %v5206_v27 = vrot.slane %v15407_v11, %v14597_v46  ;;  %v4801_v55 = vsel %vm4256_vm0, %v4712_v39, 0.0 }
 0x539   : > { %v16612_v17 = vrot.slane %v14992_v52, %v14410_v2  ;;  %v4224_v20 = vcombine.high %v4184_v49, %v4184_v49  ;;  %v5329_v40 = vmul.f32 %v15134_v62, %v5199_v3  ;;  %v4598_v32 = vrot.slane %v15409_v45, %v14597_v46 }
 0x53a   : > { %v15450_v58 = vpop.permute.xlu1 %4444  ;;  %v4310_v0 = vadd.f32 %v4309_v43, %v4308_v12  ;;  %v5411_v5 = vadd.f32 %v5410_v34, %v5409_v33  ;;  %v5756_v23 = vrot.slane %v5596_v25, %v14597_v46  ;;  %v5749_v11 = vrot.slane %v5589_v63, %v14597_v46 }
 0x53b   : > { %v15452_v44 = vpop.permute.xlu0 %3931  ;;  %v5450_v24 = vadd.f32 %v5449_v19, %v5448_v28  ;;  %v4763_v38 = vadd.f32 %v4762_v16, %v4761_v36  ;;  %v4764_v35 = vsel %vm4256_vm0, %v4673_v1, 0.0  ;;  %v4272_v39 = vsel %vm4256_vm0, %v4184_v49, 0.0 }
 0x53c   : > { %6438 = vperm.xlu1 %12106, %v6435_v50   ;;  %6416 = vbcast.lane.b32.xlu0 %v16612_v17, 256  ;;  %v4802_v3 = vadd.f32 %v4801_v55, %v4800_v53  ;;  %v4803_v50 = vsel %vm4256_vm0, %v4713_v13, 0.0  ;;  %v4225_v45 = vcombine.high %v4185_v9, %v4185_v9  ;;  %v5330_v12 = vmul.f32 %v15149_v47, %v5206_v27 }
 0x53d   : > { %v16613_v33 = vrot.slane %v14992_v52, %v14416_v4  ;;  %v4311_v63 = vsel %vm4256_vm0, %v4224_v20, 0.0  ;;  %v4274_v25 = vsel %vm4256_vm0, %v4185_v9, 0.0  ;;  %v5369_v36 = vcombine.high %v5329_v40, %v5329_v40 }
 0x53e   : > { %v5603_v6 = vpop.permute.xlu1 %5602  ;;  %v4674_v1 = vmul.f32 %v15269_v41, %v4598_v32  ;;  %v4765_v43 = vadd.f32 %v4764_v35, %v4763_v38  ;;  %v4273_v49 = vadd.f32 %v4272_v39, %v4271_v37  ;;  %v5904_v53 = vmul.f32 %v15083_v57, %v5756_v23 }
 0x53f   : > { %v15469_v61 = vpop.permute.xlu0 %5052  ;;  %v5903_v28 = vmul.f32 %v15036_v54, %v5749_v11  ;;  %v4804_v19 = vadd.f32 %v4803_v50, %v4802_v3  ;;  %v5412_v52 = vsel %vm4256_vm0, %v5329_v40, 0.0  ;;  %v4605_v13 = vrot.slane %v15450_v58, %v14597_v46 }
 0x540   : > { %6423 = vbcast.lane.b32.xlu1 %v16613_v33, 256  ;;  %6446 = vperm.xlu0 %12105, %v6443_v7   ;;  %v4092_v9 = vrot.slane %v15452_v44, %v14597_v46  ;;  %v4312_v27 = vadd.f32 %v4311_v63, %v4310_v0  ;;  %v4275_v17 = vadd.f32 %v4274_v25, %v4273_v49  ;;  %v4313_v55 = vsel %vm4256_vm0, %v4225_v45, 0.0 }
 0x541   : > { %v5370_v37 = vcombine.high %v5330_v12, %v5330_v12  ;;  %v16614_v57 = vrot.slane %v15008_v18, %v14410_v2  ;;  %v16615_v54 = vrot.slane %v15008_v18, %v14416_v4  ;;  %v5451_v20 = vsel %vm4256_vm0, %v5369_v36, 0.0 }
 0x542   : > { %v4452_v34 = vpop.permute.xlu1 %4451  ;;  %v5414_v58 = vsel %vm4256_vm0, %v5330_v12, 0.0  ;;  %v4714_v40 = vcombine.high %v4674_v1, %v4674_v1  ;;  %v5763_v44 = vrot.slane %v5603_v6, %v14597_v46  ;;  %v5413_v32 = vadd.f32 %v5412_v52, %v5411_v5 }
 0x543   : > { %v3939_v16 = vpop.permute.xlu0 %3938  ;;  %v4766_v7 = vsel %vm4256_vm0, %v4674_v1, 0.0  ;;  %v5944_v0 = vcombine.high %v5904_v53, %v5904_v53  ;;  %v5943_v23 = vcombine.high %v5903_v28, %v5903_v28  ;;  %v4314_v35 = vadd.f32 %v4313_v55, %v4312_v27 }
 0x544   : > { %6470 = vbcast.lane.b32.xlu1 %v16614_v57, 256  ;;  %6477 = vbcast.lane.b32.xlu0 %v16615_v54, 256  ;;  %v4675_v39 = vmul.f32 %v15284_v30, %v4605_v13  ;;  %v4186_v18 = vmul.f32 %v15223_v10, %v4092_v9  ;;  %v5213_v3 = vrot.slane %v15469_v61, %v14597_v46  ;;  %v5453_v6 = vsel %vm4256_vm0, %v5370_v37, 0.0 }
 0x545   : > { %v5452_v50 = vadd.f32 %v5451_v20, %v5450_v24  ;;  %v5415_v45 = vadd.f32 %v5414_v58, %v5413_v32  ;;  %v4612_v5 = vrot.slane %v4452_v34, %v14597_v46  ;;  %v16617_v12 = vrot.slane %v15020_v26, %v14410_v2  ;;  %v6584_v24 = vld [vmem:[%s16616_s6] sm:$0xf]  ;;  %v6592_v58 = vld [vmem:[#allocation12] sm:$0xf]  ;;  %s16647_s6 = sld [smem:[#allocation99_spill]] }
 0x546   : > { %v5610_v11 = vpop.permute.xlu1 %5609  ;;  %v16618_v33 = vrot.slane %v15020_v26, %v14416_v4  ;;  %v4767_v63 = vadd.f32 %v4766_v7, %v4765_v43  ;;  %v4805_v25 = vsel %vm4256_vm0, %v4714_v40, 0.0  ;;  %v5905_v36 = vmul.f32 %v15116_v22, %v5763_v44 }
 0x547   : > { %v5060_v38 = vpop.permute.xlu0 %5059  ;;  %v4099_v61 = vrot.slane %v3939_v16, %v14597_v46  ;;  %v5984_v1 = vsel %vm4256_vm0, %v5904_v53, 0.0  ;;  %v6023_v49 = vsel %vm4256_vm0, %v5944_v0, 0.0  ;;  %v5983_v34 = vsel %vm4256_vm0, %v5903_v28, 0.0 }
 0x548   : > { %6485 = vbcast.lane.b32.xlu1 %v16617_v12, 256  ;;  %6492 = vbcast.lane.b32.xlu0 %v16618_v33, 256  ;;  %v6022_v52 = vsel %vm4256_vm0, %v5943_v23, 0.0  ;;  %v4715_v26 = vcombine.high %v4675_v39, %v4675_v39  ;;  %v4768_v43 = vsel %vm4256_vm0, %v4675_v39, 0.0  ;;  %v4226_v27 = vcombine.high %v4186_v18, %v4186_v18 }
 0x549   : > { %v5331_v55 = vmul.f32 %v15166_v51, %v5213_v3  ;;  %12192 = vrcp.f32 %v15372_v59  ;;  %v5454_v22 = vadd.f32 %v5453_v6, %v5452_v50  ;;  %v4676_v16 = vmul.f32 %v15298_v29, %v4612_v5 }
 0x54a   : > { %v4459_v13 = vpop.permute.xlu1 %4458  ;;  %v5770_v53 = vrot.slane %v5610_v11, %v14597_v46  ;;  %v16619_v28 = vrot.slane %v15034_v48, %v14410_v2  ;;  %v4276_v37 = vsel %vm4256_vm0, %v4186_v18, 0.0  ;;  %v5945_v57 = vcombine.high %v5905_v36, %v5905_v36 }
 0x54b   : > { %v3946_v9 = vpop.permute.xlu0 %3945  ;;  %v4187_v54 = vmul.f32 %v15226_v60, %v4099_v61  ;;  %v5220_v20 = vrot.slane %v5060_v38, %v14597_v46  ;;  %v4806_v40 = vadd.f32 %v4805_v25, %v4804_v19  ;;  %v5985_v59 = vadd.f32 %v5984_v1, %v5983_v34 }
 0x54c   : > { %6587 = vperm.xlu1 %12106, %v6584_v24   ;;  %6565 = vbcast.lane.b32.xlu0 %v16619_v28, 256  ;;  %v6024_v44 = vadd.f32 %v6023_v49, %v6022_v52  ;;  %v4769_v32 = vadd.f32 %v4768_v43, %v4767_v63  ;;  %v4807_v23 = vsel %vm4256_vm0, %v4715_v26, 0.0  ;;  %v4315_v11 = vsel %vm4256_vm0, %v4226_v27, 0.0  ;;  %v16621_v27 = vld [vmem:[#allocation140_spill] sm:$0xff] }
 0x54d   : > { %v5986_v39 = vsel %vm4256_vm0, %v5905_v36, 0.0  ;;  %v5371_v3 = vcombine.high %v5331_v55, %v5331_v55  ;;  %v4277_v18 = vadd.f32 %v4276_v37, %v4275_v17  ;;  %v5416_v50 = vsel %vm4256_vm0, %v5331_v55, 0.0 }
 0x54e   : > { %v5617_v7 = vpop.permute.xlu1 %5616  ;;  %v4716_v6 = vcombine.high %v4676_v16, %v4676_v16  ;;  %v5906_v38 = vmul.f32 %v15121_v42, %v5770_v53  ;;  %v16620_v19 = vrot.slane %v15034_v48, %v14416_v4  ;;  %v6025_v5 = vsel %vm4256_vm0, %v5945_v57, 0.0 }
 0x54f   : > { %v5067_v0 = vpop.permute.xlu0 %5066  ;;  %v4227_v12 = vcombine.high %v4187_v54, %v4187_v54  ;;  %v5332_v33 = vmul.f32 %v15178_v56, %v5220_v20  ;;  %v4106_v63 = vrot.slane %v3946_v9, %v14597_v46  ;;  %v4808_v25 = vadd.f32 %v4807_v23, %v4806_v40 }
 0x550   : > { %6572 = vbcast.lane.b32.xlu1 %v16620_v19, 256  ;;  %6595 = vperm.xlu0 %12105, %v6592_v58   ;;  %v4316_v36 = vadd.f32 %v4315_v11, %v4314_v35  ;;  %v5987_v17 = vadd.f32 %v5986_v39, %v5985_v59  ;;  %v4619_v61 = vrot.slane %v4459_v13, %v14597_v46  ;;  %v5455_v49 = vsel %vm4256_vm0, %v5371_v3, 0.0 }
 0x551   : > { %v5417_v42 = vadd.f32 %v5416_v50, %v5415_v45  ;;  %v4770_v48 = vsel %vm4256_vm0, %v4676_v16, 0.0  ;;  %v5777_v34 = vrot.slane %v5617_v7, %v14597_v46  ;;  %v6026_v52 = vadd.f32 %v6025_v5, %v6024_v44 }
 0x552   : > { %v4466_v24 = vpop.permute.xlu1 %4465  ;;  %v4809_v26 = vsel %vm4256_vm0, %v4716_v6, 0.0  ;;  %v4278_v43 = vsel %vm4256_vm0, %v4187_v54, 0.0  ;;  %v5946_v9 = vcombine.high %v5906_v38, %v5906_v38  ;;  %v16622_v35 = vrot.slane %v16621_v27, %v14410_v2 }
 0x553   : > { %v3953_v1 = vpop.permute.xlu0 %3952  ;;  %v16623_v13 = vrot.slane %v16621_v27, %v14416_v4  ;;  %v4317_v45 = vsel %vm4256_vm0, %v4227_v12, 0.0  ;;  %v5372_v55 = vcombine.high %v5332_v33, %v5332_v33  ;;  %v4188_v16 = vmul.f32 %v15242_v8, %v4106_v63  ;;  %v15556_v28 = vpop.eup %12192 }
 0x554   : > { %6623 = vbcast.lane.b32.xlu1 %v16622_v35, 256  ;;  %v5227_v53 = vrot.slane %v5067_v0, %v14597_v46  ;;  %v5456_v37 = vadd.f32 %v5455_v49, %v5454_v22  ;;  %v4771_v57 = vadd.f32 %v4770_v48, %v4769_v32  ;;  %v5988_v54 = vsel %vm4256_vm0, %v5906_v38, 0.0  ;;  %v16624_v32 = vld [vmem:[#allocation143_spill] sm:$0xff] }
 0x555   : > { %6630 = vbcast.lane.b32.xlu0 %v16623_v13, 256  ;;  %v4677_v20 = vmul.f32 %v15339_v31, %v4619_v61  ;;  %v4279_v59 = vadd.f32 %v4278_v43, %v4277_v18  ;;  %v5418_v44 = vsel %vm4256_vm0, %v5332_v33, 0.0  ;;  %v5907_v7 = vmul.f32 %v15134_v62, %v5777_v34  ;;  %v16627_v34 = vld [vmem:[#allocation142_spill] sm:$0xff] }
 0x556   : > { %v5624_v58 = vpop.permute.xlu1 %5623  ;;  %v4626_v23 = vrot.slane %v4466_v24, %v14597_v46  ;;  %v4810_v11 = vadd.f32 %v4809_v26, %v4808_v25  ;;  %v4318_v39 = vadd.f32 %v4317_v45, %v4316_v36  ;;  %v6027_v0 = vsel %vm4256_vm0, %v5946_v9, 0.0 }
 0x557   : > { %v5074_v40 = vpop.permute.xlu0 %5073  ;;  %v4113_v22 = vrot.slane %v3953_v1, %v14597_v46  ;;  %v16625_v3 = vrot.slane %v16624_v32, %v14410_v2  ;;  %v16626_v50 = vrot.slane %v16624_v32, %v14416_v4  ;;  %v5989_v18 = vadd.f32 %v5988_v54, %v5987_v17 }
 0x558   : > { %v5457_v6 = vsel %vm4256_vm0, %v5372_v55, 0.0  ;;  %v4228_v62 = vcombine.high %v4188_v16, %v4188_v16  ;;  %v5333_v38 = vmul.f32 %v15193_v15, %v5227_v53  ;;  %v5419_v19 = vadd.f32 %v5418_v44, %v5417_v42  ;;  %v16631_v44 = vld [vmem:[#allocation153_spill] sm:$0xff] }
 0x559   : > { %6638 = vbcast.lane.b32.xlu1 %v16625_v3, 256  ;;  %6645 = vbcast.lane.b32.xlu0 %v16626_v50, 256  ;;  %v4717_v5 = vcombine.high %v4677_v20, %v4677_v20  ;;  %v4772_v12 = vsel %vm4256_vm0, %v4677_v20, 0.0  ;;  %v4280_v33 = vsel %vm4256_vm0, %v4188_v16, 0.0  ;;  %v6028_v36 = vadd.f32 %v6027_v0, %v6026_v52  ;;  %v16632_v0 = vld [vmem:[#allocation147_spill] sm:$0xff]  ;;  %v6927_v50 = vld [vmem:[%s16630_s7] sm:$0xff] }
 0x55a   : > { %v4473_v63 = vpop.permute.xlu1 %4472  ;;  %v5947_v61 = vcombine.high %v5907_v7, %v5907_v7  ;;  %v4678_v24 = vmul.f32 %v15355_v21, %v4626_v23  ;;  %v5784_v1 = vrot.slane %v5624_v58, %v14597_v46  ;;  %v5458_v17 = vadd.f32 %v5457_v6, %v5456_v37  ;;  %s16658_s7 = sld [smem:[#allocation103_spill]] }
 0x55b   : > { %v3960_v25 = vpop.permute.xlu0 %3959  ;;  %v4189_v49 = vmul.f32 %v15269_v41, %v4113_v22  ;;  %v4633_v48 = vrot.slane %v4473_v63, %v14597_v46  ;;  %v16628_v42 = vrot.slane %v16627_v34, %v14410_v2  ;;  %v16629_v26 = vrot.slane %v16627_v34, %v14416_v4 }
 0x55c   : > { %v4773_v43 = vadd.f32 %v4772_v12, %v4771_v57  ;;  %v4281_v52 = vadd.f32 %v4280_v33, %v4279_v59  ;;  %v4319_v9 = vsel %vm4256_vm0, %v4228_v62, 0.0  ;;  %v5373_v27 = vcombine.high %v5333_v38, %v5333_v38 }
 0x55d   : > { %6745 = vbcast.lane.b32.xlu1 %v16628_v42, 256  ;;  %6752 = vbcast.lane.b32.xlu0 %v16629_v26, 256  ;;  %v4811_v35 = vsel %vm4256_vm0, %v4717_v5, 0.0  ;;  %v5990_v13 = vsel %vm4256_vm0, %v5907_v7, 0.0  ;;  %v5420_v45 = vsel %vm4256_vm0, %v5333_v38, 0.0  ;;  %v5234_v55 = vrot.slane %v5074_v40, %v14597_v46 }
 0x55e   : > { %v5631_v16 = vpop.permute.xlu1 %5630  ;;  %v6029_v37 = vsel %vm4256_vm0, %v5947_v61, 0.0  ;;  %v4718_v54 = vcombine.high %v4678_v24, %v4678_v24  ;;  %v5908_v57 = vmul.f32 %v15149_v47, %v5784_v1  ;;  %v4120_v20 = vrot.slane %v3960_v25, %v14597_v46  ;;  %v6935_v47 = vld [vmem:[#allocation18] sm:$0xff] }
 0x55f   : > { %v5081_v53 = vpop.permute.xlu0 %5080  ;;  %v4320_v58 = vadd.f32 %v4319_v9, %v4318_v39  ;;  %v4229_v59 = vcombine.high %v4189_v49, %v4189_v49  ;;  %v4679_v23 = vmul.f32 %v16631_v44, %v4633_v48  ;;  %v16633_v7 = vrot.slane %v16632_v0, %v14410_v2 }
 0x560   : > { %v16634_v40 = vrot.slane %v16632_v0, %v14416_v4  ;;  %v5991_v22 = vadd.f32 %v5990_v13, %v5989_v18  ;;  %v5421_v32 = vadd.f32 %v5420_v45, %v5419_v19  ;;  %v5459_v3 = vsel %vm4256_vm0, %v5373_v27, 0.0 }
 0x561   : > { %6718 = vbcast.lane.b32.xlu1 %v16633_v7, 256  ;;  %v4812_v6 = vadd.f32 %v4811_v35, %v4810_v11  ;;  %v6030_v62 = vadd.f32 %v6029_v37, %v6028_v36  ;;  %v4774_v39 = vsel %vm4256_vm0, %v4678_v24, 0.0  ;;  %v4282_v38 = vsel %vm4256_vm0, %v4189_v49, 0.0  ;;  %v16635_v37 = vld [vmem:[#allocation141_spill] sm:$0xff] }
 0x562   : > { %6725 = vbcast.lane.b32.xlu0 %v16634_v40, 256  ;;  %v5334_v5 = vmul.f32 %v15199_v14, %v5234_v55  ;;  %v4480_v12 = vpop.permute.xlu1 %4479  ;;  %v5948_v63 = vcombine.high %v5908_v57, %v5908_v57  ;;  %v4190_v25 = vmul.f32 %v15284_v30, %v4120_v20  ;;  %v4813_v19 = vsel %vm4256_vm0, %v4718_v54, 0.0 }
 0x563   : > { %v3967_v33 = vpop.permute.xlu0 %3966  ;;  %v4640_v18 = vrot.slane %v4480_v12, %v14597_v46  ;;  %v4321_v61 = vsel %vm4256_vm0, %v4229_v59, 0.0  ;;  %v4719_v1 = vcombine.high %v4679_v23, %v4679_v23  ;;  %v5791_v11 = vrot.slane %v5631_v16, %v14597_v46  ;;  %v16639_v12 = vld [vmem:[#allocation144_spill] sm:$0xff] }
 0x564   : > { %v5241_v36 = vrot.slane %v5081_v53, %v14597_v46  ;;  %v5460_v24 = vadd.f32 %v5459_v3, %v5458_v17  ;;  %v4775_v49 = vadd.f32 %v4774_v39, %v4773_v43  ;;  %v4127_v34 = vrot.slane %v3967_v33, %v14597_v46 }
 0x565   : > { %6930 = vperm.xlu1 %12106, %v6927_v50   ;;  %v4680_v48 = vmul.f32 %v15556_v28, %v4640_v18  ;;  %v4283_v42 = vadd.f32 %v4282_v38, %v4281_v52  ;;  %v5992_v26 = vsel %vm4256_vm0, %v5908_v57, 0.0  ;;  %v5422_v9 = vsel %vm4256_vm0, %v5334_v5, 0.0 }
 0x566   : > { %6938 = vperm.xlu0 %12105, %v6935_v47   ;;  %v5638_v27 = vpop.permute.xlu1 %5637  ;;  %v4814_v13 = vadd.f32 %v4813_v19, %v4812_v6  ;;  %v4322_v45 = vadd.f32 %v4321_v61, %v4320_v58  ;;  %v6031_v55 = vsel %vm4256_vm0, %v5948_v63, 0.0  ;;  %v5374_v16 = vcombine.high %v5334_v5, %v5334_v5 }
 0x567   : > { %v5088_v35 = vpop.permute.xlu0 %5087  ;;  %v4230_v53 = vcombine.high %v4190_v25, %v4190_v25  ;;  %v5909_v17 = vmul.f32 %v15166_v51, %v5791_v11  ;;  %v5335_v43 = vmul.f32 %v15223_v10, %v5241_v36  ;;  %v16636_v52 = vrot.slane %v16635_v37, %v14410_v2  ;;  %v7542_v11 = vld [vmem:[%s16638_s10] sm:$0xff]  ;;  %s16665_s10 = sld [smem:[#allocation109_spill]] }
 0x568   : > { %v16637_v54 = vrot.slane %v16635_v37, %v14416_v4  ;;  %v4720_v57 = vcombine.high %v4680_v48, %v4680_v48  ;;  %v4815_v20 = vsel %vm4256_vm0, %v4719_v1, 0.0  ;;  %v5993_v58 = vadd.f32 %v5992_v26, %v5991_v22 }
 0x569   : > { %7446 = vbcast.lane.b32.xlu1 %v16636_v52, 256  ;;  %v5423_v59 = vadd.f32 %v5422_v9, %v5421_v32  ;;  %v4776_v0 = vsel %vm4256_vm0, %v4679_v23, 0.0  ;;  %v4191_v7 = vmul.f32 %v15298_v29, %v4127_v34  ;;  %v6032_v51 = vadd.f32 %v6031_v55, %v6030_v62 }
 0x56a   : > { %7453 = vbcast.lane.b32.xlu0 %v16637_v54, 256  ;;  %v5798_v40 = vrot.slane %v5638_v27, %v14597_v46  ;;  %v5248_v3 = vrot.slane %v5088_v35, %v14597_v46  ;;  %v5095_v50 = vpop.permute.xlu1 %5094  ;;  %v4817_v6 = vsel %vm4256_vm0, %v4720_v57, 0.0  ;;  %v5461_v39 = vsel %vm4256_vm0, %v5374_v16, 0.0  ;;  %v10796_v16 = vld [vmem:[%s16642_s11 + $0x10] sm:$0xff]  ;;  %v16643_v57 = vld [vmem:[#allocation146_spill] sm:$0xff] }
 0x56b   : > { %v3974_v47 = vpop.permute.xlu0 %3973  ;;  %v4284_v38 = vsel %vm4256_vm0, %v4190_v25, 0.0  ;;  %v4816_v22 = vadd.f32 %v4815_v20, %v4814_v13  ;;  %v4778_v32 = vsel %vm4256_vm0, %v4680_v48, 0.0  ;;  %v4323_v23 = vsel %vm4256_vm0, %v4230_v53, 0.0 }
 0x56c   : > { %v5949_v5 = vcombine.high %v5909_v17, %v5909_v17  ;;  %v5375_v62 = vcombine.high %v5335_v43, %v5335_v43  ;;  %v16640_v33 = vrot.slane %v16639_v12, %v14410_v2  ;;  %v16641_v63 = vrot.slane %v16639_v12, %v14416_v4 }
 0x56d   : > { %v4777_v18 = vadd.f32 %v4776_v0, %v4775_v49  ;;  %v4231_v19 = vcombine.high %v4191_v7, %v4191_v7  ;;  %v5255_v25 = vrot.slane %v5095_v50, %v14597_v46  ;;  %v4134_v61 = vrot.slane %v3974_v47, %v14597_v46  ;;  %v7549_v47 = vld [vmem:[#allocation22] sm:$0xff] }
 0x56e   : > { %7461 = vbcast.lane.b32.xlu1 %v16640_v33, 256  ;;  %7468 = vbcast.lane.b32.xlu0 %v16641_v63, 256  ;;  %v4818_v1 = vadd.f32 %v4817_v6, %v4816_v22  ;;  %v5462_v36 = vadd.f32 %v5461_v39, %v5460_v24  ;;  %v5910_v48 = vmul.f32 %v15178_v56, %v5798_v40  ;;  %v3981_v9 = vpop.permute.xlu1 %3980  ;;  %v5994_v35 = vsel %vm4256_vm0, %v5909_v17, 0.0  ;;  %v7639_v63 = vld [vmem:[%s16645_s16] sm:$0xff]  ;;  %s16666_s16 = sld [smem:[#allocation114_spill]] }
 0x56f   : > { %v5336_v34 = vmul.f32 %v15226_v60, %v5248_v3  ;;  %v4779_v26 = vadd.f32 %v4778_v32, %v4777_v18  ;;  %v5645_v27 = vpop.permute.xlu0 %5644  ;;  %v5424_v49 = vsel %vm4256_vm0, %v5335_v43, 0.0  ;;  %v4141_v13 = vrot.slane %v3981_v9, %v14597_v46  ;;  %v10797_v32 = vld [vmem:[%s16642_s11 + $0x18] sm:$0xf] }
 0x570   : > { %10798 = vmatprep.subr.msk.mxu0 %vm4256_vm0, %v4818_v1  ;;  %v5805_v55 = vrot.slane %v5645_v27, %v14597_v46  ;;  %v4285_v53 = vadd.f32 %v4284_v38, %v4283_v42  ;;  %v4324_v24 = vadd.f32 %v4323_v23, %v4322_v45  ;;  %v6033_v56 = vsel %vm4256_vm0, %v5949_v5, 0.0 }
 0x571   : > { %v5463_v37 = vsel %vm4256_vm0, %v5375_v62, 0.0  ;;  %10799 = vmatpush1.msk.msra.mxu0 %vm4256_vm0, %v4779_v26  ;;  %v4286_v17 = vsel %vm4256_vm0, %v4191_v7, 0.0  ;;  %v4325_v43 = vsel %vm4256_vm0, %v4231_v19, 0.0  ;;  %v5337_v52 = vmul.f32 %v15242_v8, %v5255_v25 }
 0x572   : > { %7545 = vperm.xlu1 %12106, %v7542_v11   ;;  %v4192_v54 = vmul.f32 %v15339_v31, %v4134_v61  ;;  %v16644_v42 = vrot.slane %v16643_v57, %v14410_v2  ;;  %v5995_v45 = vadd.f32 %v5994_v35, %v5993_v58  ;;  %v5425_v20 = vadd.f32 %v5424_v49, %v5423_v59  ;;  %v5652_v3 = vpop.permute.xlu1 %5651 }
 0x573   : > { %v5950_v0 = vcombine.high %v5910_v48, %v5910_v48  ;;  %v5376_v40 = vcombine.high %v5336_v34, %v5336_v34  ;;  %v5102_v50 = vpop.permute.xlu0 %5101  ;;  %10800 = vmatmul.mubr.msk.f32.vlgmr.msra.gmra.mrb[0].mxu0 %vm4822_vm1, %v10796_v16  ;;  %v6034_v7 = vadd.f32 %v6033_v56, %v6032_v51  ;;  %v5464_v6 = vadd.f32 %v5463_v37, %v5462_v36  ;;  %v7646_v36 = vld [vmem:[%s16647_s6] sm:$0xff]  ;;  %s16667_s6 = sld [smem:[#allocation115_spill]] }
 0x574   : > { %7527 = vbcast.lane.b32.xlu0 %v16644_v42, 256  ;;  %v4193_v39 = vmul.f32 %v15355_v21, %v4141_v13  ;;  %v5911_v38 = vmul.f32 %v15193_v15, %v5805_v55  ;;  %v16646_v22 = vmov 0.0   ;;  %v4287_v23 = vadd.f32 %v4286_v17, %v4285_v53 }
 0x575   : > { %4905 = vmatprep.mubr.f32.mxu0 %v16646_v22  ;;  %v4326_v58 = vadd.f32 %v4325_v43, %v4324_v24  ;;  %v5996_v59 = vsel %vm4256_vm0, %v5910_v48, 0.0  ;;  %v5812_v5 = vrot.slane %v5652_v3, %v14597_v46  ;;  %v16648_v62 = vrot.slane %v16643_v57, %v14416_v4 }
 0x576   : > { %v5426_v51 = vsel %vm4256_vm0, %v5336_v34, 0.0  ;;  %v5377_v12 = vcombine.high %v5337_v52, %v5337_v52  ;;  %v4232_v33 = vcombine.high %v4192_v54, %v4192_v54  ;;  %v5262_v15 = vrot.slane %v5102_v50, %v14597_v46  ;;  %v5109_v1 = vpop.permute.xlu1 %5108  ;;  %v16649_v50 = vld [vmem:[#allocation145_spill] sm:$0xff] }
 0x577   : > { %7534 = vbcast.lane.b32.xlu1 %v16648_v62, 256  ;;  %v6035_v18 = vsel %vm4256_vm0, %v5950_v0, 0.0  ;;  %v5465_v19 = vsel %vm4256_vm0, %v5376_v40, 0.0  ;;  %v5428_v25 = vsel %vm4256_vm0, %v5337_v52, 0.0  ;;  %v4288_v61 = vsel %vm4256_vm0, %v4192_v54, 0.0  ;;  %v3988_v11 = vpop.permute.xlu0 %3987  ;;  %10801 = vmatmul.mubr.msk.f32.gmra.mrb[2].mxu0 %vm4822_vm1, %v10797_v32 }
 0x578   : > { %7552 = vperm.xlu0 %12105, %v7549_v47   ;;  %v4233_v48 = vcombine.high %v4193_v39, %v4193_v39  ;;  %v5951_v34 = vcombine.high %v5911_v38, %v5911_v38  ;;  %v5338_v26 = vmul.f32 %v15269_v41, %v5262_v15  ;;  %v4148_v9 = vrot.slane %v3988_v11, %v14597_v46 }
 0x579   : > { %4988 = vmatprep.mubr.f32.mxu0 %v16646_v22  ;;  %v5997_v27 = vadd.f32 %v5996_v59, %v5995_v45  ;;  %v5427_v35 = vadd.f32 %v5426_v51, %v5425_v20  ;;  %v5912_v49 = vmul.f32 %v15199_v14, %v5812_v5  ;;  %v5269_v13 = vrot.slane %v5109_v1, %v14597_v46  ;;  %v16652_v1 = vld [vmem:[#allocation149_spill] sm:$0xff] }
 0x57a   : > { %v6036_v55 = vadd.f32 %v6035_v18, %v6034_v7  ;;  %v5466_v16 = vadd.f32 %v5465_v19, %v5464_v6  ;;  %v5467_v53 = vsel %vm4256_vm0, %v5377_v12, 0.0  ;;  %v4327_v24 = vsel %vm4256_vm0, %v4232_v33, 0.0  ;;  %v3995_v52 = vpop.permute.xlu1 %3994 }
 0x57b   : > { %7642 = vperm.xlu1 %12106, %v7639_v63   ;;  %v5429_v56 = vadd.f32 %v5428_v25, %v5427_v35  ;;  %v4289_v37 = vadd.f32 %v4288_v61, %v4287_v23  ;;  %v4290_v17 = vsel %vm4256_vm0, %v4193_v39, 0.0  ;;  %v4194_v43 = vmul.f32 %v16631_v44, %v4148_v9  ;;  %v5659_v54 = vpop.permute.xlu0 %5658 }
 0x57c   : > { %7649 = vperm.xlu0 %12105, %v7646_v36   ;;  %v4329_v14 = vsel %vm4256_vm0, %v4233_v48, 0.0  ;;  %v5998_v57 = vsel %vm4256_vm0, %v5911_v38, 0.0  ;;  %v6037_v42 = vsel %vm4256_vm0, %v5951_v34, 0.0  ;;  %v5378_v45 = vcombine.high %v5338_v26, %v5338_v26 }
 0x57d   : > { %v5468_v20 = vadd.f32 %v5467_v53, %v5466_v16  ;;  %v4328_v0 = vadd.f32 %v4327_v24, %v4326_v58  ;;  %v5952_v40 = vcombine.high %v5912_v49, %v5912_v49  ;;  %v5339_v3 = vmul.f32 %v15284_v30, %v5269_v13 }
 0x57e   : > { %v16650_v47 = vrot.slane %v16649_v50, %v14410_v2  ;;  %v4291_v7 = vadd.f32 %v4290_v17, %v4289_v37  ;;  %v4234_v6 = vcombine.high %v4194_v43, %v4194_v43  ;;  %v4155_v39 = vrot.slane %v3995_v52, %v14597_v46  ;;  %v5666_v62 = vpop.permute.xlu1 %5665 }
 0x57f   : > { %v5819_v32 = vrot.slane %v5659_v54, %v14597_v46  ;;  %v16651_v38 = vrot.slane %v16649_v50, %v14416_v4  ;;  %v4330_v23 = vadd.f32 %v4329_v14, %v4328_v0  ;;  %v5999_v59 = vadd.f32 %v5998_v57, %v5997_v27  ;;  %v5116_v51 = vpop.permute.xlu0 %5115  ;;  %v16655_v54 = vld [vmem:[#allocation148_spill] sm:$0xff] }
 0x580   : > { %7662 = vbcast.lane.b32.xlu1 %v16650_v47, 256  ;;  %v6038_v58 = vadd.f32 %v6037_v42, %v6036_v55  ;;  %v5430_v5 = vsel %vm4256_vm0, %v5338_v26, 0.0  ;;  %v5469_v12 = vsel %vm4256_vm0, %v5378_v45, 0.0  ;;  %v4195_v33 = vmul.f32 %v15556_v28, %v4155_v39 }
 0x581   : > { %7669 = vbcast.lane.b32.xlu0 %v16651_v38, 256  ;;  %v5913_v15 = vmul.f32 %v15223_v10, %v5819_v32  ;;  %v5826_v63 = vrot.slane %v5666_v62, %v14597_v46  ;;  %v6000_v18 = vsel %vm4256_vm0, %v5912_v49, 0.0  ;;  %v6039_v19 = vsel %vm4256_vm0, %v5952_v40, 0.0 }
 0x582   : > { %v5379_v25 = vcombine.high %v5339_v3, %v5339_v3  ;;  %v5276_v61 = vrot.slane %v5116_v51, %v14597_v46  ;;  %v16653_v11 = vrot.slane %v16652_v1, %v14410_v2  ;;  %v5431_v36 = vadd.f32 %v5430_v5, %v5429_v56  ;;  %v5673_v13 = vpop.permute.xlu1 %5672 }
 0x583   : > { %v4292_v48 = vsel %vm4256_vm0, %v4194_v43, 0.0  ;;  %v4331_v34 = vsel %vm4256_vm0, %v4234_v6, 0.0  ;;  %v4235_v26 = vcombine.high %v4195_v33, %v4195_v33  ;;  %v16654_v10 = vrot.slane %v16652_v1, %v14416_v4  ;;  %v5123_v55 = vpop.permute.xlu0 %5122 }
 0x584   : > { %7677 = vbcast.lane.b32.xlu1 %v16653_v11, 256  ;;  %v5470_v9 = vadd.f32 %v5469_v12, %v5468_v20  ;;  %v5432_v27 = vsel %vm4256_vm0, %v5339_v3, 0.0  ;;  %v5914_v35 = vmul.f32 %v15226_v60, %v5826_v63  ;;  %v5340_v49 = vmul.f32 %v15298_v29, %v5276_v61 }
 0x585   : > { %7684 = vbcast.lane.b32.xlu0 %v16654_v10, 256  ;;  %v4333_v16 = vsel %vm4256_vm0, %v4235_v26, 0.0  ;;  %v5953_v53 = vcombine.high %v5913_v15, %v5913_v15  ;;  %v5833_v24 = vrot.slane %v5673_v13, %v14597_v46  ;;  %v5283_v56 = vrot.slane %v5123_v55, %v14597_v46 }
 0x586   : > { %v5471_v37 = vsel %vm4256_vm0, %v5379_v25, 0.0  ;;  %v4293_v17 = vadd.f32 %v4292_v48, %v4291_v7  ;;  %v4332_v43 = vadd.f32 %v4331_v34, %v4330_v23  ;;  %v4294_v52 = vsel %vm4256_vm0, %v4195_v33, 0.0  ;;  %v5680_v47 = vpop.permute.xlu1 %5679  ;;  %v4335_v23 = vld [vmem:[%s16642_s11] sm:$0xff]  ;;  %v7947_v34 = vld [vmem:[%s16658_s7 + $0x8] sm:$0xff] }
 0x587   : > { %v16656_v60 = vrot.slane %v16655_v54, %v14410_v2  ;;  %v6002_v14 = vsel %vm4256_vm0, %v5913_v15, 0.0  ;;  %v5954_v57 = vcombine.high %v5914_v35, %v5914_v35  ;;  %v5915_v42 = vmul.f32 %v15242_v8, %v5833_v24  ;;  %v5130_v7 = vpop.permute.xlu0 %5129 }
 0x588   : > { %v5341_v45 = vmul.f32 %v15339_v31, %v5283_v56  ;;  %v16657_v20 = vrot.slane %v16655_v54, %v14416_v4  ;;  %v6001_v0 = vadd.f32 %v6000_v18, %v5999_v59  ;;  %v6040_v40 = vadd.f32 %v6039_v19, %v6038_v58  ;;  %v16659_v58 = vld [vmem:[#allocation150_spill] sm:$0xff]  ;;  %v7946_v19 = vld [vmem:[%s16658_s7] sm:$0xff] }
 0x589   : > { %7766 = vbcast.lane.b32.xlu1 %v16656_v60, 256  ;;  %v5380_v3 = vcombine.high %v5340_v49, %v5340_v49  ;;  %v4334_v50 = vadd.f32 %v4333_v16, %v4332_v43  ;;  %v5433_v6 = vadd.f32 %v5432_v27, %v5431_v36  ;;  %v5472_v39 = vadd.f32 %v5471_v37, %v5470_v9  ;;  %v7960_v37 = vld [vmem:[#allocation31] sm:$0xff] }
 0x58a   : > { %7773 = vbcast.lane.b32.xlu0 %v16657_v20, 256  ;;  %v4295_v32 = vadd.f32 %v4294_v52, %v4293_v17  ;;  %v6041_v38 = vsel %vm4256_vm0, %v5953_v53, 0.0  ;;  %v6003_v8 = vadd.f32 %v6002_v14, %v6001_v0  ;;  %v6004_v5 = vsel %vm4256_vm0, %v5914_v35, 0.0  ;;  %v5687_v36 = vpop.permute.xlu1 %5686  ;;  %v4336_v35 = vld [vmem:[%s16642_s11 + $0x8] sm:$0xf] }
 0x58b   : > { %v5434_v62 = vsel %vm4256_vm0, %v5340_v49, 0.0  ;;  %10802 = vmatprep.subr.msk.mxu0 %vm4256_vm0, %v4334_v50  ;;  %v5840_v59 = vrot.slane %v5680_v47, %v14597_v46  ;;  %v16660_v51 = vrot.slane %v16659_v58, %v14410_v2  ;;  %v6043_v12 = vsel %vm4256_vm0, %v5954_v57, 0.0  ;;  %v5137_v48 = vpop.permute.xlu0 %5136  ;;  %v7961_v57 = vld [vmem:[#allocation31 + $0x8] sm:$0xff] }
 0x58c   : > { %v5955_v33 = vcombine.high %v5915_v42, %v5915_v42  ;;  %v5381_v15 = vcombine.high %v5341_v45, %v5341_v45  ;;  %10803 = vmatpush1.msk.msra.mxu0 %vm4256_vm0, %v4295_v32  ;;  %v5290_v63 = vrot.slane %v5130_v7, %v14597_v46  ;;  %v16661_v18 = vrot.slane %v16659_v58, %v14416_v4 }
 0x58d   : > { %7743 = vbcast.lane.b32.xlu1 %v16660_v51, 256  ;;  %v6042_v25 = vadd.f32 %v6041_v38, %v6040_v40  ;;  %v5473_v61 = vsel %vm4256_vm0, %v5380_v3, 0.0  ;;  %v6006_v1 = vsel %vm4256_vm0, %v5915_v42, 0.0  ;;  %v5916_v11 = vmul.f32 %v15269_v41, %v5840_v59  ;;  %10804 = vmatmul.mubr.msk.f32.vlgmr.msra.gmra.mrb[0].mxu0 %vm4822_vm1, %v4335_v23 }
 0x58e   : > { %7750 = vbcast.lane.b32.xlu0 %v16661_v18, 256  ;;  %v5436_v26 = vsel %vm4256_vm0, %v5341_v45, 0.0  ;;  %v5342_v10 = vmul.f32 %v15355_v21, %v5290_v63  ;;  %v5847_v9 = vrot.slane %v5687_v36, %v14597_v46  ;;  %v5297_v27 = vrot.slane %v5137_v48, %v14597_v46  ;;  %4994 = vmatprep.mubr.f32.mxu0 %v16646_v22  ;;  %v5694_v60 = vpop.permute.xlu1 %5693 }
 0x58f   : > { %v6005_v49 = vadd.f32 %v6004_v5, %v6003_v8  ;;  %v6044_v13 = vadd.f32 %v6043_v12, %v6042_v25  ;;  %v5435_v55 = vadd.f32 %v5434_v62, %v5433_v6  ;;  %v5956_v41 = vcombine.high %v5916_v11, %v5916_v11  ;;  %v5144_v14 = vpop.permute.xlu0 %5143 }
 0x590   : > { %v6045_v16 = vsel %vm4256_vm0, %v5955_v33, 0.0  ;;  %v5475_v53 = vsel %vm4256_vm0, %v5381_v15, 0.0  ;;  %v5382_v24 = vcombine.high %v5342_v10, %v5342_v10  ;;  %v5917_v56 = vmul.f32 %v15284_v30, %v5847_v9 }
 0x591   : > { %7950 = vperm.xlu1 %12106, %v7946_v19   ;;  %v5474_v17 = vadd.f32 %v5473_v61, %v5472_v39  ;;  %v6007_v43 = vadd.f32 %v6006_v1, %v6005_v49  ;;  %v5437_v52 = vadd.f32 %v5436_v26, %v5435_v55  ;;  %v5343_v54 = vmul.f32 %v16631_v44, %v5297_v27  ;;  %v16662_v19 = vld [vmem:[#allocation151_spill] sm:$0xff] }
 0x592   : > { %7955 = vperm.xlu0 %12105, %v7947_v34   ;;  %10805 = vmatmul.mubr.msk.f32.gmra.mrb[2].mxu0 %vm4822_vm1, %v4336_v35  ;;  %v6008_v42 = vsel %vm4256_vm0, %v5916_v11, 0.0  ;;  %v6047_v45 = vsel %vm4256_vm0, %v5956_v41, 0.0  ;;  %v5438_v20 = vsel %vm4256_vm0, %v5342_v10, 0.0  ;;  %v5957_v0 = vcombine.high %v5917_v56, %v5917_v56  ;;  %v5708_v5 = vpop.permute.xlu1 %5707 }
 0x593   : > { %5562 = vmatprep.mubr.f32.mxu0 %v16646_v22  ;;  %v6046_v30 = vadd.f32 %v6045_v16, %v6044_v13  ;;  %v5476_v40 = vadd.f32 %v5475_v53, %v5474_v17  ;;  %v5477_v3 = vsel %vm4256_vm0, %v5382_v24, 0.0  ;;  %v5383_v50 = vcombine.high %v5343_v54, %v5343_v54  ;;  %v5701_v62 = vpop.permute.xlu0 %5700  ;;  %v16663_v53 = vld [vmem:[#allocation152_spill] sm:$0xff] }
 0x594   : > { %v6010_v47 = vsel %vm4256_vm0, %v5917_v56, 0.0  ;;  %v5440_v7 = vsel %vm4256_vm0, %v5343_v54, 0.0  ;;  %v5854_v6 = vrot.slane %v5694_v60, %v14597_v46  ;;  %v5304_v39 = vrot.slane %v5144_v14, %v14597_v46  ;;  %v12414_v14 = vld [vmem:[%s16604_s14] sm:$0x3] }
 0x595   : > { %7964 = vperm.xlu1 %12106, %v7960_v37   ;;  %v6009_v32 = vadd.f32 %v6008_v42, %v6007_v43  ;;  %v6048_v38 = vadd.f32 %v6047_v45, %v6046_v30  ;;  %v5439_v23 = vadd.f32 %v5438_v20, %v5437_v52  ;;  %v6049_v8 = vsel %vm4256_vm0, %v5957_v0, 0.0  ;;  %v10809_v43 = vld [vmem:[%s16642_s11 + $0x20] sm:$0xff]  ;;  %v16664_v20 = vld [vmem:[#allocation154_spill] sm:$0xff] }
 0x596   : > { %7969 = vperm.xlu0 %12105, %v7961_v57   ;;  %v5479_v59 = vsel %vm4256_vm0, %v5383_v50, 0.0  ;;  %v5918_v58 = vmul.f32 %v15298_v29, %v5854_v6  ;;  %v5344_v51 = vmul.f32 %v15556_v28, %v5304_v39  ;;  %v5868_v12 = vrot.slane %v5708_v5, %v14597_v46  ;;  %v5722_v26 = vpop.permute.xlu1 %5721  ;;  %v8556_v39 = vld [vmem:[%s16665_s10] sm:$0xff] }
 0x597   : > { %v5478_v33 = vadd.f32 %v5477_v3, %v5476_v40  ;;  %v6011_v15 = vadd.f32 %v6010_v47, %v6009_v32  ;;  %v5441_v63 = vadd.f32 %v5440_v7, %v5439_v23  ;;  %v5861_v18 = vrot.slane %v5701_v62, %v14597_v46  ;;  %v5715_v10 = vpop.permute.xlu0 %5714  ;;  %v10810_v3 = vld [vmem:[%s16642_s11 + $0x28] sm:$0xf]  ;;  %v8522_v32 = vld [vmem:[#allocation37] sm:$0x3]  ;;  %v10819_v62 = vld [vmem:[%s16642_s11 + $0x38] sm:$0xf] }
 0x598   : > { %v6050_v25 = vadd.f32 %v6049_v8, %v6048_v38  ;;  %v5958_v61 = vcombine.high %v5918_v58, %v5918_v58  ;;  %v6012_v1 = vsel %vm4256_vm0, %v5918_v58, 0.0  ;;  %v5384_v11 = vcombine.high %v5344_v51, %v5344_v51  ;;  %v8557_v23 = vld [vmem:[%s16665_s10 + $0x8] sm:$0xff]  ;;  %v10818_v8 = vld [vmem:[%s16642_s11 + $0x30] sm:$0xff]  ;;  %v8570_v58 = vld [vmem:[#allocation36] sm:$0xff] }
 0x599   : > { %8413 = vbcast.lane.b32.xlu1 %v16662_v19, 256  ;;  %v5480_v36 = vadd.f32 %v5479_v59, %v5478_v33  ;;  %v5442_v29 = vsel %vm4256_vm0, %v5344_v51, 0.0  ;;  %v5920_v48 = vmul.f32 %v15355_v21, %v5868_v12  ;;  %v5919_v34 = vmul.f32 %v15339_v31, %v5861_v18  ;;  %v8571_v51 = vld [vmem:[#allocation36 + $0x8] sm:$0xff]  ;;  %v8679_v12 = vld [vmem:[%s16666_s16] sm:$0xff] }
 0x59a   : > { %8417 = vbcast.lane.b32.xlu0 %v16662_v19, 264  ;;  %v6051_v9 = vsel %vm4256_vm0, %v5958_v61, 0.0  ;;  %v5481_v27 = vsel %vm4256_vm0, %v5384_v11, 0.0  ;;  %v5882_v35 = vrot.slane %v5722_v26, %v14597_v46  ;;  %v5875_v49 = vrot.slane %v5715_v10, %v14597_v46  ;;  %v8680_v33 = vld [vmem:[%s16666_s16 + $0x8] sm:$0xff]  ;;  %v8735_v61 = vld [vmem:[%s16669_s2] sm:$0x3] }
 0x59b   : > { %v6013_v13 = vadd.f32 %v6012_v1, %v6011_v15  ;;  %v6052_v55 = vadd.f32 %v6051_v9, %v6050_v25  ;;  %v5960_v41 = vcombine.high %v5920_v48, %v5920_v48  ;;  %v5959_v16 = vcombine.high %v5919_v34, %v5919_v34  ;;  %v8693_v15 = vld [vmem:[%s16667_s6] sm:$0xff]  ;;  %v8694_v18 = vld [vmem:[%s16667_s6 + $0x8] sm:$0xff]  ;;  %s16671_s2 = sld [smem:[#allocation126_spill]] }
 0x59c   : > { %v6014_v31 = vsel %vm4256_vm0, %v5919_v34, 0.0  ;;  %v5922_v21 = vmul.f32 %v15556_v28, %v5882_v35  ;;  %v5921_v24 = vmul.f32 %v16631_v44, %v5875_v49  ;;  %v5482_v56 = vadd.f32 %v5481_v27, %v5480_v36  ;;  %v8865_v36 = vld [vmem:[#allocation45 + $0x2] sm:$0x3]  ;;  %v8827_v27 = vld [vmem:[#allocation45] sm:$0x3] }
 0x59d   : > { %8424 = vbcast.lane.b32.xlu1 %v16663_v53, 256  ;;  %v5443_v37 = vadd.f32 %v5442_v29, %v5441_v63  ;;  %v6015_v17 = vadd.f32 %v6014_v31, %v6013_v13  ;;  %v6053_v46 = vsel %vm4256_vm0, %v5959_v16, 0.0  ;;  %v6016_v52 = vsel %vm4256_vm0, %v5920_v48, 0.0  ;;  %v8712_v63 = vld [vmem:[%s16668_s1] sm:$0x3]  ;;  %s16670_s1 = sld [smem:[#allocation118_spill]] }
 0x59e   : > { %8428 = vbcast.lane.b32.xlu0 %v16663_v53, 264  ;;  %v6054_v54 = vadd.f32 %v6053_v46, %v6052_v55  ;;  %v5961_v60 = vcombine.high %v5921_v24, %v5921_v24  ;;  %10811 = vmatprep.subr.msk.mxu0 %vm4256_vm0, %v5482_v56  ;;  %v8445_v28 = vrot.slane %v12414_v14, %v14416_v4  ;;  %v6055_v44 = vsel %vm4256_vm0, %v5960_v41, 0.0  ;;  %v9126_v56 = vld [vmem:[#allocation43 + $0x8] sm:$0xff]  ;;  %v9128_v14 = vld [vmem:[#allocation43 + $0x18] sm:$0xff] }
 0x59f   : > { %v5962_v57 = vcombine.high %v5922_v21, %v5922_v21  ;;  %v6017_v42 = vadd.f32 %v6016_v52, %v6015_v17  ;;  %v6018_v45 = vsel %vm4256_vm0, %v5921_v24, 0.0  ;;  %10812 = vmatpush1.msk.msra.mxu0 %vm4256_vm0, %v5443_v37  ;;  %v6020_v7 = vsel %vm4256_vm0, %v5922_v21, 0.0  ;;  %v9125_v21 = vld [vmem:[#allocation43] sm:$0xff] }
 0x5a0   : > { %v6056_v0 = vadd.f32 %v6055_v44, %v6054_v54  ;;  %v6057_v30 = vsel %vm4256_vm0, %v5961_v60, 0.0  ;;  %10813 = vmatmul.mubr.msk.f32.vlgmr.msra.gmra.mrb[0].mxu0 %vm4822_vm1, %v10809_v43  ;;  %v8526_v5 = vrot.slane %v8522_v32, %v14410_v2  ;;  %v8537_v59 = vrot.slane %v8522_v32, %v14416_v4  ;;  %v9127_v54 = vld [vmem:[#allocation43 + $0x10] sm:$0xff] }
 0x5a1   : > { %8436 = vbcast.lane.b32.xlu1 %v16664_v20, 256  ;;  %v6019_v40 = vadd.f32 %v6018_v45, %v6017_v42  ;;  %5568 = vmatprep.mubr.f32.mxu0 %v16646_v22  ;;  %v6059_v47 = vsel %vm4256_vm0, %v5962_v57, 0.0  ;;  %v8716_v19 = vrot.slane %v8712_v63, %v14410_v2  ;;  %v8727_v25 = vrot.slane %v8712_v63, %v14416_v4  ;;  %v9634_v60 = vld [vmem:[%s16671_s2] sm:$0x3]  ;;  %s16673_s2 = sld [smem:[#allocation124_spill]]  ;;  %v9905_v63 = vld [vmem:[#allocation48 + $0x8] sm:$0xff] }
 0x5a2   : > { %8440 = vbcast.lane.b32.xlu0 %v16664_v20, 264  ;;  %v6058_v50 = vadd.f32 %v6057_v30, %v6056_v0  ;;  %v8739_v1 = vrot.slane %v8735_v61, %v14410_v2  ;;  %v8750_v11 = vrot.slane %v8735_v61, %v14416_v4  ;;  %v8869_v34 = vrot.slane %v8865_v36, %v14410_v2  ;;  %v9673_v45 = vld [vmem:[%s16672_s3] sm:$0x3]  ;;  %s16674_s3 = sld [smem:[#allocation129_spill]] }
 0x5a3   : > { %v6021_v38 = vadd.f32 %v6020_v7, %v6019_v40  ;;  %v8880_v10 = vrot.slane %v8865_v36, %v14416_v4  ;;  %v8831_v35 = vrot.slane %v8827_v27, %v14410_v2  ;;  %v8842_v55 = vrot.slane %v8827_v27, %v14416_v4  ;;  %v9097_v53 = vld [vmem:[%s16670_s1] sm:$0xff]  ;;  %v9098_v31 = vld [vmem:[%s16670_s1 + $0x8] sm:$0xff]  ;;  %v9099_v17 = vld [vmem:[%s16670_s1 + $0x10] sm:$0xff] }
 0x5a4   : > { %10814 = vmatmul.mubr.msk.f32.gmra.mrb[2].mxu0 %vm4822_vm1, %v10810_v3  ;;  %v6060_v6 = vadd.f32 %v6059_v47, %v6058_v50  ;;  %v9100_v46 = vld [vmem:[%s16670_s1 + $0x18] sm:$0xff]  ;;  %v9657_v42 = vrot.slane %v9634_v60, %v14416_v4  ;;  %v9677_v0 = vrot.slane %v9673_v45, %v14410_v2  ;;  %v9696_v40 = vrot.slane %v9673_v45, %v14416_v4  ;;  %s16675_s1 = sld [smem:[#allocation130_spill]] }
 0x5a5   : > { %8447 = vbcast.lane.b32.xlu1 %v8445_v28, 256  ;;  %6140 = vmatprep.mubr.f32.mxu0 %v16646_v22  ;;  %v9906_v36 = vld [vmem:[#allocation48 + $0x10] sm:$0xff] }
 0x5a6   : > { %8451 = vbcast.lane.b32.xlu0 %v8445_v28, 264  ;;  %10820 = vmatprep.subr.msk.mxu0 %vm4256_vm0, %v6060_v6  ;;  %v9638_v28 = vrot.slane %v9634_v60, %v14410_v2 }
 0x5a7   : > { %10821 = vmatpush1.msk.msra.mxu0 %vm4256_vm0, %v6021_v38  ;;  %v15836_v29 = vpop.permute.xlu1 %6166  ;;  %v15838_v48 = vpop.permute.xlu0 %6161 }
 0x5a8   : > { %10822 = vmatmul.mubr.msk.f32.vlgmr.msra.gmra.mrb[0].mxu0 %vm4822_vm1, %v10818_v8  ;;  %v9817_v8 = vld [vmem:[#allocation49] sm:$0x3] }
 0x5a9   : > { %8560 = vperm.xlu1 %12106, %v8556_v39   ;;  %6146 = vmatprep.mubr.f32.mxu0 %v16646_v22 }
 0x5aa   : > { %8565 = vperm.xlu0 %12105, %v8557_v23   ;;  %v9876_v23 = vld [vmem:[%s16673_s2] sm:$0xff] }
 0x5ab   : > { %v15841_v26 = vpop.permute.xlu1 %6177  ;;  %v15844_v9 = vpop.permute.xlu0 %6182 }
 0x5ac   : > { %10823 = vmatmul.mubr.msk.f32.gmra.mrb[2].mxu0 %vm4822_vm1, %v10819_v62  ;;  %v9821_v62 = vrot.slane %v9817_v8, %v14410_v2 }
 0x5ad   : > { %8528 = vbcast.lane.b32.xlu1 %v8526_v5, 256 }
 0x5ae   : > { %8532 = vbcast.lane.b32.xlu0 %v8526_v5, 264  ;;  %v9877_v5 = vld [vmem:[%s16673_s2 + $0x8] sm:$0xff] }
 0x5af   : > { %v15847_v49 = vpop.permute.xlu1 %6299  ;;  %v15849_v13 = vpop.permute.xlu0 %6307 }
 0x5b1   : > { %8539 = vbcast.lane.b32.xlu1 %v8537_v59, 256 }
 0x5b2   : > { %8543 = vbcast.lane.b32.xlu0 %v8537_v59, 264 }
 0x5b3   : > { %v15852_v41 = vpop.permute.xlu1 %6321  ;;  %v15854_v16 = vpop.permute.xlu0 %6328 }
 0x5b5   : > { %8574 = vperm.xlu1 %12106, %v8570_v58  }
 0x5b6   : > { %8579 = vperm.xlu0 %12105, %v8571_v51   ;;  %v9840_v51 = vrot.slane %v9817_v8, %v14416_v4 }
 0x5b7   : > { %v15858_v24 = vpop.permute.xlu1 %6336  ;;  %v15860_v37 = vpop.permute.xlu0 %6343 }
 0x5b9   : > { %8683 = vperm.xlu1 %12106, %v8679_v12  }
 0x5ba   : > { %8688 = vperm.xlu0 %12105, %v8680_v33  }
 0x5bb   : > { %v15864_v43 = vpop.permute.xlu1 %6438  ;;  %v15866_v52 = vpop.permute.xlu0 %6416 }
 0x5bd   : > { %8697 = vperm.xlu1 %12106, %v8693_v15   ;;  %v9904_v15 = vld [vmem:[#allocation48] sm:$0xff] }
 0x5be   : > { %8702 = vperm.xlu0 %12105, %v8694_v18   ;;  %v9878_v18 = vld [vmem:[%s16673_s2 + $0x10] sm:$0xff] }
 0x5bf   : > { %v15870_v44 = vpop.permute.xlu1 %6423  ;;  %v15872_v57 = vpop.permute.xlu0 %6446 }
 0x5c1   : > { %8718 = vbcast.lane.b32.xlu1 %v8716_v19, 256 }
 0x5c2   : > { %8722 = vbcast.lane.b32.xlu0 %v8716_v19, 264 }
 0x5c3   : > { %v15876_v20 = vpop.permute.xlu1 %6470  ;;  %v15879_v30 = vpop.permute.xlu0 %6477 }
 0x5c5   : > { %8729 = vbcast.lane.b32.xlu1 %v8727_v25, 256 }
 0x5c6   : > { %8733 = vbcast.lane.b32.xlu0 %v8727_v25, 264  ;;  %v9879_v25 = vld [vmem:[%s16673_s2 + $0x18] sm:$0xff] }
 0x5c7   : > { %v15882_v3 = vpop.permute.xlu1 %6485  ;;  %v15884_v50 = vpop.permute.xlu0 %6492 }
 0x5c9   : > { %8741 = vbcast.lane.b32.xlu1 %v8739_v1, 256 }
 0x5ca   : > { %8745 = vbcast.lane.b32.xlu0 %v8739_v1, 264 }
 0x5cb   : > { %v15886_v47 = vpop.permute.xlu1 %6587  ;;  %v15888_v7 = vpop.permute.xlu0 %6565 }
 0x5cd   : > { %8752 = vbcast.lane.b32.xlu1 %v8750_v11, 256 }
 0x5ce   : > { %8756 = vbcast.lane.b32.xlu0 %v8750_v11, 264 }
 0x5cf   : > { %v15890_v6 = vpop.permute.xlu1 %6572  ;;  %v15892_v39 = vpop.permute.xlu0 %6595 }
 0x5d1   : > { %8871 = vbcast.lane.b32.xlu1 %v8869_v34, 256 }
 0x5d2   : > { %8875 = vbcast.lane.b32.xlu0 %v8869_v34, 264 }
 0x5d3   : > { %v15894_v32 = vpop.permute.xlu1 %6623  ;;  %v15896_v38 = vpop.permute.xlu0 %6630 }
 0x5d5   : > { %8882 = vbcast.lane.b32.xlu1 %v8880_v10, 256 }
 0x5d6   : > { %8886 = vbcast.lane.b32.xlu0 %v8880_v10, 264  ;;  %v9907_v10 = vld [vmem:[#allocation48 + $0x18] sm:$0xff] }
 0x5d7   : > { %v15901_v59 = vpop.permute.xlu1 %6638  ;;  %v15903_v58 = vpop.permute.xlu0 %6645 }
 0x5d9   : > { %8833 = vbcast.lane.b32.xlu1 %v8831_v35, 256 }
 0x5da   : > { %8837 = vbcast.lane.b32.xlu0 %v8831_v35, 264  ;;  %v10057_v35 = vld [vmem:[%s16674_s3] sm:$0xff] }
 0x5db   : > { %v15906_v12 = vpop.permute.xlu1 %6745  ;;  %v15908_v33 = vpop.permute.xlu0 %6752 }
 0x5dd   : > { %8844 = vbcast.lane.b32.xlu1 %v8842_v55, 256 }
 0x5de   : > { %8848 = vbcast.lane.b32.xlu0 %v8842_v55, 264  ;;  %v10058_v55 = vld [vmem:[%s16674_s3 + $0x8] sm:$0xff] }
 0x5df   : > { %v15911_v19 = vpop.permute.xlu1 %6718  ;;  %v15914_v61 = vpop.permute.xlu0 %6725 }
 0x5e1   : > { %9103 = vperm.xlu1 %12106, %v9097_v53  }
 0x5e2   : > { %9108 = vperm.xlu0 %12105, %v9098_v31  }
 0x5e4   : > { %v15916_v1 = vpop.permute.xlu1 %6930 }
 0x5e5   : > { %9131 = vperm.xlu1 %12106, %v9125_v21   ;;  %v15918_v11 = vpop.permute.xlu0 %6938  ;;  %v10085_v21 = vld [vmem:[%s16675_s1] sm:$0xff] }
 0x5e6   : > { %9136 = vperm.xlu0 %12105, %v9126_v56   ;;  %v10086_v56 = vld [vmem:[%s16675_s1 + $0x8] sm:$0xff] }
 0x5e8   : > { %v15920_v34 = vpop.permute.xlu1 %7446 }
 0x5e9   : > { %9113 = vperm.xlu1 %12106, %v9099_v17   ;;  %v15922_v27 = vpop.permute.xlu0 %7453  ;;  %v10059_v17 = vld [vmem:[%s16674_s3 + $0x10] sm:$0xff] }
 0x5ea   : > { %9118 = vperm.xlu0 %12105, %v9100_v46  }
 0x5ec   : > { %v15926_v53 = vpop.permute.xlu1 %7461 }
 0x5ed   : > { %9141 = vperm.xlu1 %12106, %v9127_v54   ;;  %v15928_v31 = vpop.permute.xlu0 %7468  ;;  %v10060_v54 = vld [vmem:[%s16674_s3 + $0x18] sm:$0xff] }
 0x5ee   : > { %9146 = vperm.xlu0 %12105, %v9128_v14   ;;  %v10087_v14 = vld [vmem:[%s16675_s1 + $0x10] sm:$0xff] }
 0x5f1   : > { %9640 = vbcast.lane.b32.xlu1 %v9638_v28, 256  ;;  %v15933_v46 = vpop.permute.xlu1 %7545  ;;  %v15936_v60 = vpop.permute.xlu0 %7527 }
 0x5f2   : > { %9644 = vbcast.lane.b32.xlu0 %v9638_v28, 264 }
 0x5f5   : > { %9659 = vbcast.lane.b32.xlu1 %v9657_v42, 256 }
 0x5f6   : > { %9663 = vbcast.lane.b32.xlu0 %v9657_v42, 264 }
 0x5f7   : > { %v15942_v45 = vpop.permute.xlu0 %7552 }
 0x5f9   : > { %9679 = vbcast.lane.b32.xlu1 %v9677_v0, 256 }
 0x5fa   : > { %9683 = vbcast.lane.b32.xlu0 %v9677_v0, 264 }
 0x5fd   : > { %9698 = vbcast.lane.b32.xlu1 %v9696_v40, 256 }
 0x5fe   : > { %9702 = vbcast.lane.b32.xlu0 %v9696_v40, 264 }
 0x601   : > { %9648 = vbcast.lane.b32.xlu1 %v9638_v28, 272 }
 0x602   : > { %9652 = vbcast.lane.b32.xlu0 %v9638_v28, 280  ;;  %v10088_v28 = vld [vmem:[%s16675_s1 + $0x18] sm:$0xff]  ;;  %s16677_s1 = sld [smem:[#allocation113_spill]] }
 0x605   : > { %9667 = vbcast.lane.b32.xlu1 %v9657_v42, 272 }
 0x606   : > { %9671 = vbcast.lane.b32.xlu0 %v9657_v42, 280  ;;  %v15940_v42 = vpop.permute.xlu1 %7534 }
 0x609   : > { %9687 = vbcast.lane.b32.xlu1 %v9677_v0, 272 }
 0x60a   : > { %9691 = vbcast.lane.b32.xlu0 %v9677_v0, 280 }
 0x60d   : > { %9706 = vbcast.lane.b32.xlu1 %v9696_v40, 272 }
 0x60e   : > { %9710 = vbcast.lane.b32.xlu0 %v9696_v40, 280 }
 0x611   : > { %9882 = vperm.xlu1 %12106, %v9876_v23  }
 0x612   : > { %9887 = vperm.xlu0 %12105, %v9877_v5  }
 0x615   : > { %9823 = vbcast.lane.b32.xlu1 %v9821_v62, 256 }
 0x616   : > { %9827 = vbcast.lane.b32.xlu0 %v9821_v62, 264 }
 0x619   : > { %9842 = vbcast.lane.b32.xlu1 %v9840_v51, 256 }
 0x61a   : > { %9846 = vbcast.lane.b32.xlu0 %v9840_v51, 264 }
 0x61d   : > { %9910 = vperm.xlu1 %12106, %v9904_v15  }
 0x61e   : > { %9915 = vperm.xlu0 %12105, %v9905_v63  }
 0x621   : > { %9892 = vperm.xlu1 %12106, %v9878_v18  }
 0x622   : > { %9897 = vperm.xlu0 %12105, %v9879_v25  }
 0x625   : > { %9831 = vbcast.lane.b32.xlu1 %v9821_v62, 272 }
 0x626   : > { %9835 = vbcast.lane.b32.xlu0 %v9821_v62, 280 }
 0x629   : > { %9850 = vbcast.lane.b32.xlu1 %v9840_v51, 272 }
 0x62a   : > { %9854 = vbcast.lane.b32.xlu0 %v9840_v51, 280 }
 0x62d   : > { %9920 = vperm.xlu1 %12106, %v9906_v36  }
 0x62e   : > { %9925 = vperm.xlu0 %12105, %v9907_v10  }
 0x631   : > { %10063 = vperm.xlu1 %12106, %v10057_v35  }
 0x632   : > { %10068 = vperm.xlu0 %12105, %v10058_v55  }
 0x635   : > { %10091 = vperm.xlu1 %12106, %v10085_v21  }
 0x636   : > { %10096 = vperm.xlu0 %12105, %v10086_v56  }
 0x639   : > { %10073 = vperm.xlu1 %12106, %v10059_v17  }
 0x63a   : > { %10078 = vperm.xlu0 %12105, %v10060_v54  }
 0x63d   : > { %10101 = vperm.xlu1 %12106, %v10087_v14  }
 0x63e   : > { %10106 = vperm.xlu0 %12105, %v10088_v28  }
 0x67b   : > { %v6142_v0 = vpop.f32.mrb[0].mxu0 }
 0x67c   : > { %v6169_v40 = vmul.f32 %v15838_v48, %v6142_v0  ;;  %v6144_v23 = vpop.f32.mrb[1].mxu0 }
 0x67d   : > { %v6170_v8 = vmul.f32 %v15838_v48, %v6144_v23 }
 0x67e   : > { %v6185_v5 = vadd.f32 %v15841_v26, %v6169_v40 }
 0x67f   : > { %v6186_v62 = vadd.f32 %v15841_v26, %v6170_v8  ;;  %v6148_v51 = vpop.f32.mrb[2].mxu0 }
 0x680   : > { %v10824_v15 = vmul.f32 -1.442695, %v6185_v5  ;;  %v6171_v63 = vmul.f32 %v15836_v29, %v6148_v51  ;;  %v6150_v18 = vpop.f32.mrb[3].mxu0 }
 0x681   : > { %v10825_v25 = vmul.f32 -1.442695, %v6186_v62  ;;  %v6172_v36 = vmul.f32 %v15836_v29, %v6150_v18  ;;  %v6213_v62 = vld [vmem:[#allocation54] sm:$0xf] }
 0x682   : > { %12194 = vpow2.f32 %v10824_v15  ;;  %v6187_v10 = vadd.f32 %v15844_v9, %v6171_v63  ;;  %v10831_v51 = vld.sshfl [vmem:[#allocation6] sm:$0x33 pattern:$0x75316420] }
 0x683   : > { %12196 = vpow2.f32 %v10825_v25  ;;  %v6188_v35 = vadd.f32 %v15844_v9, %v6172_v36  ;;  %v6353_v15 = vcombine.high %v10831_v51, %v10831_v51 }
 0x684   : > { %v10826_v55 = vmul.f32 -1.442695, %v6187_v10 }
 0x685   : > { %v10827_v48 = vmul.f32 -1.442695, %v6188_v35  ;;  %v6357_v35 = vrot.slane %v10831_v51, %v14410_v2 }
 0x686   : > { %12198 = vpow2.f32 %v10826_v55  ;;  %v6365_v55 = vrot.slane %v6353_v15, %v14410_v2 }
 0x687   : > { %12200 = vpow2.f32 %v10827_v48 }
 0x68c   : > { %v12195_v21 = vpop.eup %12194 }
 0x68d   : > { %v12197_v26 = vpop.eup %12196  ;;  %v6201_v56 = vadd.f32 1.0, %v12195_v21  ;;  %v6361_v21 = vrot.slane %v10831_v51, %v14416_v4 }
 0x68e   : > { %v6202_v17 = vadd.f32 1.0, %v12197_v26  ;;  %v6369_v26 = vrot.slane %v6353_v15, %v14416_v4 }
 0x68f   : > { %12202 = vrcp.f32 %v6201_v56 }
 0x690   : > { %v12199_v54 = vpop.eup %12198  ;;  %12204 = vrcp.f32 %v6202_v17 }
 0x691   : > { %v12201_v14 = vpop.eup %12200  ;;  %v6203_v28 = vadd.f32 1.0, %v12199_v54 }
 0x692   : > { %v6204_v29 = vadd.f32 1.0, %v12201_v14 }
 0x693   : > { %12206 = vrcp.f32 %v6203_v28 }
 0x694   : > { %12208 = vrcp.f32 %v6204_v29 }
 0x699   : > { %v12203_v0 = vpop.eup %12202 }
 0x69a   : > { %v12205_v40 = vpop.eup %12204 }
 0x69d   : > { %v12207_v9 = vpop.eup %12206 }
 0x69e   : > { %v12209_v23 = vpop.eup %12208  ;;  %v11466_v8 = vpack.c.bf16 %v12207_v9, %v12203_v0 }
 0x69f   : > { %v11463_v5 = vpack.c.bf16 %v12209_v23, %v12205_v40 }
 0x6a1   : > { %11465 = vmatprep.subr.msk.bf16.mxu1 %vm11464_vm4, %v11463_v5 }
 0x6a2   : > { %11468 = vmatpush1.bf16.msk.msra.mxu1 %vm11464_vm4, %v11466_v8 }
 0x6a5   : > { %10830 = vmatmul.mubr.msk.f32.vlgmr.msra.gmra.mrb[0].mxu1 %vm6214_vm5, %v6213_v62 }
 0x6a6   : > { %6840 = vmatprep.mubr.f32.mxu1 %v16646_v22 }
 0x778   : > { %v6291_v63 = vpop.f32.mrb[0].mxu1 }
 0x779   : > { %v6302_v18 = vmul.f32 %v15847_v49, %v6291_v63  ;;  %v6293_v25 = vpop.f32.mrb[1].mxu1 }
 0x77a   : > { %v6303_v36 = vmul.f32 %v15847_v49, %v6293_v25 }
 0x77b   : > { %v6310_v10 = vadd.f32 %v15849_v13, %v6302_v18 }
 0x77c   : > { %v6311_v48 = vadd.f32 %v15849_v13, %v6303_v36 }
 0x77d   : > { %v15962_v56 = vmax.f32 %v6310_v10, 0.0 }
 0x77e   : > { %v15964_v17 = vmax.f32 %v6311_v48, 0.0 }
 0x77f   : > { %v6374_v54 = vadd.f32 %v6357_v35, %v15962_v56  ;;  %v6376_v49 = vadd.f32 %v6365_v55, %v15962_v56 }
 0x780   : > { %v6375_v14 = vadd.f32 %v6361_v21, %v15964_v17  ;;  %v6377_v28 = vadd.f32 %v6369_v26, %v15964_v17 }
 0x781   : > { %v6378_v29 = vmul.f32 %v6374_v54, %v15852_v41  ;;  %v6380_v13 = vmul.f32 %v6376_v49, %v15854_v16 }
 0x782   : > { %v6379_v0 = vmul.f32 %v6375_v14, %v15852_v41  ;;  %v6381_v40 = vmul.f32 %v6377_v28, %v15854_v16 }
 0x783   : > { %v6382_v9 = vadd.f32 %v6378_v29, %v15858_v24  ;;  %v6384_v23 = vadd.f32 %v6380_v13, %v15860_v37 }
 0x784   : > { %v6383_v8 = vadd.f32 %v6379_v0, %v15858_v24  ;;  %v6385_v5 = vadd.f32 %v6381_v40, %v15860_v37 }
 0x785   : > { %v10832_v62 = vmul.f32 -1.442695, %v6382_v9  ;;  %v10834_v51 = vmul.f32 -1.442695, %v6384_v23 }
 0x786   : > { %v10833_v15 = vmul.f32 -1.442695, %v6383_v8  ;;  %v10835_v63 = vmul.f32 -1.442695, %v6385_v5 }
 0x787   : > { %12210 = vpow2.f32 %v10832_v62 }
 0x788   : > { %12212 = vpow2.f32 %v10834_v51 }
 0x789   : > { %12214 = vpow2.f32 %v10833_v15 }
 0x78a   : > { %12216 = vpow2.f32 %v10835_v63 }
 0x791   : > { %v12211_v18 = vpop.eup %12210 }
 0x792   : > { %v12213_v41 = vpop.eup %12212  ;;  %v6398_v25 = vadd.f32 1.0, %v12211_v18  ;;  %v10838_v18 = vld.sshfl [vmem:[#allocation10] sm:$0x33 pattern:$0x75316420] }
 0x793   : > { %v12215_v16 = vpop.eup %12214  ;;  %v6400_v36 = vadd.f32 1.0, %v12213_v41 }
 0x794   : > { %v12217_v10 = vpop.eup %12216  ;;  %12218 = vrcp.f32 %v6398_v25  ;;  %v6399_v35 = vadd.f32 1.0, %v12215_v16  ;;  %v6502_v25 = vcombine.high %v10838_v18, %v10838_v18  ;;  %v6506_v16 = vrot.slane %v10838_v18, %v14410_v2 }
 0x795   : > { %12220 = vrcp.f32 %v6400_v36  ;;  %v6401_v24 = vadd.f32 1.0, %v12217_v10 }
 0x796   : > { %12222 = vrcp.f32 %v6399_v35  ;;  %v6514_v36 = vrot.slane %v6502_v25, %v14410_v2  ;;  %v6518_v10 = vrot.slane %v6502_v25, %v14416_v4 }
 0x797   : > { %12224 = vrcp.f32 %v6401_v24 }
 0x79e   : > { %v12219_v37 = vpop.eup %12218 }
 0x79f   : > { %v12221_v55 = vpop.eup %12220  ;;  %v6425_v48 = vmul.f32 %v12219_v37, %v15866_v52 }
 0x7a0   : > { %v12223_v21 = vpop.eup %12222  ;;  %v6427_v26 = vmul.f32 %v12221_v55, %v15870_v44 }
 0x7a1   : > { %v12225_v54 = vpop.eup %12224  ;;  %v6429_v49 = vsel %vm6218_vm2, %v6425_v48, 0.0  ;;  %v6426_v14 = vmul.f32 %v12223_v21, %v15866_v52 }
 0x7a2   : > { %v6430_v28 = vsel %vm6218_vm2, %v6427_v26, 0.0  ;;  %v6428_v29 = vmul.f32 %v12225_v54, %v15870_v44 }
 0x7a3   : > { %v6431_v13 = vadd.f32 %v6430_v28, %v6429_v49  ;;  %v6432_v0 = vsel %vm6218_vm2, %v6426_v14, 0.0 }
 0x7a4   : > { %v6433_v40 = vsel %vm6218_vm2, %v6428_v29, 0.0 }
 0x7a5   : > { %v6441_v9 = vmul.f32 %v15864_v43, %v6431_v13  ;;  %v6434_v23 = vadd.f32 %v6433_v40, %v6432_v0 }
 0x7a7   : > { %v6449_v8 = vadd.f32 %v15872_v57, %v6441_v9  ;;  %v6442_v5 = vmul.f32 %v15864_v43, %v6434_v23  ;;  %v6510_v43 = vrot.slane %v10838_v18, %v14416_v4 }
 0x7a9   : > { %v10836_v62 = vmul.f32 -1.442695, %v6449_v8  ;;  %v6450_v51 = vadd.f32 %v15872_v57, %v6442_v5 }
 0x7ab   : > { %12226 = vpow2.f32 %v10836_v62  ;;  %v10837_v52 = vmul.f32 -1.442695, %v6450_v51 }
 0x7ad   : > { %12228 = vpow2.f32 %v10837_v52 }
 0x7b5   : > { %v12227_v15 = vpop.eup %12226 }
 0x7b6   : > { %v6457_v44 = vadd.f32 1.0, %v12227_v15 }
 0x7b7   : > { %v12229_v63 = vpop.eup %12228 }
 0x7b8   : > { %12230 = vrcp.f32 %v6457_v44  ;;  %v6458_v41 = vadd.f32 1.0, %v12229_v63 }
 0x7ba   : > { %12232 = vrcp.f32 %v6458_v41 }
 0x7c2   : > { %v12231_v57 = vpop.eup %12230 }
 0x7c3   : > { %v6523_v35 = vadd.f32 %v12231_v57, %v6506_v16  ;;  %v6525_v24 = vadd.f32 %v12231_v57, %v6514_v36 }
 0x7c4   : > { %v12233_v37 = vpop.eup %12232 }
 0x7c5   : > { %v6527_v55 = vmul.f32 %v6523_v35, %v15876_v20  ;;  %v6529_v48 = vmul.f32 %v6525_v24, %v15879_v30  ;;  %v6524_v21 = vadd.f32 %v12233_v37, %v6510_v43  ;;  %v6526_v26 = vadd.f32 %v12233_v37, %v6518_v10 }
 0x7c7   : > { %v6531_v54 = vadd.f32 %v6527_v55, %v15882_v3  ;;  %v6533_v49 = vadd.f32 %v6529_v48, %v15884_v50  ;;  %v6528_v14 = vmul.f32 %v6524_v21, %v15876_v20  ;;  %v6530_v28 = vmul.f32 %v6526_v26, %v15879_v30 }
 0x7c9   : > { %v10839_v29 = vmul.f32 -1.442695, %v6531_v54  ;;  %v10841_v13 = vmul.f32 -1.442695, %v6533_v49  ;;  %v6532_v0 = vadd.f32 %v6528_v14, %v15882_v3  ;;  %v6534_v40 = vadd.f32 %v6530_v28, %v15884_v50 }
 0x7ca   : > { %v10845_v28 = vld.sshfl [vmem:[#allocation15] sm:$0x33 pattern:$0x75316420] }
 0x7cb   : > { %12234 = vpow2.f32 %v10839_v29  ;;  %v10840_v9 = vmul.f32 -1.442695, %v6532_v0  ;;  %v10842_v23 = vmul.f32 -1.442695, %v6534_v40  ;;  %v6655_v29 = vcombine.high %v10845_v28, %v10845_v28 }
 0x7cc   : > { %12236 = vpow2.f32 %v10841_v13  ;;  %v6659_v40 = vrot.slane %v10845_v28, %v14410_v2 }
 0x7cd   : > { %12238 = vpow2.f32 %v10840_v9 }
 0x7ce   : > { %12240 = vpow2.f32 %v10842_v23 }
 0x7d5   : > { %v12235_v8 = vpop.eup %12234 }
 0x7d6   : > { %v12237_v5 = vpop.eup %12236  ;;  %v6547_v62 = vadd.f32 1.0, %v12235_v8  ;;  %v6663_v8 = vrot.slane %v10845_v28, %v14416_v4 }
 0x7d7   : > { %v12239_v51 = vpop.eup %12238  ;;  %v6549_v52 = vadd.f32 1.0, %v12237_v5  ;;  %v6671_v5 = vrot.slane %v6655_v29, %v14416_v4 }
 0x7d8   : > { %v12241_v20 = vpop.eup %12240  ;;  %12242 = vrcp.f32 %v6547_v62  ;;  %v6548_v30 = vadd.f32 1.0, %v12239_v51 }
 0x7d9   : > { %12244 = vrcp.f32 %v6549_v52  ;;  %v6550_v15 = vadd.f32 1.0, %v12241_v20 }
 0x7da   : > { %12246 = vrcp.f32 %v6548_v30 }
 0x7db   : > { %12248 = vrcp.f32 %v6550_v15 }
 0x7e2   : > { %v12243_v3 = vpop.eup %12242 }
 0x7e3   : > { %v12245_v50 = vpop.eup %12244  ;;  %v6574_v44 = vmul.f32 %v12243_v3, %v15888_v7 }
 0x7e4   : > { %v12247_v63 = vpop.eup %12246  ;;  %v6576_v18 = vmul.f32 %v12245_v50, %v15890_v6 }
 0x7e5   : > { %v12249_v41 = vpop.eup %12248  ;;  %v6578_v25 = vsel %vm6218_vm2, %v6574_v44, 0.0  ;;  %v6575_v16 = vmul.f32 %v12247_v63, %v15888_v7 }
 0x7e6   : > { %v6579_v36 = vsel %vm6218_vm2, %v6576_v18, 0.0  ;;  %v6577_v43 = vmul.f32 %v12249_v41, %v15890_v6 }
 0x7e7   : > { %v6580_v10 = vadd.f32 %v6579_v36, %v6578_v25  ;;  %v6581_v57 = vsel %vm6218_vm2, %v6575_v16, 0.0 }
 0x7e8   : > { %v6582_v35 = vsel %vm6218_vm2, %v6577_v43, 0.0 }
 0x7e9   : > { %v6590_v24 = vmul.f32 %v15886_v47, %v6580_v10  ;;  %v6583_v37 = vadd.f32 %v6582_v35, %v6581_v57 }
 0x7eb   : > { %v6598_v55 = vadd.f32 %v15892_v39, %v6590_v24  ;;  %v6591_v48 = vmul.f32 %v15886_v47, %v6583_v37  ;;  %v6667_v47 = vrot.slane %v6655_v29, %v14410_v2 }
 0x7ed   : > { %v10843_v21 = vmul.f32 -1.442695, %v6598_v55  ;;  %v6599_v26 = vadd.f32 %v15892_v39, %v6591_v48 }
 0x7ef   : > { %12250 = vpow2.f32 %v10843_v21  ;;  %v10844_v7 = vmul.f32 -1.442695, %v6599_v26 }
 0x7f1   : > { %12252 = vpow2.f32 %v10844_v7 }
 0x7f9   : > { %v12251_v54 = vpop.eup %12250 }
 0x7fa   : > { %v6606_v6 = vadd.f32 1.0, %v12251_v54 }
 0x7fb   : > { %v12253_v49 = vpop.eup %12252 }
 0x7fc   : > { %12254 = vrcp.f32 %v6606_v6  ;;  %v6607_v14 = vadd.f32 1.0, %v12253_v49 }
 0x7fe   : > { %12256 = vrcp.f32 %v6607_v14 }
 0x806   : > { %v12255_v13 = vpop.eup %12254 }
 0x807   : > { %v6612_v0 = vadd.f32 %v12255_v13, %v15962_v56 }
 0x808   : > { %v12257_v9 = vpop.eup %12256 }
 0x809   : > { %v16017_v39 = vmax.f32 %v6612_v0, 0.0  ;;  %v6613_v23 = vadd.f32 %v12257_v9, %v15964_v17 }
 0x80b   : > { %v6676_v62 = vadd.f32 %v6659_v40, %v16017_v39  ;;  %v6678_v51 = vadd.f32 %v6667_v47, %v16017_v39  ;;  %v16024_v52 = vmax.f32 %v6613_v23, 0.0  ;;  %v6765_v23 = vld [vmem:[#allocation16 + $0x8] sm:$0xff] }
 0x80d   : > { %v6680_v56 = vmul.f32 %v6676_v62, %v15894_v32  ;;  %v6682_v20 = vmul.f32 %v6678_v51, %v15896_v38  ;;  %v6677_v30 = vadd.f32 %v6663_v8, %v16024_v52  ;;  %v6679_v15 = vadd.f32 %v6671_v5, %v16024_v52  ;;  %v6737_v5 = vld [vmem:[#allocation16] sm:$0xff]  ;;  %v6971_v62 = vld [vmem:[#allocation25 + $0x80] sm:$0xff]  ;;  %v6972_v51 = vld [vmem:[#allocation25 + $0x88] sm:$0xff] }
 0x80f   : > { %v6684_v17 = vadd.f32 %v6680_v56, %v15901_v59  ;;  %v6686_v3 = vadd.f32 %v6682_v20, %v15903_v58  ;;  %v6681_v4 = vmul.f32 %v6677_v30, %v15894_v32  ;;  %v6683_v50 = vmul.f32 %v6679_v15, %v15896_v38  ;;  %v7074_v56 = vld [vmem:[#allocation25 + $0x180] sm:$0xff]  ;;  %v7075_v30 = vld [vmem:[#allocation25 + $0x188] sm:$0xff] }
 0x810   : > { %v16059_v20 = vpack.c.bf16 %v6972_v51, %v6971_v62  ;;  %v6955_v15 = vld [vmem:[#allocation25] sm:$0xff] }
 0x811   : > { %v10846_v44 = vmul.f32 -1.442695, %v6684_v17  ;;  %v10848_v63 = vmul.f32 -1.442695, %v6686_v3  ;;  %v6685_v18 = vadd.f32 %v6681_v4, %v15901_v59  ;;  %v6687_v41 = vadd.f32 %v6683_v50, %v15903_v58  ;;  %v6956_v17 = vld [vmem:[#allocation25 + $0x8] sm:$0xff]  ;;  %v7058_v50 = vld [vmem:[#allocation25 + $0x100] sm:$0xff] }
 0x812   : > { %v11501_v3 = vpack.c.bf16 %v7075_v30, %v7074_v56  ;;  %v16061_v4 = vpack.c.bf16 %v6956_v17, %v6955_v15  ;;  %v7082_v62 = vld [vmem:[#allocation25 + $0x1c0] sm:$0xff]  ;;  %v7083_v56 = vld [vmem:[#allocation25 + $0x1c8] sm:$0xff] }
 0x813   : > { %12258 = vpow2.f32 %v10846_v44  ;;  %v10847_v25 = vmul.f32 -1.442695, %v6685_v18  ;;  %v10849_v16 = vmul.f32 -1.442695, %v6687_v41  ;;  %v7059_v44 = vld [vmem:[#allocation25 + $0x108] sm:$0xff]  ;;  %v6973_v18 = vld [vmem:[#allocation25 + $0x90] sm:$0xff]  ;;  %v11517_v17 = vpack.c.bf16 %v7083_v56, %v7082_v62 }
 0x814   : > { %12260 = vpow2.f32 %v10848_v63  ;;  %v11503_v63 = vpack.c.bf16 %v7059_v44, %v7058_v50  ;;  %11502 = vmatprep.subr.bf16.mxu0 %v11501_v3  ;;  %v6974_v41 = vld [vmem:[#allocation25 + $0x98] sm:$0xff]  ;;  %v6963_v30 = vld [vmem:[#allocation25 + $0x40] sm:$0xff]  ;;  %v6964_v15 = vld [vmem:[#allocation25 + $0x48] sm:$0xff] }
 0x815   : > { %12262 = vpow2.f32 %v10847_v25  ;;  %v7076_v25 = vld [vmem:[#allocation25 + $0x190] sm:$0xff]  ;;  %v16085_v3 = vpack.c.bf16 %v6964_v15, %v6963_v30  ;;  %v7066_v50 = vld [vmem:[#allocation25 + $0x140] sm:$0xff]  ;;  %v7067_v44 = vld [vmem:[#allocation25 + $0x148] sm:$0xff] }
 0x816   : > { %12264 = vpow2.f32 %v10849_v16  ;;  %11504 = vmatpush3.bf16.msra.mxu0 %v11503_v63  ;;  %v16065_v16 = vpack.c.bf16 %v6974_v41, %v6973_v18  ;;  %v11519_v63 = vpack.c.bf16 %v7067_v44, %v7066_v50  ;;  %v6981_v18 = vld [vmem:[#allocation25 + $0xd0] sm:$0xff]  ;;  %v6982_v41 = vld [vmem:[#allocation25 + $0xd8] sm:$0xff]  ;;  %v7179_v50 = vld [vmem:[#allocation25 + $0x288] sm:$0xff] }
 0x817   : > { %v7072_v62 = vld [vmem:[#allocation25 + $0x170] sm:$0xff]  ;;  %v7073_v30 = vld [vmem:[#allocation25 + $0x178] sm:$0xff]  ;;  %v7282_v44 = vld [vmem:[#allocation25 + $0x380] sm:$0xff] }
 0x818   : > { %v11531_v15 = vpack.c.bf16 %v7073_v30, %v7072_v62  ;;  %v7182_v62 = vld [vmem:[#allocation25 + $0x2a0] sm:$0xff] }
 0x81d   : > { %v12259_v36 = vpop.eup %12258 }
 0x81e   : > { %v12261_v43 = vpop.eup %12260  ;;  %v6700_v10 = vadd.f32 1.0, %v12259_v36  ;;  %v7077_v36 = vld [vmem:[#allocation25 + $0x198] sm:$0xff] }
 0x81f   : > { %v12263_v57 = vpop.eup %12262  ;;  %v6702_v35 = vadd.f32 1.0, %v12261_v43  ;;  %v6957_v43 = vld [vmem:[#allocation25 + $0x10] sm:$0xff] }
 0x820   : > { %v12265_v32 = vpop.eup %12264  ;;  %12266 = vrcp.f32 %v6700_v10  ;;  %v6701_v38 = vadd.f32 1.0, %v12263_v57  ;;  %v6958_v10 = vld [vmem:[#allocation25 + $0x18] sm:$0xff]  ;;  %v11505_v57 = vpack.c.bf16 %v7077_v36, %v7076_v25  ;;  %v7084_v25 = vld [vmem:[#allocation25 + $0x1d0] sm:$0xff]  ;;  %v16089_v36 = vpack.c.bf16 %v6982_v41, %v6981_v18  ;;  %v7283_v18 = vld [vmem:[#allocation25 + $0x388] sm:$0xff] }
 0x821   : > { %12268 = vrcp.f32 %v6702_v35  ;;  %v6703_v24 = vadd.f32 1.0, %v12265_v32  ;;  %v16067_v35 = vpack.c.bf16 %v6958_v10, %v6957_v43  ;;  %v7060_v32 = vld [vmem:[#allocation25 + $0x110] sm:$0xff]  ;;  %v7085_v43 = vld [vmem:[#allocation25 + $0x1d8] sm:$0xff]  ;;  %v11565_v41 = vpack.c.bf16 %v7283_v18, %v7282_v44  ;;  %v7286_v44 = vld [vmem:[#allocation25 + $0x3a0] sm:$0xff] }
 0x822   : > { %12270 = vrcp.f32 %v6701_v38  ;;  %v7061_v38 = vld [vmem:[#allocation25 + $0x118] sm:$0xff]  ;;  %11506 = vmatprep.subr.bf16.mxu0 %v11505_v57  ;;  %v6965_v10 = vld [vmem:[#allocation25 + $0x50] sm:$0xff] }
 0x823   : > { %12272 = vrcp.f32 %v6703_v24  ;;  %v11507_v24 = vpack.c.bf16 %v7061_v38, %v7060_v32  ;;  %v6966_v57 = vld [vmem:[#allocation25 + $0x58] sm:$0xff]  ;;  %v11521_v32 = vpack.c.bf16 %v7085_v43, %v7084_v25 }
 0x824   : > { %v16091_v38 = vpack.c.bf16 %v6966_v57, %v6965_v10 }
 0x825   : > { %11508 = vmatpush3.bf16.msra.mxu0 %v11507_v24  ;;  %v7068_v24 = vld [vmem:[#allocation25 + $0x150] sm:$0xff] }
 0x82a   : > { %v12267_v59 = vpop.eup %12266 }
 0x82b   : > { %v12269_v58 = vpop.eup %12268  ;;  %v6754_v37 = vmul.f32 %v12267_v59, %v15906_v12  ;;  %v6727_v54 = vmul.f32 %v12267_v59, %v15911_v19  ;;  %v6975_v59 = vld [vmem:[#allocation25 + $0xa0] sm:$0xff] }
 0x82c   : > { %v12271_v55 = vpop.eup %12270  ;;  %v6756_v48 = vmul.f32 %v12269_v58, %v15908_v33  ;;  %v6729_v6 = vmul.f32 %v12269_v58, %v15914_v61  ;;  %v6976_v58 = vld [vmem:[#allocation25 + $0xa8] sm:$0xff] }
 0x82d   : > { %v12273_v21 = vpop.eup %12272  ;;  %v6755_v26 = vmul.f32 %v12271_v55, %v15906_v12  ;;  %v6728_v7 = vmul.f32 %v12271_v55, %v15911_v19  ;;  %v6758_v29 = vsel %vm6218_vm2, %v6754_v37, 0.0  ;;  %v6731_v19 = vsel %vm6218_vm2, %v6727_v54, 0.0  ;;  %v7078_v37 = vld [vmem:[#allocation25 + $0x1a0] sm:$0xff] }
 0x82e   : > { %v6757_v49 = vmul.f32 %v12273_v21, %v15908_v33  ;;  %v6730_v14 = vmul.f32 %v12273_v21, %v15914_v61  ;;  %v6759_v13 = vsel %vm6218_vm2, %v6756_v48, 0.0  ;;  %v6732_v9 = vsel %vm6218_vm2, %v6729_v6, 0.0  ;;  %v7079_v48 = vld [vmem:[#allocation25 + $0x1a8] sm:$0xff]  ;;  %v6959_v21 = vld [vmem:[#allocation25 + $0x20] sm:$0xff] }
 0x82f   : > { %v6761_v28 = vsel %vm6218_vm2, %v6755_v26, 0.0  ;;  %v6734_v12 = vsel %vm6218_vm2, %v6728_v7, 0.0  ;;  %v6760_v33 = vadd.f32 %v6759_v13, %v6758_v29  ;;  %v6733_v8 = vadd.f32 %v6732_v9, %v6731_v19  ;;  %v6960_v26 = vld [vmem:[#allocation25 + $0x28] sm:$0xff]  ;;  %v7062_v6 = vld [vmem:[#allocation25 + $0x120] sm:$0xff]  ;;  %v6978_v29 = vld [vmem:[#allocation25 + $0xb8] sm:$0xff] }
 0x830   : > { %v6762_v0 = vsel %vm6218_vm2, %v6757_v49, 0.0  ;;  %v6735_v40 = vsel %vm6218_vm2, %v6730_v14, 0.0  ;;  %v16071_v55 = vpack.c.bf16 %v6976_v58, %v6975_v59  ;;  %v11509_v7 = vpack.c.bf16 %v7079_v48, %v7078_v37  ;;  %v7063_v49 = vld [vmem:[#allocation25 + $0x128] sm:$0xff]  ;;  %v7080_v13 = vld [vmem:[#allocation25 + $0x1b0] sm:$0xff]  ;;  %v7069_v59 = vld [vmem:[#allocation25 + $0x158] sm:$0xff] }
 0x831   : > { %v6763_v47 = vadd.f32 %v6762_v0, %v6761_v28  ;;  %v6736_v61 = vadd.f32 %v6735_v40, %v6734_v12  ;;  %v16073_v54 = vpack.c.bf16 %v6960_v26, %v6959_v21  ;;  %v11511_v14 = vpack.c.bf16 %v7063_v49, %v7062_v6  ;;  %v6977_v28 = vld [vmem:[#allocation25 + $0xb0] sm:$0xff]  ;;  %v7081_v12 = vld [vmem:[#allocation25 + $0x1b8] sm:$0xff]  ;;  %v6983_v37 = vld [vmem:[#allocation25 + $0xe0] sm:$0xff] }
 0x832   : > { %11510 = vmatprep.subr.bf16.mxu0 %v11509_v7  ;;  %v16077_v0 = vpack.c.bf16 %v6978_v29, %v6977_v28  ;;  %v6961_v40 = vld [vmem:[#allocation25 + $0x30] sm:$0xff]  ;;  %v11513_v19 = vpack.c.bf16 %v7081_v12, %v7080_v13  ;;  %v11523_v58 = vpack.c.bf16 %v7069_v59, %v7068_v24  ;;  %v6984_v48 = vld [vmem:[#allocation25 + $0xe8] sm:$0xff]  ;;  %v7086_v21 = vld [vmem:[#allocation25 + $0x1e0] sm:$0xff] }
 0x833   : > { %10850 = vmatprep.subr.msk.mxu1 %vm6218_vm2, %v6763_v47  ;;  %11512 = vmatpush3.bf16.msra.mxu0 %v11511_v14  ;;  %v6962_v47 = vld [vmem:[#allocation25 + $0x38] sm:$0xff]  ;;  %v16095_v26 = vpack.c.bf16 %v6984_v48, %v6983_v37  ;;  %v7087_v7 = vld [vmem:[#allocation25 + $0x1e8] sm:$0xff]  ;;  %v6967_v6 = vld [vmem:[#allocation25 + $0x60] sm:$0xff] }
 0x834   : > { %10851 = vmatpush1.msk.msra.mxu1 %vm6218_vm2, %v6760_v33  ;;  %v16079_v9 = vpack.c.bf16 %v6962_v47, %v6961_v40  ;;  %v7064_v33 = vld [vmem:[#allocation25 + $0x130] sm:$0xff]  ;;  %11514 = vmatprep.subr.bf16.mxu0 %v11513_v19  ;;  %v6968_v49 = vld [vmem:[#allocation25 + $0x68] sm:$0xff]  ;;  %v11525_v14 = vpack.c.bf16 %v7087_v7, %v7086_v21  ;;  %v7070_v29 = vld [vmem:[#allocation25 + $0x160] sm:$0xff] }
 0x835   : > { %10852 = vmatmul.mubr.msk.f32.vlgmr.msra.gmra.mrb[2].mxu1 %vm6766_vm6, %v6765_v23  ;;  %10853 = vmatprep.subr.msk.mxu1 %vm6218_vm2, %v6736_v61  ;;  %v7065_v23 = vld [vmem:[#allocation25 + $0x138] sm:$0xff]  ;;  %v16097_v28 = vpack.c.bf16 %v6968_v49, %v6967_v6  ;;  %v7071_v13 = vld [vmem:[#allocation25 + $0x168] sm:$0xff]  ;;  %v6985_v12 = vld [vmem:[#allocation25 + $0xf0] sm:$0xff] }
 0x836   : > { %10854 = vmatpush1.msk.msra.mxu1 %vm6218_vm2, %v6733_v8  ;;  %6920 = vmatprep.mubr.f32.mxu1 %v16646_v22  ;;  %v11515_v61 = vpack.c.bf16 %v7065_v23, %v7064_v33  ;;  %v6979_v8 = vld [vmem:[#allocation25 + $0xc0] sm:$0xff]  ;;  %v11527_v40 = vpack.c.bf16 %v7071_v13, %v7070_v29  ;;  %v6986_v47 = vld [vmem:[#allocation25 + $0xf8] sm:$0xff]  ;;  %v7088_v19 = vld [vmem:[#allocation25 + $0x1f0] sm:$0xff] }
 0x837   : > { %11470 = vmatprep.subr.bf16.mxu1 %v16059_v20  ;;  %v7089_v33 = vld [vmem:[#allocation25 + $0x1f8] sm:$0xff]  ;;  %v16101_v23 = vpack.c.bf16 %v6986_v47, %v6985_v12  ;;  %v7162_v6 = vld [vmem:[#allocation25 + $0x200] sm:$0xff]  ;;  %v7163_v49 = vld [vmem:[#allocation25 + $0x208] sm:$0xff] }
 0x838   : > { %11516 = vmatpush3.bf16.msra.mxu0 %v11515_v61  ;;  %v11529_v61 = vpack.c.bf16 %v7089_v33, %v7088_v19  ;;  %v7267_v29 = vld [vmem:[#allocation25 + $0x308] sm:$0xff]  ;;  %v7180_v13 = vld [vmem:[#allocation25 + $0x290] sm:$0xff]  ;;  %v11535_v47 = vpack.c.bf16 %v7163_v49, %v7162_v6  ;;  %v7165_v33 = vld [vmem:[#allocation25 + $0x218] sm:$0xff] }
 0x839   : > { %11518 = vmatprep.subr.bf16.mxu0 %v11517_v17  ;;  %v7178_v17 = vld [vmem:[#allocation25 + $0x280] sm:$0xff]  ;;  %v7284_v12 = vld [vmem:[#allocation25 + $0x390] sm:$0xff]  ;;  %v7169_v49 = vld [vmem:[#allocation25 + $0x238] sm:$0xff] }
 0x83a   : > { %v7164_v19 = vld [vmem:[#allocation25 + $0x210] sm:$0xff] }
 0x83b   : > { %v11539_v18 = vpack.c.bf16 %v7165_v33, %v7164_v19  ;;  %v7168_v6 = vld [vmem:[#allocation25 + $0x230] sm:$0xff] }
 0x83c   : > { %11520 = vmatpush3.bf16.msra.mxu0 %v11519_v63  ;;  %v11533_v63 = vpack.c.bf16 %v7179_v50, %v7178_v17  ;;  %v7183_v50 = vld [vmem:[#allocation25 + $0x2a8] sm:$0xff]  ;;  %v11547_v19 = vpack.c.bf16 %v7169_v49, %v7168_v6  ;;  %v7174_v49 = vld [vmem:[#allocation25 + $0x260] sm:$0xff] }
 0x83d   : > { %10855 = vmatmul.mubr.msk.f32.vlgmr.msra.gmra.mrb[2].mxu1 %vm6766_vm6, %v6737_v5  ;;  %v6980_v5 = vld [vmem:[#allocation25 + $0xc8] sm:$0xff]  ;;  %11522 = vmatprep.subr.bf16.mxu0 %v11521_v32 }
 0x83e   : > { %11472 = vmatpush3.bf16.msra.mxu1 %v16061_v4  ;;  %v16083_v51 = vpack.c.bf16 %v6980_v5, %v6979_v8  ;;  %v6969_v8 = vld [vmem:[#allocation25 + $0x70] sm:$0xff]  ;;  %v6970_v5 = vld [vmem:[#allocation25 + $0x78] sm:$0xff] }
 0x83f   : > { %11474 = vmatprep.subr.bf16.mxu1 %v16065_v16  ;;  %v16103_v56 = vpack.c.bf16 %v6970_v5, %v6969_v8  ;;  %v7268_v8 = vld [vmem:[#allocation25 + $0x310] sm:$0xff]  ;;  %v7269_v5 = vld [vmem:[#allocation25 + $0x318] sm:$0xff] }
 0x840   : > { %11524 = vmatpush3.bf16.msra.mxu0 %v11523_v58 }
 0x841   : > { %11526 = vmatprep.subr.bf16.mxu0 %v11525_v14  ;;  %v7266_v14 = vld [vmem:[#allocation25 + $0x300] sm:$0xff] }
 0x842   : > { %11476 = vmatpush3.bf16.msra.mxu1 %v16067_v35 }
 0x843   : > { %11478 = vmatprep.subr.bf16.mxu1 %v16071_v55 }
 0x844   : > { %11528 = vmatpush3.bf16.msra.mxu0 %v11527_v40  ;;  %v7285_v40 = vld [vmem:[#allocation25 + $0x398] sm:$0xff] }
 0x845   : > { %11530 = vmatprep.subr.bf16.mxu0 %v11529_v61  ;;  %v11569_v17 = vpack.c.bf16 %v7285_v40, %v7284_v12  ;;  %v7186_v12 = vld [vmem:[#allocation25 + $0x2c0] sm:$0xff]  ;;  %v7187_v40 = vld [vmem:[#allocation25 + $0x2c8] sm:$0xff] }
 0x846   : > { %11480 = vmatpush3.bf16.msra.mxu1 %v16073_v54 }
 0x847   : > { %11482 = vmatprep.subr.bf16.mxu1 %v16077_v0 }
 0x848   : > { %11532 = vmatpush3.bf16.msra.mxu0 %v11531_v15 }
 0x849   : > { %11566 = vmatprep.subr.bf16.mxu0 %v11565_v41  ;;  %v11571_v41 = vpack.c.bf16 %v7269_v5, %v7268_v8  ;;  %v7171_v8 = vld [vmem:[#allocation25 + $0x248] sm:$0xff]  ;;  %v11549_v5 = vpack.c.bf16 %v7187_v40, %v7186_v12  ;;  %v7192_v40 = vld [vmem:[#allocation25 + $0x2f0] sm:$0xff] }
 0x84a   : > { %11484 = vmatpush3.bf16.msra.mxu1 %v16079_v9  ;;  %v7279_v12 = vld [vmem:[#allocation25 + $0x368] sm:$0xff] }
 0x84b   : > { %11486 = vmatprep.subr.bf16.mxu1 %v16083_v51 }
 0x84e   : > { %11488 = vmatpush3.bf16.msra.mxu1 %v16085_v3 }
 0x84f   : > { %11490 = vmatprep.subr.bf16.mxu1 %v16089_v36 }
 0x852   : > { %11492 = vmatpush3.bf16.msra.mxu1 %v16091_v38 }
 0x853   : > { %11494 = vmatprep.subr.bf16.mxu1 %v16095_v26 }
 0x856   : > { %11496 = vmatpush3.bf16.msra.mxu1 %v16097_v28 }
 0x857   : > { %11498 = vmatprep.subr.bf16.mxu1 %v16101_v23 }
 0x85a   : > { %11500 = vmatpush3.bf16.msra.mxu1 %v16103_v56 }
 0x85b   : > { %11534 = vmatprep.subr.bf16.mxu1 %v11533_v63  ;;  %v7287_v63 = vld [vmem:[#allocation25 + $0x3a8] sm:$0xff] }
 0x910   : > { %v6922_v25 = vpop.f32.mrb[2].mxu1 }
 0x911   : > { %v6933_v43 = vmul.f32 %v15916_v1, %v6922_v25  ;;  %v6924_v10 = vpop.f32.mrb[3].mxu1  ;;  %v7166_v25 = vld [vmem:[#allocation25 + $0x220] sm:$0xff] }
 0x912   : > { %v6934_v57 = vmul.f32 %v15916_v1, %v6924_v10  ;;  %v7181_v1 = vld [vmem:[#allocation25 + $0x298] sm:$0xff]  ;;  %v11541_v10 = vpack.c.bf16 %v7183_v50, %v7182_v62  ;;  %v7188_v50 = vld [vmem:[#allocation25 + $0x2d0] sm:$0xff] }
 0x913   : > { %v6941_v32 = vadd.f32 %v15918_v11, %v6933_v43  ;;  %v11537_v15 = vpack.c.bf16 %v7181_v1, %v7180_v13  ;;  %v7167_v43 = vld [vmem:[#allocation25 + $0x228] sm:$0xff]  ;;  %v7272_v13 = vld [vmem:[#allocation25 + $0x330] sm:$0xff]  ;;  %v7273_v1 = vld [vmem:[#allocation25 + $0x338] sm:$0xff] }
 0x914   : > { %v6942_v24 = vadd.f32 %v15918_v11, %v6934_v57  ;;  %v11567_v11 = vpack.c.bf16 %v7267_v29, %v7266_v14  ;;  %v11573_v57 = vpack.c.bf16 %v7287_v63, %v7286_v44  ;;  %v11579_v33 = vpack.c.bf16 %v7273_v1, %v7272_v13  ;;  %v7189_v44 = vld [vmem:[#allocation25 + $0x2d8] sm:$0xff]  ;;  %v7292_v63 = vld [vmem:[#allocation25 + $0x3d0] sm:$0xff]  ;;  %v7278_v1 = vld [vmem:[#allocation25 + $0x360] sm:$0xff] }
 0x915   : > { %v10856_v59 = vmul.f32 -1.442695, %v6941_v32  ;;  %v7270_v32 = vld [vmem:[#allocation25 + $0x320] sm:$0xff] }
 0x916   : > { %v10857_v58 = vmul.f32 -1.442695, %v6942_v24  ;;  %v7271_v24 = vld [vmem:[#allocation25 + $0x328] sm:$0xff] }
 0x917   : > { %12274 = vpow2.f32 %v10856_v59  ;;  %v7184_v59 = vld [vmem:[#allocation25 + $0x2b0] sm:$0xff] }
 0x918   : > { %12276 = vpow2.f32 %v10857_v58  ;;  %v7185_v58 = vld [vmem:[#allocation25 + $0x2b8] sm:$0xff] }
 0x919   : > { %v11545_v14 = vpack.c.bf16 %v7185_v58, %v7184_v59  ;;  %v7277_v59 = vld [vmem:[#allocation25 + $0x358] sm:$0xff]  ;;  %v7190_v58 = vld [vmem:[#allocation25 + $0x2e0] sm:$0xff] }
 0x921   : > { %v12275_v37 = vpop.eup %12274 }
 0x922   : > { %v12277_v48 = vpop.eup %12276  ;;  %v6949_v21 = vadd.f32 1.0, %v12275_v37  ;;  %v7288_v37 = vld [vmem:[#allocation25 + $0x3b0] sm:$0xff] }
 0x923   : > { %v6950_v7 = vadd.f32 1.0, %v12277_v48  ;;  %v7289_v48 = vld [vmem:[#allocation25 + $0x3b8] sm:$0xff] }
 0x924   : > { %v11577_v29 = vpack.c.bf16 %v7289_v48, %v7288_v37  ;;  %v7191_v37 = vld [vmem:[#allocation25 + $0x2e8] sm:$0xff]  ;;  %v7294_v48 = vld [vmem:[#allocation25 + $0x3e0] sm:$0xff] }
 0x925   : > { %12278 = vrcp.f32 %v6950_v7  ;;  %v11575_v7 = vpack.c.bf16 %v7271_v24, %v7270_v32  ;;  %v7276_v24 = vld [vmem:[#allocation25 + $0x350] sm:$0xff] }
 0x926   : > { %12280 = vrcp.f32 %v6949_v21  ;;  %v11543_v21 = vpack.c.bf16 %v7167_v43, %v7166_v25  ;;  %v7172_v43 = vld [vmem:[#allocation25 + $0x250] sm:$0xff]  ;;  %v11587_v6 = vpack.c.bf16 %v7277_v59, %v7276_v24 }
 0x92f   : > { %v12279_v61 = vpop.eup %12278 }
 0x930   : > { %v16111_v30 = vpop.eup %12280  ;;  %7051 = vmatprep.mubr.f32.mxu1 %v12279_v61  ;;  %7154 = vmatprep.mubr.f32.mxu0 %v12279_v61 }
 0x931   : > { %7052 = vmatmul.mubr.f32.vlgmr.msra.gmra.mrb[4].mxu1 %v16111_v30  ;;  %7155 = vmatmul.mubr.f32.vlgmr.msra.gmra.mrb[4].mxu0 %v16111_v30 }
 0x932   : > { %11536 = vmatpush3.bf16.msra.mxu1 %v11535_v47  ;;  %11568 = vmatpush3.bf16.msra.mxu0 %v11567_v11  ;;  %v7290_v47 = vld [vmem:[#allocation25 + $0x3c0] sm:$0xff]  ;;  %v7291_v11 = vld [vmem:[#allocation25 + $0x3c8] sm:$0xff] }
 0x933   : > { %7258 = vmatprep.mubr.f32.mxu1 %v12279_v61  ;;  %7362 = vmatprep.mubr.f32.mxu0 %v12279_v61  ;;  %v7170_v61 = vld [vmem:[#allocation25 + $0x240] sm:$0xff]  ;;  %v11581_v62 = vpack.c.bf16 %v7291_v11, %v7290_v47  ;;  %v7193_v47 = vld [vmem:[#allocation25 + $0x2f8] sm:$0xff]  ;;  %v7296_v11 = vld [vmem:[#allocation25 + $0x3f0] sm:$0xff] }
 0x934   : > { %11538 = vmatprep.subr.bf16.mxu1 %v11537_v15  ;;  %11570 = vmatprep.subr.bf16.mxu0 %v11569_v17  ;;  %v7274_v15 = vld [vmem:[#allocation25 + $0x340] sm:$0xff]  ;;  %v7275_v17 = vld [vmem:[#allocation25 + $0x348] sm:$0xff] }
 0x935   : > { %v11583_v25 = vpack.c.bf16 %v7275_v17, %v7274_v15  ;;  %v7177_v15 = vld [vmem:[#allocation25 + $0x278] sm:$0xff]  ;;  %v7280_v17 = vld [vmem:[#allocation25 + $0x370] sm:$0xff] }
 0x936   : > { %11540 = vmatpush3.bf16.msra.mxu1 %v11539_v18  ;;  %11572 = vmatpush3.bf16.msra.mxu0 %v11571_v41  ;;  %v7293_v18 = vld [vmem:[#allocation25 + $0x3d8] sm:$0xff]  ;;  %v11551_v41 = vpack.c.bf16 %v7171_v8, %v7170_v61  ;;  %v11591_v61 = vpack.c.bf16 %v7279_v12, %v7278_v1  ;;  %v7176_v8 = vld [vmem:[#allocation25 + $0x270] sm:$0xff] }
 0x937   : > { %11542 = vmatprep.subr.bf16.mxu1 %v11541_v10  ;;  %11574 = vmatprep.subr.bf16.mxu0 %v11573_v57  ;;  %v7173_v10 = vld [vmem:[#allocation25 + $0x258] sm:$0xff]  ;;  %v11553_v57 = vpack.c.bf16 %v7189_v44, %v7188_v50  ;;  %v11585_v32 = vpack.c.bf16 %v7293_v18, %v7292_v63  ;;  %v11563_v44 = vpack.c.bf16 %v7177_v15, %v7176_v8  ;;  %v10858_v18 = vld.sshfl [vmem:[#allocation21] sm:$0x11 pattern:$0x75316420]  ;;  %v7650_v15 = vpop.permute.xlu0 %7649 }
 0x938   : > { %v7281_v50 = vld [vmem:[#allocation25 + $0x378] sm:$0xff] }
 0x939   : > { %v11595_v63 = vpack.c.bf16 %v7281_v50, %v7280_v17 }
 0x93a   : > { %11544 = vmatpush3.bf16.msra.mxu1 %v11543_v21  ;;  %11576 = vmatpush3.bf16.msra.mxu0 %v11575_v7  ;;  %v7295_v21 = vld [vmem:[#allocation25 + $0x3e8] sm:$0xff]  ;;  %v11555_v7 = vpack.c.bf16 %v7173_v10, %v7172_v43 }
 0x93b   : > { %11546 = vmatprep.subr.bf16.mxu1 %v11545_v14  ;;  %11578 = vmatprep.subr.bf16.mxu0 %v11577_v29  ;;  %v7175_v14 = vld [vmem:[#allocation25 + $0x268] sm:$0xff]  ;;  %v11557_v29 = vpack.c.bf16 %v7191_v37, %v7190_v58  ;;  %v11589_v13 = vpack.c.bf16 %v7295_v21, %v7294_v48 }
 0x93e   : > { %11548 = vmatpush3.bf16.msra.mxu1 %v11547_v19  ;;  %11580 = vmatpush3.bf16.msra.mxu0 %v11579_v33  ;;  %v7297_v19 = vld [vmem:[#allocation25 + $0x3f8] sm:$0xff]  ;;  %v11559_v33 = vpack.c.bf16 %v7175_v14, %v7174_v49 }
 0x93f   : > { %11550 = vmatprep.subr.bf16.mxu1 %v11549_v5  ;;  %11582 = vmatprep.subr.bf16.mxu0 %v11581_v62  ;;  %v11561_v5 = vpack.c.bf16 %v7193_v47, %v7192_v40  ;;  %v11593_v62 = vpack.c.bf16 %v7297_v19, %v7296_v11 }
 0x942   : > { %11552 = vmatpush3.bf16.msra.mxu1 %v11551_v41  ;;  %11584 = vmatpush3.bf16.msra.mxu0 %v11583_v25  ;;  %v7478_v41 = vcombine.high %v10858_v18, %v10858_v18  ;;  %v16676_v25 = vld [vmem:[#allocation139_spill] sm:$0xff] }
 0x943   : > { %11554 = vmatprep.subr.bf16.mxu1 %v11553_v57  ;;  %11586 = vmatprep.subr.bf16.mxu0 %v11585_v32  ;;  %v7485_v43 = vrot.slane %v10858_v18, %v16676_v25 }
 0x944   : > { %v7492_v10 = vrot.slane %v7478_v41, %v16676_v25 }
 0x945   : > { %v7496_v57 = vrot.slane %v7485_v43, %v14410_v2 }
 0x946   : > { %11556 = vmatpush3.bf16.msra.mxu1 %v11555_v7  ;;  %11588 = vmatpush3.bf16.msra.mxu0 %v11587_v6  ;;  %v7500_v32 = vrot.slane %v7492_v10, %v14410_v2  ;;  %v7781_v6 = vld [vmem:[#allocation30 + $0x10] sm:$0xff] }
 0x947   : > { %11558 = vmatprep.subr.bf16.mxu1 %v11557_v29  ;;  %11590 = vmatprep.subr.bf16.mxu0 %v11589_v13 }
 0x94a   : > { %11560 = vmatpush3.bf16.msra.mxu1 %v11559_v33  ;;  %11592 = vmatpush3.bf16.msra.mxu0 %v11591_v61 }
 0x94b   : > { %11562 = vmatprep.subr.bf16.mxu1 %v11561_v5  ;;  %11594 = vmatprep.subr.bf16.mxu0 %v11593_v62  ;;  %v10864_v5 = vld.sshfl [vmem:[#allocation28] sm:$0x11 pattern:$0x75316420] }
 0x94c   : > { %v7694_v62 = vcombine.high %v10864_v5, %v10864_v5  ;;  %v7701_v50 = vrot.slane %v10864_v5, %v16676_v25 }
 0x94e   : > { %11564 = vmatpush3.bf16.msra.mxu1 %v11563_v44  ;;  %11596 = vmatpush3.bf16.msra.mxu0 %v11595_v63  ;;  %v7708_v44 = vrot.slane %v7694_v62, %v16676_v25  ;;  %v7990_v62 = vld [vmem:[%s16677_s1 + $0x20] sm:$0xff] }
 0x94f   : > { %11598 = vmatprep.subr.bf16.mxu1 %v16059_v20  ;;  %11260 = vmatprep.subr.mxu0 %v16646_v22 }
 0x951   : > { %7259 = vmatmul.mubr.f32.vlgmr.msra.gmra.mrb[6].mxu1 %v16111_v30  ;;  %7363 = vmatmul.mubr.f32.vlgmr.msra.gmra.mrb[6].mxu0 %v16111_v30  ;;  %v7562_v30 = vld [vmem:[#allocation27] sm:$0xff] }
 0x952   : > { %11600 = vmatpush3.bf16.msra.mxu1 %v16061_v4  ;;  %7433 = vmatprep.mubr.f32.mxu1 %v16024_v52 }
 0x953   : > { %11602 = vmatprep.subr.bf16.mxu1 %v16065_v16  ;;  %11262 = vmatprep.mubr.msk.f32.mxu0 %vm13525_vm7, %v16646_v22 }
 0x956   : > { %11604 = vmatpush3.bf16.msra.mxu1 %v16067_v35 }
 0x957   : > { %11606 = vmatprep.subr.bf16.mxu1 %v16071_v55 }
 0x95a   : > { %11608 = vmatpush3.bf16.msra.mxu1 %v16073_v54 }
 0x95b   : > { %11610 = vmatprep.subr.bf16.mxu1 %v16077_v0 }
 0x95e   : > { %11612 = vmatpush3.bf16.msra.mxu1 %v16079_v9 }
 0x95f   : > { %11614 = vmatprep.subr.bf16.mxu1 %v16083_v51 }
 0x962   : > { %11616 = vmatpush3.bf16.msra.mxu1 %v16085_v3 }
 0x963   : > { %11618 = vmatprep.subr.bf16.mxu1 %v16089_v36 }
 0x966   : > { %11620 = vmatpush3.bf16.msra.mxu1 %v16091_v38 }
 0x967   : > { %11622 = vmatprep.subr.bf16.mxu1 %v16095_v26 }
 0x96a   : > { %11624 = vmatpush3.bf16.msra.mxu1 %v16097_v28 }
 0x96b   : > { %11626 = vmatprep.subr.bf16.mxu1 %v16101_v23 }
 0x96e   : > { %11628 = vmatpush3.bf16.msra.mxu1 %v16103_v56 }
 0x971   : > { %7434 = vmatmul.mubr.f32.vlgmr.msra.gmra.mrb[8].mxu1 %v16017_v39 }
 0xa04   : > { %v11005_v52 = vpop.f32.mrb[4].mxu1  ;;  %v11040_v20 = vpop.f32.mrb[4].mxu0 }
 0xa05   : > { %v11006_v4 = vpop.f32.mrb[5].mxu1  ;;  %v11041_v16 = vpop.f32.mrb[5].mxu0 }
 0xa06   : > { %v11007_v35 = vadd.f32 %v11006_v4, %v11005_v52  ;;  %v11042_v55 = vadd.f32 %v11041_v16, %v11040_v20  ;;  %v7716_v4 = vrot.slane %v7708_v44, %v14410_v2  ;;  %v7993_v44 = vld [vmem:[%s16677_s1 + $0x38] sm:$0xff] }
 0xa08   : > { %v7160_v54 = vmax.f32 %v11007_v35, %v11042_v55  ;;  %v7670_v35 = vpop.permute.xlu0 %7669 }
 0xa24   : > { %v11075_v0 = vpop.f32.mrb[6].mxu1  ;;  %v11110_v9 = vpop.f32.mrb[6].mxu0 }
 0xa25   : > { %v11076_v51 = vpop.f32.mrb[7].mxu1  ;;  %v11111_v3 = vpop.f32.mrb[7].mxu0 }
 0xa26   : > { %v11077_v36 = vadd.f32 %v11076_v51, %v11075_v0  ;;  %v11112_v38 = vadd.f32 %v11111_v3, %v11110_v9 }
 0xa28   : > { %v7264_v26 = vmax.f32 %v7160_v54, %v11077_v36  ;;  %v7685_v36 = vpop.permute.xlu0 %7684 }
 0xa2a   : > { %v7368_v28 = vmax.f32 %v7264_v26, %v11112_v38 }
 0xa2c   : > { %v7503_v24 = vadd.f32 %v7496_v57, %v7368_v28  ;;  %v7504_v59 = vadd.f32 %v7500_v32, %v7368_v28  ;;  %v7774_v43 = vpop.permute.xlu0 %7773 }
 0xa2e   : > { %v7505_v58 = vmul.f32 %v7503_v24, %v15920_v34  ;;  %v7506_v37 = vmul.f32 %v7504_v59, %v15922_v27 }
 0xa30   : > { %v7507_v48 = vadd.f32 %v7505_v58, %v15926_v53  ;;  %v7508_v21 = vadd.f32 %v7506_v37, %v15928_v31  ;;  %v7751_v24 = vpop.permute.xlu0 %7750 }
 0xa32   : > { %v10859_v7 = vmul.f32 -1.442695, %v7507_v48  ;;  %v10860_v49 = vmul.f32 -1.442695, %v7508_v21 }
 0xa34   : > { %12282 = vpow2.f32 %v10859_v7 }
 0xa35   : > { %12284 = vpow2.f32 %v10860_v49 }
 0xa3e   : > { %v12283_v14 = vpop.eup %12282 }
 0xa3f   : > { %v12285_v29 = vpop.eup %12284  ;;  %v7515_v13 = vadd.f32 1.0, %v12283_v14 }
 0xa40   : > { %v7516_v1 = vadd.f32 1.0, %v12285_v29  ;;  %v7782_v29 = vld [vmem:[#allocation30 + $0x18] sm:$0xff] }
 0xa41   : > { %12286 = vrcp.f32 %v7515_v13 }
 0xa42   : > { %12288 = vrcp.f32 %v7516_v1  ;;  %v7757_v1 = vld [vmem:[#allocation30] sm:$0xff] }
 0xa44   : > { %v11145_v39 = vpop.f32.mrb[8].mxu1 }
 0xa45   : > { %v11146_v23 = vpop.f32.mrb[9].mxu1 }
 0xa46   : > { %v11147_v56 = vadd.f32 %v11146_v23, %v11145_v39 }
 0xa48   : > { %11261 = vmatpush3.msk.msra.mxu0 %vm6218_vm2, %v11147_v56 }
 0xa49   : > { %11263 = vmatmul.mubr.msk.f32.vlgmr.msra.gmra.mrb[8].mxu0 %vm6766_vm6, %v7562_v30 }
 0xa4a   : > { %11267 = vmatprep.mubr.msk.f32.mxu0 %vm7783_vm8, %v7781_v6 }
 0xa4b   : > { %v12287_v34 = vpop.eup %12286 }
 0xa4c   : > { %v12289_v27 = vpop.eup %12288  ;;  %v7536_v53 = vmul.f32 %v12287_v34, %v15936_v60  ;;  %v7643_v60 = vpop.permute.xlu1 %7642  ;;  %v7758_v34 = vld [vmem:[#allocation30 + $0x8] sm:$0xff] }
 0xa4d   : > { %v7537_v31 = vmul.f32 %v12289_v27, %v15940_v42  ;;  %v7986_v27 = vld [vmem:[%s16677_s1] sm:$0xff] }
 0xa4e   : > { %v7539_v12 = vsel %vm7538_vm9, %v7536_v53, 0.0  ;;  %v7987_v53 = vld [vmem:[%s16677_s1 + $0x8] sm:$0xff] }
 0xa4f   : > { %v7540_v40 = vsel %vm7538_vm9, %v7537_v31, 0.0  ;;  %v10875_v31 = vld [vmem:[%s16677_s1 + $0x40] sm:$0xff] }
 0xa50   : > { %v7541_v47 = vadd.f32 %v7540_v40, %v7539_v12  ;;  %v7663_v16 = vpop.permute.xlu1 %7662  ;;  %v16173_v12 = vpack.c.bf16 %v7987_v53, %v7986_v27  ;;  %v10876_v40 = vld [vmem:[%s16677_s1 + $0x48] sm:$0xff]  ;;  %v10891_v27 = vld [vmem:[%s16677_s1 + $0xb0] sm:$0xff]  ;;  %v10892_v53 = vld [vmem:[%s16677_s1 + $0xb8] sm:$0xff] }
 0xa52   : > { %v7548_v11 = vmul.f32 %v15933_v46, %v7541_v47  ;;  %v11645_v47 = vpack.c.bf16 %v10876_v40, %v10875_v31  ;;  %v10901_v31 = vld [vmem:[%s16677_s1 + $0xf0] sm:$0xff]  ;;  %v10902_v40 = vld [vmem:[%s16677_s1 + $0xf8] sm:$0xff] }
 0xa54   : > { %v7555_v19 = vadd.f32 %v15942_v45, %v7548_v11  ;;  %v7712_v45 = vrot.slane %v7701_v50, %v14410_v2  ;;  %v7678_v3 = vpop.permute.xlu1 %7677  ;;  %11646 = vmatprep.subr.bf16.mxu1 %v11645_v47  ;;  %v7988_v11 = vld [vmem:[%s16677_s1 + $0x10] sm:$0xff] }
 0xa55   : > { %11648 = vmatpush3.bf16.msra.mxu1 %v11645_v47  ;;  %v7992_v50 = vld [vmem:[%s16677_s1 + $0x30] sm:$0xff]  ;;  %v11673_v47 = vpack.c.bf16 %v10892_v53, %v10891_v27 }
 0xa56   : > { %v10861_v33 = vmul.f32 -1.442695, %v7555_v19  ;;  %v7989_v19 = vld [vmem:[%s16677_s1 + $0x18] sm:$0xff] }
 0xa58   : > { %12290 = vpow2.f32 %v10861_v33  ;;  %v7767_v41 = vpop.permute.xlu1 %7766  ;;  %v10877_v33 = vld [vmem:[%s16677_s1 + $0x50] sm:$0xff] }
 0xa5c   : > { %v7744_v57 = vpop.permute.xlu1 %7743 }
 0xa62   : > { %v12291_v61 = vpop.eup %12290 }
 0xa63   : > { %v7559_v8 = vadd.f32 1.0, %v12291_v61  ;;  %v16181_v61 = vpack.c.bf16 %v7989_v19, %v7988_v11  ;;  %v11689_v11 = vpack.c.bf16 %v10902_v40, %v10901_v31  ;;  %v13526_v19 = vmov 0.0|0.0  }
 0xa65   : > { %12292 = vrcp.f32 %v7559_v8  ;;  %v10878_v8 = vld [vmem:[%s16677_s1 + $0x58] sm:$0xff] }
 0xa66   : > { %v11649_v5 = vpack.c.bf16 %v10878_v8, %v10877_v33  ;;  %v8596_v33 = vld [vmem:[#allocation39] sm:$0xff] }
 0xa68   : > { %11650 = vmatprep.subr.bf16.mxu1 %v11649_v5 }
 0xa69   : > { %11652 = vmatpush3.bf16.msra.mxu1 %v11649_v5 }
 0xa6f   : > { %v12293_v46 = vpop.eup %12292 }
 0xb1c   : > { %v7635_v42 = vpop.f32.mrb[8].mxu0 }
 0xb1d   : > { %v7645_v17 = vmul.f32 %v7643_v60, %v7635_v42  ;;  %v11264_v63 = vpop.f32.mrb[9].mxu0  ;;  %v7991_v60 = vld [vmem:[%s16677_s1 + $0x28] sm:$0xff] }
 0xb1e   : > { %v16189_v42 = vpack.c.bf16 %v7991_v60, %v7990_v62 }
 0xb1f   : > { %v7652_v52 = vadd.f32 %v7650_v15, %v7645_v17  ;;  %v10879_v15 = vld [vmem:[%s16677_s1 + $0x60] sm:$0xff]  ;;  %v10880_v17 = vld [vmem:[%s16677_s1 + $0x68] sm:$0xff] }
 0xb20   : > { %v11653_v63 = vpack.c.bf16 %v10880_v17, %v10879_v15 }
 0xb21   : > { %v7653_v20 = vadd.f32 %v12293_v46, %v7652_v52  ;;  %v16194_v52 = vpack.c.bf16 %v7993_v44, %v7992_v50  ;;  %v10881_v46 = vld [vmem:[%s16677_s1 + $0x70] sm:$0xff] }
 0xb22   : > { %11654 = vmatprep.subr.bf16.mxu1 %v11653_v63 }
 0xb23   : > { %v16159_v55 = vmax.f32 %v7653_v20, 0.0  ;;  %v10882_v20 = vld [vmem:[%s16677_s1 + $0x78] sm:$0xff]  ;;  %11656 = vmatpush3.bf16.msra.mxu1 %v11653_v63 }
 0xb25   : > { %v7719_v54 = vadd.f32 %v7712_v45, %v16159_v55  ;;  %v7720_v0 = vadd.f32 %v7716_v4, %v16159_v55  ;;  %v11657_v45 = vpack.c.bf16 %v10882_v20, %v10881_v46  ;;  %v10885_v4 = vld [vmem:[%s16677_s1 + $0x80] sm:$0xff] }
 0xb26   : > { %v8597_v20 = vld [vmem:[#allocation39 + $0x8] sm:$0xff] }
 0xb27   : > { %v7721_v9 = vmul.f32 %v7719_v54, %v7663_v16  ;;  %v7722_v51 = vmul.f32 %v7720_v0, %v7670_v35  ;;  %11658 = vmatprep.subr.bf16.mxu1 %v11657_v45  ;;  %v10886_v16 = vld [vmem:[%s16677_s1 + $0x88] sm:$0xff]  ;;  %v10895_v35 = vld [vmem:[%s16677_s1 + $0xc0] sm:$0xff] }
 0xb28   : > { %11660 = vmatpush3.bf16.msra.mxu1 %v11657_v45  ;;  %v11661_v54 = vpack.c.bf16 %v10886_v16, %v10885_v4  ;;  %v10896_v0 = vld [vmem:[%s16677_s1 + $0xc8] sm:$0xff]  ;;  %v10906_v45 = vld.sshfl [vmem:[#allocation34] sm:$0x11 pattern:$0x75316420] }
 0xb29   : > { %v7723_v38 = vadd.f32 %v7721_v9, %v7678_v3  ;;  %v7724_v26 = vadd.f32 %v7722_v51, %v7685_v36  ;;  %v11677_v9 = vpack.c.bf16 %v10896_v0, %v10895_v35  ;;  %v7956_v51 = vpop.permute.xlu0 %7955  ;;  %v7951_v3 = vpop.permute.xlu1 %7950  ;;  %v8461_v4 = vcombine.high %v10906_v45, %v10906_v45 }
 0xb2b   : > { %v10865_v28 = vmul.f32 -1.442695, %v7723_v38  ;;  %v10866_v39 = vmul.f32 -1.442695, %v7724_v26  ;;  %11678 = vmatprep.subr.bf16.mxu1 %v11677_v9  ;;  %v8475_v0 = vrot.slane %v8461_v4, %v16676_v25 }
 0xb2d   : > { %12294 = vpow2.f32 %v10865_v28  ;;  %v7970_v28 = vpop.permute.xlu0 %7969 }
 0xb2e   : > { %12296 = vpow2.f32 %v10866_v39 }
 0xb31   : > { %v8418_v16 = vpop.permute.xlu0 %8417 }
 0xb37   : > { %v12295_v23 = vpop.eup %12294 }
 0xb38   : > { %v12297_v56 = vpop.eup %12296  ;;  %v7731_v30 = vadd.f32 1.0, %v12295_v23  ;;  %v7965_v23 = vpop.permute.xlu1 %7964 }
 0xb39   : > { %v7732_v18 = vadd.f32 1.0, %v12297_v56 }
 0xb3a   : > { %12298 = vrcp.f32 %v7731_v30 }
 0xb3b   : > { %12300 = vrcp.f32 %v7732_v18 }
 0xb3c   : > { %v8414_v35 = vpop.permute.xlu1 %8413 }
 0xb44   : > { %v12299_v10 = vpop.eup %12298 }
 0xb45   : > { %v12301_v32 = vpop.eup %12300  ;;  %v7775_v59 = vmul.f32 %v12299_v10, %v7767_v41  ;;  %v7752_v58 = vmul.f32 %v12299_v10, %v7744_v57 }
 0xb46   : > { %v7776_v37 = vmul.f32 %v12301_v32, %v7774_v43  ;;  %v7753_v48 = vmul.f32 %v12301_v32, %v7751_v24  ;;  %v10887_v24 = vld [vmem:[%s16677_s1 + $0x90] sm:$0xff] }
 0xb47   : > { %v7777_v21 = vsel %vm7538_vm9, %v7775_v59, 0.0  ;;  %v7754_v6 = vsel %vm7538_vm9, %v7752_v58, 0.0  ;;  %v10888_v59 = vld [vmem:[%s16677_s1 + $0x98] sm:$0xff]  ;;  %v10897_v58 = vld [vmem:[%s16677_s1 + $0xd0] sm:$0xff] }
 0xb48   : > { %v7778_v7 = vsel %vm7538_vm9, %v7776_v37, 0.0  ;;  %v7755_v49 = vsel %vm7538_vm9, %v7753_v48, 0.0  ;;  %v10898_v37 = vld [vmem:[%s16677_s1 + $0xd8] sm:$0xff] }
 0xb49   : > { %v7779_v14 = vadd.f32 %v7778_v7, %v7777_v21  ;;  %v7756_v13 = vadd.f32 %v7755_v49, %v7754_v6  ;;  %v10889_v21 = vld [vmem:[%s16677_s1 + $0xa0] sm:$0xff]  ;;  %v11665_v6 = vpack.c.bf16 %v10888_v59, %v10887_v24  ;;  %v11681_v49 = vpack.c.bf16 %v10898_v37, %v10897_v58 }
 0xb4b   : > { %11265 = vmatprep.subr.mxu0 %v7779_v14 }
 0xb4c   : > { %11266 = vmatpush3.msra.mxu0 %v7779_v14  ;;  %v10890_v14 = vld [vmem:[%s16677_s1 + $0xa8] sm:$0xff] }
 0xb4d   : > { %11268 = vmatmul.mubr.msk.f32.vlgmr.msra.gmra.mrb[10].mxu0 %vm7783_vm8, %v7782_v29  ;;  %11270 = vmatprep.subr.mxu0 %v7756_v13  ;;  %v10899_v29 = vld [vmem:[%s16677_s1 + $0xe0] sm:$0xff] }
 0xb4e   : > { %11271 = vmatpush3.msra.mxu0 %v7756_v13  ;;  %11272 = vmatprep.mubr.msk.f32.mxu0 %vm7783_vm8, %v7757_v1  ;;  %v10900_v13 = vld [vmem:[%s16677_s1 + $0xe8] sm:$0xff]  ;;  %v11669_v1 = vpack.c.bf16 %v10890_v14, %v10889_v21  ;;  %s10972_s1 = sshll.u32 %s16679_s28, 4 }
 0xb4f   : > { %11630 = vmatprep.subr.bf16.mxu0 %v16173_v12  ;;  %s2688_s2 = scalar_lea.vmem %s13915_s8, %s10972_s1 }
 0xb55   : > { %11273 = vmatmul.mubr.msk.f32.vlgmr.msra.gmra.mrb[10].mxu0 %vm7783_vm8, %v7758_v34  ;;  %v11685_v34 = vpack.c.bf16 %v10900_v13, %v10899_v29 }
 0xb56   : > { %11632 = vmatpush3.bf16.msra.mxu0 %v16173_v12 }
 0xb57   : > { %11634 = vmatprep.subr.bf16.mxu0 %v16181_v61 }
 0xb5a   : > { %11636 = vmatpush3.bf16.msra.mxu0 %v16181_v61 }
 0xb5b   : > { %11638 = vmatprep.subr.bf16.mxu0 %v16189_v42 }
 0xb5e   : > { %11640 = vmatpush3.bf16.msra.mxu0 %v16189_v42 }
 0xb5f   : > { %11642 = vmatprep.subr.bf16.mxu0 %v16194_v52 }
 0xb62   : > { %11644 = vmatpush3.bf16.msra.mxu0 %v16194_v52 }
 0xb63   : > { %11662 = vmatprep.subr.bf16.mxu0 %v11661_v54 }
 0xc28   : > { %v11274_v36 = vpop.f32.mrb[10].mxu0 }
 0xc29   : > { %v7959_v38 = vmul.f32 %v11274_v36, %v7956_v51  ;;  %v7937_v26 = vpop.f32.mrb[11].mxu0  ;;  %v8425_v36 = vpop.permute.xlu1 %8424 }
 0xc2a   : > { %v7958_v39 = vmul.f32 %v7951_v3, %v7937_v26  ;;  %v8483_v3 = vrot.slane %v8475_v0, %v14410_v2 }
 0xc2b   : > { %v7973_v56 = vadd.f32 %v7970_v28, %v7959_v38 }
 0xc2c   : > { %v7972_v30 = vadd.f32 %v7965_v23, %v7958_v39 }
 0xc2d   : > { %v10872_v18 = vmul.f32 -1.442695, %v7973_v56  ;;  %v8437_v56 = vpop.permute.xlu1 %8436 }
 0xc2e   : > { %v10871_v41 = vmul.f32 -1.442695, %v7972_v30 }
 0xc2f   : > { %12302 = vpow2.f32 %v10872_v18 }
 0xc30   : > { %12304 = vpow2.f32 %v10871_v41 }
 0xc31   : > { %v8448_v24 = vpop.permute.xlu1 %8447 }
 0xc35   : > { %v8561_v40 = vpop.permute.xlu1 %8560 }
 0xc39   : > { %v12303_v43 = vpop.eup %12302 }
 0xc3a   : > { %v12305_v10 = vpop.eup %12304  ;;  %v7981_v57 = vadd.f32 1.0, %v12303_v43 }
 0xc3b   : > { %v7980_v32 = vadd.f32 1.0, %v12305_v10 }
 0xc3d   : > { %12306 = vrcp.f32 %v7980_v32 }
 0xc3e   : > { %12308 = vrcp.f32 %v7981_v57 }
 0xc47   : > { %v12307_v48 = vpop.eup %12306 }
 0xc48   : > { %v12309_v7 = vpop.eup %12308  ;;  %11291 = vmatprep.mubr.msk.f32.mxu0 %vm7538_vm9, %v12307_v48  ;;  %11310 = vmatprep.mubr.msk.f32.mxu1 %vm7538_vm9, %v12307_v48 }
 0xc49   : > { %11292 = vmatmul.mubr.msk.f32.vlgmr.msra.gmra.mrb[12].mxu0 %vm7538_vm9, %v12309_v7  ;;  %11311 = vmatmul.mubr.msk.f32.vlgmr.msra.gmra.mrb[10].mxu1 %vm7538_vm9, %v12309_v7 }
 0xc4a   : > { %11664 = vmatpush3.bf16.msra.mxu0 %v11661_v54  ;;  %11680 = vmatpush3.bf16.msra.mxu1 %v11677_v9  ;;  %v8468_v54 = vrot.slane %v10906_v45, %v16676_v25  ;;  %v8429_v9 = vpop.permute.xlu0 %8428 }
 0xc4b   : > { %11329 = vmatprep.mubr.msk.f32.mxu0 %vm7538_vm9, %v12307_v48  ;;  %11348 = vmatprep.mubr.msk.f32.mxu1 %vm7538_vm9, %v12307_v48 }
 0xc4c   : > { %11666 = vmatprep.subr.bf16.mxu0 %v11665_v6  ;;  %11682 = vmatprep.subr.bf16.mxu1 %v11681_v49  ;;  %v8479_v51 = vrot.slane %v8468_v54, %v14410_v2 }
 0xc4e   : > { %11668 = vmatpush3.bf16.msra.mxu0 %v11665_v6  ;;  %11684 = vmatpush3.bf16.msra.mxu1 %v11681_v49  ;;  %v8441_v28 = vpop.permute.xlu0 %8440  ;;  %v8899_v6 = vld [vmem:[#allocation42 + $0x20] sm:$0xff] }
 0xc4f   : > { %11670 = vmatprep.subr.bf16.mxu0 %v11669_v1  ;;  %11686 = vmatprep.subr.bf16.mxu1 %v11685_v34 }
 0xc52   : > { %11672 = vmatpush3.bf16.msra.mxu0 %v11669_v1  ;;  %11688 = vmatpush3.bf16.msra.mxu1 %v11685_v34  ;;  %v8452_v10 = vpop.permute.xlu0 %8451 }
 0xc53   : > { %11674 = vmatprep.subr.bf16.mxu0 %v11673_v47  ;;  %11690 = vmatprep.subr.bf16.mxu1 %v11689_v11 }
 0xc56   : > { %11676 = vmatpush3.bf16.msra.mxu0 %v11673_v47  ;;  %11692 = vmatpush3.bf16.msra.mxu1 %v11689_v11  ;;  %v8566_v31 = vpop.permute.xlu0 %8565  ;;  %v8529_v11 = vpop.permute.xlu1 %8528 }
 0xc57   : > { %11693 = vmatprep.subr.bf16.mxu0 %v13526_v19 }
 0xc59   : > { %11330 = vmatmul.mubr.msk.f32.vlgmr.msra.gmra.mrb[14].mxu0 %vm7538_vm9, %v12309_v7  ;;  %11349 = vmatmul.mubr.msk.f32.vlgmr.msra.gmra.mrb[12].mxu1 %vm7538_vm9, %v12309_v7 }
 0xc5a   : > { %11695 = vmatpush3.bf16.msra.mxu0 %v16173_v12  ;;  %11367 = vmatprep.mubr.msk.f32.mxu0 %vm13525_vm7, %v16646_v22  ;;  %v8533_v47 = vpop.permute.xlu0 %8532 }
 0xc5b   : > { %11696 = vmatprep.subr.bf16.mxu0 %v13526_v19  ;;  %11372 = vmatprep.mubr.msk.f32.mxu1 %vm7783_vm8, %v8596_v33 }
 0xc5e   : > { %11698 = vmatpush3.bf16.msra.mxu0 %v16181_v61 }
 0xc5f   : > { %11699 = vmatprep.subr.bf16.mxu0 %v13526_v19 }
 0xc62   : > { %11701 = vmatpush3.bf16.msra.mxu0 %v16189_v42 }
 0xc63   : > { %11702 = vmatprep.subr.bf16.mxu0 %v13526_v19 }
 0xc66   : > { %11704 = vmatpush3.bf16.msra.mxu0 %v16194_v52 }
 0xc69   : > { %11368 = vmatmul.mubr.msk.f32.vlgmr.msra.gmra.mrb[16].mxu0 %vm7538_vm9, %v16159_v55 }
 0xd1c   : > { %v11293_v8 = vpop.f32.mrb[12].mxu0  ;;  %v11312_v12 = vpop.f32.mrb[10].mxu1 }
 0xd1d   : > { %v8160_v5 = vmax.f32 %v11293_v8, %v11312_v12  ;;  %v8066_v62 = vpop.f32.mrb[13].mxu0  ;;  %v8150_v22 = vpop.f32.mrb[11].mxu1 }
 0xd1e   : > { %v8159_v60 = vmax.f32 %v8066_v62, %v8150_v22  ;;  %v8540_v62 = vpop.permute.xlu1 %8539 }
 0xd22   : > { %v8575_v45 = vpop.permute.xlu1 %8574 }
 0xd2c   : > { %v11331_v15 = vpop.f32.mrb[14].mxu0  ;;  %v11350_v61 = vpop.f32.mrb[12].mxu1 }
 0xd2d   : > { %v8246_v17 = vmax.f32 %v8160_v5, %v11331_v15  ;;  %v8236_v50 = vpop.f32.mrb[15].mxu0  ;;  %v8322_v42 = vpop.f32.mrb[13].mxu1 }
 0xd2e   : > { %v8245_v44 = vmax.f32 %v8159_v60, %v8236_v50  ;;  %v8544_v5 = vpop.permute.xlu0 %8543 }
 0xd2f   : > { %v8332_v63 = vmax.f32 %v8246_v17, %v11350_v61 }
 0xd30   : > { %v8331_v52 = vmax.f32 %v8245_v44, %v8322_v42 }
 0xd31   : > { %v8487_v38 = vadd.f32 %v8479_v51, %v8332_v63  ;;  %v8489_v26 = vadd.f32 %v8483_v3, %v8332_v63 }
 0xd32   : > { %v8486_v39 = vadd.f32 %v8479_v51, %v8331_v52  ;;  %v8488_v23 = vadd.f32 %v8483_v3, %v8331_v52 }
 0xd33   : > { %v8491_v30 = vmul.f32 %v8487_v38, %v8418_v16  ;;  %v8493_v18 = vmul.f32 %v8489_v26, %v8429_v9  ;;  %v8684_v9 = vpop.permute.xlu1 %8683 }
 0xd34   : > { %v8490_v41 = vmul.f32 %v8486_v39, %v8414_v35  ;;  %v8492_v43 = vmul.f32 %v8488_v23, %v8425_v36  ;;  %v10915_v23 = vld.sshfl [vmem:[#allocation40] sm:$0x11 pattern:$0x75316420] }
 0xd35   : > { %v8495_v57 = vadd.f32 %v8491_v30, %v8441_v28  ;;  %v8497_v32 = vadd.f32 %v8493_v18, %v8452_v10  ;;  %v8766_v30 = vcombine.high %v10915_v23, %v10915_v23 }
 0xd36   : > { %v8494_v59 = vadd.f32 %v8490_v41, %v8437_v56  ;;  %v8496_v58 = vadd.f32 %v8492_v43, %v8448_v24 }
 0xd37   : > { %v10908_v37 = vmul.f32 -1.442695, %v8495_v57  ;;  %v10910_v48 = vmul.f32 -1.442695, %v8497_v32  ;;  %v8698_v38 = vpop.permute.xlu1 %8697  ;;  %v8773_v57 = vrot.slane %v10915_v23, %v16676_v25  ;;  %v8780_v32 = vrot.slane %v8766_v30, %v16676_v25 }
 0xd38   : > { %v10907_v21 = vmul.f32 -1.442695, %v8494_v59  ;;  %v10909_v7 = vmul.f32 -1.442695, %v8496_v58 }
 0xd39   : > { %12310 = vpow2.f32 %v10908_v37 }
 0xd3a   : > { %12312 = vpow2.f32 %v10910_v48 }
 0xd3b   : > { %12314 = vpow2.f32 %v10907_v21  ;;  %v8719_v56 = vpop.permute.xlu1 %8718 }
 0xd3c   : > { %v8402_v46 = vpop.f32.mrb[16].mxu0  ;;  %12316 = vpow2.f32 %v10909_v7 }
 0xd3d   : > { %v11369_v55 = vpop.f32.mrb[17].mxu0  ;;  %11370 = vmatprep.subr.mxu1 %v8402_v46 }
 0xd3e   : > { %11371 = vmatpush3.msra.mxu1 %v8402_v46  ;;  %v8580_v55 = vpop.permute.xlu0 %8579 }
 0xd3f   : > { %11373 = vmatmul.mubr.msk.f32.vlgmr.msra.gmra.mrb[14].mxu1 %vm7783_vm8, %v8597_v20  ;;  %v8730_v43 = vpop.permute.xlu1 %8729 }
 0xd40   : > { %11379 = vmatprep.mubr.msk.f32.mxu1 %vm8549_vm10, %v8899_v6  ;;  %v8784_v6 = vrot.slane %v8773_v57, %v14410_v2 }
 0xd42   : > { %v8689_v0 = vpop.permute.xlu0 %8688 }
 0xd43   : > { %v12311_v49 = vpop.eup %12310 }
 0xd44   : > { %v12313_v14 = vpop.eup %12312  ;;  %v8511_v1 = vadd.f32 1.0, %v12311_v49  ;;  %v8788_v49 = vrot.slane %v8780_v32, %v14410_v2 }
 0xd45   : > { %v12315_v29 = vpop.eup %12314  ;;  %v8513_v34 = vadd.f32 1.0, %v12313_v14 }
 0xd46   : > { %v12317_v13 = vpop.eup %12316  ;;  %v8510_v27 = vadd.f32 1.0, %v12315_v29  ;;  %12318 = vrcp.f32 %v8511_v1  ;;  %v8703_v36 = vpop.permute.xlu0 %8702 }
 0xd47   : > { %v8512_v53 = vadd.f32 1.0, %v12317_v13  ;;  %12320 = vrcp.f32 %v8513_v34  ;;  %v8742_v13 = vpop.permute.xlu1 %8741 }
 0xd48   : > { %12322 = vrcp.f32 %v8510_v27 }
 0xd49   : > { %12324 = vrcp.f32 %v8512_v53 }
 0xd4a   : > { %v8723_v39 = vpop.permute.xlu0 %8722 }
 0xd4e   : > { %v8734_v18 = vpop.permute.xlu0 %8733 }
 0xd50   : > { %v12319_v19 = vpop.eup %12318 }
 0xd51   : > { %v12321_v33 = vpop.eup %12320  ;;  %v8546_v22 = vmul.f32 %v12319_v19, %v8533_v47 }
 0xd52   : > { %v12323_v8 = vpop.eup %12322  ;;  %v8548_v60 = vmul.f32 %v12321_v33, %v8544_v5  ;;  %v8746_v14 = vpop.permute.xlu0 %8745 }
 0xd53   : > { %v12325_v12 = vpop.eup %12324  ;;  %v8545_v15 = vmul.f32 %v12323_v8, %v8529_v11  ;;  %v8553_v17 = vsel %vm8549_vm10, %v8546_v22, 0.0 }
 0xd54   : > { %v8547_v61 = vmul.f32 %v12325_v12, %v8540_v62  ;;  %v8554_v50 = vsel %vm8549_vm10, %v8548_v60, 0.0  ;;  %v8753_v12 = vpop.permute.xlu1 %8752 }
 0xd55   : > { %v8550_v42 = vsel %vm8549_vm10, %v8545_v15, 0.0  ;;  %v8555_v63 = vadd.f32 %v8554_v50, %v8553_v17 }
 0xd56   : > { %v8551_v44 = vsel %vm8549_vm10, %v8547_v61, 0.0  ;;  %v8757_v19 = vpop.permute.xlu0 %8756 }
 0xd57   : > { %v8552_v52 = vadd.f32 %v8551_v44, %v8550_v42  ;;  %v8569_v46 = vmul.f32 %v8566_v31, %v8555_v63 }
 0xd58   : > { %v8872_v44 = vpop.permute.xlu1 %8871 }
 0xd59   : > { %v8568_v20 = vmul.f32 %v8561_v40, %v8552_v52  ;;  %v8583_v4 = vadd.f32 %v8580_v55, %v8569_v46 }
 0xd5a   : > { %v8876_v42 = vpop.permute.xlu0 %8875 }
 0xd5b   : > { %v8582_v16 = vadd.f32 %v8575_v45, %v8568_v20  ;;  %v10912_v35 = vmul.f32 -1.442695, %v8583_v4 }
 0xd5d   : > { %v10911_v54 = vmul.f32 -1.442695, %v8582_v16  ;;  %12326 = vpow2.f32 %v10912_v35  ;;  %v8883_v35 = vpop.permute.xlu1 %8882 }
 0xd5e   : > { %v8887_v55 = vpop.permute.xlu0 %8886 }
 0xd5f   : > { %12328 = vpow2.f32 %v10911_v54 }
 0xd67   : > { %v12327_v51 = vpop.eup %12326 }
 0xd68   : > { %v8591_v26 = vadd.f32 1.0, %v12327_v51 }
 0xd69   : > { %v12329_v3 = vpop.eup %12328 }
 0xd6a   : > { %v8590_v28 = vadd.f32 1.0, %v12329_v3  ;;  %12330 = vrcp.f32 %v8591_v26 }
 0xd6c   : > { %12332 = vrcp.f32 %v8590_v28 }
 0xd74   : > { %v12331_v37 = vpop.eup %12330 }
 0xd76   : > { %v12333_v21 = vpop.eup %12332 }
 0xe12   : > { %v11374_v41 = vpop.f32.mrb[14].mxu1 }
 0xe13   : > { %v8692_v10 = vmul.f32 %v11374_v41, %v8689_v0  ;;  %v8670_v24 = vpop.f32.mrb[15].mxu1  ;;  %v8838_v0 = vpop.permute.xlu0 %8837 }
 0xe14   : > { %v8691_v59 = vmul.f32 %v8684_v9, %v8670_v24  ;;  %v8834_v9 = vpop.permute.xlu1 %8833 }
 0xe15   : > { %v8706_v58 = vadd.f32 %v8703_v36, %v8692_v10 }
 0xe16   : > { %v8705_v48 = vadd.f32 %v8698_v38, %v8691_v59 }
 0xe17   : > { %v8708_v7 = vadd.f32 %v12331_v37, %v8706_v58  ;;  %v8849_v36 = vpop.permute.xlu0 %8848 }
 0xe18   : > { %v8707_v29 = vadd.f32 %v12333_v21, %v8705_v48  ;;  %v8845_v30 = vpop.permute.xlu1 %8844 }
 0xe19   : > { %v16249_v1 = vmax.f32 %v8708_v7, 0.0 }
 0xe1a   : > { %v16251_v34 = vmax.f32 %v8707_v29, 0.0 }
 0xe1b   : > { %v8792_v27 = vadd.f32 %v8784_v6, %v16249_v1  ;;  %v8794_v53 = vadd.f32 %v8788_v49, %v16249_v1 }
 0xe1c   : > { %v8791_v31 = vadd.f32 %v8784_v6, %v16251_v34  ;;  %v8793_v40 = vadd.f32 %v8788_v49, %v16251_v34 }
 0xe1d   : > { %v8796_v47 = vmul.f32 %v8792_v27, %v8723_v39  ;;  %v8798_v11 = vmul.f32 %v8794_v53, %v8734_v18  ;;  %v8900_v27 = vld [vmem:[#allocation42 + $0x28] sm:$0xff]  ;;  %v8901_v53 = vld [vmem:[#allocation42 + $0x30] sm:$0xff] }
 0xe1e   : > { %v8795_v33 = vmul.f32 %v8791_v31, %v8719_v56  ;;  %v8797_v8 = vmul.f32 %v8793_v40, %v8730_v43  ;;  %v8902_v31 = vld [vmem:[#allocation42 + $0x38] sm:$0xff]  ;;  %v8860_v40 = vld [vmem:[#allocation42] sm:$0xff] }
 0xe1f   : > { %v8800_v5 = vadd.f32 %v8796_v47, %v8746_v14  ;;  %v8802_v62 = vadd.f32 %v8798_v11, %v8757_v19  ;;  %v8861_v47 = vld [vmem:[#allocation42 + $0x8] sm:$0xff]  ;;  %v8862_v11 = vld [vmem:[#allocation42 + $0x10] sm:$0xff]  ;;  %v8863_v19 = vld [vmem:[#allocation42 + $0x18] sm:$0xff] }
 0xe20   : > { %v8799_v22 = vadd.f32 %v8795_v33, %v8742_v13  ;;  %v8801_v60 = vadd.f32 %v8797_v8, %v8753_v12  ;;  %v9177_v33 = vld [vmem:[#allocation51] sm:$0xff]  ;;  %v9178_v8 = vld [vmem:[#allocation51 + $0x8] sm:$0xff] }
 0xe21   : > { %v10917_v15 = vmul.f32 -1.442695, %v8800_v5  ;;  %v10919_v61 = vmul.f32 -1.442695, %v8802_v62  ;;  %v9369_v12 = vld [vmem:[#allocation51 + $0x20] sm:$0xff]  ;;  %v11713_v5 = vpack.c.bf16 %v9178_v8, %v9177_v33  ;;  %v9370_v62 = vld [vmem:[#allocation51 + $0x28] sm:$0xff] }
 0xe22   : > { %v10916_v17 = vmul.f32 -1.442695, %v8799_v22  ;;  %v10918_v50 = vmul.f32 -1.442695, %v8801_v60  ;;  %v11721_v22 = vpack.c.bf16 %v9370_v62, %v9369_v12  ;;  %v9277_v60 = vld [vmem:[#allocation51 + $0x10] sm:$0xff] }
 0xe23   : > { %12334 = vpow2.f32 %v10917_v15  ;;  %11714 = vmatprep.subr.bf16.mxu0 %v11713_v5  ;;  %v9278_v15 = vld [vmem:[#allocation51 + $0x18] sm:$0xff] }
 0xe24   : > { %12336 = vpow2.f32 %v10919_v61  ;;  %11716 = vmatpush3.bf16.msra.mxu0 %v11713_v5  ;;  %v11717_v61 = vpack.c.bf16 %v9278_v15, %v9277_v60  ;;  %v9957_v15 = vld [vmem:[#allocation52 + $0x8] sm:$0xff] }
 0xe25   : > { %12338 = vpow2.f32 %v10916_v17  ;;  %v9109_v17 = vpop.permute.xlu0 %9108 }
 0xe26   : > { %12340 = vpow2.f32 %v10918_v50  ;;  %11718 = vmatprep.subr.bf16.mxu0 %v11717_v61  ;;  %v9104_v50 = vpop.permute.xlu1 %9103 }
 0xe2d   : > { %v12335_v63 = vpop.eup %12334 }
 0xe2e   : > { %v12337_v52 = vpop.eup %12336  ;;  %v8816_v46 = vadd.f32 1.0, %v12335_v63 }
 0xe2f   : > { %v12339_v20 = vpop.eup %12338  ;;  %v8818_v45 = vadd.f32 1.0, %v12337_v52 }
 0xe30   : > { %v12341_v4 = vpop.eup %12340  ;;  %12342 = vrcp.f32 %v8816_v46  ;;  %v8815_v16 = vadd.f32 1.0, %v12339_v20 }
 0xe31   : > { %12344 = vrcp.f32 %v8818_v45  ;;  %v8817_v54 = vadd.f32 1.0, %v12341_v4 }
 0xe32   : > { %12346 = vrcp.f32 %v8815_v16 }
 0xe33   : > { %12348 = vrcp.f32 %v8817_v54 }
 0xe3a   : > { %v12343_v51 = vpop.eup %12342 }
 0xe3b   : > { %v12345_v3 = vpop.eup %12344  ;;  %v8889_v38 = vmul.f32 %v12343_v51, %v8876_v42  ;;  %v8851_v26 = vmul.f32 %v12343_v51, %v8838_v0  ;;  %v9137_v42 = vpop.permute.xlu0 %9136 }
 0xe3c   : > { %v12347_v28 = vpop.eup %12346  ;;  %v8891_v39 = vmul.f32 %v12345_v3, %v8887_v55  ;;  %v8853_v23 = vmul.f32 %v12345_v3, %v8849_v36 }
 0xe3d   : > { %v12349_v56 = vpop.eup %12348  ;;  %v8888_v18 = vmul.f32 %v12347_v28, %v8872_v44  ;;  %v8895_v41 = vsel %vm8549_vm10, %v8889_v38, 0.0  ;;  %v8850_v43 = vmul.f32 %v12347_v28, %v8834_v9  ;;  %v8857_v10 = vsel %vm8549_vm10, %v8851_v26, 0.0  ;;  %v9132_v44 = vpop.permute.xlu1 %9131 }
 0xe3e   : > { %v8890_v57 = vmul.f32 %v12349_v56, %v8883_v35  ;;  %v8896_v32 = vsel %vm8549_vm10, %v8891_v39, 0.0  ;;  %v8852_v24 = vmul.f32 %v12349_v56, %v8845_v30  ;;  %v8858_v59 = vsel %vm8549_vm10, %v8853_v23, 0.0 }
 0xe3f   : > { %v8892_v58 = vsel %vm8549_vm10, %v8888_v18, 0.0  ;;  %v8897_v37 = vadd.f32 %v8896_v32, %v8895_v41  ;;  %v8854_v48 = vsel %vm8549_vm10, %v8850_v43, 0.0  ;;  %v8859_v14 = vadd.f32 %v8858_v59, %v8857_v10  ;;  %v9119_v63 = vpop.permute.xlu0 %9118  ;;  %v9462_v59 = vld [vmem:[#allocation51 + $0x38] sm:$0xff] }
 0xe40   : > { %v8893_v21 = vsel %vm8549_vm10, %v8890_v57, 0.0  ;;  %v8855_v7 = vsel %vm8549_vm10, %v8852_v24, 0.0  ;;  %v9461_v24 = vld [vmem:[#allocation51 + $0x30] sm:$0xff] }
 0xe41   : > { %v8894_v6 = vadd.f32 %v8893_v21, %v8892_v58  ;;  %v8856_v49 = vadd.f32 %v8855_v7, %v8854_v48  ;;  %v9114_v46 = vpop.permute.xlu1 %9113 }
 0xe43   : > { %v11705_v29 = vpack.c.bf16 %v8897_v37, %v8894_v6  ;;  %v11709_v13 = vpack.c.bf16 %v8859_v14, %v8856_v49  ;;  %v9147_v51 = vpop.permute.xlu0 %9146  ;;  %v11725_v37 = vpack.c.bf16 %v9462_v59, %v9461_v24  ;;  %v9956_v6 = vld [vmem:[#allocation52] sm:$0xff] }
 0xe45   : > { %11706 = vmatprep.subr.bf16.mxu1 %v11705_v29  ;;  %v9142_v38 = vpop.permute.xlu1 %9141 }
 0xe46   : > { %11708 = vmatpush3.bf16.msra.mxu1 %v11705_v29 }
 0xe47   : > { %11710 = vmatprep.subr.bf16.mxu1 %v11709_v13 }
 0xe49   : > { %11380 = vmatmul.mubr.msk.f32.vlgmr.msra.gmra.mrb[16].mxu1 %vm8549_vm10, %v8900_v27 }
 0xe4a   : > { %11712 = vmatpush3.bf16.msra.mxu1 %v11709_v13  ;;  %11382 = vmatprep.mubr.msk.f32.mxu1 %vm8549_vm10, %v8901_v53 }
 0xe4b   : > { %11722 = vmatprep.subr.bf16.mxu1 %v11721_v22 }
 0xe4d   : > { %11383 = vmatmul.mubr.msk.f32.gmra.mrb[18].mxu1 %vm8549_vm10, %v8902_v31 }
 0xe4e   : > { %11389 = vmatprep.mubr.msk.f32.mxu1 %vm8549_vm10, %v8860_v40 }
 0xe51   : > { %11390 = vmatmul.mubr.msk.f32.vlgmr.msra.gmra.mrb[16].mxu1 %vm8549_vm10, %v8861_v47 }
 0xe52   : > { %11392 = vmatprep.mubr.msk.f32.mxu1 %vm8549_vm10, %v8862_v11  ;;  %11724 = vmatpush3.bf16.msra.mxu1 %v11721_v22 }
 0xe53   : > { %11730 = vmatprep.subr.bf16.mxu1 %v11713_v5 }
 0xe55   : > { %11393 = vmatmul.mubr.msk.f32.gmra.mrb[18].mxu1 %vm8549_vm10, %v8863_v19 }
 0xf24   : > { %v11391_v52 = vpop.f32.mrb[16].mxu1 }
 0xf25   : > { %v9122_v20 = vmul.f32 %v11391_v52, %v9109_v17  ;;  %v9078_v55 = vpop.f32.mrb[17].mxu1  ;;  %v9958_v17 = vld [vmem:[#allocation52 + $0x10] sm:$0xff] }
 0xf26   : > { %v9121_v45 = vmul.f32 %v9104_v50, %v9078_v55 }
 0xf27   : > { %v9150_v4 = vadd.f32 %v9137_v42, %v9122_v20 }
 0xf28   : > { %v9149_v16 = vadd.f32 %v9132_v44, %v9121_v45  ;;  %v11394_v35 = vpop.f32.mrb[18].mxu1 }
 0xf29   : > { %v10929_v54 = vmul.f32 -1.442695, %v9150_v4  ;;  %v9124_v0 = vmul.f32 %v11394_v35, %v9119_v63  ;;  %v9088_v9 = vpop.f32.mrb[19].mxu1  ;;  %v9645_v35 = vpop.permute.xlu0 %9644 }
 0xf2a   : > { %v10928_v3 = vmul.f32 -1.442695, %v9149_v16  ;;  %v9123_v36 = vmul.f32 %v9114_v46, %v9088_v9  ;;  %v9959_v46 = vld [vmem:[#allocation52 + $0x18] sm:$0xff] }
 0xf2b   : > { %12350 = vpow2.f32 %v10929_v54  ;;  %v9152_v26 = vadd.f32 %v9147_v51, %v9124_v0  ;;  %v9641_v54 = vpop.permute.xlu1 %9640 }
 0xf2c   : > { %12352 = vpow2.f32 %v10928_v3  ;;  %v9151_v28 = vadd.f32 %v9142_v38, %v9123_v36 }
 0xf2d   : > { %v10931_v39 = vmul.f32 -1.442695, %v9152_v26  ;;  %v9664_v0 = vpop.permute.xlu0 %9663  ;;  %v10950_v26 = vld.sshfl [vmem:[#allocation46] sm:$0x11 pattern:$0x75316420] }
 0xf2e   : > { %v10930_v23 = vmul.f32 -1.442695, %v9151_v28  ;;  %v9720_v28 = vcombine.high %v10950_v26, %v10950_v26 }
 0xf2f   : > { %12354 = vpow2.f32 %v10931_v39  ;;  %v9660_v9 = vpop.permute.xlu1 %9659 }
 0xf30   : > { %12356 = vpow2.f32 %v10930_v23 }
 0xf31   : > { %v9684_v51 = vpop.permute.xlu0 %9683 }
 0xf33   : > { %v9680_v3 = vpop.permute.xlu1 %9679 }
 0xf35   : > { %v12351_v56 = vpop.eup %12350  ;;  %v9703_v36 = vpop.permute.xlu0 %9702 }
 0xf36   : > { %v12353_v30 = vpop.eup %12352  ;;  %v9166_v18 = vadd.f32 1.0, %v12351_v56  ;;  %v9727_v56 = vrot.slane %v10950_v26, %v16676_v25 }
 0xf37   : > { %v9165_v41 = vadd.f32 1.0, %v12353_v30  ;;  %v9699_v38 = vpop.permute.xlu1 %9698  ;;  %v9734_v30 = vrot.slane %v9720_v28, %v16676_v25 }
 0xf39   : > { %v12355_v43 = vpop.eup %12354  ;;  %12358 = vrcp.f32 %v9165_v41  ;;  %v9653_v39 = vpop.permute.xlu0 %9652 }
 0xf3a   : > { %v12357_v10 = vpop.eup %12356  ;;  %12360 = vrcp.f32 %v9166_v18  ;;  %v9168_v57 = vadd.f32 1.0, %v12355_v43  ;;  %v9738_v18 = vrot.slane %v9727_v56, %v14410_v2  ;;  %v9742_v43 = vrot.slane %v9734_v30, %v14410_v2 }
 0xf3b   : > { %v9167_v32 = vadd.f32 1.0, %v12357_v10  ;;  %v9649_v23 = vpop.permute.xlu1 %9648 }
 0xf3d   : > { %12362 = vrcp.f32 %v9167_v32  ;;  %v9672_v41 = vpop.permute.xlu0 %9671 }
 0xf3e   : > { %12364 = vrcp.f32 %v9168_v57 }
 0xf3f   : > { %v9668_v10 = vpop.permute.xlu1 %9667 }
 0xf41   : > { %v9692_v59 = vpop.permute.xlu0 %9691 }
 0xf43   : > { %v12359_v58 = vpop.eup %12358 }
 0xf44   : > { %v12361_v48 = vpop.eup %12360  ;;  %11399 = vmatprep.mubr.msk.f32.mxu0 %vm8549_vm10, %v12359_v58  ;;  %11419 = vmatprep.mubr.msk.f32.mxu1 %vm8549_vm10, %v12359_v58 }
 0xf45   : > { %11400 = vmatmul.mubr.msk.f32.vlgmr.msra.gmra.mrb[18].mxu0 %vm8549_vm10, %v12361_v48  ;;  %11420 = vmatmul.mubr.msk.f32.vlgmr.msra.gmra.mrb[20].mxu1 %vm8549_vm10, %v12361_v48 }
 0xf46   : > { %11720 = vmatpush3.bf16.msra.mxu0 %v11717_v61  ;;  %11732 = vmatpush3.bf16.msra.mxu1 %v11713_v5 }
 0xf47   : > { %v12363_v21 = vpop.eup %12362  ;;  %11726 = vmatprep.subr.bf16.mxu0 %v11725_v37 }
 0xf48   : > { %v12365_v7 = vpop.eup %12364  ;;  %11402 = vmatprep.mubr.msk.f32.mxu0 %vm8549_vm10, %v12363_v21  ;;  %11422 = vmatprep.mubr.msk.f32.mxu1 %vm8549_vm10, %v12363_v21 }
 0xf49   : > { %11403 = vmatmul.mubr.msk.f32.gmra.mrb[20].mxu0 %vm8549_vm10, %v12365_v7  ;;  %11423 = vmatmul.mubr.msk.f32.gmra.mrb[22].mxu1 %vm8549_vm10, %v12365_v7 }
 0xf4a   : > { %11409 = vmatprep.mubr.msk.f32.mxu0 %vm8549_vm10, %v12359_v58  ;;  %11439 = vmatprep.mubr.msk.f32.mxu1 %vm8549_vm10, %v16251_v34 }
 0xf4d   : > { %11410 = vmatmul.mubr.msk.f32.vlgmr.msra.gmra.mrb[22].mxu0 %vm8549_vm10, %v12361_v48  ;;  %11440 = vmatmul.mubr.msk.f32.vlgmr.msra.gmra.mrb[24].mxu1 %vm8549_vm10, %v16249_v1 }
 0xf4e   : > { %11412 = vmatprep.mubr.msk.f32.mxu0 %vm8549_vm10, %v12363_v21  ;;  %11728 = vmatpush3.bf16.msra.mxu0 %v11725_v37  ;;  %v9688_v37 = vpop.permute.xlu1 %9687 }
 0xf4f   : > { %11446 = vmatprep.mubr.msk.f32.mxu1 %vm8549_vm10, %v9956_v6 }
 0xf51   : > { %11413 = vmatmul.mubr.msk.f32.gmra.mrb[24].mxu0 %vm8549_vm10, %v12365_v7 }
 0xf52   : > { %11429 = vmatprep.mubr.msk.f32.mxu0 %vm8549_vm10, %v12359_v58 }
 0xf55   : > { %11430 = vmatmul.mubr.msk.f32.vlgmr.msra.gmra.mrb[26].mxu0 %vm8549_vm10, %v12361_v48 }
 0xf56   : > { %11432 = vmatprep.mubr.msk.f32.mxu0 %vm8549_vm10, %v12363_v21 }
 0xf59   : > { %11433 = vmatmul.mubr.msk.f32.gmra.mrb[28].mxu0 %vm8549_vm10, %v12365_v7 }
0x1018   : > { %v11401_v34 = vpop.f32.mrb[18].mxu0  ;;  %v11421_v49 = vpop.f32.mrb[20].mxu1 }
0x1019   : > { %v9257_v14 = vpop.f32.mrb[19].mxu0  ;;  %v9437_v1 = vpop.f32.mrb[21].mxu1 }
0x101c   : > { %v11404_v29 = vpop.f32.mrb[20].mxu0  ;;  %v11424_v13 = vpop.f32.mrb[22].mxu1 }
0x101d   : > { %v9267_v27 = vpop.f32.mrb[21].mxu0  ;;  %v9447_v53 = vpop.f32.mrb[23].mxu1 }
0x1020   : > { %v11411_v31 = vpop.f32.mrb[22].mxu0  ;;  %v11441_v40 = vpop.f32.mrb[24].mxu1 }
0x1021   : > { %v9365_v47 = vmax.f32 %v11401_v34, %v11411_v31  ;;  %v9345_v11 = vpop.f32.mrb[23].mxu0  ;;  %v9624_v19 = vpop.f32.mrb[25].mxu1 }
0x1022   : > { %v9364_v33 = vmax.f32 %v9257_v14, %v9345_v11  ;;  %v11733_v8 = vpack.c.bf16 %v11441_v40, %v9624_v19 }
0x1023   : > { %v9457_v12 = vmax.f32 %v9365_v47, %v11421_v49 }
0x1024   : > { %v11414_v5 = vpop.f32.mrb[24].mxu0  ;;  %11734 = vmatprep.subr.bf16.mxu1 %v11733_v8  ;;  %v9456_v62 = vmax.f32 %v9364_v33, %v9437_v1 }
0x1025   : > { %v9367_v22 = vmax.f32 %v11404_v29, %v11414_v5  ;;  %v9355_v60 = vpop.f32.mrb[25].mxu0  ;;  %11736 = vmatpush3.bf16.msra.mxu1 %v11733_v8 }
0x1026   : > { %v9366_v61 = vmax.f32 %v9267_v27, %v9355_v60 }
0x1027   : > { %v9459_v50 = vmax.f32 %v9367_v22, %v11424_v13  ;;  %v9711_v13 = vpop.permute.xlu0 %9710 }
0x1028   : > { %v11431_v42 = vpop.f32.mrb[26].mxu0  ;;  %11447 = vmatmul.mubr.msk.f32.vlgmr.msra.gmra.mrb[26].mxu1 %vm8549_vm10, %v9957_v15  ;;  %v9458_v44 = vmax.f32 %v9366_v61, %v9447_v53  ;;  %v9707_v53 = vpop.permute.xlu1 %9706 }
0x1029   : > { %v9549_v63 = vmax.f32 %v9457_v12, %v11431_v42  ;;  %v9529_v52 = vpop.f32.mrb[27].mxu0  ;;  %11449 = vmatprep.mubr.msk.f32.mxu1 %vm8549_vm10, %v9958_v17 }
0x102a   : > { %v9548_v20 = vmax.f32 %v9456_v62, %v9529_v52 }
0x102b   : > { %v9746_v57 = vadd.f32 %v9738_v18, %v9549_v63  ;;  %v9750_v32 = vadd.f32 %v9742_v43, %v9549_v63  ;;  %v16300_v22 = vpop.permute.xlu0 %9887 }
0x102c   : > { %v11434_v55 = vpop.f32.mrb[28].mxu0  ;;  %11450 = vmatmul.mubr.msk.f32.gmra.mrb[28].mxu1 %vm8549_vm10, %v9959_v46  ;;  %v9745_v24 = vadd.f32 %v9738_v18, %v9548_v20  ;;  %v9749_v58 = vadd.f32 %v9742_v43, %v9548_v20  ;;  %v16302_v61 = vpop.permute.xlu1 %9882 }
0x102d   : > { %v9551_v45 = vmax.f32 %v9459_v50, %v11434_v55  ;;  %v9539_v4 = vpop.f32.mrb[29].mxu0  ;;  %v9754_v48 = vmul.f32 %v9746_v57, %v9645_v35  ;;  %v9758_v7 = vmul.f32 %v9750_v32, %v9664_v0 }
0x102e   : > { %v9550_v16 = vmax.f32 %v9458_v44, %v9539_v4  ;;  %v9753_v34 = vmul.f32 %v9745_v24, %v9641_v54  ;;  %v9757_v14 = vmul.f32 %v9749_v58, %v9660_v9 }
0x102f   : > { %v9748_v21 = vadd.f32 %v9738_v18, %v9551_v45  ;;  %v9752_v6 = vadd.f32 %v9742_v43, %v9551_v45  ;;  %v9762_v1 = vadd.f32 %v9754_v48, %v9684_v51  ;;  %v9766_v27 = vadd.f32 %v9758_v7, %v9703_v36  ;;  %v9828_v63 = vpop.permute.xlu0 %9827 }
0x1030   : > { %v9747_v49 = vadd.f32 %v9738_v18, %v9550_v16  ;;  %v9751_v25 = vadd.f32 %v9742_v43, %v9550_v16  ;;  %v9761_v31 = vadd.f32 %v9753_v34, %v9680_v3  ;;  %v9765_v47 = vadd.f32 %v9757_v14, %v9699_v38  ;;  %v9824_v52 = vpop.permute.xlu1 %9823 }
0x1031   : > { %v9756_v29 = vmul.f32 %v9748_v21, %v9653_v39  ;;  %v9760_v2 = vmul.f32 %v9752_v6, %v9672_v41  ;;  %v10952_v19 = vmul.f32 -1.442695, %v9762_v1  ;;  %v10956_v8 = vmul.f32 -1.442695, %v9766_v27 }
0x1032   : > { %v9755_v40 = vmul.f32 %v9747_v49, %v9649_v23  ;;  %v9759_v11 = vmul.f32 %v9751_v25, %v9668_v10  ;;  %v10951_v5 = vmul.f32 -1.442695, %v9761_v31  ;;  %v10955_v60 = vmul.f32 -1.442695, %v9765_v47 }
0x1033   : > { %v9764_v33 = vadd.f32 %v9756_v29, %v9692_v59  ;;  %v9768_v12 = vadd.f32 %v9760_v2, %v9711_v13  ;;  %12366 = vpow2.f32 %v10952_v19  ;;  %v9847_v55 = vpop.permute.xlu0 %9846 }
0x1034   : > { %v9763_v62 = vadd.f32 %v9755_v40, %v9688_v37  ;;  %v9767_v15 = vadd.f32 %v9759_v11, %v9707_v53  ;;  %12368 = vpow2.f32 %v10956_v8  ;;  %v9843_v4 = vpop.permute.xlu1 %9842 }
0x1035   : > { %v10954_v17 = vmul.f32 -1.442695, %v9764_v33  ;;  %v10958_v50 = vmul.f32 -1.442695, %v9768_v12  ;;  %12370 = vpow2.f32 %v10951_v5 }
0x1036   : > { %v10953_v42 = vmul.f32 -1.442695, %v9763_v62  ;;  %12372 = vpow2.f32 %v10955_v60  ;;  %v10957_v44 = vmul.f32 -1.442695, %v9767_v15 }
0x1037   : > { %12374 = vpow2.f32 %v10954_v17  ;;  %v9916_v26 = vpop.permute.xlu0 %9915 }
0x1038   : > { %12376 = vpow2.f32 %v10958_v50  ;;  %v9911_v39 = vpop.permute.xlu1 %9910 }
0x1039   : > { %12378 = vpow2.f32 %v10953_v42 }
0x103a   : > { %12380 = vpow2.f32 %v10957_v44 }
0x103b   : > { %v9898_v18 = vpop.permute.xlu0 %9897 }
0x103c   : > { %v9893_v41 = vpop.permute.xlu1 %9892 }
0x103d   : > { %v12367_v46 = vpop.eup %12366 }
0x103e   : > { %v12369_v20 = vpop.eup %12368  ;;  %v9794_v35 = vadd.f32 1.0, %v12367_v46 }
0x103f   : > { %v12371_v45 = vpop.eup %12370  ;;  %v9798_v0 = vadd.f32 1.0, %v12369_v20  ;;  %v9836_v32 = vpop.permute.xlu0 %9835 }
0x1040   : > { %v12373_v16 = vpop.eup %12372  ;;  %v9793_v51 = vadd.f32 1.0, %v12371_v45  ;;  %12382 = vrcp.f32 %v9794_v35  ;;  %v9832_v59 = vpop.permute.xlu1 %9831 }
0x1041   : > { %v12375_v54 = vpop.eup %12374  ;;  %v9797_v36 = vadd.f32 1.0, %v12373_v16  ;;  %12384 = vrcp.f32 %v9798_v0 }
0x1042   : > { %v12377_v9 = vpop.eup %12376  ;;  %v9796_v28 = vadd.f32 1.0, %v12375_v54  ;;  %12386 = vrcp.f32 %v9793_v51 }
0x1043   : > { %v12379_v3 = vpop.eup %12378  ;;  %v9800_v23 = vadd.f32 1.0, %v12377_v9  ;;  %12388 = vrcp.f32 %v9797_v36  ;;  %v9855_v14 = vpop.permute.xlu0 %9854 }
0x1044   : > { %v12381_v38 = vpop.eup %12380  ;;  %v9795_v56 = vadd.f32 1.0, %v12379_v3  ;;  %12390 = vrcp.f32 %v9796_v28  ;;  %v9851_v25 = vpop.permute.xlu1 %9850 }
0x1045   : > { %v9799_v30 = vadd.f32 1.0, %v12381_v38  ;;  %12392 = vrcp.f32 %v9800_v23 }
0x1046   : > { %12394 = vrcp.f32 %v9795_v56 }
0x1047   : > { %12396 = vrcp.f32 %v9799_v30 }
0x104a   : > { %v12383_v43 = vpop.eup %12382 }
0x104b   : > { %v12385_v10 = vpop.eup %12384  ;;  %v9857_v48 = vmul.f32 %v12383_v43, %v9828_v63  ;;  %v9926_v63 = vpop.permute.xlu0 %9925 }
0x104c   : > { %v12387_v57 = vpop.eup %12386  ;;  %v9861_v21 = vmul.f32 %v12385_v10, %v9847_v55 }
0x104d   : > { %v12389_v24 = vpop.eup %12388  ;;  %v9856_v6 = vmul.f32 %v12387_v57, %v9824_v52  ;;  %v9867_v1 = vsel %vm6766_vm6, %v9857_v48, 0.0  ;;  %v9921_v52 = vpop.permute.xlu1 %9920 }
0x104e   : > { %v12391_v58 = vpop.eup %12390  ;;  %v9860_v34 = vmul.f32 %v12389_v24, %v9843_v4  ;;  %v9868_v29 = vsel %vm6766_vm6, %v9861_v21, 0.0 }
0x104f   : > { %v12393_v37 = vpop.eup %12392  ;;  %v9859_v13 = vmul.f32 %v12391_v58, %v9836_v32  ;;  %v9864_v2 = vsel %vm6766_vm6, %v9856_v6, 0.0  ;;  %v9869_v47 = vadd.f32 %v9868_v29, %v9867_v1 }
0x1050   : > { %v12395_v7 = vpop.eup %12394  ;;  %v9863_v27 = vmul.f32 %v12393_v37, %v9855_v14  ;;  %v9865_v53 = vsel %vm6766_vm6, %v9860_v34, 0.0 }
0x1051   : > { %v12397_v49 = vpop.eup %12396  ;;  %v9858_v31 = vmul.f32 %v12395_v7, %v9832_v59  ;;  %v9873_v11 = vsel %vm6766_vm6, %v9859_v13, 0.0  ;;  %v9866_v33 = vadd.f32 %v9865_v53, %v9864_v2  ;;  %v9901_v5 = vmul.f32 %v16300_v22, %v9869_v47  ;;  %v10064_v54 = vpop.permute.xlu1 %10063 }
0x1052   : > { %v9862_v40 = vmul.f32 %v12397_v49, %v9851_v25  ;;  %v9874_v19 = vsel %vm6766_vm6, %v9863_v27, 0.0 }
0x1053   : > { %v9870_v8 = vsel %vm6766_vm6, %v9858_v31, 0.0  ;;  %v9875_v62 = vadd.f32 %v9874_v19, %v9873_v11  ;;  %v9900_v60 = vmul.f32 %v16302_v61, %v9866_v33  ;;  %v9929_v17 = vadd.f32 %v9916_v26, %v9901_v5  ;;  %v10069_v61 = vpop.permute.xlu0 %10068  ;;  %v10138_v19 = vld [vmem:[#allocation4] sm:$0xff] }
0x1054   : > { %v9871_v12 = vsel %vm6766_vm6, %v9862_v40, 0.0  ;;  %11460 = vmatprep.mubr.msk.f32.mxu0 %vm10142_vm11, %v10138_v19 }
0x1055   : > { %v9872_v15 = vadd.f32 %v9871_v12, %v9870_v8  ;;  %v9903_v50 = vmul.f32 %v9898_v18, %v9875_v62  ;;  %v9928_v42 = vadd.f32 %v9911_v39, %v9900_v60  ;;  %v10960_v46 = vmul.f32 -1.442695, %v9929_v17  ;;  %v10092_v26 = vpop.permute.xlu1 %10091 }
0x1057   : > { %v9902_v44 = vmul.f32 %v9893_v41, %v9872_v15  ;;  %v9931_v20 = vadd.f32 %v9926_v63, %v9903_v50  ;;  %v10959_v55 = vmul.f32 -1.442695, %v9928_v42  ;;  %12398 = vpow2.f32 %v10960_v46  ;;  %v10097_v36 = vpop.permute.xlu0 %10096  ;;  %v10141_v63 = vld [vmem:[#allocation2 + $0x8] sm:$0x3] }
0x1059   : > { %v9930_v45 = vadd.f32 %v9921_v52, %v9902_v44  ;;  %v10962_v4 = vmul.f32 -1.442695, %v9931_v20  ;;  %12400 = vpow2.f32 %v10959_v55  ;;  %v10074_v56 = vpop.permute.xlu1 %10073  ;;  %v10139_v44 = vld [vmem:[#allocation4 + $0x8] sm:$0x3]  ;;  %v10140_v52 = vld [vmem:[#allocation2] sm:$0xff] }
0x105b   : > { %v10961_v16 = vmul.f32 -1.442695, %v9930_v45  ;;  %12402 = vpow2.f32 %v10962_v4  ;;  %v10079_v39 = vpop.permute.xlu0 %10078 }
0x105d   : > { %12404 = vpow2.f32 %v10961_v16  ;;  %v10102_v6 = vpop.permute.xlu1 %10101 }
0x105f   : > { %v10107_v48 = vpop.permute.xlu0 %10106 }
0x1061   : > { %v12399_v22 = vpop.eup %12398 }
0x1062   : > { %v9945_v0 = vadd.f32 1.0, %v12399_v22 }
0x1063   : > { %v12401_v35 = vpop.eup %12400 }
0x1064   : > { %v9944_v51 = vadd.f32 1.0, %v12401_v35  ;;  %12406 = vrcp.f32 %v9945_v0 }
0x1065   : > { %v12403_v9 = vpop.eup %12402 }
0x1066   : > { %v9947_v38 = vadd.f32 1.0, %v12403_v9  ;;  %12408 = vrcp.f32 %v9944_v51 }
0x1067   : > { %v12405_v3 = vpop.eup %12404 }
0x1068   : > { %v9946_v28 = vadd.f32 1.0, %v12405_v3  ;;  %12410 = vrcp.f32 %v9947_v38 }
0x106a   : > { %12412 = vrcp.f32 %v9946_v28 }
0x106e   : > { %v12407_v10 = vpop.eup %12406 }
0x1070   : > { %v12409_v24 = vpop.eup %12408 }
0x1072   : > { %v12411_v14 = vpop.eup %12410 }
0x1074   : > { %v12413_v29 = vpop.eup %12412 }
0x10fb   : > { %v11448_v23 = vpop.f32.mrb[26].mxu1 }
0x10fc   : > { %v10082_v30 = vmul.f32 %v11448_v23, %v10069_v61  ;;  %v10038_v18 = vpop.f32.mrb[27].mxu1 }
0x10fd   : > { %v10081_v41 = vmul.f32 %v10064_v54, %v10038_v18 }
0x10fe   : > { %v10110_v43 = vadd.f32 %v10097_v36, %v10082_v30 }
0x10ff   : > { %v10109_v57 = vadd.f32 %v10092_v26, %v10081_v41  ;;  %v11451_v32 = vpop.f32.mrb[28].mxu1 }
0x1100   : > { %v10084_v59 = vmul.f32 %v11451_v32, %v10079_v39  ;;  %v10048_v58 = vpop.f32.mrb[29].mxu1  ;;  %v10114_v37 = vadd.f32 %v12407_v10, %v10110_v43 }
0x1101   : > { %v10083_v21 = vmul.f32 %v10074_v56, %v10048_v58  ;;  %v10113_v7 = vadd.f32 %v12409_v24, %v10109_v57 }
0x1102   : > { %v10112_v34 = vadd.f32 %v10107_v48, %v10084_v59  ;;  %v10118_v49 = vmax.f32 %v10114_v37, 0.0 }
0x1103   : > { %v10111_v25 = vadd.f32 %v10102_v6, %v10083_v21  ;;  %v10117_v1 = vmax.f32 %v10113_v7, 0.0 }
0x1104   : > { %v10124_v13 = vsel %vm6766_vm6, %v10118_v49, 0.0  ;;  %v10116_v27 = vadd.f32 %v12411_v14, %v10112_v34 }
0x1105   : > { %10125 = vadd.xlane.f32.xlu0 %v10124_v13  ;;  %v10121_v2 = vsel %vm6766_vm6, %v10117_v1, 0.0  ;;  %v10115_v53 = vadd.f32 %v12413_v29, %v10111_v25 }
0x1106   : > { %10122 = vadd.xlane.f32.xlu1 %v10121_v2  ;;  %v10120_v31 = vmax.f32 %v10116_v27, 0.0 }
0x1107   : > { %v10119_v40 = vmax.f32 %v10115_v53, 0.0 }
0x1108   : > { %v10130_v47 = vsel %vm6766_vm6, %v10120_v31, 0.0 }
0x1109   : > { %v10127_v11 = vsel %vm6766_vm6, %v10119_v40, 0.0 }
0x110a   : > { %10131 = vadd.xlane.f32.xlu1 %v10130_v47  ;;  %10128 = vadd.xlane.f32.xlu0 %v10127_v11 }
0x1192   : > { %v10126_v33 = vpop.xlane.xlu0 %10125 }
0x1193   : > { %v10135_v8 = vmul.f32 0.25, %v10126_v33  ;;  %v10123_v12 = vpop.xlane.xlu1 %10122 }
0x1194   : > { %v10134_v5 = vmul.f32 0.25, %v10123_v12 }
0x1196   : > { %v11737_v62 = vpack.c.bf16 %v10135_v8, %v10134_v5 }
0x1197   : > { %v10132_v60 = vpop.xlane.xlu1 %10131  ;;  %v10129_v15 = vpop.xlane.xlu0 %10128 }
0x1198   : > { %v10137_v17 = vmul.f32 0.25, %v10132_v60  ;;  %v10136_v50 = vmul.f32 0.25, %v10129_v15  ;;  %11738 = vmatprep.subr.bf16.mxu0 %v11737_v62 }
0x1199   : > { %11740 = vmatpush3.bf16.msra.mxu0 %v11737_v62 }
0x119a   : > { %v11741_v42 = vpack.c.bf16 %v10137_v17, %v10136_v50 }
0x119c   : > { %11742 = vmatprep.subr.bf16.mxu0 %v11741_v42 }
0x119d   : > { %11744 = vmatpush3.bf16.msra.mxu0 %v11741_v42 }
0x11a0   : > { %11461 = vmatmul.mubr.msk.f32.vlgmr.msra.gmra.mrb[30].mxu0 %vm10142_vm11, %v10139_v44 }
0x1273   : > { %v11462_v46 = vpop.f32.mrb[30].mxu0 }
0x1274   : > { %v10221_v20 = vadd.f32 %v11462_v46, %v10141_v63  ;;  %v10215_v55 = vpop.f32.mrb[31].mxu0 }
0x1275   : > { %v10216_v45 = vadd.f32 %v10215_v55, %v10140_v52 }
0x1276   : > { %10227 = vst.msk [vmem:[%s2688_s2 + $0x8] sm:$0x3] %vm10226_vm12, %v10221_v20 }
0x1277   : > { %10225 = vst.msk [vmem:[%s2688_s2] sm:$0xff] %vm10224_vm13, %v10216_v45 }
0x1278 PF: > { %s181_s0 = sadd.s32 1, %s13403_s0  }
0x1279   : > { %p178_p3 = scmp.ge.s32.totalorder %s181_s0, 4  }
0x127b   :  { %180 = sbr.rel (!%p178_p3) target bundleno = 164 (0xa4), region = 592 }
0x1282   :  { %10249 = vsyncpa [#allocation3], 1 }
0x1283   :  { %10251 = vsyncpa [#allocation3 + $0x1], 1 }
0x1284   :  { %10252 = vsyncpa [#allocation5], 1 }
0x1285   :  { %10253 = vsyncpa [#allocation8], 1 }
0x1286   :  { %10254 = vsyncpa [#allocation11], 1 }
0x1287   :  { %10255 = vsyncpa [#allocation14], 1 }
0x1288   :  { %10256 = vsyncpa [#allocation17], 1 }
0x1289   :  { %10257 = vsyncpa [#allocation20], 1 }
0x128a   :  { %10258 = vsyncpa [#allocation23], 1 }
0x128b   :  { %10259 = vsyncpa [#allocation26], 1 }
0x128c   :  { %10260 = vsyncpa [#allocation29], 1 }
0x128d   :  { %10261 = vsyncpa [#allocation32], 1 }
0x128e   :  { %10262 = vsyncpa [#allocation35], 1 }
0x128f   :  { %10263 = vsyncpa [#allocation38], 1 }
0x1290   :  { %10264 = vsyncpa [#allocation41], 1 }
0x1291   :  { %10265 = vsyncpa [#allocation44], 1 }
0x1292   :  { %10266 = vsyncpa [#allocation47], 1 }
0x1293   :  { %10267 = vsyncpa [#allocation50], 1 }
0x1294   :  { %10268 = vsyncpa [#allocation53], 1 }

</bundles_post_ra>
